<compile_context>
chip_gen: v7x
topology: tpu7x:2x2x1
jax: 0.10.0
libtpu: 0.0.40
codegen_flags: <defaults>
</compile_context>

<pallas_src>
import functools

import jax
import jax.numpy as jnp
from jax.experimental import pallas as pl
from jax.experimental.pallas import tpu as pltpu


def _cdiv(a, b):
    return -(-a // b)


def _round_up(a, b):
    return _cdiv(a, b) * b


def _vmem_limit_bytes():
    try:
        cap = int(pltpu.get_tpu_info().vmem_capacity_bytes)
        return max(32 * 1024 * 1024, min(100 * 1024 * 1024, (cap * 3) // 4))
    except Exception:
        return 48 * 1024 * 1024


VMEM_LIMIT = _vmem_limit_bytes()


# ----------------------------------------------------------------------------
# Pallas kernels
# ----------------------------------------------------------------------------
def _even_select(n_in, n_out):
    """(n_in, n_out) f32 matrix with M[2j, j] = 1 (right-multiply gathers the
    even columns; exact since all pooled values are finite)."""
    r = jax.lax.broadcasted_iota(jnp.int32, (n_in, n_out), 0)
    c = jax.lax.broadcasted_iota(jnp.int32, (n_in, n_out), 1)
    return (r == 2 * c).astype(jnp.float32)


def _conv_pool_kernel(x_ref, w_ref, b_ref, o_ref, *, wp, hc, wsp, ho, wo, cin,
                      padded_out):
    """Fused 3x3 conv (stride 1, pad 1) + bias + ReLU + 2x2/2 max-pool.

    Layout: channel planes with the zero-padded spatial grid flattened into
    the lane dimension, so every tap is a contiguous lane-offset slice and all
    intermediates / stores are lane-dense.

      x_ref : (1, cin, hp*wp)   padded input planes (hp = hc + 3, wp = wsp + 2)
      w_ref : (9, cout, cin)    conv weight, tap-major (tap = 3*dh + dw)
      b_ref : (cout, 1)
      o_ref : padded_out -> (1, cout, hp_next, wp_next): zero-bordered planes
              that are directly the next stage's input;  else (1, cout, ho, wo).
    """
    m = hc * wp
    acc = None
    for dh in range(3):
        for dw in range(3):
            k = 3 * dh + dw
            off = dh * wp + dw
            xs = x_ref[0, :, off:off + m]                     # (cin, m)
            if cin == 1:
                d = w_ref[k] * xs                             # VPU broadcast FMA
            else:
                d = jnp.dot(w_ref[k], xs,                     # MXU, lane-dense N
                            preferred_element_type=jnp.float32)
            acc = d if acc is None else acc + d
    acc = jnp.maximum(acc + b_ref[...], 0.0)                  # (cout, m)

    # 2x2 / stride-2 max pool (floor): row-pair max, column-pair max, then a
    # small 0/1 selection matmul per pooled row gathers the even columns.
    rp = jnp.maximum(acc[:, : m - wp], acc[:, wp:])           # rows r, r+1
    cp = jnp.maximum(rp[:, : m - wp - 1], rp[:, 1:])          # cols c, c+1
    sel = _even_select(wsp, wo)

    if padded_out:
        o_ref[...] = jnp.zeros(o_ref.shape, o_ref.dtype)      # zero border
    for i in range(ho):
        row = cp[:, 2 * i * wp: 2 * i * wp + wsp]             # (cout, wsp)
        prow = jnp.dot(row, sel, preferred_element_type=jnp.float32)
        if padded_out:
            o_ref[0, :, i + 1, 1:1 + wo] = prow
        else:
            o_ref[0, :, i, :] = prow


def _dense_kernel(x_ref, w_ref, b_ref, o_ref, *, relu):
    """o = relu?(x @ w + b); x is fed to the MXU in the weight's dtype (bf16
    for fc_map) with f32 accumulation."""
    y = jnp.dot(x_ref[...].astype(w_ref.dtype), w_ref[...],
                preferred_element_type=jnp.float32)
    y = y + b_ref[...]
    if relu:
        y = jnp.maximum(y, 0.0)
    o_ref[...] = y.astype(o_ref.dtype)


def _qheads_kernel(sa_ref, w1_ref, b1_ref, w2_ref, b2_ref, w3_ref, b3_ref,
                   w4_ref, b4_ref, o_ref):
    """Fused 4-layer MLP; grid=(2,) selects the Q head via the BlockSpecs."""
    h = jnp.dot(sa_ref[...], w1_ref[0], preferred_element_type=jnp.float32)
    h = jnp.maximum(h + b1_ref[0], 0.0)
    h = jnp.dot(h, w2_ref[0], preferred_element_type=jnp.float32)
    h = jnp.maximum(h + b2_ref[0], 0.0)
    h = jnp.dot(h, w3_ref[0], preferred_element_type=jnp.float32)
    h = jnp.maximum(h + b3_ref[0], 0.0)
    q = jnp.dot(h, w4_ref[0], preferred_element_type=jnp.float32)
    o_ref[0] = q + b4_ref[0]


# ----------------------------------------------------------------------------
# Pallas wrappers
# ----------------------------------------------------------------------------
def conv3x3_relu_pool(x_planes, w, b, *, h, wsp, out_padded):
    """x_planes: (B, cin, hp*wp) zero-padded planes (hp = 2*(h//2)+3,
    wp = wsp+2).  Returns the next stage's padded planes (out_padded=True)
    or the pooled planes (out_padded=False)."""
    B, cin, hpwp = x_planes.shape
    cout = w.shape[1]
    hc, ho, wo = 2 * (h // 2), h // 2, wsp // 2
    hp, wp = hc + 3, wsp + 2
    assert hpwp == hp * wp, (hpwp, hp, wp)
    if out_padded:
        out_shape = (B, cout, 2 * (ho // 2) + 3, wo + 2)
    else:
        out_shape = (B, cout, ho, wo)

    kern = functools.partial(_conv_pool_kernel, wp=wp, hc=hc, wsp=wsp, ho=ho,
                             wo=wo, cin=cin, padded_out=out_padded)
    return pl.pallas_call(
        kern,
        out_shape=jax.ShapeDtypeStruct(out_shape, jnp.float32),
        grid_spec=pltpu.PrefetchScalarGridSpec(
            num_scalar_prefetch=0,
            grid=(B,),
            in_specs=[
                pl.BlockSpec((1, cin, hpwp), lambda i: (i, 0, 0)),
                pl.BlockSpec((9, cout, cin), lambda i: (0, 0, 0)),
                pl.BlockSpec((cout, 1), lambda i: (0, 0)),
            ],
            out_specs=pl.BlockSpec((1,) + out_shape[1:],
                                   lambda i: (i, 0, 0, 0)),
        ),
        compiler_params=pltpu.CompilerParams(
            dimension_semantics=("parallel",),
            vmem_limit_bytes=VMEM_LIMIT),
    )(x_planes, w, b)


def dense(x, w, b, *, relu, tm=32):
    """x: (M, K) f32; w: (K, N) (bf16 for fc_map); b: (1, N)."""
    M, K = x.shape
    Kw, N = w.shape
    assert Kw == K
    tm = min(tm, M)
    mp = _round_up(M, tm)
    if mp > M:
        x = jnp.pad(x, ((0, mp - M), (0, 0)))
    out = pl.pallas_call(
        functools.partial(_dense_kernel, relu=relu),
        out_shape=jax.ShapeDtypeStruct((mp, N), jnp.float32),
        grid_spec=pltpu.PrefetchScalarGridSpec(
            num_scalar_prefetch=0,
            grid=(mp // tm,),
            in_specs=[
                pl.BlockSpec((tm, K), lambda i: (i, 0)),
                pl.BlockSpec((K, N), lambda i: (0, 0)),
                pl.BlockSpec((1, N), lambda i: (0, 0)),
            ],
            out_specs=pl.BlockSpec((tm, N), lambda i: (i, 0)),
        ),
        compiler_params=pltpu.CompilerParams(
            dimension_semantics=("parallel",),
            vmem_limit_bytes=VMEM_LIMIT),
    )(x, w, b)
    return out[:M]


def q_heads(sa, qp):
    """Both Q heads in one pallas_call (grid over the head axis)."""
    B, D = sa.shape
    hd = qp["w1"].shape[2]
    out = pl.pallas_call(
        _qheads_kernel,
        out_shape=jax.ShapeDtypeStruct((2, B, 1), jnp.float32),
        grid_spec=pltpu.PrefetchScalarGridSpec(
            num_scalar_prefetch=0,
            grid=(2,),
            in_specs=[
                pl.BlockSpec((B, D), lambda i: (0, 0)),
                pl.BlockSpec((1, D, hd), lambda i: (i, 0, 0)),
                pl.BlockSpec((1, 1, hd), lambda i: (i, 0, 0)),
                pl.BlockSpec((1, hd, hd), lambda i: (i, 0, 0)),
                pl.BlockSpec((1, 1, hd), lambda i: (i, 0, 0)),
                pl.BlockSpec((1, hd, hd), lambda i: (i, 0, 0)),
                pl.BlockSpec((1, 1, hd), lambda i: (i, 0, 0)),
                pl.BlockSpec((1, hd, 1), lambda i: (i, 0, 0)),
                pl.BlockSpec((1, 1, 1), lambda i: (i, 0, 0)),
            ],
            out_specs=pl.BlockSpec((1, B, 1), lambda i: (i, 0, 0))),
        compiler_params=pltpu.CompilerParams(
            dimension_semantics=("parallel",),
            vmem_limit_bytes=VMEM_LIMIT),
    )(sa, qp["w1"], qp["b1"], qp["w2"], qp["b2"], qp["w3"], qp["b3"],
      qp["w4"], qp["b4"])
    return out[0], out[1]


# ----------------------------------------------------------------------------
# Parameters (torch-style init values, stored in kernel layouts)
# ----------------------------------------------------------------------------
def _uniform(key, shape, bound):
    return jax.random.uniform(key, shape, jnp.float32, -bound, bound)


def _linear_torch(key, out_dim, in_dim):
    kw, kb = jax.random.split(key)
    s = float(in_dim) ** -0.5
    return _uniform(kw, (out_dim, in_dim), s), _uniform(kb, (out_dim,), s)


def _conv_torch(key, out_c, in_c):
    kw, kb = jax.random.split(key)
    s = float(in_c * 9) ** -0.5
    return _uniform(kw, (out_c, in_c, 3, 3), s), _uniform(kb, (out_c,), s)


def _conv_to_kernel(w, b):
    """torch (Cout, Cin, 3, 3) -> (9, Cout, Cin) tap-major; bias -> (Cout, 1)."""
    co, ci = w.shape[0], w.shape[1]
    return jnp.transpose(w, (2, 3, 0, 1)).reshape(9, co, ci), b.reshape(co, 1)


def init_critic_params(key, state_dim, action_dim, hidden_dim,
                       map_feature_dim, hf, wf):
    keys = jax.random.split(key, 12)
    p = {}
    p["conv1_w"], p["conv1_b"] = _conv_to_kernel(*_conv_torch(keys[0], 16, 1))
    p["conv2_w"], p["conv2_b"] = _conv_to_kernel(*_conv_torch(keys[1], 32, 16))
    p["conv3_w"], p["conv3_b"] = _conv_to_kernel(*_conv_torch(keys[2], 32, 32))

    # fc_map: the conv3 pooled planes are already in torch's NCHW flatten
    # order, so the weight only needs a transpose.  Stored in bf16 (the fc is
    # memory-bound); accumulation stays f32.
    flat_dim = 32 * hf * wf
    wt, bt = _linear_torch(keys[3], map_feature_dim, flat_dim)
    p["fc_map_w"] = jnp.transpose(wt).astype(jnp.bfloat16)
    p["fc_map_b"] = bt.reshape(1, map_feature_dim)

    # Two Q heads: per-layer weights stacked on a leading head axis, (in, out);
    # layer-1's input dim is zero-padded to a multiple of 128 lanes.
    in_dim = state_dim + action_dim
    dpad = _round_up(in_dim, 128)
    dims = [(in_dim, hidden_dim), (hidden_dim, hidden_dim),
            (hidden_dim, hidden_dim), (hidden_dim, 1)]
    q = {}
    for li, (di, do) in enumerate(dims, start=1):
        ws, bs = [], []
        for hh in range(2):
            wt_, bt_ = _linear_torch(keys[4 + 4 * hh + (li - 1)], do, di)
            wk = jnp.transpose(wt_)                     # (in, out)
            if li == 1 and dpad > di:
                wk = jnp.pad(wk, ((0, dpad - di), (0, 0)))
            ws.append(wk)
            bs.append(bt_.reshape(1, do))
        q[f"w{li}"] = jnp.stack(ws)
        q[f"b{li}"] = jnp.stack(bs)
    p["q"] = q
    return p


# ----------------------------------------------------------------------------
# Forward pass (mirrors Critic.forward)
# ----------------------------------------------------------------------------
def critic_forward(params, maps, robot, lidar, action):
    B, _, H, W = maps.shape

    # Layer-1 padded input planes (the only host/XLA-side padding copy in the
    # conv pipeline; layers 2/3 consume the zero-bordered planes written
    # directly by the previous kernel).
    hp1 = 2 * (H // 2) + 3
    xp = jnp.pad(maps, ((0, 0), (0, 0), (1, hp1 - 1 - H), (1, 1)))
    xp = xp.reshape(B, 1, hp1 * (W + 2))

    x = conv3x3_relu_pool(xp, params["conv1_w"], params["conv1_b"],
                          h=H, wsp=W, out_padded=True)
    h2, w2 = H // 2, W // 2
    x = conv3x3_relu_pool(x.reshape(B, x.shape[1], -1), params["conv2_w"],
                          params["conv2_b"], h=h2, wsp=w2, out_padded=True)
    h3, w3 = h2 // 2, w2 // 2
    x = conv3x3_relu_pool(x.reshape(B, x.shape[1], -1), params["conv3_w"],
                          params["conv3_b"], h=h3, wsp=w3, out_padded=False)

    feats = x.reshape(B, -1)         # free reshape, == torch NCHW Flatten
    features = dense(feats, params["fc_map_w"], params["fc_map_b"], relu=True)

    sa = jnp.concatenate([features, robot, lidar, action], axis=1)
    dpad = params["q"]["w1"].shape[1] - sa.shape[1]
    if dpad:
        sa = jnp.pad(sa, ((0, 0), (0, dpad)))
    q1, q2 = q_heads(sa, params["q"])
    return q1, q2


# ----------------------------------------------------------------------------
# Pure-JAX reference (for a correctness cross-check in the demo)
# ----------------------------------------------------------------------------
_HI = jax.lax.Precision.HIGHEST


def critic_forward_ref(params, maps, robot, lidar, action):
    def conv_relu_pool(x, wk, bk):
        cout, cin = wk.shape[1], wk.shape[2]
        wt = wk.reshape(3, 3, cout, cin).transpose(2, 3, 0, 1)   # OIHW
        y = jax.lax.conv_general_dilated(
            x, wt, (1, 1), ((1, 1), (1, 1)),
            dimension_numbers=("NCHW", "OIHW", "NCHW"), precision=_HI)
        y = jnp.maximum(y + bk.reshape(1, cout, 1, 1), 0.0)
        return jax.lax.reduce_window(y, -jnp.inf, jax.lax.max,
                                     (1, 1, 2, 2), (1, 1, 2, 2), "VALID")

    B = maps.shape[0]
    x = conv_relu_pool(maps, params["conv1_w"], params["conv1_b"])
    x = conv_relu_pool(x, params["conv2_w"], params["conv2_b"])
    x = conv_relu_pool(x, params["conv3_w"], params["conv3_b"])
    feats = x.reshape(B, -1)
    fw = params["fc_map_w"].astype(jnp.float32)
    fx = feats.astype(jnp.bfloat16).astype(jnp.float32)   # match kernel feed
    features = jnp.maximum(jnp.dot(fx, fw, precision=_HI)
                           + params["fc_map_b"], 0.0)
    sa = jnp.concatenate([features, robot, lidar, action], axis=1)
    q = params["q"]
    outs = []
    for hh in range(2):
        h = sa
        for li in range(1, 4):
            w = q[f"w{li}"][hh][: h.shape[1]]
            h = jnp.maximum(jnp.dot(h, w, precision=_HI) + q[f"b{li}"][hh], 0.0)
        outs.append(jnp.dot(h, q["w4"][hh], precision=_HI) + q["b4"][hh])
    return outs[0], outs[1]


# ----------------------------------------------------------------------------
# Example run
# ----------------------------------------------------------------------------
if __name__ == "__main__":
    # Small stand-in for the real constants (real: GRID_SIZE=300 -> 301x301
    # map, flat_dim=43808).  Keeps the same "+1, odd" structure so MaxPool's
    # floor behaviour and the ragged padding are exercised.
    GRID_SIZE = 16
    MAP_FEATURE_DIM = 128
    HIDDEN_DIM = 256
    B = 2
    ROBOT_DIM, LIDAR_DIM, ACTION_DIM = 4, 8, 2

    H = W = GRID_SIZE + 1                          # 17 (odd)
    HF = WF = ((H // 2) // 2) // 2                 # == (GRID_SIZE + 1) // 8
    state_dim = MAP_FEATURE_DIM + ROBOT_DIM + LIDAR_DIM

    key = jax.random.PRNGKey(0)
    k_par, k_map, k_rob, k_lid, k_act = jax.random.split(key, 5)
    params = init_critic_params(k_par, state_dim, ACTION_DIM, HIDDEN_DIM,
                                MAP_FEATURE_DIM, HF, WF)

    maps = jax.random.normal(k_map, (B, 1, H, W), jnp.float32)
    robot = jax.random.normal(k_rob, (B, ROBOT_DIM), jnp.float32)
    lidar = jax.random.normal(k_lid, (B, LIDAR_DIM), jnp.float32)
    action = jax.random.normal(k_act, (B, ACTION_DIM), jnp.float32)

    q1, q2 = jax.jit(critic_forward)(params, maps, robot, lidar, action)
    jax.block_until_ready((q1, q2))

    assert q1.shape == (B, 1) and q2.shape == (B, 1)
    assert q1.dtype == jnp.float32 and q2.dtype == jnp.float32
    assert bool(jnp.all(jnp.isfinite(q1))) and bool(jnp.all(jnp.isfinite(q2)))

    # Cross-check against a straightforward jnp/lax reference.
    q1_ref, q2_ref = critic_forward_ref(params, maps, robot, lidar, action)
    assert bool(jnp.allclose(q1, q1_ref, rtol=5e-2, atol=5e-3)), (q1, q1_ref)
    assert bool(jnp.allclose(q2, q2_ref, rtol=5e-2, atol=5e-3)), (q2, q2_ref)

    print("KERNEL_OK")
</pallas_src>

<mosaic_0001>
module attributes {stable_mosaic.version = 11 : i64} {
  func.func @_conv_pool_kernel(%arg0: i32, %arg1: memref<1x1x361xf32, #tpu.memory_space<vmem>>, %arg2: memref<9x16x1xf32, #tpu.memory_space<vmem>>, %arg3: memref<16x1xf32, #tpu.memory_space<vmem>>, %arg4: memref<1x16x11x10xf32, #tpu.memory_space<vmem>>) attributes {dimension_semantics = [#tpu.dimension_semantics<parallel>], iteration_bounds = array<i64: 2>, scalar_prefetch = 0 : i64, scratch_operands = 0 : i64, tpu.core_type = #tpu.core_type<tc>, window_params = [{transform_indices = @transform_0, window_bounds = array<i64: 1, 1, 361>}, {pipeline_mode = #tpu.pipeline_mode<synchronous>, transform_indices = @transform_1, window_bounds = array<i64: 9, 16, 1>}, {pipeline_mode = #tpu.pipeline_mode<synchronous>, transform_indices = @transform_2, window_bounds = array<i64: 16, 1>}, {transform_indices = @transform_3, window_bounds = array<i64: 1, 16, 11, 10>}]} {
    %c0 = arith.constant 0 : index
    %c0_0 = arith.constant 0 : index
    %c0_1 = arith.constant 0 : index
    %0 = vector.load %arg1[%c0, %c0_0, %c0_1] : memref<1x1x361xf32, #tpu.memory_space<vmem>>, vector<1x1x304xf32>
    %1 = vector.shape_cast %0 : vector<1x1x304xf32> to vector<1x304xf32>
    %c0_2 = arith.constant 0 : index
    %c0_3 = arith.constant 0 : index
    %c0_4 = arith.constant 0 : index
    %2 = vector.load %arg2[%c0_2, %c0_3, %c0_4] : memref<9x16x1xf32, #tpu.memory_space<vmem>>, vector<1x16x1xf32>
    %3 = vector.shape_cast %2 : vector<1x16x1xf32> to vector<16x1xf32>
    %4 = vector.broadcast %3 : vector<16x1xf32> to vector<16x304xf32>
    %5 = vector.broadcast %1 : vector<1x304xf32> to vector<16x304xf32>
    %6 = arith.mulf %4, %5 : vector<16x304xf32>
    %c0_5 = arith.constant 0 : index
    %c0_6 = arith.constant 0 : index
    %c1 = arith.constant 1 : index
    %7 = vector.load %arg1[%c0_5, %c0_6, %c1] : memref<1x1x361xf32, #tpu.memory_space<vmem>>, vector<1x1x304xf32>
    %8 = vector.shape_cast %7 : vector<1x1x304xf32> to vector<1x304xf32>
    %c1_7 = arith.constant 1 : index
    %c0_8 = arith.constant 0 : index
    %c0_9 = arith.constant 0 : index
    %9 = vector.load %arg2[%c1_7, %c0_8, %c0_9] : memref<9x16x1xf32, #tpu.memory_space<vmem>>, vector<1x16x1xf32>
    %10 = vector.shape_cast %9 : vector<1x16x1xf32> to vector<16x1xf32>
    %11 = vector.broadcast %10 : vector<16x1xf32> to vector<16x304xf32>
    %12 = vector.broadcast %8 : vector<1x304xf32> to vector<16x304xf32>
    %13 = arith.mulf %11, %12 : vector<16x304xf32>
    %14 = arith.addf %6, %13 : vector<16x304xf32>
    %c0_10 = arith.constant 0 : index
    %c0_11 = arith.constant 0 : index
    %c2 = arith.constant 2 : index
    %15 = vector.load %arg1[%c0_10, %c0_11, %c2] : memref<1x1x361xf32, #tpu.memory_space<vmem>>, vector<1x1x304xf32>
    %16 = vector.shape_cast %15 : vector<1x1x304xf32> to vector<1x304xf32>
    %c2_12 = arith.constant 2 : index
    %c0_13 = arith.constant 0 : index
    %c0_14 = arith.constant 0 : index
    %17 = vector.load %arg2[%c2_12, %c0_13, %c0_14] : memref<9x16x1xf32, #tpu.memory_space<vmem>>, vector<1x16x1xf32>
    %18 = vector.shape_cast %17 : vector<1x16x1xf32> to vector<16x1xf32>
    %19 = vector.broadcast %18 : vector<16x1xf32> to vector<16x304xf32>
    %20 = vector.broadcast %16 : vector<1x304xf32> to vector<16x304xf32>
    %21 = arith.mulf %19, %20 : vector<16x304xf32>
    %22 = arith.addf %14, %21 : vector<16x304xf32>
    %c0_15 = arith.constant 0 : index
    %c0_16 = arith.constant 0 : index
    %c19 = arith.constant 19 : index
    %23 = vector.load %arg1[%c0_15, %c0_16, %c19] : memref<1x1x361xf32, #tpu.memory_space<vmem>>, vector<1x1x304xf32>
    %24 = vector.shape_cast %23 : vector<1x1x304xf32> to vector<1x304xf32>
    %c3 = arith.constant 3 : index
    %c0_17 = arith.constant 0 : index
    %c0_18 = arith.constant 0 : index
    %25 = vector.load %arg2[%c3, %c0_17, %c0_18] : memref<9x16x1xf32, #tpu.memory_space<vmem>>, vector<1x16x1xf32>
    %26 = vector.shape_cast %25 : vector<1x16x1xf32> to vector<16x1xf32>
    %27 = vector.broadcast %26 : vector<16x1xf32> to vector<16x304xf32>
    %28 = vector.broadcast %24 : vector<1x304xf32> to vector<16x304xf32>
    %29 = arith.mulf %27, %28 : vector<16x304xf32>
    %30 = arith.addf %22, %29 : vector<16x304xf32>
    %c0_19 = arith.constant 0 : index
    %c0_20 = arith.constant 0 : index
    %c20 = arith.constant 20 : index
    %31 = vector.load %arg1[%c0_19, %c0_20, %c20] : memref<1x1x361xf32, #tpu.memory_space<vmem>>, vector<1x1x304xf32>
    %32 = vector.shape_cast %31 : vector<1x1x304xf32> to vector<1x304xf32>
    %c4 = arith.constant 4 : index
    %c0_21 = arith.constant 0 : index
    %c0_22 = arith.constant 0 : index
    %33 = vector.load %arg2[%c4, %c0_21, %c0_22] : memref<9x16x1xf32, #tpu.memory_space<vmem>>, vector<1x16x1xf32>
    %34 = vector.shape_cast %33 : vector<1x16x1xf32> to vector<16x1xf32>
    %35 = vector.broadcast %34 : vector<16x1xf32> to vector<16x304xf32>
    %36 = vector.broadcast %32 : vector<1x304xf32> to vector<16x304xf32>
    %37 = arith.mulf %35, %36 : vector<16x304xf32>
    %38 = arith.addf %30, %37 : vector<16x304xf32>
    %c0_23 = arith.constant 0 : index
    %c0_24 = arith.constant 0 : index
    %c21 = arith.constant 21 : index
    %39 = vector.load %arg1[%c0_23, %c0_24, %c21] : memref<1x1x361xf32, #tpu.memory_space<vmem>>, vector<1x1x304xf32>
    %40 = vector.shape_cast %39 : vector<1x1x304xf32> to vector<1x304xf32>
    %c5 = arith.constant 5 : index
    %c0_25 = arith.constant 0 : index
    %c0_26 = arith.constant 0 : index
    %41 = vector.load %arg2[%c5, %c0_25, %c0_26] : memref<9x16x1xf32, #tpu.memory_space<vmem>>, vector<1x16x1xf32>
    %42 = vector.shape_cast %41 : vector<1x16x1xf32> to vector<16x1xf32>
    %43 = vector.broadcast %42 : vector<16x1xf32> to vector<16x304xf32>
    %44 = vector.broadcast %40 : vector<1x304xf32> to vector<16x304xf32>
    %45 = arith.mulf %43, %44 : vector<16x304xf32>
    %46 = arith.addf %38, %45 : vector<16x304xf32>
    %c0_27 = arith.constant 0 : index
    %c0_28 = arith.constant 0 : index
    %c38 = arith.constant 38 : index
    %47 = vector.load %arg1[%c0_27, %c0_28, %c38] : memref<1x1x361xf32, #tpu.memory_space<vmem>>, vector<1x1x304xf32>
    %48 = vector.shape_cast %47 : vector<1x1x304xf32> to vector<1x304xf32>
    %c6 = arith.constant 6 : index
    %c0_29 = arith.constant 0 : index
    %c0_30 = arith.constant 0 : index
    %49 = vector.load %arg2[%c6, %c0_29, %c0_30] : memref<9x16x1xf32, #tpu.memory_space<vmem>>, vector<1x16x1xf32>
    %50 = vector.shape_cast %49 : vector<1x16x1xf32> to vector<16x1xf32>
    %51 = vector.broadcast %50 : vector<16x1xf32> to vector<16x304xf32>
    %52 = vector.broadcast %48 : vector<1x304xf32> to vector<16x304xf32>
    %53 = arith.mulf %51, %52 : vector<16x304xf32>
    %54 = arith.addf %46, %53 : vector<16x304xf32>
    %c0_31 = arith.constant 0 : index
    %c0_32 = arith.constant 0 : index
    %c39 = arith.constant 39 : index
    %55 = vector.load %arg1[%c0_31, %c0_32, %c39] : memref<1x1x361xf32, #tpu.memory_space<vmem>>, vector<1x1x304xf32>
    %56 = vector.shape_cast %55 : vector<1x1x304xf32> to vector<1x304xf32>
    %c7 = arith.constant 7 : index
    %c0_33 = arith.constant 0 : index
    %c0_34 = arith.constant 0 : index
    %57 = vector.load %arg2[%c7, %c0_33, %c0_34] : memref<9x16x1xf32, #tpu.memory_space<vmem>>, vector<1x16x1xf32>
    %58 = vector.shape_cast %57 : vector<1x16x1xf32> to vector<16x1xf32>
    %59 = vector.broadcast %58 : vector<16x1xf32> to vector<16x304xf32>
    %60 = vector.broadcast %56 : vector<1x304xf32> to vector<16x304xf32>
    %61 = arith.mulf %59, %60 : vector<16x304xf32>
    %62 = arith.addf %54, %61 : vector<16x304xf32>
    %c0_35 = arith.constant 0 : index
    %c0_36 = arith.constant 0 : index
    %c40 = arith.constant 40 : index
    %63 = vector.load %arg1[%c0_35, %c0_36, %c40] : memref<1x1x361xf32, #tpu.memory_space<vmem>>, vector<1x1x304xf32>
    %64 = vector.shape_cast %63 : vector<1x1x304xf32> to vector<1x304xf32>
    %c8 = arith.constant 8 : index
    %c0_37 = arith.constant 0 : index
    %c0_38 = arith.constant 0 : index
    %65 = vector.load %arg2[%c8, %c0_37, %c0_38] : memref<9x16x1xf32, #tpu.memory_space<vmem>>, vector<1x16x1xf32>
    %66 = vector.shape_cast %65 : vector<1x16x1xf32> to vector<16x1xf32>
    %67 = vector.broadcast %66 : vector<16x1xf32> to vector<16x304xf32>
    %68 = vector.broadcast %64 : vector<1x304xf32> to vector<16x304xf32>
    %69 = arith.mulf %67, %68 : vector<16x304xf32>
    %70 = arith.addf %62, %69 : vector<16x304xf32>
    %c0_39 = arith.constant 0 : index
    %c0_40 = arith.constant 0 : index
    %71 = vector.load %arg3[%c0_39, %c0_40] : memref<16x1xf32, #tpu.memory_space<vmem>>, vector<16x1xf32>
    %72 = vector.broadcast %71 : vector<16x1xf32> to vector<16x304xf32>
    %73 = arith.addf %70, %72 : vector<16x304xf32>
    %cst = arith.constant 0.000000e+00 : f32
    %74 = vector.broadcast %cst : f32 to vector<16x304xf32>
    %75 = arith.maximumf %73, %74 : vector<16x304xf32>
    %76 = vector.extract_strided_slice %75 {offsets = [0, 0], sizes = [16, 285], strides = [1, 1]} : vector<16x304xf32> to vector<16x285xf32>
    %77 = vector.extract_strided_slice %75 {offsets = [0, 19], sizes = [16, 285], strides = [1, 1]} : vector<16x304xf32> to vector<16x285xf32>
    %78 = arith.maximumf %76, %77 : vector<16x285xf32>
    %79 = vector.extract_strided_slice %78 {offsets = [0, 0], sizes = [16, 284], strides = [1, 1]} : vector<16x285xf32> to vector<16x284xf32>
    %80 = vector.extract_strided_slice %78 {offsets = [0, 1], sizes = [16, 284], strides = [1, 1]} : vector<16x285xf32> to vector<16x284xf32>
    %81 = arith.maximumf %79, %80 : vector<16x284xf32>
    %82 = tpu.iota {dimensions = array<i32: 0>} : vector<17x8xi32>
    %83 = tpu.iota {dimensions = array<i32: 1>} : vector<17x8xi32>
    %c2_i32 = arith.constant 2 : i32
    %84 = vector.broadcast %c2_i32 : i32 to vector<17x8xi32>
    %85 = arith.muli %84, %83 : vector<17x8xi32>
    %86 = arith.cmpi eq, %82, %85 : vector<17x8xi32>
    %87 = arith.extui %86 : vector<17x8xi1> to vector<17x8xi32>
    %88 = arith.sitofp %87 : vector<17x8xi32> to vector<17x8xf32>
    %cst_41 = arith.constant 0.000000e+00 : f32
    %89 = vector.broadcast %cst_41 : f32 to vector<1x16x11x10xf32>
    %c0_42 = arith.constant 0 : index
    %c0_43 = arith.constant 0 : index
    %c0_44 = arith.constant 0 : index
    %c0_45 = arith.constant 0 : index
    %90 = vector.load %arg4[%c0_42, %c0_43, %c0_44, %c0_45] : memref<1x16x11x10xf32, #tpu.memory_space<vmem>>, vector<1x16x11x10xf32>
    tpu.vector_store %arg4[%c0_42, %c0_43, %c0_44, %c0_45], %89 {strides = array<i32>} : memref<1x16x11x10xf32, #tpu.memory_space<vmem>>, vector<1x16x11x10xf32>,
    %91 = vector.extract_strided_slice %81 {offsets = [0, 0], sizes = [16, 17], strides = [1, 1]} : vector<16x284xf32> to vector<16x17xf32>
    %cst_46 = arith.constant dense<0.000000e+00> : vector<16x8xf32>
    %92 = tpu.matmul %91, %88, %cst_46 {dimension_numbers = #tpu.dot_dimension_numbers<[1], [0], [0], [1], [0, 0, 1, 1], [], []>} : vector<16x17xf32>, vector<17x8xf32>, vector<16x8xf32> -> vector<16x8xf32>
    %c0_47 = arith.constant 0 : index
    %c0_48 = arith.constant 0 : index
    %c1_49 = arith.constant 1 : index
    %c1_50 = arith.constant 1 : index
    %93 = vector.load %arg4[%c0_47, %c0_48, %c1_49, %c1_50] : memref<1x16x11x10xf32, #tpu.memory_space<vmem>>, vector<1x16x1x8xf32>
    %94 = vector.shape_cast %93 : vector<1x16x1x8xf32> to vector<16x8xf32>
    %95 = vector.shape_cast %92 : vector<16x8xf32> to vector<1x16x1x8xf32>
    tpu.vector_store %arg4[%c0_47, %c0_48, %c1_49, %c1_50], %95 {strides = array<i32>} : memref<1x16x11x10xf32, #tpu.memory_space<vmem>>, vector<1x16x1x8xf32>,
    %96 = vector.extract_strided_slice %81 {offsets = [0, 38], sizes = [16, 17], strides = [1, 1]} : vector<16x284xf32> to vector<16x17xf32>
    %cst_51 = arith.constant dense<0.000000e+00> : vector<16x8xf32>
    %97 = tpu.matmul %96, %88, %cst_51 {dimension_numbers = #tpu.dot_dimension_numbers<[1], [0], [0], [1], [0, 0, 1, 1], [], []>} : vector<16x17xf32>, vector<17x8xf32>, vector<16x8xf32> -> vector<16x8xf32>
    %c0_52 = arith.constant 0 : index
    %c0_53 = arith.constant 0 : index
    %c2_54 = arith.constant 2 : index
    %c1_55 = arith.constant 1 : index
    %98 = vector.load %arg4[%c0_52, %c0_53, %c2_54, %c1_55] : memref<1x16x11x10xf32, #tpu.memory_space<vmem>>, vector<1x16x1x8xf32>
    %99 = vector.shape_cast %98 : vector<1x16x1x8xf32> to vector<16x8xf32>
    %100 = vector.shape_cast %97 : vector<16x8xf32> to vector<1x16x1x8xf32>
    tpu.vector_store %arg4[%c0_52, %c0_53, %c2_54, %c1_55], %100 {strides = array<i32>} : memref<1x16x11x10xf32, #tpu.memory_space<vmem>>, vector<1x16x1x8xf32>,
    %101 = vector.extract_strided_slice %81 {offsets = [0, 76], sizes = [16, 17], strides = [1, 1]} : vector<16x284xf32> to vector<16x17xf32>
    %cst_56 = arith.constant dense<0.000000e+00> : vector<16x8xf32>
    %102 = tpu.matmul %101, %88, %cst_56 {dimension_numbers = #tpu.dot_dimension_numbers<[1], [0], [0], [1], [0, 0, 1, 1], [], []>} : vector<16x17xf32>, vector<17x8xf32>, vector<16x8xf32> -> vector<16x8xf32>
    %c0_57 = arith.constant 0 : index
    %c0_58 = arith.constant 0 : index
    %c3_59 = arith.constant 3 : index
    %c1_60 = arith.constant 1 : index
    %103 = vector.load %arg4[%c0_57, %c0_58, %c3_59, %c1_60] : memref<1x16x11x10xf32, #tpu.memory_space<vmem>>, vector<1x16x1x8xf32>
    %104 = vector.shape_cast %103 : vector<1x16x1x8xf32> to vector<16x8xf32>
    %105 = vector.shape_cast %102 : vector<16x8xf32> to vector<1x16x1x8xf32>
    tpu.vector_store %arg4[%c0_57, %c0_58, %c3_59, %c1_60], %105 {strides = array<i32>} : memref<1x16x11x10xf32, #tpu.memory_space<vmem>>, vector<1x16x1x8xf32>,
    %106 = vector.extract_strided_slice %81 {offsets = [0, 114], sizes = [16, 17], strides = [1, 1]} : vector<16x284xf32> to vector<16x17xf32>
    %cst_61 = arith.constant dense<0.000000e+00> : vector<16x8xf32>
    %107 = tpu.matmul %106, %88, %cst_61 {dimension_numbers = #tpu.dot_dimension_numbers<[1], [0], [0], [1], [0, 0, 1, 1], [], []>} : vector<16x17xf32>, vector<17x8xf32>, vector<16x8xf32> -> vector<16x8xf32>
    %c0_62 = arith.constant 0 : index
    %c0_63 = arith.constant 0 : index
    %c4_64 = arith.constant 4 : index
    %c1_65 = arith.constant 1 : index
    %108 = vector.load %arg4[%c0_62, %c0_63, %c4_64, %c1_65] : memref<1x16x11x10xf32, #tpu.memory_space<vmem>>, vector<1x16x1x8xf32>
    %109 = vector.shape_cast %108 : vector<1x16x1x8xf32> to vector<16x8xf32>
    %110 = vector.shape_cast %107 : vector<16x8xf32> to vector<1x16x1x8xf32>
    tpu.vector_store %arg4[%c0_62, %c0_63, %c4_64, %c1_65], %110 {strides = array<i32>} : memref<1x16x11x10xf32, #tpu.memory_space<vmem>>, vector<1x16x1x8xf32>,
    %111 = vector.extract_strided_slice %81 {offsets = [0, 152], sizes = [16, 17], strides = [1, 1]} : vector<16x284xf32> to vector<16x17xf32>
    %cst_66 = arith.constant dense<0.000000e+00> : vector<16x8xf32>
    %112 = tpu.matmul %111, %88, %cst_66 {dimension_numbers = #tpu.dot_dimension_numbers<[1], [0], [0], [1], [0, 0, 1, 1], [], []>} : vector<16x17xf32>, vector<17x8xf32>, vector<16x8xf32> -> vector<16x8xf32>
    %c0_67 = arith.constant 0 : index
    %c0_68 = arith.constant 0 : index
    %c5_69 = arith.constant 5 : index
    %c1_70 = arith.constant 1 : index
    %113 = vector.load %arg4[%c0_67, %c0_68, %c5_69, %c1_70] : memref<1x16x11x10xf32, #tpu.memory_space<vmem>>, vector<1x16x1x8xf32>
    %114 = vector.shape_cast %113 : vector<1x16x1x8xf32> to vector<16x8xf32>
    %115 = vector.shape_cast %112 : vector<16x8xf32> to vector<1x16x1x8xf32>
    tpu.vector_store %arg4[%c0_67, %c0_68, %c5_69, %c1_70], %115 {strides = array<i32>} : memref<1x16x11x10xf32, #tpu.memory_space<vmem>>, vector<1x16x1x8xf32>,
    %116 = vector.extract_strided_slice %81 {offsets = [0, 190], sizes = [16, 17], strides = [1, 1]} : vector<16x284xf32> to vector<16x17xf32>
    %cst_71 = arith.constant dense<0.000000e+00> : vector<16x8xf32>
    %117 = tpu.matmul %116, %88, %cst_71 {dimension_numbers = #tpu.dot_dimension_numbers<[1], [0], [0], [1], [0, 0, 1, 1], [], []>} : vector<16x17xf32>, vector<17x8xf32>, vector<16x8xf32> -> vector<16x8xf32>
    %c0_72 = arith.constant 0 : index
    %c0_73 = arith.constant 0 : index
    %c6_74 = arith.constant 6 : index
    %c1_75 = arith.constant 1 : index
    %118 = vector.load %arg4[%c0_72, %c0_73, %c6_74, %c1_75] : memref<1x16x11x10xf32, #tpu.memory_space<vmem>>, vector<1x16x1x8xf32>
    %119 = vector.shape_cast %118 : vector<1x16x1x8xf32> to vector<16x8xf32>
    %120 = vector.shape_cast %117 : vector<16x8xf32> to vector<1x16x1x8xf32>
    tpu.vector_store %arg4[%c0_72, %c0_73, %c6_74, %c1_75], %120 {strides = array<i32>} : memref<1x16x11x10xf32, #tpu.memory_space<vmem>>, vector<1x16x1x8xf32>,
    %121 = vector.extract_strided_slice %81 {offsets = [0, 228], sizes = [16, 17], strides = [1, 1]} : vector<16x284xf32> to vector<16x17xf32>
    %cst_76 = arith.constant dense<0.000000e+00> : vector<16x8xf32>
    %122 = tpu.matmul %121, %88, %cst_76 {dimension_numbers = #tpu.dot_dimension_numbers<[1], [0], [0], [1], [0, 0, 1, 1], [], []>} : vector<16x17xf32>, vector<17x8xf32>, vector<16x8xf32> -> vector<16x8xf32>
    %c0_77 = arith.constant 0 : index
    %c0_78 = arith.constant 0 : index
    %c7_79 = arith.constant 7 : index
    %c1_80 = arith.constant 1 : index
    %123 = vector.load %arg4[%c0_77, %c0_78, %c7_79, %c1_80] : memref<1x16x11x10xf32, #tpu.memory_space<vmem>>, vector<1x16x1x8xf32>
    %124 = vector.shape_cast %123 : vector<1x16x1x8xf32> to vector<16x8xf32>
    %125 = vector.shape_cast %122 : vector<16x8xf32> to vector<1x16x1x8xf32>
    tpu.vector_store %arg4[%c0_77, %c0_78, %c7_79, %c1_80], %125 {strides = array<i32>} : memref<1x16x11x10xf32, #tpu.memory_space<vmem>>, vector<1x16x1x8xf32>,
    %126 = vector.extract_strided_slice %81 {offsets = [0, 266], sizes = [16, 17], strides = [1, 1]} : vector<16x284xf32> to vector<16x17xf32>
    %cst_81 = arith.constant dense<0.000000e+00> : vector<16x8xf32>
    %127 = tpu.matmul %126, %88, %cst_81 {dimension_numbers = #tpu.dot_dimension_numbers<[1], [0], [0], [1], [0, 0, 1, 1], [], []>} : vector<16x17xf32>, vector<17x8xf32>, vector<16x8xf32> -> vector<16x8xf32>
    %c0_82 = arith.constant 0 : index
    %c0_83 = arith.constant 0 : index
    %c8_84 = arith.constant 8 : index
    %c1_85 = arith.constant 1 : index
    %128 = vector.load %arg4[%c0_82, %c0_83, %c8_84, %c1_85] : memref<1x16x11x10xf32, #tpu.memory_space<vmem>>, vector<1x16x1x8xf32>
    %129 = vector.shape_cast %128 : vector<1x16x1x8xf32> to vector<16x8xf32>
    %130 = vector.shape_cast %127 : vector<16x8xf32> to vector<1x16x1x8xf32>
    tpu.vector_store %arg4[%c0_82, %c0_83, %c8_84, %c1_85], %130 {strides = array<i32>} : memref<1x16x11x10xf32, #tpu.memory_space<vmem>>, vector<1x16x1x8xf32>,
    return
  }
  func.func @transform_0(%arg0: i32) -> (i32, i32, i32) {
    %c0_i32 = arith.constant 0 : i32
    %c0_i32_0 = arith.constant 0 : i32
    %c0_i32_1 = arith.constant 0 : i32
    return %arg0, %c0_i32, %c0_i32_0 : i32, i32, i32
  }
  func.func @transform_1(%arg0: i32) -> (i32, i32, i32) {
    %c0_i32 = arith.constant 0 : i32
    %c0_i32_0 = arith.constant 0 : i32
    %c0_i32_1 = arith.constant 0 : i32
    %c0_i32_2 = arith.constant 0 : i32
    return %c0_i32, %c0_i32_0, %c0_i32_1 : i32, i32, i32
  }
  func.func @transform_2(%arg0: i32) -> (i32, i32) {
    %c0_i32 = arith.constant 0 : i32
    %c0_i32_0 = arith.constant 0 : i32
    %c0_i32_1 = arith.constant 0 : i32
    return %c0_i32, %c0_i32_0 : i32, i32
  }
  func.func @transform_3(%arg0: i32) -> (i32, i32, i32, i32) {
    %c0_i32 = arith.constant 0 : i32
    %c0_i32_0 = arith.constant 0 : i32
    %c0_i32_1 = arith.constant 0 : i32
    %c0_i32_2 = arith.constant 0 : i32
    return %arg0, %c0_i32, %c0_i32_0, %c0_i32_1 : i32, i32, i32, i32
  }
}

module attributes {stable_mosaic.version = 11 : i64} {
  func.func @_conv_pool_kernel(%arg0: i32, %arg1: memref<1x16x110xf32, #tpu.memory_space<vmem>>, %arg2: memref<9x32x16xf32, #tpu.memory_space<vmem>>, %arg3: memref<32x1xf32, #tpu.memory_space<vmem>>, %arg4: memref<1x32x7x6xf32, #tpu.memory_space<vmem>>) attributes {dimension_semantics = [#tpu.dimension_semantics<parallel>], iteration_bounds = array<i64: 2>, scalar_prefetch = 0 : i64, scratch_operands = 0 : i64, tpu.core_type = #tpu.core_type<tc>, window_params = [{transform_indices = @transform_0, window_bounds = array<i64: 1, 16, 110>}, {pipeline_mode = #tpu.pipeline_mode<synchronous>, transform_indices = @transform_1, window_bounds = array<i64: 9, 32, 16>}, {pipeline_mode = #tpu.pipeline_mode<synchronous>, transform_indices = @transform_2, window_bounds = array<i64: 32, 1>}, {transform_indices = @transform_3, window_bounds = array<i64: 1, 32, 7, 6>}]} {
    %c0 = arith.constant 0 : index
    %c0_0 = arith.constant 0 : index
    %c0_1 = arith.constant 0 : index
    %0 = vector.load %arg1[%c0, %c0_0, %c0_1] : memref<1x16x110xf32, #tpu.memory_space<vmem>>, vector<1x16x80xf32>
    %1 = vector.shape_cast %0 : vector<1x16x80xf32> to vector<16x80xf32>
    %c0_2 = arith.constant 0 : index
    %c0_3 = arith.constant 0 : index
    %c0_4 = arith.constant 0 : index
    %2 = vector.load %arg2[%c0_2, %c0_3, %c0_4] : memref<9x32x16xf32, #tpu.memory_space<vmem>>, vector<1x32x16xf32>
    %3 = vector.shape_cast %2 : vector<1x32x16xf32> to vector<32x16xf32>
    %cst = arith.constant dense<0.000000e+00> : vector<32x80xf32>
    %4 = tpu.matmul %3, %1, %cst {dimension_numbers = #tpu.dot_dimension_numbers<[1], [0], [0], [1], [0, 0, 1, 1], [], []>} : vector<32x16xf32>, vector<16x80xf32>, vector<32x80xf32> -> vector<32x80xf32>
    %c0_5 = arith.constant 0 : index
    %c0_6 = arith.constant 0 : index
    %c1 = arith.constant 1 : index
    %5 = vector.load %arg1[%c0_5, %c0_6, %c1] : memref<1x16x110xf32, #tpu.memory_space<vmem>>, vector<1x16x80xf32>
    %6 = vector.shape_cast %5 : vector<1x16x80xf32> to vector<16x80xf32>
    %c1_7 = arith.constant 1 : index
    %c0_8 = arith.constant 0 : index
    %c0_9 = arith.constant 0 : index
    %7 = vector.load %arg2[%c1_7, %c0_8, %c0_9] : memref<9x32x16xf32, #tpu.memory_space<vmem>>, vector<1x32x16xf32>
    %8 = vector.shape_cast %7 : vector<1x32x16xf32> to vector<32x16xf32>
    %cst_10 = arith.constant dense<0.000000e+00> : vector<32x80xf32>
    %9 = tpu.matmul %8, %6, %cst_10 {dimension_numbers = #tpu.dot_dimension_numbers<[1], [0], [0], [1], [0, 0, 1, 1], [], []>} : vector<32x16xf32>, vector<16x80xf32>, vector<32x80xf32> -> vector<32x80xf32>
    %10 = arith.addf %4, %9 : vector<32x80xf32>
    %c0_11 = arith.constant 0 : index
    %c0_12 = arith.constant 0 : index
    %c2 = arith.constant 2 : index
    %11 = vector.load %arg1[%c0_11, %c0_12, %c2] : memref<1x16x110xf32, #tpu.memory_space<vmem>>, vector<1x16x80xf32>
    %12 = vector.shape_cast %11 : vector<1x16x80xf32> to vector<16x80xf32>
    %c2_13 = arith.constant 2 : index
    %c0_14 = arith.constant 0 : index
    %c0_15 = arith.constant 0 : index
    %13 = vector.load %arg2[%c2_13, %c0_14, %c0_15] : memref<9x32x16xf32, #tpu.memory_space<vmem>>, vector<1x32x16xf32>
    %14 = vector.shape_cast %13 : vector<1x32x16xf32> to vector<32x16xf32>
    %cst_16 = arith.constant dense<0.000000e+00> : vector<32x80xf32>
    %15 = tpu.matmul %14, %12, %cst_16 {dimension_numbers = #tpu.dot_dimension_numbers<[1], [0], [0], [1], [0, 0, 1, 1], [], []>} : vector<32x16xf32>, vector<16x80xf32>, vector<32x80xf32> -> vector<32x80xf32>
    %16 = arith.addf %10, %15 : vector<32x80xf32>
    %c0_17 = arith.constant 0 : index
    %c0_18 = arith.constant 0 : index
    %c10 = arith.constant 10 : index
    %17 = vector.load %arg1[%c0_17, %c0_18, %c10] : memref<1x16x110xf32, #tpu.memory_space<vmem>>, vector<1x16x80xf32>
    %18 = vector.shape_cast %17 : vector<1x16x80xf32> to vector<16x80xf32>
    %c3 = arith.constant 3 : index
    %c0_19 = arith.constant 0 : index
    %c0_20 = arith.constant 0 : index
    %19 = vector.load %arg2[%c3, %c0_19, %c0_20] : memref<9x32x16xf32, #tpu.memory_space<vmem>>, vector<1x32x16xf32>
    %20 = vector.shape_cast %19 : vector<1x32x16xf32> to vector<32x16xf32>
    %cst_21 = arith.constant dense<0.000000e+00> : vector<32x80xf32>
    %21 = tpu.matmul %20, %18, %cst_21 {dimension_numbers = #tpu.dot_dimension_numbers<[1], [0], [0], [1], [0, 0, 1, 1], [], []>} : vector<32x16xf32>, vector<16x80xf32>, vector<32x80xf32> -> vector<32x80xf32>
    %22 = arith.addf %16, %21 : vector<32x80xf32>
    %c0_22 = arith.constant 0 : index
    %c0_23 = arith.constant 0 : index
    %c11 = arith.constant 11 : index
    %23 = vector.load %arg1[%c0_22, %c0_23, %c11] : memref<1x16x110xf32, #tpu.memory_space<vmem>>, vector<1x16x80xf32>
    %24 = vector.shape_cast %23 : vector<1x16x80xf32> to vector<16x80xf32>
    %c4 = arith.constant 4 : index
    %c0_24 = arith.constant 0 : index
    %c0_25 = arith.constant 0 : index
    %25 = vector.load %arg2[%c4, %c0_24, %c0_25] : memref<9x32x16xf32, #tpu.memory_space<vmem>>, vector<1x32x16xf32>
    %26 = vector.shape_cast %25 : vector<1x32x16xf32> to vector<32x16xf32>
    %cst_26 = arith.constant dense<0.000000e+00> : vector<32x80xf32>
    %27 = tpu.matmul %26, %24, %cst_26 {dimension_numbers = #tpu.dot_dimension_numbers<[1], [0], [0], [1], [0, 0, 1, 1], [], []>} : vector<32x16xf32>, vector<16x80xf32>, vector<32x80xf32> -> vector<32x80xf32>
    %28 = arith.addf %22, %27 : vector<32x80xf32>
    %c0_27 = arith.constant 0 : index
    %c0_28 = arith.constant 0 : index
    %c12 = arith.constant 12 : index
    %29 = vector.load %arg1[%c0_27, %c0_28, %c12] : memref<1x16x110xf32, #tpu.memory_space<vmem>>, vector<1x16x80xf32>
    %30 = vector.shape_cast %29 : vector<1x16x80xf32> to vector<16x80xf32>
    %c5 = arith.constant 5 : index
    %c0_29 = arith.constant 0 : index
    %c0_30 = arith.constant 0 : index
    %31 = vector.load %arg2[%c5, %c0_29, %c0_30] : memref<9x32x16xf32, #tpu.memory_space<vmem>>, vector<1x32x16xf32>
    %32 = vector.shape_cast %31 : vector<1x32x16xf32> to vector<32x16xf32>
    %cst_31 = arith.constant dense<0.000000e+00> : vector<32x80xf32>
    %33 = tpu.matmul %32, %30, %cst_31 {dimension_numbers = #tpu.dot_dimension_numbers<[1], [0], [0], [1], [0, 0, 1, 1], [], []>} : vector<32x16xf32>, vector<16x80xf32>, vector<32x80xf32> -> vector<32x80xf32>
    %34 = arith.addf %28, %33 : vector<32x80xf32>
    %c0_32 = arith.constant 0 : index
    %c0_33 = arith.constant 0 : index
    %c20 = arith.constant 20 : index
    %35 = vector.load %arg1[%c0_32, %c0_33, %c20] : memref<1x16x110xf32, #tpu.memory_space<vmem>>, vector<1x16x80xf32>
    %36 = vector.shape_cast %35 : vector<1x16x80xf32> to vector<16x80xf32>
    %c6 = arith.constant 6 : index
    %c0_34 = arith.constant 0 : index
    %c0_35 = arith.constant 0 : index
    %37 = vector.load %arg2[%c6, %c0_34, %c0_35] : memref<9x32x16xf32, #tpu.memory_space<vmem>>, vector<1x32x16xf32>
    %38 = vector.shape_cast %37 : vector<1x32x16xf32> to vector<32x16xf32>
    %cst_36 = arith.constant dense<0.000000e+00> : vector<32x80xf32>
    %39 = tpu.matmul %38, %36, %cst_36 {dimension_numbers = #tpu.dot_dimension_numbers<[1], [0], [0], [1], [0, 0, 1, 1], [], []>} : vector<32x16xf32>, vector<16x80xf32>, vector<32x80xf32> -> vector<32x80xf32>
    %40 = arith.addf %34, %39 : vector<32x80xf32>
    %c0_37 = arith.constant 0 : index
    %c0_38 = arith.constant 0 : index
    %c21 = arith.constant 21 : index
    %41 = vector.load %arg1[%c0_37, %c0_38, %c21] : memref<1x16x110xf32, #tpu.memory_space<vmem>>, vector<1x16x80xf32>
    %42 = vector.shape_cast %41 : vector<1x16x80xf32> to vector<16x80xf32>
    %c7 = arith.constant 7 : index
    %c0_39 = arith.constant 0 : index
    %c0_40 = arith.constant 0 : index
    %43 = vector.load %arg2[%c7, %c0_39, %c0_40] : memref<9x32x16xf32, #tpu.memory_space<vmem>>, vector<1x32x16xf32>
    %44 = vector.shape_cast %43 : vector<1x32x16xf32> to vector<32x16xf32>
    %cst_41 = arith.constant dense<0.000000e+00> : vector<32x80xf32>
    %45 = tpu.matmul %44, %42, %cst_41 {dimension_numbers = #tpu.dot_dimension_numbers<[1], [0], [0], [1], [0, 0, 1, 1], [], []>} : vector<32x16xf32>, vector<16x80xf32>, vector<32x80xf32> -> vector<32x80xf32>
    %46 = arith.addf %40, %45 : vector<32x80xf32>
    %c0_42 = arith.constant 0 : index
    %c0_43 = arith.constant 0 : index
    %c22 = arith.constant 22 : index
    %47 = vector.load %arg1[%c0_42, %c0_43, %c22] : memref<1x16x110xf32, #tpu.memory_space<vmem>>, vector<1x16x80xf32>
    %48 = vector.shape_cast %47 : vector<1x16x80xf32> to vector<16x80xf32>
    %c8 = arith.constant 8 : index
    %c0_44 = arith.constant 0 : index
    %c0_45 = arith.constant 0 : index
    %49 = vector.load %arg2[%c8, %c0_44, %c0_45] : memref<9x32x16xf32, #tpu.memory_space<vmem>>, vector<1x32x16xf32>
    %50 = vector.shape_cast %49 : vector<1x32x16xf32> to vector<32x16xf32>
    %cst_46 = arith.constant dense<0.000000e+00> : vector<32x80xf32>
    %51 = tpu.matmul %50, %48, %cst_46 {dimension_numbers = #tpu.dot_dimension_numbers<[1], [0], [0], [1], [0, 0, 1, 1], [], []>} : vector<32x16xf32>, vector<16x80xf32>, vector<32x80xf32> -> vector<32x80xf32>
    %52 = arith.addf %46, %51 : vector<32x80xf32>
    %c0_47 = arith.constant 0 : index
    %c0_48 = arith.constant 0 : index
    %53 = vector.load %arg3[%c0_47, %c0_48] : memref<32x1xf32, #tpu.memory_space<vmem>>, vector<32x1xf32>
    %54 = vector.broadcast %53 : vector<32x1xf32> to vector<32x80xf32>
    %55 = arith.addf %52, %54 : vector<32x80xf32>
    %cst_49 = arith.constant 0.000000e+00 : f32
    %56 = vector.broadcast %cst_49 : f32 to vector<32x80xf32>
    %57 = arith.maximumf %55, %56 : vector<32x80xf32>
    %58 = vector.extract_strided_slice %57 {offsets = [0, 0], sizes = [32, 70], strides = [1, 1]} : vector<32x80xf32> to vector<32x70xf32>
    %59 = vector.extract_strided_slice %57 {offsets = [0, 10], sizes = [32, 70], strides = [1, 1]} : vector<32x80xf32> to vector<32x70xf32>
    %60 = arith.maximumf %58, %59 : vector<32x70xf32>
    %61 = vector.extract_strided_slice %60 {offsets = [0, 0], sizes = [32, 69], strides = [1, 1]} : vector<32x70xf32> to vector<32x69xf32>
    %62 = vector.extract_strided_slice %60 {offsets = [0, 1], sizes = [32, 69], strides = [1, 1]} : vector<32x70xf32> to vector<32x69xf32>
    %63 = arith.maximumf %61, %62 : vector<32x69xf32>
    %64 = tpu.iota {dimensions = array<i32: 0>} : vector<8x4xi32>
    %65 = tpu.iota {dimensions = array<i32: 1>} : vector<8x4xi32>
    %c2_i32 = arith.constant 2 : i32
    %66 = vector.broadcast %c2_i32 : i32 to vector<8x4xi32>
    %67 = arith.muli %66, %65 : vector<8x4xi32>
    %68 = arith.cmpi eq, %64, %67 : vector<8x4xi32>
    %69 = arith.extui %68 : vector<8x4xi1> to vector<8x4xi32>
    %70 = arith.sitofp %69 : vector<8x4xi32> to vector<8x4xf32>
    %cst_50 = arith.constant 0.000000e+00 : f32
    %71 = vector.broadcast %cst_50 : f32 to vector<1x32x7x6xf32>
    %c0_51 = arith.constant 0 : index
    %c0_52 = arith.constant 0 : index
    %c0_53 = arith.constant 0 : index
    %c0_54 = arith.constant 0 : index
    %72 = vector.load %arg4[%c0_51, %c0_52, %c0_53, %c0_54] : memref<1x32x7x6xf32, #tpu.memory_space<vmem>>, vector<1x32x7x6xf32>
    tpu.vector_store %arg4[%c0_51, %c0_52, %c0_53, %c0_54], %71 {strides = array<i32>} : memref<1x32x7x6xf32, #tpu.memory_space<vmem>>, vector<1x32x7x6xf32>,
    %73 = vector.extract_strided_slice %63 {offsets = [0, 0], sizes = [32, 8], strides = [1, 1]} : vector<32x69xf32> to vector<32x8xf32>
    %cst_55 = arith.constant dense<0.000000e+00> : vector<32x4xf32>
    %74 = tpu.matmul %73, %70, %cst_55 {dimension_numbers = #tpu.dot_dimension_numbers<[1], [0], [0], [1], [0, 0, 1, 1], [], []>} : vector<32x8xf32>, vector<8x4xf32>, vector<32x4xf32> -> vector<32x4xf32>
    %c0_56 = arith.constant 0 : index
    %c0_57 = arith.constant 0 : index
    %c1_58 = arith.constant 1 : index
    %c1_59 = arith.constant 1 : index
    %75 = vector.load %arg4[%c0_56, %c0_57, %c1_58, %c1_59] : memref<1x32x7x6xf32, #tpu.memory_space<vmem>>, vector<1x32x1x4xf32>
    %76 = vector.shape_cast %75 : vector<1x32x1x4xf32> to vector<32x4xf32>
    %77 = vector.shape_cast %74 : vector<32x4xf32> to vector<1x32x1x4xf32>
    tpu.vector_store %arg4[%c0_56, %c0_57, %c1_58, %c1_59], %77 {strides = array<i32>} : memref<1x32x7x6xf32, #tpu.memory_space<vmem>>, vector<1x32x1x4xf32>,
    %78 = vector.extract_strided_slice %63 {offsets = [0, 20], sizes = [32, 8], strides = [1, 1]} : vector<32x69xf32> to vector<32x8xf32>
    %cst_60 = arith.constant dense<0.000000e+00> : vector<32x4xf32>
    %79 = tpu.matmul %78, %70, %cst_60 {dimension_numbers = #tpu.dot_dimension_numbers<[1], [0], [0], [1], [0, 0, 1, 1], [], []>} : vector<32x8xf32>, vector<8x4xf32>, vector<32x4xf32> -> vector<32x4xf32>
    %c0_61 = arith.constant 0 : index
    %c0_62 = arith.constant 0 : index
    %c2_63 = arith.constant 2 : index
    %c1_64 = arith.constant 1 : index
    %80 = vector.load %arg4[%c0_61, %c0_62, %c2_63, %c1_64] : memref<1x32x7x6xf32, #tpu.memory_space<vmem>>, vector<1x32x1x4xf32>
    %81 = vector.shape_cast %80 : vector<1x32x1x4xf32> to vector<32x4xf32>
    %82 = vector.shape_cast %79 : vector<32x4xf32> to vector<1x32x1x4xf32>
    tpu.vector_store %arg4[%c0_61, %c0_62, %c2_63, %c1_64], %82 {strides = array<i32>} : memref<1x32x7x6xf32, #tpu.memory_space<vmem>>, vector<1x32x1x4xf32>,
    %83 = vector.extract_strided_slice %63 {offsets = [0, 40], sizes = [32, 8], strides = [1, 1]} : vector<32x69xf32> to vector<32x8xf32>
    %cst_65 = arith.constant dense<0.000000e+00> : vector<32x4xf32>
    %84 = tpu.matmul %83, %70, %cst_65 {dimension_numbers = #tpu.dot_dimension_numbers<[1], [0], [0], [1], [0, 0, 1, 1], [], []>} : vector<32x8xf32>, vector<8x4xf32>, vector<32x4xf32> -> vector<32x4xf32>
    %c0_66 = arith.constant 0 : index
    %c0_67 = arith.constant 0 : index
    %c3_68 = arith.constant 3 : index
    %c1_69 = arith.constant 1 : index
    %85 = vector.load %arg4[%c0_66, %c0_67, %c3_68, %c1_69] : memref<1x32x7x6xf32, #tpu.memory_space<vmem>>, vector<1x32x1x4xf32>
    %86 = vector.shape_cast %85 : vector<1x32x1x4xf32> to vector<32x4xf32>
    %87 = vector.shape_cast %84 : vector<32x4xf32> to vector<1x32x1x4xf32>
    tpu.vector_store %arg4[%c0_66, %c0_67, %c3_68, %c1_69], %87 {strides = array<i32>} : memref<1x32x7x6xf32, #tpu.memory_space<vmem>>, vector<1x32x1x4xf32>,
    %88 = vector.extract_strided_slice %63 {offsets = [0, 60], sizes = [32, 8], strides = [1, 1]} : vector<32x69xf32> to vector<32x8xf32>
    %cst_70 = arith.constant dense<0.000000e+00> : vector<32x4xf32>
    %89 = tpu.matmul %88, %70, %cst_70 {dimension_numbers = #tpu.dot_dimension_numbers<[1], [0], [0], [1], [0, 0, 1, 1], [], []>} : vector<32x8xf32>, vector<8x4xf32>, vector<32x4xf32> -> vector<32x4xf32>
    %c0_71 = arith.constant 0 : index
    %c0_72 = arith.constant 0 : index
    %c4_73 = arith.constant 4 : index
    %c1_74 = arith.constant 1 : index
    %90 = vector.load %arg4[%c0_71, %c0_72, %c4_73, %c1_74] : memref<1x32x7x6xf32, #tpu.memory_space<vmem>>, vector<1x32x1x4xf32>
    %91 = vector.shape_cast %90 : vector<1x32x1x4xf32> to vector<32x4xf32>
    %92 = vector.shape_cast %89 : vector<32x4xf32> to vector<1x32x1x4xf32>
    tpu.vector_store %arg4[%c0_71, %c0_72, %c4_73, %c1_74], %92 {strides = array<i32>} : memref<1x32x7x6xf32, #tpu.memory_space<vmem>>, vector<1x32x1x4xf32>,
    return
  }
  func.func @transform_0(%arg0: i32) -> (i32, i32, i32) {
    %c0_i32 = arith.constant 0 : i32
    %c0_i32_0 = arith.constant 0 : i32
    %c0_i32_1 = arith.constant 0 : i32
    return %arg0, %c0_i32, %c0_i32_0 : i32, i32, i32
  }
  func.func @transform_1(%arg0: i32) -> (i32, i32, i32) {
    %c0_i32 = arith.constant 0 : i32
    %c0_i32_0 = arith.constant 0 : i32
    %c0_i32_1 = arith.constant 0 : i32
    %c0_i32_2 = arith.constant 0 : i32
    return %c0_i32, %c0_i32_0, %c0_i32_1 : i32, i32, i32
  }
  func.func @transform_2(%arg0: i32) -> (i32, i32) {
    %c0_i32 = arith.constant 0 : i32
    %c0_i32_0 = arith.constant 0 : i32
    %c0_i32_1 = arith.constant 0 : i32
    return %c0_i32, %c0_i32_0 : i32, i32
  }
  func.func @transform_3(%arg0: i32) -> (i32, i32, i32, i32) {
    %c0_i32 = arith.constant 0 : i32
    %c0_i32_0 = arith.constant 0 : i32
    %c0_i32_1 = arith.constant 0 : i32
    %c0_i32_2 = arith.constant 0 : i32
    return %arg0, %c0_i32, %c0_i32_0, %c0_i32_1 : i32, i32, i32, i32
  }
}

module attributes {stable_mosaic.version = 11 : i64} {
  func.func @_conv_pool_kernel(%arg0: i32, %arg1: memref<1x32x42xf32, #tpu.memory_space<vmem>>, %arg2: memref<9x32x32xf32, #tpu.memory_space<vmem>>, %arg3: memref<32x1xf32, #tpu.memory_space<vmem>>, %arg4: memref<1x32x2x2xf32, #tpu.memory_space<vmem>>) attributes {dimension_semantics = [#tpu.dimension_semantics<parallel>], iteration_bounds = array<i64: 2>, scalar_prefetch = 0 : i64, scratch_operands = 0 : i64, tpu.core_type = #tpu.core_type<tc>, window_params = [{transform_indices = @transform_0, window_bounds = array<i64: 1, 32, 42>}, {pipeline_mode = #tpu.pipeline_mode<synchronous>, transform_indices = @transform_1, window_bounds = array<i64: 9, 32, 32>}, {pipeline_mode = #tpu.pipeline_mode<synchronous>, transform_indices = @transform_2, window_bounds = array<i64: 32, 1>}, {transform_indices = @transform_3, window_bounds = array<i64: 1, 32, 2, 2>}]} {
    %c0 = arith.constant 0 : index
    %c0_0 = arith.constant 0 : index
    %c0_1 = arith.constant 0 : index
    %0 = vector.load %arg1[%c0, %c0_0, %c0_1] : memref<1x32x42xf32, #tpu.memory_space<vmem>>, vector<1x32x24xf32>
    %1 = vector.shape_cast %0 : vector<1x32x24xf32> to vector<32x24xf32>
    %c0_2 = arith.constant 0 : index
    %c0_3 = arith.constant 0 : index
    %c0_4 = arith.constant 0 : index
    %2 = vector.load %arg2[%c0_2, %c0_3, %c0_4] : memref<9x32x32xf32, #tpu.memory_space<vmem>>, vector<1x32x32xf32>
    %3 = vector.shape_cast %2 : vector<1x32x32xf32> to vector<32x32xf32>
    %cst = arith.constant dense<0.000000e+00> : vector<32x24xf32>
    %4 = tpu.matmul %3, %1, %cst {dimension_numbers = #tpu.dot_dimension_numbers<[1], [0], [0], [1], [0, 0, 1, 1], [], []>} : vector<32x32xf32>, vector<32x24xf32>, vector<32x24xf32> -> vector<32x24xf32>
    %c0_5 = arith.constant 0 : index
    %c0_6 = arith.constant 0 : index
    %c1 = arith.constant 1 : index
    %5 = vector.load %arg1[%c0_5, %c0_6, %c1] : memref<1x32x42xf32, #tpu.memory_space<vmem>>, vector<1x32x24xf32>
    %6 = vector.shape_cast %5 : vector<1x32x24xf32> to vector<32x24xf32>
    %c1_7 = arith.constant 1 : index
    %c0_8 = arith.constant 0 : index
    %c0_9 = arith.constant 0 : index
    %7 = vector.load %arg2[%c1_7, %c0_8, %c0_9] : memref<9x32x32xf32, #tpu.memory_space<vmem>>, vector<1x32x32xf32>
    %8 = vector.shape_cast %7 : vector<1x32x32xf32> to vector<32x32xf32>
    %cst_10 = arith.constant dense<0.000000e+00> : vector<32x24xf32>
    %9 = tpu.matmul %8, %6, %cst_10 {dimension_numbers = #tpu.dot_dimension_numbers<[1], [0], [0], [1], [0, 0, 1, 1], [], []>} : vector<32x32xf32>, vector<32x24xf32>, vector<32x24xf32> -> vector<32x24xf32>
    %10 = arith.addf %4, %9 : vector<32x24xf32>
    %c0_11 = arith.constant 0 : index
    %c0_12 = arith.constant 0 : index
    %c2 = arith.constant 2 : index
    %11 = vector.load %arg1[%c0_11, %c0_12, %c2] : memref<1x32x42xf32, #tpu.memory_space<vmem>>, vector<1x32x24xf32>
    %12 = vector.shape_cast %11 : vector<1x32x24xf32> to vector<32x24xf32>
    %c2_13 = arith.constant 2 : index
    %c0_14 = arith.constant 0 : index
    %c0_15 = arith.constant 0 : index
    %13 = vector.load %arg2[%c2_13, %c0_14, %c0_15] : memref<9x32x32xf32, #tpu.memory_space<vmem>>, vector<1x32x32xf32>
    %14 = vector.shape_cast %13 : vector<1x32x32xf32> to vector<32x32xf32>
    %cst_16 = arith.constant dense<0.000000e+00> : vector<32x24xf32>
    %15 = tpu.matmul %14, %12, %cst_16 {dimension_numbers = #tpu.dot_dimension_numbers<[1], [0], [0], [1], [0, 0, 1, 1], [], []>} : vector<32x32xf32>, vector<32x24xf32>, vector<32x24xf32> -> vector<32x24xf32>
    %16 = arith.addf %10, %15 : vector<32x24xf32>
    %c0_17 = arith.constant 0 : index
    %c0_18 = arith.constant 0 : index
    %c6 = arith.constant 6 : index
    %17 = vector.load %arg1[%c0_17, %c0_18, %c6] : memref<1x32x42xf32, #tpu.memory_space<vmem>>, vector<1x32x24xf32>
    %18 = vector.shape_cast %17 : vector<1x32x24xf32> to vector<32x24xf32>
    %c3 = arith.constant 3 : index
    %c0_19 = arith.constant 0 : index
    %c0_20 = arith.constant 0 : index
    %19 = vector.load %arg2[%c3, %c0_19, %c0_20] : memref<9x32x32xf32, #tpu.memory_space<vmem>>, vector<1x32x32xf32>
    %20 = vector.shape_cast %19 : vector<1x32x32xf32> to vector<32x32xf32>
    %cst_21 = arith.constant dense<0.000000e+00> : vector<32x24xf32>
    %21 = tpu.matmul %20, %18, %cst_21 {dimension_numbers = #tpu.dot_dimension_numbers<[1], [0], [0], [1], [0, 0, 1, 1], [], []>} : vector<32x32xf32>, vector<32x24xf32>, vector<32x24xf32> -> vector<32x24xf32>
    %22 = arith.addf %16, %21 : vector<32x24xf32>
    %c0_22 = arith.constant 0 : index
    %c0_23 = arith.constant 0 : index
    %c7 = arith.constant 7 : index
    %23 = vector.load %arg1[%c0_22, %c0_23, %c7] : memref<1x32x42xf32, #tpu.memory_space<vmem>>, vector<1x32x24xf32>
    %24 = vector.shape_cast %23 : vector<1x32x24xf32> to vector<32x24xf32>
    %c4 = arith.constant 4 : index
    %c0_24 = arith.constant 0 : index
    %c0_25 = arith.constant 0 : index
    %25 = vector.load %arg2[%c4, %c0_24, %c0_25] : memref<9x32x32xf32, #tpu.memory_space<vmem>>, vector<1x32x32xf32>
    %26 = vector.shape_cast %25 : vector<1x32x32xf32> to vector<32x32xf32>
    %cst_26 = arith.constant dense<0.000000e+00> : vector<32x24xf32>
    %27 = tpu.matmul %26, %24, %cst_26 {dimension_numbers = #tpu.dot_dimension_numbers<[1], [0], [0], [1], [0, 0, 1, 1], [], []>} : vector<32x32xf32>, vector<32x24xf32>, vector<32x24xf32> -> vector<32x24xf32>
    %28 = arith.addf %22, %27 : vector<32x24xf32>
    %c0_27 = arith.constant 0 : index
    %c0_28 = arith.constant 0 : index
    %c8 = arith.constant 8 : index
    %29 = vector.load %arg1[%c0_27, %c0_28, %c8] : memref<1x32x42xf32, #tpu.memory_space<vmem>>, vector<1x32x24xf32>
    %30 = vector.shape_cast %29 : vector<1x32x24xf32> to vector<32x24xf32>
    %c5 = arith.constant 5 : index
    %c0_29 = arith.constant 0 : index
    %c0_30 = arith.constant 0 : index
    %31 = vector.load %arg2[%c5, %c0_29, %c0_30] : memref<9x32x32xf32, #tpu.memory_space<vmem>>, vector<1x32x32xf32>
    %32 = vector.shape_cast %31 : vector<1x32x32xf32> to vector<32x32xf32>
    %cst_31 = arith.constant dense<0.000000e+00> : vector<32x24xf32>
    %33 = tpu.matmul %32, %30, %cst_31 {dimension_numbers = #tpu.dot_dimension_numbers<[1], [0], [0], [1], [0, 0, 1, 1], [], []>} : vector<32x32xf32>, vector<32x24xf32>, vector<32x24xf32> -> vector<32x24xf32>
    %34 = arith.addf %28, %33 : vector<32x24xf32>
    %c0_32 = arith.constant 0 : index
    %c0_33 = arith.constant 0 : index
    %c12 = arith.constant 12 : index
    %35 = vector.load %arg1[%c0_32, %c0_33, %c12] : memref<1x32x42xf32, #tpu.memory_space<vmem>>, vector<1x32x24xf32>
    %36 = vector.shape_cast %35 : vector<1x32x24xf32> to vector<32x24xf32>
    %c6_34 = arith.constant 6 : index
    %c0_35 = arith.constant 0 : index
    %c0_36 = arith.constant 0 : index
    %37 = vector.load %arg2[%c6_34, %c0_35, %c0_36] : memref<9x32x32xf32, #tpu.memory_space<vmem>>, vector<1x32x32xf32>
    %38 = vector.shape_cast %37 : vector<1x32x32xf32> to vector<32x32xf32>
    %cst_37 = arith.constant dense<0.000000e+00> : vector<32x24xf32>
    %39 = tpu.matmul %38, %36, %cst_37 {dimension_numbers = #tpu.dot_dimension_numbers<[1], [0], [0], [1], [0, 0, 1, 1], [], []>} : vector<32x32xf32>, vector<32x24xf32>, vector<32x24xf32> -> vector<32x24xf32>
    %40 = arith.addf %34, %39 : vector<32x24xf32>
    %c0_38 = arith.constant 0 : index
    %c0_39 = arith.constant 0 : index
    %c13 = arith.constant 13 : index
    %41 = vector.load %arg1[%c0_38, %c0_39, %c13] : memref<1x32x42xf32, #tpu.memory_space<vmem>>, vector<1x32x24xf32>
    %42 = vector.shape_cast %41 : vector<1x32x24xf32> to vector<32x24xf32>
    %c7_40 = arith.constant 7 : index
    %c0_41 = arith.constant 0 : index
    %c0_42 = arith.constant 0 : index
    %43 = vector.load %arg2[%c7_40, %c0_41, %c0_42] : memref<9x32x32xf32, #tpu.memory_space<vmem>>, vector<1x32x32xf32>
    %44 = vector.shape_cast %43 : vector<1x32x32xf32> to vector<32x32xf32>
    %cst_43 = arith.constant dense<0.000000e+00> : vector<32x24xf32>
    %45 = tpu.matmul %44, %42, %cst_43 {dimension_numbers = #tpu.dot_dimension_numbers<[1], [0], [0], [1], [0, 0, 1, 1], [], []>} : vector<32x32xf32>, vector<32x24xf32>, vector<32x24xf32> -> vector<32x24xf32>
    %46 = arith.addf %40, %45 : vector<32x24xf32>
    %c0_44 = arith.constant 0 : index
    %c0_45 = arith.constant 0 : index
    %c14 = arith.constant 14 : index
    %47 = vector.load %arg1[%c0_44, %c0_45, %c14] : memref<1x32x42xf32, #tpu.memory_space<vmem>>, vector<1x32x24xf32>
    %48 = vector.shape_cast %47 : vector<1x32x24xf32> to vector<32x24xf32>
    %c8_46 = arith.constant 8 : index
    %c0_47 = arith.constant 0 : index
    %c0_48 = arith.constant 0 : index
    %49 = vector.load %arg2[%c8_46, %c0_47, %c0_48] : memref<9x32x32xf32, #tpu.memory_space<vmem>>, vector<1x32x32xf32>
    %50 = vector.shape_cast %49 : vector<1x32x32xf32> to vector<32x32xf32>
    %cst_49 = arith.constant dense<0.000000e+00> : vector<32x24xf32>
    %51 = tpu.matmul %50, %48, %cst_49 {dimension_numbers = #tpu.dot_dimension_numbers<[1], [0], [0], [1], [0, 0, 1, 1], [], []>} : vector<32x32xf32>, vector<32x24xf32>, vector<32x24xf32> -> vector<32x24xf32>
    %52 = arith.addf %46, %51 : vector<32x24xf32>
    %c0_50 = arith.constant 0 : index
    %c0_51 = arith.constant 0 : index
    %53 = vector.load %arg3[%c0_50, %c0_51] : memref<32x1xf32, #tpu.memory_space<vmem>>, vector<32x1xf32>
    %54 = vector.broadcast %53 : vector<32x1xf32> to vector<32x24xf32>
    %55 = arith.addf %52, %54 : vector<32x24xf32>
    %cst_52 = arith.constant 0.000000e+00 : f32
    %56 = vector.broadcast %cst_52 : f32 to vector<32x24xf32>
    %57 = arith.maximumf %55, %56 : vector<32x24xf32>
    %58 = vector.extract_strided_slice %57 {offsets = [0, 0], sizes = [32, 18], strides = [1, 1]} : vector<32x24xf32> to vector<32x18xf32>
    %59 = vector.extract_strided_slice %57 {offsets = [0, 6], sizes = [32, 18], strides = [1, 1]} : vector<32x24xf32> to vector<32x18xf32>
    %60 = arith.maximumf %58, %59 : vector<32x18xf32>
    %61 = vector.extract_strided_slice %60 {offsets = [0, 0], sizes = [32, 17], strides = [1, 1]} : vector<32x18xf32> to vector<32x17xf32>
    %62 = vector.extract_strided_slice %60 {offsets = [0, 1], sizes = [32, 17], strides = [1, 1]} : vector<32x18xf32> to vector<32x17xf32>
    %63 = arith.maximumf %61, %62 : vector<32x17xf32>
    %64 = tpu.iota {dimensions = array<i32: 0>} : vector<4x2xi32>
    %65 = tpu.iota {dimensions = array<i32: 1>} : vector<4x2xi32>
    %c2_i32 = arith.constant 2 : i32
    %66 = vector.broadcast %c2_i32 : i32 to vector<4x2xi32>
    %67 = arith.muli %66, %65 : vector<4x2xi32>
    %68 = arith.cmpi eq, %64, %67 : vector<4x2xi32>
    %69 = arith.extui %68 : vector<4x2xi1> to vector<4x2xi32>
    %70 = arith.sitofp %69 : vector<4x2xi32> to vector<4x2xf32>
    %71 = vector.extract_strided_slice %63 {offsets = [0, 0], sizes = [32, 4], strides = [1, 1]} : vector<32x17xf32> to vector<32x4xf32>
    %cst_53 = arith.constant dense<0.000000e+00> : vector<32x2xf32>
    %72 = tpu.matmul %71, %70, %cst_53 {dimension_numbers = #tpu.dot_dimension_numbers<[1], [0], [0], [1], [0, 0, 1, 1], [], []>} : vector<32x4xf32>, vector<4x2xf32>, vector<32x2xf32> -> vector<32x2xf32>
    %c0_54 = arith.constant 0 : index
    %c0_55 = arith.constant 0 : index
    %c0_56 = arith.constant 0 : index
    %c0_57 = arith.constant 0 : index
    %73 = vector.load %arg4[%c0_54, %c0_55, %c0_56, %c0_57] : memref<1x32x2x2xf32, #tpu.memory_space<vmem>>, vector<1x32x1x2xf32>
    %74 = vector.shape_cast %73 : vector<1x32x1x2xf32> to vector<32x2xf32>
    %75 = vector.shape_cast %72 : vector<32x2xf32> to vector<1x32x1x2xf32>
    tpu.vector_store %arg4[%c0_54, %c0_55, %c0_56, %c0_57], %75 {strides = array<i32>} : memref<1x32x2x2xf32, #tpu.memory_space<vmem>>, vector<1x32x1x2xf32>,
    %76 = vector.extract_strided_slice %63 {offsets = [0, 12], sizes = [32, 4], strides = [1, 1]} : vector<32x17xf32> to vector<32x4xf32>
    %cst_58 = arith.constant dense<0.000000e+00> : vector<32x2xf32>
    %77 = tpu.matmul %76, %70, %cst_58 {dimension_numbers = #tpu.dot_dimension_numbers<[1], [0], [0], [1], [0, 0, 1, 1], [], []>} : vector<32x4xf32>, vector<4x2xf32>, vector<32x2xf32> -> vector<32x2xf32>
    %c0_59 = arith.constant 0 : index
    %c0_60 = arith.constant 0 : index
    %c1_61 = arith.constant 1 : index
    %c0_62 = arith.constant 0 : index
    %78 = vector.load %arg4[%c0_59, %c0_60, %c1_61, %c0_62] : memref<1x32x2x2xf32, #tpu.memory_space<vmem>>, vector<1x32x1x2xf32>
    %79 = vector.shape_cast %78 : vector<1x32x1x2xf32> to vector<32x2xf32>
    %80 = vector.shape_cast %77 : vector<32x2xf32> to vector<1x32x1x2xf32>
    tpu.vector_store %arg4[%c0_59, %c0_60, %c1_61, %c0_62], %80 {strides = array<i32>} : memref<1x32x2x2xf32, #tpu.memory_space<vmem>>, vector<1x32x1x2xf32>,
    return
  }
  func.func @transform_0(%arg0: i32) -> (i32, i32, i32) {
    %c0_i32 = arith.constant 0 : i32
    %c0_i32_0 = arith.constant 0 : i32
    %c0_i32_1 = arith.constant 0 : i32
    return %arg0, %c0_i32, %c0_i32_0 : i32, i32, i32
  }
  func.func @transform_1(%arg0: i32) -> (i32, i32, i32) {
    %c0_i32 = arith.constant 0 : i32
    %c0_i32_0 = arith.constant 0 : i32
    %c0_i32_1 = arith.constant 0 : i32
    %c0_i32_2 = arith.constant 0 : i32
    return %c0_i32, %c0_i32_0, %c0_i32_1 : i32, i32, i32
  }
  func.func @transform_2(%arg0: i32) -> (i32, i32) {
    %c0_i32 = arith.constant 0 : i32
    %c0_i32_0 = arith.constant 0 : i32
    %c0_i32_1 = arith.constant 0 : i32
    return %c0_i32, %c0_i32_0 : i32, i32
  }
  func.func @transform_3(%arg0: i32) -> (i32, i32, i32, i32) {
    %c0_i32 = arith.constant 0 : i32
    %c0_i32_0 = arith.constant 0 : i32
    %c0_i32_1 = arith.constant 0 : i32
    %c0_i32_2 = arith.constant 0 : i32
    return %arg0, %c0_i32, %c0_i32_0, %c0_i32_1 : i32, i32, i32, i32
  }
}

module attributes {stable_mosaic.version = 11 : i64} {
  func.func @_dense_kernel(%arg0: i32, %arg1: memref<2x128xf32, #tpu.memory_space<vmem>>, %arg2: memref<128x128xbf16, #tpu.memory_space<vmem>>, %arg3: memref<1x128xf32, #tpu.memory_space<vmem>>, %arg4: memref<2x128xf32, #tpu.memory_space<vmem>>) attributes {dimension_semantics = [#tpu.dimension_semantics<parallel>], iteration_bounds = array<i64: 1>, scalar_prefetch = 0 : i64, scratch_operands = 0 : i64, tpu.core_type = #tpu.core_type<tc>, window_params = [{transform_indices = @transform_0, window_bounds = array<i64: 2, 128>}, {pipeline_mode = #tpu.pipeline_mode<synchronous>, transform_indices = @transform_1, window_bounds = array<i64: 128, 128>}, {pipeline_mode = #tpu.pipeline_mode<synchronous>, transform_indices = @transform_2, window_bounds = array<i64: 1, 128>}, {transform_indices = @transform_3, window_bounds = array<i64: 2, 128>}]} {
    %c0 = arith.constant 0 : index
    %c0_0 = arith.constant 0 : index
    %0 = vector.load %arg1[%c0, %c0_0] : memref<2x128xf32, #tpu.memory_space<vmem>>, vector<2x128xf32>
    %1 = arith.truncf %0 : vector<2x128xf32> to vector<2x128xbf16>
    %c0_1 = arith.constant 0 : index
    %c0_2 = arith.constant 0 : index
    %2 = vector.load %arg2[%c0_1, %c0_2] : memref<128x128xbf16, #tpu.memory_space<vmem>>, vector<128x128xbf16>
    %cst = arith.constant dense<0.000000e+00> : vector<2x128xf32>
    %3 = tpu.matmul %1, %2, %cst {dimension_numbers = #tpu.dot_dimension_numbers<[1], [0], [0], [1], [0, 0, 1, 1], [], []>} : vector<2x128xbf16>, vector<128x128xbf16>, vector<2x128xf32> -> vector<2x128xf32>
    %c0_3 = arith.constant 0 : index
    %c0_4 = arith.constant 0 : index
    %4 = vector.load %arg3[%c0_3, %c0_4] : memref<1x128xf32, #tpu.memory_space<vmem>>, vector<1x128xf32>
    %5 = vector.broadcast %4 : vector<1x128xf32> to vector<2x128xf32>
    %6 = arith.addf %3, %5 : vector<2x128xf32>
    %cst_5 = arith.constant 0.000000e+00 : f32
    %7 = vector.broadcast %cst_5 : f32 to vector<2x128xf32>
    %8 = arith.maximumf %6, %7 : vector<2x128xf32>
    %c0_6 = arith.constant 0 : index
    %c0_7 = arith.constant 0 : index
    %9 = vector.load %arg4[%c0_6, %c0_7] : memref<2x128xf32, #tpu.memory_space<vmem>>, vector<2x128xf32>
    tpu.vector_store %arg4[%c0_6, %c0_7], %8 {strides = array<i32>} : memref<2x128xf32, #tpu.memory_space<vmem>>, vector<2x128xf32>,
    return
  }
  func.func @transform_0(%arg0: i32) -> (i32, i32) {
    %c0_i32 = arith.constant 0 : i32
    %c0_i32_0 = arith.constant 0 : i32
    return %arg0, %c0_i32 : i32, i32
  }
  func.func @transform_1(%arg0: i32) -> (i32, i32) {
    %c0_i32 = arith.constant 0 : i32
    %c0_i32_0 = arith.constant 0 : i32
    %c0_i32_1 = arith.constant 0 : i32
    return %c0_i32, %c0_i32_0 : i32, i32
  }
  func.func @transform_2(%arg0: i32) -> (i32, i32) {
    %c0_i32 = arith.constant 0 : i32
    %c0_i32_0 = arith.constant 0 : i32
    %c0_i32_1 = arith.constant 0 : i32
    return %c0_i32, %c0_i32_0 : i32, i32
  }
  func.func @transform_3(%arg0: i32) -> (i32, i32) {
    %c0_i32 = arith.constant 0 : i32
    %c0_i32_0 = arith.constant 0 : i32
    return %arg0, %c0_i32 : i32, i32
  }
}

module attributes {stable_mosaic.version = 11 : i64} {
  func.func @_qheads_kernel(%arg0: i32, %arg1: memref<2x256xf32, #tpu.memory_space<vmem>>, %arg2: memref<1x256x256xf32, #tpu.memory_space<vmem>>, %arg3: memref<1x1x256xf32, #tpu.memory_space<vmem>>, %arg4: memref<1x256x256xf32, #tpu.memory_space<vmem>>, %arg5: memref<1x1x256xf32, #tpu.memory_space<vmem>>, %arg6: memref<1x256x256xf32, #tpu.memory_space<vmem>>, %arg7: memref<1x1x256xf32, #tpu.memory_space<vmem>>, %arg8: memref<1x256x1xf32, #tpu.memory_space<vmem>>, %arg9: memref<1x1x1xf32, #tpu.memory_space<vmem>>, %arg10: memref<1x2x1xf32, #tpu.memory_space<vmem>>) attributes {dimension_semantics = [#tpu.dimension_semantics<parallel>], iteration_bounds = array<i64: 2>, scalar_prefetch = 0 : i64, scratch_operands = 0 : i64, tpu.core_type = #tpu.core_type<tc>, window_params = [{pipeline_mode = #tpu.pipeline_mode<synchronous>, transform_indices = @transform_0, window_bounds = array<i64: 2, 256>}, {transform_indices = @transform_1, window_bounds = array<i64: 1, 256, 256>}, {transform_indices = @transform_2, window_bounds = array<i64: 1, 1, 256>}, {transform_indices = @transform_3, window_bounds = array<i64: 1, 256, 256>}, {transform_indices = @transform_4, window_bounds = array<i64: 1, 1, 256>}, {transform_indices = @transform_5, window_bounds = array<i64: 1, 256, 256>}, {transform_indices = @transform_6, window_bounds = array<i64: 1, 1, 256>}, {transform_indices = @transform_7, window_bounds = array<i64: 1, 256, 1>}, {transform_indices = @transform_8, window_bounds = array<i64: 1, 1, 1>}, {transform_indices = @transform_9, window_bounds = array<i64: 1, 2, 1>}]} {
    %c0 = arith.constant 0 : index
    %c0_0 = arith.constant 0 : index
    %0 = vector.load %arg1[%c0, %c0_0] : memref<2x256xf32, #tpu.memory_space<vmem>>, vector<2x256xf32>
    %c0_1 = arith.constant 0 : index
    %c0_2 = arith.constant 0 : index
    %c0_3 = arith.constant 0 : index
    %1 = vector.load %arg2[%c0_1, %c0_2, %c0_3] : memref<1x256x256xf32, #tpu.memory_space<vmem>>, vector<1x256x256xf32>
    %2 = vector.shape_cast %1 : vector<1x256x256xf32> to vector<256x256xf32>
    %cst = arith.constant dense<0.000000e+00> : vector<2x256xf32>
    %3 = tpu.matmul %0, %2, %cst {dimension_numbers = #tpu.dot_dimension_numbers<[1], [0], [0], [1], [0, 0, 1, 1], [], []>} : vector<2x256xf32>, vector<256x256xf32>, vector<2x256xf32> -> vector<2x256xf32>
    %c0_4 = arith.constant 0 : index
    %c0_5 = arith.constant 0 : index
    %c0_6 = arith.constant 0 : index
    %4 = vector.load %arg3[%c0_4, %c0_5, %c0_6] : memref<1x1x256xf32, #tpu.memory_space<vmem>>, vector<1x1x256xf32>
    %5 = vector.shape_cast %4 : vector<1x1x256xf32> to vector<1x256xf32>
    %6 = vector.broadcast %5 : vector<1x256xf32> to vector<2x256xf32>
    %7 = arith.addf %3, %6 : vector<2x256xf32>
    %cst_7 = arith.constant 0.000000e+00 : f32
    %8 = vector.broadcast %cst_7 : f32 to vector<2x256xf32>
    %9 = arith.maximumf %7, %8 : vector<2x256xf32>
    %c0_8 = arith.constant 0 : index
    %c0_9 = arith.constant 0 : index
    %c0_10 = arith.constant 0 : index
    %10 = vector.load %arg4[%c0_8, %c0_9, %c0_10] : memref<1x256x256xf32, #tpu.memory_space<vmem>>, vector<1x256x256xf32>
    %11 = vector.shape_cast %10 : vector<1x256x256xf32> to vector<256x256xf32>
    %cst_11 = arith.constant dense<0.000000e+00> : vector<2x256xf32>
    %12 = tpu.matmul %9, %11, %cst_11 {dimension_numbers = #tpu.dot_dimension_numbers<[1], [0], [0], [1], [0, 0, 1, 1], [], []>} : vector<2x256xf32>, vector<256x256xf32>, vector<2x256xf32> -> vector<2x256xf32>
    %c0_12 = arith.constant 0 : index
    %c0_13 = arith.constant 0 : index
    %c0_14 = arith.constant 0 : index
    %13 = vector.load %arg5[%c0_12, %c0_13, %c0_14] : memref<1x1x256xf32, #tpu.memory_space<vmem>>, vector<1x1x256xf32>
    %14 = vector.shape_cast %13 : vector<1x1x256xf32> to vector<1x256xf32>
    %15 = vector.broadcast %14 : vector<1x256xf32> to vector<2x256xf32>
    %16 = arith.addf %12, %15 : vector<2x256xf32>
    %cst_15 = arith.constant 0.000000e+00 : f32
    %17 = vector.broadcast %cst_15 : f32 to vector<2x256xf32>
    %18 = arith.maximumf %16, %17 : vector<2x256xf32>
    %c0_16 = arith.constant 0 : index
    %c0_17 = arith.constant 0 : index
    %c0_18 = arith.constant 0 : index
    %19 = vector.load %arg6[%c0_16, %c0_17, %c0_18] : memref<1x256x256xf32, #tpu.memory_space<vmem>>, vector<1x256x256xf32>
    %20 = vector.shape_cast %19 : vector<1x256x256xf32> to vector<256x256xf32>
    %cst_19 = arith.constant dense<0.000000e+00> : vector<2x256xf32>
    %21 = tpu.matmul %18, %20, %cst_19 {dimension_numbers = #tpu.dot_dimension_numbers<[1], [0], [0], [1], [0, 0, 1, 1], [], []>} : vector<2x256xf32>, vector<256x256xf32>, vector<2x256xf32> -> vector<2x256xf32>
    %c0_20 = arith.constant 0 : index
    %c0_21 = arith.constant 0 : index
    %c0_22 = arith.constant 0 : index
    %22 = vector.load %arg7[%c0_20, %c0_21, %c0_22] : memref<1x1x256xf32, #tpu.memory_space<vmem>>, vector<1x1x256xf32>
    %23 = vector.shape_cast %22 : vector<1x1x256xf32> to vector<1x256xf32>
    %24 = vector.broadcast %23 : vector<1x256xf32> to vector<2x256xf32>
    %25 = arith.addf %21, %24 : vector<2x256xf32>
    %cst_23 = arith.constant 0.000000e+00 : f32
    %26 = vector.broadcast %cst_23 : f32 to vector<2x256xf32>
    %27 = arith.maximumf %25, %26 : vector<2x256xf32>
    %c0_24 = arith.constant 0 : index
    %c0_25 = arith.constant 0 : index
    %c0_26 = arith.constant 0 : index
    %28 = vector.load %arg8[%c0_24, %c0_25, %c0_26] : memref<1x256x1xf32, #tpu.memory_space<vmem>>, vector<1x256x1xf32>
    %29 = vector.shape_cast %28 : vector<1x256x1xf32> to vector<256x1xf32>
    %cst_27 = arith.constant dense<0.000000e+00> : vector<2x1xf32>
    %30 = tpu.matmul %27, %29, %cst_27 {dimension_numbers = #tpu.dot_dimension_numbers<[1], [0], [0], [1], [0, 0, 1, 1], [], []>} : vector<2x256xf32>, vector<256x1xf32>, vector<2x1xf32> -> vector<2x1xf32>
    %c0_28 = arith.constant 0 : index
    %c0_29 = arith.constant 0 : index
    %c0_30 = arith.constant 0 : index
    %31 = vector.load %arg9[%c0_28, %c0_29, %c0_30] : memref<1x1x1xf32, #tpu.memory_space<vmem>>, vector<1x1x1xf32>
    %32 = vector.shape_cast %31 : vector<1x1x1xf32> to vector<1x1xf32>
    %33 = vector.broadcast %32 : vector<1x1xf32> to vector<2x1xf32>
    %34 = arith.addf %30, %33 : vector<2x1xf32>
    %c0_31 = arith.constant 0 : index
    %c0_32 = arith.constant 0 : index
    %c0_33 = arith.constant 0 : index
    %35 = vector.load %arg10[%c0_31, %c0_32, %c0_33] : memref<1x2x1xf32, #tpu.memory_space<vmem>>, vector<1x2x1xf32>
    %36 = vector.shape_cast %35 : vector<1x2x1xf32> to vector<2x1xf32>
    %37 = vector.shape_cast %34 : vector<2x1xf32> to vector<1x2x1xf32>
    tpu.vector_store %arg10[%c0_31, %c0_32, %c0_33], %37 {strides = array<i32>} : memref<1x2x1xf32, #tpu.memory_space<vmem>>, vector<1x2x1xf32>,
    return
  }
  func.func @transform_0(%arg0: i32) -> (i32, i32) {
    %c0_i32 = arith.constant 0 : i32
    %c0_i32_0 = arith.constant 0 : i32
    %c0_i32_1 = arith.constant 0 : i32
    return %c0_i32, %c0_i32_0 : i32, i32
  }
  func.func @transform_1(%arg0: i32) -> (i32, i32, i32) {
    %c0_i32 = arith.constant 0 : i32
    %c0_i32_0 = arith.constant 0 : i32
    %c0_i32_1 = arith.constant 0 : i32
    return %arg0, %c0_i32, %c0_i32_0 : i32, i32, i32
  }
  func.func @transform_2(%arg0: i32) -> (i32, i32, i32) {
    %c0_i32 = arith.constant 0 : i32
    %c0_i32_0 = arith.constant 0 : i32
    %c0_i32_1 = arith.constant 0 : i32
    return %arg0, %c0_i32, %c0_i32_0 : i32, i32, i32
  }
  func.func @transform_3(%arg0: i32) -> (i32, i32, i32) {
    %c0_i32 = arith.constant 0 : i32
    %c0_i32_0 = arith.constant 0 : i32
    %c0_i32_1 = arith.constant 0 : i32
    return %arg0, %c0_i32, %c0_i32_0 : i32, i32, i32
  }
  func.func @transform_4(%arg0: i32) -> (i32, i32, i32) {
    %c0_i32 = arith.constant 0 : i32
    %c0_i32_0 = arith.constant 0 : i32
    %c0_i32_1 = arith.constant 0 : i32
    return %arg0, %c0_i32, %c0_i32_0 : i32, i32, i32
  }
  func.func @transform_5(%arg0: i32) -> (i32, i32, i32) {
    %c0_i32 = arith.constant 0 : i32
    %c0_i32_0 = arith.constant 0 : i32
    %c0_i32_1 = arith.constant 0 : i32
    return %arg0, %c0_i32, %c0_i32_0 : i32, i32, i32
  }
  func.func @transform_6(%arg0: i32) -> (i32, i32, i32) {
    %c0_i32 = arith.constant 0 : i32
    %c0_i32_0 = arith.constant 0 : i32
    %c0_i32_1 = arith.constant 0 : i32
    return %arg0, %c0_i32, %c0_i32_0 : i32, i32, i32
  }
  func.func @transform_7(%arg0: i32) -> (i32, i32, i32) {
    %c0_i32 = arith.constant 0 : i32
    %c0_i32_0 = arith.constant 0 : i32
    %c0_i32_1 = arith.constant 0 : i32
    return %arg0, %c0_i32, %c0_i32_0 : i32, i32, i32
  }
  func.func @transform_8(%arg0: i32) -> (i32, i32, i32) {
    %c0_i32 = arith.constant 0 : i32
    %c0_i32_0 = arith.constant 0 : i32
    %c0_i32_1 = arith.constant 0 : i32
    return %arg0, %c0_i32, %c0_i32_0 : i32, i32, i32
  }
  func.func @transform_9(%arg0: i32) -> (i32, i32, i32) {
    %c0_i32 = arith.constant 0 : i32
    %c0_i32_0 = arith.constant 0 : i32
    %c0_i32_1 = arith.constant 0 : i32
    return %arg0, %c0_i32, %c0_i32_0 : i32, i32, i32
  }
}

</mosaic_0001>

<bundles_post_ra>
// kernel: critic_forward.6
= control target key start
LH: loop header
LB: loop body
LE: loop exit
PB: predicated region body
PF: predicated region fallthrough
CT: control target
= control target key end

     0   :  { %s4039_s12 = smov 0   ;;  %s5029_s0 = inlined_call_operand.vmem [shape: f32[2,16,110], index: 0, kind: input, shape index: {}]   ;;  %s5030_s1 = inlined_call_operand.vmem [shape: f32[9,32,16], index: 1, kind: input, shape index: {}]   ;;  %s5031_s2 = inlined_call_operand.vmem [shape: f32[32,1], index: 2, kind: input, shape index: {}]   ;;  %s5032_s3 = inlined_call_operand.vmem [shape: f32[2,32,7,6], index: 3, kind: output, shape index: {}]  }
   0x1 LB: > { %s3563_s13 = sadd.s32 4294967295, %s4002_s12   ;;  %p3567_p0 = scmp.ge.s32.totalorder %s4002_s12, 1  ;;  %s4002_s12 = sphi %s4039_s12, %s13_s12  }
   0x2   : > { %p137_p1 = scmp.lt.s32.totalorder %s4002_s12, 3 }
   0x4   : > { %p138_p2 = pnand %p3567_p0, %p137_p1 }
   0x5   : > { %p161_p3 = scmp.lt.s32.totalorder (!%p138_p2), %s3563_s13, 1  ;;  %vm190_vm0 = vcmask (!%p138_p2), 130048   ;;  %v3584_v0 = vld [vmem:[%s5030_s1 + $0x40] sm:$0xff] (!%p138_p2)  ;;  %s4004_s20 = smov (!%p138_p2), 126   ;;  %v1170_v7 = vld [vmem:[%s5031_s2 + $0x8] sm:$0xff] (!%p138_p2)  ;;  %v4012_v8 = vmov (!%p138_p2), 0  }
   0x6   : > { %141 = sbr.rel (%p138_p2) target bundleno = 1283 (0x503), region = 32  ;;  %3763 = vmatprep.mubr.msk.f32.mxu0 (!%p138_p2), %vm190_vm0, %v3584_v0  ;;  %s4005_s21 = smov (!%p138_p2), 117   ;;  %v3572_v4 = vld [vmem:[%s5030_s1 + $0x20] sm:$0xff] (!%p138_p2)  ;;  %3994 = vset.pattern.permute.xlu0 (!%p138_p2), %v4012_v8  ;;  %v1172_v9 = vld [vmem:[%s5031_s2 + $0x18] sm:$0xff] (!%p138_p2)  ;;  %v1171_v10 = vld [vmem:[%s5031_s2 + $0x10] sm:$0xff] (!%p138_p2)  ;;  %vm1282_vm2 = vcmask (!%p138_p2), 64512  }
   0x7   : > { %3743 = vmatprep.mubr.msk.f32.mxu1 (!%p138_p2), %vm190_vm0, %v3572_v4  ;;  %s4006_s24 = smov (!%p138_p2), 118   ;;  %s4007_s25 = smov (!%p138_p2), 116   ;;  %v1169_v6 = vld [vmem:[%s5031_s2] sm:$0xff] (!%p138_p2)  ;;  %3995 = vset.pattern.permute.xlu1 (!%p138_p2), %v4012_v8  ;;  %v3585_v21 = vld [vmem:[%s5030_s1 + $0x48] sm:$0xff] (!%p138_p2)  ;;  %v3574_v34 = vld [vmem:[%s5030_s1 + $0x30] sm:$0xff] (!%p138_p2)  ;;  %vm1249_vm3 = vcmask (!%p138_p2), 47104  }
   0x8   : > { %s4008_s26 = smov (!%p138_p2), 127   ;;  %s4009_s27 = smov (!%p138_p2), 108   ;;  %v3592_v23 = vld [vmem:[%s5030_s1 + $0x60] sm:$0xff] (!%p138_p2)  ;;  %v3573_v32 = vld [vmem:[%s5030_s1 + $0x28] sm:$0xff] (!%p138_p2)  ;;  %v3594_v37 = vld [vmem:[%s5030_s1 + $0x70] sm:$0xff] (!%p138_p2)  ;;  %vm1804_vm4 = vcmask (!%p138_p2), 32776  }
   0x9   : > { %s4010_s28 = smov (!%p138_p2), 107   ;;  %s4011_s29 = smov (!%p138_p2), 106   ;;  %v3593_v33 = vld [vmem:[%s5030_s1 + $0x68] sm:$0xff] (!%p138_p2)  ;;  %v3575_v38 = vld [vmem:[%s5030_s1 + $0x38] sm:$0xff] (!%p138_p2)  ;;  %v173_v40 = vld [vmem:[%s5030_s1] sm:$0xff] (!%p138_p2) }
   0xa   : > { %v3595_v39 = vld [vmem:[%s5030_s1 + $0x78] sm:$0xff] (!%p138_p2)  ;;  %v3600_v41 = vld [vmem:[%s5030_s1 + $0x80] sm:$0xff] (!%p138_p2)  ;;  %v174_v44 = vld [vmem:[%s5030_s1 + $0x8] sm:$0xff] (!%p138_p2) }
   0xb   : > { %v3601_v45 = vld [vmem:[%s5030_s1 + $0x88] sm:$0xff] (!%p138_p2)  ;;  %v3602_v47 = vld [vmem:[%s5030_s1 + $0x90] sm:$0xff] (!%p138_p2)  ;;  %v3603_v50 = vld [vmem:[%s5030_s1 + $0x98] sm:$0xff] (!%p138_p2) }
   0xc   : > { %v175_v49 = vld [vmem:[%s5030_s1 + $0x10] sm:$0xff] (!%p138_p2)  ;;  %v176_v51 = vld [vmem:[%s5030_s1 + $0x18] sm:$0xff] (!%p138_p2)  ;;  %v3608_v52 = vld [vmem:[%s5030_s1 + $0xa0] sm:$0xff] (!%p138_p2) }
   0xd   : > { %s5036_s13 = smov (!%p161_p3, %s3563_s13), 1  ;;  %v3586_v55 = vld [vmem:[%s5030_s1 + $0x50] sm:$0xff]  ;;  %v3609_v56 = vld [vmem:[%s5030_s1 + $0xa8] sm:$0xff]  ;;  %v3611_v60 = vld [vmem:[%s5030_s1 + $0xb8] sm:$0xff] }
   0xe   : > { %s3663_s16 = sshll.u32 %s5036_s13, 4  ;;  %v3610_v57 = vld [vmem:[%s5030_s1 + $0xb0] sm:$0xff]  ;;  %v3587_v61 = vld [vmem:[%s5030_s1 + $0x58] sm:$0xff]  ;;  %v3616_v62 = vld [vmem:[%s5030_s1 + $0xc0] sm:$0xff] }
   0xf   : > { %s165_s19 = scalar_lea.vmem %s5029_s0, %s3663_s16  ;;  %v3619_v4 = vld [vmem:[%s5030_s1 + $0xd8] sm:$0xff] }
  0x10   : > { %v171_v1 = vld [vmem:[%s165_s19] sm:$0xff]  ;;  %v172_v2 = vld [vmem:[%s165_s19 + $0x8] sm:$0xff]  ;;  %v3627_v8 = vld [vmem:[%s5030_s1 + $0xf8] sm:$0xff] }
  0x11   : > { %v3954_v3 = vpack.i.bf16 %v172_v2, %v171_v1  ;;  %v4061_v5 = vpack.c.bf16 %v172_v2, %v171_v1  ;;  %v3617_v1 = vld [vmem:[%s5030_s1 + $0xc8] sm:$0xff]  ;;  %v3618_v2 = vld [vmem:[%s5030_s1 + $0xd0] sm:$0xff] }
  0x13   : > { %3955 = vrot.lane.b32.xlu0 %v3954_v3, %s4004_s20  ;;  %3965 = vrot.lane.b32.xlu1 %v3954_v3, %s4005_s21 }
  0x17   : > { %3960 = vrot.lane.b32.xlu0 %v3954_v3, %s4006_s24  ;;  %3970 = vrot.lane.b32.xlu1 %v3954_v3, %s4007_s25 }
  0x1b   : > { %3975 = vrot.lane.b32.xlu0 %v3954_v3, %s4008_s26  ;;  %3980 = vrot.lane.b32.xlu1 %v3954_v3, %s4009_s27 }
  0x1f   : > { %3985 = vrot.lane.b32.xlu0 %v3954_v3, %s4010_s28  ;;  %3990 = vrot.lane.b32.xlu1 %v3954_v3, %s4011_s29 }
  0x23   : > { %1175 = vperm.xlu0 %3994, %v1169_v6   ;;  %1180 = vperm.xlu1 %3995, %v1170_v7   ;;  %v3625_v6 = vld [vmem:[%s5030_s1 + $0xe8] sm:$0xff]  ;;  %v3626_v7 = vld [vmem:[%s5030_s1 + $0xf0] sm:$0xff] }
  0x27   : > { %1190 = vperm.xlu0 %3994, %v1172_v9   ;;  %1185 = vperm.xlu1 %3995, %v1171_v10   ;;  %v3632_v9 = vld [vmem:[%s5030_s1 + $0x100] sm:$0xff]  ;;  %v3633_v10 = vld [vmem:[%s5030_s1 + $0x108] sm:$0xff] }
  0x85   : > { %v3956_v11 = vpop.permute.xlu0 %3955  ;;  %v3966_v12 = vpop.permute.xlu1 %3965 }
  0x86   : > { %v3958_v13 = vunpack.i.h.bf16 %v3956_v11  ;;  %v3957_v14 = vunpack.i.l.bf16 %v3956_v11  ;;  %v3968_v16 = vunpack.i.h.bf16 %v3966_v12  ;;  %v3967_v17 = vunpack.i.l.bf16 %v3966_v12  ;;  %v3634_v11 = vld [vmem:[%s5030_s1 + $0x110] sm:$0xff]  ;;  %v3635_v12 = vld [vmem:[%s5030_s1 + $0x118] sm:$0xff] }
  0x88   : > { %v3869_v15 = vpack.c.bf16 %v3958_v13, %v3957_v14  ;;  %v3877_v24 = vpack.c.bf16 %v3968_v16, %v3967_v17 }
  0x89   : > { %v3961_v18 = vpop.permute.xlu0 %3960  ;;  %v3971_v28 = vpop.permute.xlu1 %3970 }
  0x8a   : > { %v3963_v19 = vunpack.i.h.bf16 %v3961_v18  ;;  %v3962_v20 = vunpack.i.l.bf16 %v3961_v18  ;;  %3870 = vmatprep.subr.bf16.mxu0 %v3869_v15  ;;  %v3973_v30 = vunpack.i.h.bf16 %v3971_v28  ;;  %v3972_v31 = vunpack.i.l.bf16 %v3971_v28 }
  0x8b   : > { %3872 = vmatpush3.bf16.msra.mxu0 %v3869_v15 }
  0x8c   : > { %v3873_v22 = vpack.c.bf16 %v3963_v19, %v3962_v20  ;;  %v3881_v35 = vpack.c.bf16 %v3973_v30, %v3972_v31 }
  0x8d   : > { %v3976_v25 = vpop.permute.xlu0 %3975  ;;  %v3981_v36 = vpop.permute.xlu1 %3980 }
  0x8e   : > { %3764 = vmatmul.mubr.msk.f32.vlgmr.msra.gmra.mrb[0].mxu0 %vm190_vm0, %v3585_v21  ;;  %3874 = vmatprep.subr.bf16.mxu0 %v3873_v22  ;;  %v3978_v26 = vunpack.i.h.bf16 %v3976_v25  ;;  %v3977_v27 = vunpack.i.l.bf16 %v3976_v25  ;;  %v3983_v42 = vunpack.i.h.bf16 %v3981_v36  ;;  %v3982_v43 = vunpack.i.l.bf16 %v3981_v36 }
  0x8f   : > { %3876 = vmatpush3.bf16.msra.mxu0 %v3873_v22  ;;  %3773 = vmatprep.mubr.msk.f32.mxu0 %vm190_vm0, %v3592_v23 }
  0x90   : > { %v3861_v29 = vpack.c.bf16 %v3978_v26, %v3977_v27  ;;  %3878 = vmatprep.subr.bf16.mxu0 %v3877_v24  ;;  %v3885_v46 = vpack.c.bf16 %v3983_v42, %v3982_v43  ;;  %v4013_v42 = vmov 1.0  }
  0x91   : > { %v3986_v48 = vpop.permute.xlu0 %3985  ;;  %v3991_v59 = vpop.permute.xlu1 %3990 }
  0x92   : > { %3862 = vmatprep.subr.bf16.mxu1 %v3861_v29  ;;  %v3988_v53 = vunpack.i.h.bf16 %v3986_v48  ;;  %v3987_v54 = vunpack.i.l.bf16 %v3986_v48  ;;  %v3993_v63 = vunpack.i.h.bf16 %v3991_v59  ;;  %v3992_v0 = vunpack.i.l.bf16 %v3991_v59 }
  0x93   : > { %3864 = vmatpush3.bf16.msra.mxu1 %v3861_v29 }
  0x94   : > { %3866 = vmatprep.subr.bf16.mxu1 %v4061_v5  ;;  %v3889_v58 = vpack.c.bf16 %v3988_v53, %v3987_v54  ;;  %v3893_v3 = vpack.c.bf16 %v3993_v63, %v3992_v0 }
  0x96   : > { %3744 = vmatmul.mubr.msk.f32.vlgmr.msra.gmra.mrb[0].mxu1 %vm190_vm0, %v3573_v32  ;;  %3774 = vmatmul.mubr.msk.f32.vlgmr.msra.gmra.mrb[0].mxu0 %vm190_vm0, %v3593_v33 }
  0x97   : > { %3880 = vmatpush3.bf16.msra.mxu0 %v3877_v24  ;;  %3868 = vmatpush3.bf16.msra.mxu1 %v4061_v5  ;;  %v3624_v5 = vld [vmem:[%s5030_s1 + $0xe0] sm:$0xff] }
  0x98   : > { %3897 = vmatprep.subr.bf16.mxu1 %v3869_v15  ;;  %3746 = vmatprep.mubr.msk.f32.mxu1 %vm190_vm0, %v3574_v34 }
  0x99   : > { %3776 = vmatprep.mubr.msk.f32.mxu0 %vm190_vm0, %v3594_v37  ;;  %3882 = vmatprep.subr.bf16.mxu0 %v3881_v35  ;;  %v1241_v37 = vlaneseq }
  0x9a   : > { %3747 = vmatmul.mubr.msk.f32.gmra.mrb[2].mxu1 %vm190_vm0, %v3575_v38  ;;  %3777 = vmatmul.mubr.msk.f32.gmra.mrb[2].mxu0 %vm190_vm0, %v3595_v39 }
  0x9b   : > { %3753 = vmatprep.mubr.msk.f32.mxu1 %vm190_vm0, %v173_v40  ;;  %3783 = vmatprep.mubr.msk.f32.mxu0 %vm190_vm0, %v3600_v41  ;;  %v1244_v38 = vand.u32 127, %v1241_v37  ;;  %v4220_v39 = vshrl.u32 %v1241_v37, 7 }
  0x9d   : > { %v1245_v40 = vmul.u32 2, %v1244_v38 }
  0x9e   : > { %3754 = vmatmul.mubr.msk.f32.vlgmr.msra.gmra.mrb[0].mxu1 %vm190_vm0, %v174_v44  ;;  %3784 = vmatmul.mubr.msk.f32.vlgmr.msra.gmra.mrb[0].mxu0 %vm190_vm0, %v3601_v45 }
  0x9f   : > { %3898 = vmatpush3.bf16.msra.mxu1 %v3869_v15  ;;  %3884 = vmatpush3.bf16.msra.mxu0 %v3881_v35  ;;  %vm4223_vm1 = vcmp.eq.s32.totalorder %v4220_v39, %v1245_v40 }
  0xa0   : > { %3786 = vmatprep.mubr.msk.f32.mxu0 %vm190_vm0, %v3602_v47  ;;  %3886 = vmatprep.subr.bf16.mxu0 %v3885_v46 }
  0xa1   : > { %3756 = vmatprep.mubr.msk.f32.mxu1 %vm190_vm0, %v175_v49  ;;  %3829 = vmatprep.subr.msk.mxu1 %vm4223_vm1, %v4013_v42 }
  0xa2   : > { %3787 = vmatmul.mubr.msk.f32.gmra.mrb[2].mxu0 %vm190_vm0, %v3603_v50  ;;  %3757 = vmatmul.mubr.msk.f32.gmra.mrb[2].mxu1 %vm190_vm0, %v176_v51  ;;  %v1176_v17 = vpop.permute.xlu0 %1175  ;;  %v1181_v20 = vpop.permute.xlu1 %1180 }
  0xa3   : > { %3793 = vmatprep.mubr.msk.f32.mxu0 %vm190_vm0, %v3608_v52  ;;  %3766 = vmatprep.mubr.msk.f32.mxu1 %vm190_vm0, %v3586_v55 }
  0xa6   : > { %3794 = vmatmul.mubr.msk.f32.vlgmr.msra.gmra.mrb[0].mxu0 %vm190_vm0, %v3609_v56  ;;  %v1191_v30 = vpop.permute.xlu0 %1190  ;;  %v1186_v33 = vpop.permute.xlu1 %1185 }
  0xa7   : > { %3888 = vmatpush3.bf16.msra.mxu0 %v3885_v46  ;;  %3796 = vmatprep.mubr.msk.f32.mxu0 %vm190_vm0, %v3610_v57 }
  0xa8   : > { %3890 = vmatprep.subr.bf16.mxu0 %v3889_v58 }
  0xaa   : > { %3797 = vmatmul.mubr.msk.f32.gmra.mrb[2].mxu0 %vm190_vm0, %v3611_v60  ;;  %3767 = vmatmul.mubr.msk.f32.vlgmr.msra.gmra.mrb[2].mxu1 %vm190_vm0, %v3587_v61 }
  0xab   : > { %3803 = vmatprep.mubr.msk.f32.mxu0 %vm190_vm0, %v3616_v62  ;;  %3830 = vmatpush3.msk.msra.mxu1 %vm4223_vm1, %v4013_v42 }
  0xac   : > { %3837 = vmatprep.subr.msk.mxu1 %vm4223_vm1, %v4013_v42 }
  0xae   : > { %3804 = vmatmul.mubr.msk.f32.vlgmr.msra.gmra.mrb[0].mxu0 %vm190_vm0, %v3617_v1 }
  0xaf   : > { %3892 = vmatpush3.bf16.msra.mxu0 %v3889_v58  ;;  %3806 = vmatprep.mubr.msk.f32.mxu0 %vm190_vm0, %v3618_v2 }
  0xb0   : > { %3894 = vmatprep.subr.bf16.mxu0 %v3893_v3 }
  0xb2   : > { %3807 = vmatmul.mubr.msk.f32.gmra.mrb[2].mxu0 %vm190_vm0, %v3619_v4 }
  0xb3   : > { %3813 = vmatprep.mubr.msk.f32.mxu0 %vm190_vm0, %v3624_v5 }
  0xb6   : > { %3814 = vmatmul.mubr.msk.f32.vlgmr.msra.gmra.mrb[0].mxu0 %vm190_vm0, %v3625_v6 }
  0xb7   : > { %3896 = vmatpush3.bf16.msra.mxu0 %v3893_v3  ;;  %3816 = vmatprep.mubr.msk.f32.mxu0 %vm190_vm0, %v3626_v7  ;;  %v4016_v7 = vmov 1966171168  }
  0xba   : > { %3817 = vmatmul.mubr.msk.f32.gmra.mrb[2].mxu0 %vm190_vm0, %v3627_v8  ;;  %v1386_v8 = vunpack.c.l.s4 %v4016_v7 }
  0xbb   : > { %3823 = vmatprep.mubr.msk.f32.mxu0 %vm190_vm0, %v3632_v9 }
  0xbc   : > { %v1387_v9 = vunpack.c.0.s8 %v1386_v8 }
  0xbe   : > { %3824 = vmatmul.mubr.msk.f32.vlgmr.msra.gmra.mrb[0].mxu0 %vm190_vm0, %v3633_v10  ;;  %v4274_v10 = vsub.s32 %v1387_v9, %v4220_v39 }
  0xbf   : > { %3826 = vmatprep.mubr.msk.f32.mxu0 %vm190_vm0, %v3634_v11 }
  0xc2   : > { %3827 = vmatmul.mubr.msk.f32.gmra.mrb[2].mxu0 %vm190_vm0, %v3635_v12  ;;  %v4017_v12 = vmov 0.0  }
 0x171   : > { %v3755_v13 = vpop.f32.mrb[0].mxu1 }
 0x172   : > { %v366_v14 = vpop.f32.mrb[1].mxu1 }
 0x17d   : > { %v3768_v15 = vpop.f32.mrb[2].mxu1 }
 0x17e   : > { %v484_v16 = vpop.f32.mrb[3].mxu1 }
 0x191   : > { %v3825_v18 = vpop.f32.mrb[0].mxu0 }
 0x192   : > { %v3899_v19 = vadd.f32 %v3825_v18, %v3755_v13  ;;  %v1146_v21 = vpop.f32.mrb[1].mxu0  ;;  %v4343_v18 = vsub.s32 0, %v4220_v39 }
 0x193   : > { %v3900_v22 = vadd.f32 %v1146_v21, %v366_v14 }
 0x194   : > { %v1194_v23 = vadd.f32 %v3899_v19, %v1181_v20 }
 0x195   : > { %v1193_v24 = vadd.f32 %v3900_v22, %v1176_v17  ;;  %v3828_v25 = vpop.f32.mrb[2].mxu0 }
 0x196   : > { %v1198_v26 = vmax.f32 %v1194_v23, 0.0  ;;  %v3901_v27 = vadd.f32 %v3828_v25, %v3768_v15  ;;  %v1156_v28 = vpop.f32.mrb[3].mxu0 }
 0x197   : > { %v1197_v29 = vmax.f32 %v1193_v24, 0.0  ;;  %v3902_v31 = vadd.f32 %v1156_v28, %v484_v16 }
 0x198   : > { %v1196_v32 = vadd.f32 %v3901_v27, %v1191_v30  ;;  %1207 = vrot.lane.b32.xlu0 %v1198_v26, %s4006_s24 }
 0x199   : > { %v1195_v34 = vadd.f32 %v3902_v31, %v1186_v33  ;;  %1205 = vrot.lane.b32.xlu1 %v1197_v29, %s4006_s24 }
 0x19a   : > { %v1200_v35 = vmax.f32 %v1196_v32, 0.0 }
 0x19b   : > { %v1199_v36 = vmax.f32 %v1195_v34, 0.0 }
 0x19c   : > { %1211 = vrot.lane.b32.xlu0 %v1200_v35, %s4006_s24 }
 0x19d   : > { %1209 = vrot.lane.b32.xlu1 %v1199_v36, %s4006_s24  ;;  %s4014_s24 = smov 88  }
 0x20a   : > { %v1208_v43 = vpop.permute.xlu0 %1207 }
 0x20b   : > { %v1218_v44 = vmax.f32 %v1198_v26, %v1208_v43  ;;  %v1206_v45 = vpop.permute.xlu1 %1205 }
 0x20c   : > { %v1217_v46 = vmax.f32 %v1197_v29, %v1206_v45 }
 0x20d   : > { %1227 = vrot.lane.b32.xlu0 %v1218_v44, %s4008_s26 }
 0x20e   : > { %v1212_v47 = vpop.permute.xlu0 %1211  ;;  %1225 = vrot.lane.b32.xlu1 %v1217_v46, %s4008_s26 }
 0x20f   : > { %v1220_v48 = vmax.f32 %v1200_v35, %v1212_v47  ;;  %v1210_v49 = vpop.permute.xlu1 %1209 }
 0x210   : > { %v1219_v50 = vmax.f32 %v1199_v36, %v1210_v49 }
 0x211   : > { %1231 = vrot.lane.b32.xlu0 %v1220_v48, %s4008_s26 }
 0x212   : > { %1229 = vrot.lane.b32.xlu1 %v1219_v50, %s4008_s26  ;;  %s4015_s26 = smov 68  }
 0x27f   : > { %v1228_v51 = vpop.permute.xlu0 %1227 }
 0x280   : > { %v1238_v52 = vmax.f32 %v1218_v44, %v1228_v51  ;;  %v1226_v53 = vpop.permute.xlu1 %1225 }
 0x281   : > { %v1237_v54 = vmax.f32 %v1217_v46, %v1226_v53 }
 0x282   : > { %1839 = vrot.lane.b32.xlu0 %v1238_v52, %s4009_s27 }
 0x283   : > { %v1232_v55 = vpop.permute.xlu0 %1231  ;;  %1837 = vrot.lane.b32.xlu1 %v1237_v54, %s4009_s27  ;;  %3831 = vmatprep.mubr.msk.f32.mxu1 %vm1282_vm2, %v1237_v54 }
 0x284   : > { %v1240_v56 = vmax.f32 %v1220_v48, %v1232_v55  ;;  %3832 = vmatmul.mubr.msk.f32.vlgmr.msra.gmra.mrb[4].mxu1 %vm1282_vm2, %v1238_v52  ;;  %v1230_v57 = vpop.permute.xlu1 %1229 }
 0x285   : > { %v1239_v58 = vmax.f32 %v1219_v50, %v1230_v57  ;;  %3838 = vmatpush3.msk.msra.mxu1 %vm4223_vm1, %v4013_v42 }
 0x286   : > { %1843 = vrot.lane.b32.xlu0 %v1240_v56, %s4009_s27  ;;  %3845 = vmatprep.subr.msk.mxu1 %vm4223_vm1, %v4013_v42 }
 0x287   : > { %1841 = vrot.lane.b32.xlu1 %v1239_v58, %s4009_s27  ;;  %3834 = vmatprep.mubr.msk.f32.mxu1 %vm1282_vm2, %v1239_v58  ;;  %s3664_s27 = sshll.u32 %s5036_s13, 8  ;;  %s4018_s13 = smov 1  }
 0x288   : > { %3835 = vmatmul.mubr.msk.f32.gmra.mrb[6].mxu1 %vm1282_vm2, %v1240_v56  ;;  %s4271_s17 = scalar_lea.vmem %s5032_s3, %s3664_s27 }
 0x289   : > { %1258 = vst.msk [vmem:[%s4271_s17 + $0x40] sm:$0x7f] %vm1249_vm3, %v4017_v12  ;;  %1250 = vst.msk [vmem:[%s4271_s17] sm:$0x7f] %vm1249_vm3, %v4017_v12 }
 0x28a   : > { %2396 = vrot.lane.b32.xlu0 %v1238_v52, %s4014_s24  ;;  %1251 = vst.msk [vmem:[%s4271_s17 + $0x8] sm:$0x7f] %vm1249_vm3, %v4017_v12  ;;  %1252 = vst.msk [vmem:[%s4271_s17 + $0x10] sm:$0x7f] %vm1249_vm3, %v4017_v12 }
 0x28b   : > { %2394 = vrot.lane.b32.xlu1 %v1237_v54, %s4014_s24  ;;  %1253 = vst.msk [vmem:[%s4271_s17 + $0x18] sm:$0x7f] %vm1249_vm3, %v4017_v12  ;;  %1254 = vst.msk [vmem:[%s4271_s17 + $0x20] sm:$0x7f] %vm1249_vm3, %v4017_v12 }
 0x28c   : > { %1255 = vst.msk [vmem:[%s4271_s17 + $0x28] sm:$0x7f] %vm1249_vm3, %v4017_v12  ;;  %1256 = vst.msk [vmem:[%s4271_s17 + $0x30] sm:$0x7f] %vm1249_vm3, %v4017_v12 }
 0x28d   : > { %1257 = vst.msk [vmem:[%s4271_s17 + $0x38] sm:$0x7f] %vm1249_vm3, %v4017_v12  ;;  %1259 = vst.msk [vmem:[%s4271_s17 + $0x48] sm:$0x7f] %vm1249_vm3, %v4017_v12 }
 0x28e   : > { %2400 = vrot.lane.b32.xlu0 %v1240_v56, %s4014_s24  ;;  %1260 = vst.msk [vmem:[%s4271_s17 + $0x50] sm:$0x7f] %vm1249_vm3, %v4017_v12  ;;  %1261 = vst.msk [vmem:[%s4271_s17 + $0x58] sm:$0x7f] %vm1249_vm3, %v4017_v12 }
 0x28f   : > { %2398 = vrot.lane.b32.xlu1 %v1239_v58, %s4014_s24  ;;  %1262 = vst.msk [vmem:[%s4271_s17 + $0x60] sm:$0x7f] %vm1249_vm3, %v4017_v12  ;;  %1263 = vst.msk [vmem:[%s4271_s17 + $0x68] sm:$0x7f] %vm1249_vm3, %v4017_v12 }
 0x290   : > { %1264 = vst.msk [vmem:[%s4271_s17 + $0x70] sm:$0x7f] %vm1249_vm3, %v4017_v12  ;;  %1265 = vst.msk [vmem:[%s4271_s17 + $0x78] sm:$0x7f] %vm1249_vm3, %v4017_v12 }
 0x291   : > { %1266 = vst.msk [vmem:[%s4271_s17 + $0x80] sm:$0x7f] %vm1249_vm3, %v4017_v12  ;;  %1267 = vst.msk [vmem:[%s4271_s17 + $0x88] sm:$0x7f] %vm1249_vm3, %v4017_v12 }
 0x292   : > { %2953 = vrot.lane.b32.xlu0 %v1238_v52, %s4015_s26  ;;  %1268 = vst.msk [vmem:[%s4271_s17 + $0x90] sm:$0x7f] %vm1249_vm3, %v4017_v12  ;;  %1269 = vst.msk [vmem:[%s4271_s17 + $0x98] sm:$0x7f] %vm1249_vm3, %v4017_v12 }
 0x293   : > { %2951 = vrot.lane.b32.xlu1 %v1237_v54, %s4015_s26  ;;  %1270 = vst.msk [vmem:[%s4271_s17 + $0xa0] sm:$0x7f] %vm1249_vm3, %v4017_v12  ;;  %1271 = vst.msk [vmem:[%s4271_s17 + $0xa8] sm:$0x7f] %vm1249_vm3, %v4017_v12 }
 0x294   : > { %1272 = vst.msk [vmem:[%s4271_s17 + $0xb0] sm:$0x7f] %vm1249_vm3, %v4017_v12  ;;  %1273 = vst.msk [vmem:[%s4271_s17 + $0xb8] sm:$0x7f] %vm1249_vm3, %v4017_v12 }
 0x295   : > { %1274 = vst.msk [vmem:[%s4271_s17 + $0xc0] sm:$0x7f] %vm1249_vm3, %v4017_v12  ;;  %1275 = vst.msk [vmem:[%s4271_s17 + $0xc8] sm:$0x7f] %vm1249_vm3, %v4017_v12 }
 0x296   : > { %2957 = vrot.lane.b32.xlu0 %v1240_v56, %s4015_s26  ;;  %1276 = vst.msk [vmem:[%s4271_s17 + $0xd0] sm:$0x7f] %vm1249_vm3, %v4017_v12  ;;  %1277 = vst.msk [vmem:[%s4271_s17 + $0xd8] sm:$0x7f] %vm1249_vm3, %v4017_v12 }
 0x297   : > { %2955 = vrot.lane.b32.xlu1 %v1239_v58, %s4015_s26  ;;  %1278 = vst.msk [vmem:[%s4271_s17 + $0xe0] sm:$0x7f] %vm1249_vm3, %v4017_v12  ;;  %1279 = vst.msk [vmem:[%s4271_s17 + $0xe8] sm:$0x7f] %vm1249_vm3, %v4017_v12 }
 0x298   : > { %1280 = vst.msk [vmem:[%s4271_s17 + $0xf0] sm:$0x7f] %vm1249_vm3, %v4017_v12  ;;  %1281 = vst.msk [vmem:[%s4271_s17 + $0xf8] sm:$0x7f] %vm1249_vm3, %v4017_v12 }
 0x2f4   : > { %v1840_v59 = vpop.permute.xlu0 %1839 }
 0x2f5   : > { %v1838_v60 = vpop.permute.xlu1 %1837 }
 0x2f6   : > { %3839 = vmatprep.mubr.msk.f32.mxu1 %vm1282_vm2, %v1838_v60 }
 0x2f7   : > { %3840 = vmatmul.mubr.msk.f32.vlgmr.msra.gmra.mrb[8].mxu1 %vm1282_vm2, %v1840_v59 }
 0x2f8   : > { %v1844_v61 = vpop.permute.xlu0 %1843  ;;  %3846 = vmatpush3.msk.msra.mxu1 %vm4223_vm1, %v4013_v42 }
 0x2f9   : > { %v1842_v62 = vpop.permute.xlu1 %1841  ;;  %3853 = vmatprep.subr.msk.mxu1 %vm4223_vm1, %v4013_v42 }
 0x2fa   : > { %3842 = vmatprep.mubr.msk.f32.mxu1 %vm1282_vm2, %v1842_v62 }
 0x2fb   : > { %3843 = vmatmul.mubr.msk.f32.gmra.mrb[10].mxu1 %vm1282_vm2, %v1844_v61 }
 0x2fc   : > { %v2397_v63 = vpop.permute.xlu0 %2396 }
 0x2fd   : > { %v2395_v0 = vpop.permute.xlu1 %2394 }
 0x2fe   : > { %3847 = vmatprep.mubr.msk.f32.mxu1 %vm1282_vm2, %v2395_v0 }
 0x2ff   : > { %3848 = vmatmul.mubr.msk.f32.vlgmr.msra.gmra.mrb[12].mxu1 %vm1282_vm2, %v2397_v63 }
 0x300   : > { %v2401_v1 = vpop.permute.xlu0 %2400  ;;  %3854 = vmatpush3.msk.msra.mxu1 %vm4223_vm1, %v4013_v42 }
 0x301   : > { %v2399_v2 = vpop.permute.xlu1 %2398 }
 0x302   : > { %3850 = vmatprep.mubr.msk.f32.mxu1 %vm1282_vm2, %v2399_v2 }
 0x303   : > { %3851 = vmatmul.mubr.msk.f32.gmra.mrb[14].mxu1 %vm1282_vm2, %v2401_v1 }
 0x304   : > { %v2954_v3 = vpop.permute.xlu0 %2953 }
 0x305   : > { %v2952_v4 = vpop.permute.xlu1 %2951 }
 0x306   : > { %3855 = vmatprep.mubr.msk.f32.mxu1 %vm1282_vm2, %v2952_v4 }
 0x307   : > { %3856 = vmatmul.mubr.msk.f32.vlgmr.msra.gmra.mrb[16].mxu1 %vm1282_vm2, %v2954_v3 }
 0x308   : > { %v2958_v6 = vpop.permute.xlu0 %2957 }
 0x309   : > { %v2956_v5 = vpop.permute.xlu1 %2955 }
 0x30a   : > { %3858 = vmatprep.mubr.msk.f32.mxu1 %vm1282_vm2, %v2956_v5 }
 0x30b   : > { %3859 = vmatmul.mubr.msk.f32.gmra.mrb[18].mxu1 %vm1282_vm2, %v2958_v6 }
 0x357   : > { %v3833_v11 = vpop.f32.mrb[4].mxu1 }
 0x358   : > { %v1440_v13 = vrot.slane %v3833_v11, %v4274_v10  ;;  %v1361_v14 = vpop.f32.mrb[5].mxu1  ;;  %v1433_v16 = vcombine.high %v3833_v11, %v3833_v11 }
 0x359   : > { %v1391_v15 = vrot.slane %v1361_v14, %v4274_v10  ;;  %v1384_v29 = vcombine.high %v1361_v14, %v1361_v14 }
 0x35a   : > { %v1448_v17 = vcombine.high %v1440_v13, %v1440_v13  ;;  %v1456_v19 = vrot.slane %v1440_v13, %v4274_v10  ;;  %v1447_v24 = vrot.slane %v1433_v16, %v4274_v10 }
 0x35b   : > { %v1399_v20 = vcombine.high %v1391_v15, %v1391_v15  ;;  %v4346_v21 = vpop.f32.mrb[6].mxu1  ;;  %v1407_v25 = vrot.slane %v1391_v15, %v4274_v10  ;;  %v1398_v35 = vrot.slane %v1384_v29, %v4274_v10 }
 0x35c   : > { %v1470_v22 = vrot.slane %v1448_v17, %v4274_v10  ;;  %v4349_v23 = vpop.f32.mrb[7].mxu1  ;;  %v1615_v27 = vrot.slane %v1456_v19, %v4343_v18  ;;  %v1449_v30 = vcombine.high %v1447_v24, %v1447_v24  ;;  %v1478_v31 = vcombine.high %v1456_v19, %v1456_v19 }
 0x35d   : > { %v1421_v26 = vrot.slane %v1399_v20, %v4274_v10  ;;  %v1583_v32 = vrot.slane %v1407_v25, %v4343_v18  ;;  %v1463_v36 = vrot.slane %v1447_v24, %v4274_v10  ;;  %v1400_v40 = vcombine.high %v1398_v35, %v1398_v35 }
 0x35e   : > { %v1619_v28 = vrot.slane %v1470_v22, %v4343_v18  ;;  %1724 = vrot.lane.b32.xlu1 %v1615_v27, %s4018_s13  ;;  %v1480_v34 = vcombine.high %v1470_v22, %v1470_v22  ;;  %v1623_v37 = vrot.slane %v1478_v31, %v4343_v18  ;;  %v1477_v39 = vrot.slane %v1449_v30, %v4274_v10 }
 0x35f   : > { %v1587_v33 = vrot.slane %v1421_v26, %v4343_v18  ;;  %v1429_v41 = vcombine.high %v1407_v25, %v1407_v25  ;;  %v1631_v42 = vrot.slane %v1463_v36, %v4343_v18  ;;  %v1431_v44 = vcombine.high %v1421_v26, %v1421_v26 }
 0x360   : > { %1726 = vrot.lane.b32.xlu0 %v1619_v28, %s4018_s13  ;;  %v1627_v38 = vrot.slane %v1480_v34, %v4343_v18  ;;  %v1635_v43 = vrot.slane %v1477_v39, %v4343_v18  ;;  %v1538_v45 = vrot.slane %v4346_v21, %v4274_v10  ;;  %v1414_v46 = vrot.slane %v1398_v35, %v4274_v10 }
 0x361   : > { %v1591_v47 = vrot.slane %v1429_v41, %v4343_v18  ;;  %v1595_v48 = vrot.slane %v1431_v44, %v4343_v18  ;;  %v1428_v49 = vrot.slane %v1400_v40, %v4274_v10  ;;  %v1479_v53 = vcombine.high %v1463_v36, %v1463_v36 }
 0x362   : > { %1708 = vrot.lane.b32.xlu1 %v1583_v32, %s4018_s13  ;;  %v1546_v50 = vcombine.high %v1538_v45, %v1538_v45  ;;  %v1599_v51 = vrot.slane %v1414_v46, %v4343_v18  ;;  %v1481_v54 = vcombine.high %v1477_v39, %v1477_v39  ;;  %v1489_v55 = vrot.slane %v4349_v23, %v4274_v10 }
 0x363   : > { %v1603_v52 = vrot.slane %v1428_v49, %v4343_v18  ;;  %v1554_v56 = vrot.slane %v1538_v45, %v4274_v10  ;;  %v1639_v58 = vrot.slane %v1479_v53, %v4343_v18  ;;  %v1531_v60 = vcombine.high %v4346_v21, %v4346_v21 }
 0x364   : > { %1710 = vrot.lane.b32.xlu0 %v1587_v33, %s4018_s13  ;;  %v1568_v57 = vrot.slane %v1546_v50, %v4274_v10  ;;  %v1643_v59 = vrot.slane %v1481_v54, %v4343_v18  ;;  %v1497_v61 = vcombine.high %v1489_v55, %v1489_v55  ;;  %v1430_v0 = vcombine.high %v1414_v46, %v1414_v46 }
 0x365   : > { %v1679_v62 = vrot.slane %v1554_v56, %v4343_v18  ;;  %v1432_v1 = vcombine.high %v1428_v49, %v1428_v49  ;;  %v1545_v2 = vrot.slane %v1531_v60, %v4274_v10  ;;  %v1505_v3 = vrot.slane %v1489_v55, %v4274_v10 }
 0x366   : > { %1728 = vrot.lane.b32.xlu1 %v1623_v37, %s4018_s13  ;;  %v1683_v63 = vrot.slane %v1568_v57, %v4343_v18  ;;  %v1519_v4 = vrot.slane %v1497_v61, %v4274_v10  ;;  %v1607_v5 = vrot.slane %v1430_v0, %v4343_v18  ;;  %v1482_v8 = vcombine.high %v4349_v23, %v4349_v23 }
 0x367   : > { %v1611_v6 = vrot.slane %v1432_v1, %v4343_v18  ;;  %v1547_v7 = vcombine.high %v1545_v2, %v1545_v2  ;;  %v1576_v9 = vcombine.high %v1554_v56, %v1554_v56  ;;  %v1647_v11 = vrot.slane %v1505_v3, %v4343_v18 }
 0x368   : > { %1730 = vrot.lane.b32.xlu0 %v1627_v38, %s4018_s13  ;;  %v1651_v12 = vrot.slane %v1519_v4, %v4343_v18  ;;  %v1578_v13 = vcombine.high %v1568_v57, %v1568_v57  ;;  %v1496_v14 = vrot.slane %v1482_v8, %v4274_v10  ;;  %v1561_v15 = vrot.slane %v1545_v2, %v4274_v10 }
 0x369   : > { %v1687_v16 = vrot.slane %v1576_v9, %v4343_v18  ;;  %v1575_v19 = vrot.slane %v1547_v7, %v4274_v10  ;;  %v1527_v21 = vcombine.high %v1505_v3, %v1505_v3  ;;  %v1529_v24 = vcombine.high %v1519_v4, %v1519_v4 }
 0x36a   : > { %1732 = vrot.lane.b32.xlu1 %v1631_v42, %s4018_s13  ;;  %v1691_v17 = vrot.slane %v1578_v13, %v4343_v18  ;;  %v1498_v20 = vcombine.high %v1496_v14, %v1496_v14  ;;  %v1695_v22 = vrot.slane %v1561_v15, %v4343_v18  ;;  %v1512_v25 = vrot.slane %v1496_v14, %v4274_v10 }
 0x36b   : > { %v1699_v23 = vrot.slane %v1575_v19, %v4343_v18  ;;  %v1655_v26 = vrot.slane %v1527_v21, %v4343_v18  ;;  %v1659_v27 = vrot.slane %v1529_v24, %v4343_v18  ;;  %v1577_v31 = vcombine.high %v1561_v15, %v1561_v15 }
 0x36c   : > { %1734 = vrot.lane.b32.xlu0 %v1635_v43, %s4018_s13  ;;  %v1526_v28 = vrot.slane %v1498_v20, %v4274_v10  ;;  %v1663_v29 = vrot.slane %v1512_v25, %v4343_v18  ;;  %v1579_v32 = vcombine.high %v1575_v19, %v1575_v19  ;;  %v1528_v35 = vcombine.high %v1512_v25, %v1512_v25 }
 0x36d   : > { %v1703_v33 = vrot.slane %v1577_v31, %v4343_v18 }
 0x36e   : > { %1712 = vrot.lane.b32.xlu1 %v1591_v47, %s4018_s13  ;;  %v1667_v30 = vrot.slane %v1526_v28, %v4343_v18  ;;  %v1707_v34 = vrot.slane %v1579_v32, %v4343_v18  ;;  %v1530_v36 = vcombine.high %v1526_v28, %v1526_v28  ;;  %v1671_v37 = vrot.slane %v1528_v35, %v4343_v18 }
 0x370   : > { %1714 = vrot.lane.b32.xlu0 %v1595_v48, %s4018_s13  ;;  %v1675_v38 = vrot.slane %v1530_v36, %v4343_v18 }
 0x372   : > { %1716 = vrot.lane.b32.xlu1 %v1599_v51, %s4018_s13 }
 0x374   : > { %1718 = vrot.lane.b32.xlu0 %v1603_v52, %s4018_s13 }
 0x376   : > { %1736 = vrot.lane.b32.xlu1 %v1639_v58, %s4018_s13 }
 0x378   : > { %1738 = vrot.lane.b32.xlu0 %v1643_v59, %s4018_s13 }
 0x37a   : > { %1756 = vrot.lane.b32.xlu1 %v1679_v62, %s4018_s13 }
 0x37c   : > { %1758 = vrot.lane.b32.xlu0 %v1683_v63, %s4018_s13 }
 0x37e   : > { %1720 = vrot.lane.b32.xlu1 %v1607_v5, %s4018_s13 }
 0x380   : > { %1722 = vrot.lane.b32.xlu0 %v1611_v6, %s4018_s13 }
 0x382   : > { %1740 = vrot.lane.b32.xlu1 %v1647_v11, %s4018_s13 }
 0x384   : > { %1742 = vrot.lane.b32.xlu0 %v1651_v12, %s4018_s13 }
 0x386   : > { %1760 = vrot.lane.b32.xlu1 %v1687_v16, %s4018_s13 }
 0x388   : > { %1762 = vrot.lane.b32.xlu0 %v1691_v17, %s4018_s13 }
 0x38a   : > { %1764 = vrot.lane.b32.xlu1 %v1695_v22, %s4018_s13 }
 0x38c   : > { %1766 = vrot.lane.b32.xlu0 %v1699_v23, %s4018_s13 }
 0x38e   : > { %1744 = vrot.lane.b32.xlu1 %v1655_v26, %s4018_s13 }
 0x390   : > { %1746 = vrot.lane.b32.xlu0 %v1659_v27, %s4018_s13 }
 0x392   : > { %1748 = vrot.lane.b32.xlu1 %v1663_v29, %s4018_s13 }
 0x394   : > { %1750 = vrot.lane.b32.xlu0 %v1667_v30, %s4018_s13 }
 0x396   : > { %1768 = vrot.lane.b32.xlu1 %v1703_v33, %s4018_s13 }
 0x398   : > { %1770 = vrot.lane.b32.xlu0 %v1707_v34, %s4018_s13 }
 0x39a   : > { %1752 = vrot.lane.b32.xlu1 %v1671_v37, %s4018_s13 }
 0x39c   : > { %1754 = vrot.lane.b32.xlu0 %v1675_v38, %s4018_s13 }
 0x3ca   : > { %v3841_v39 = vpop.f32.mrb[8].mxu1 }
 0x3cb   : > { %v1998_v40 = vrot.slane %v3841_v39, %v4274_v10  ;;  %v4442_v41 = vpop.f32.mrb[9].mxu1  ;;  %v1991_v5 = vcombine.high %v3841_v39, %v3841_v39 }
 0x3cc   : > { %v1949_v42 = vrot.slane %v4442_v41, %v4274_v10  ;;  %v1942_v19 = vcombine.high %v4442_v41, %v4442_v41 }
 0x3cd   : > { %v2006_v43 = vcombine.high %v1998_v40, %v1998_v40  ;;  %v2014_v44 = vrot.slane %v1998_v40, %v4274_v10  ;;  %v2005_v11 = vrot.slane %v1991_v5, %v4274_v10 }
 0x3ce   : > { %v4447_v45 = vpop.f32.mrb[10].mxu1  ;;  %v1957_v47 = vcombine.high %v1949_v42, %v1949_v42  ;;  %v4453_v49 = vrot.slane %v1949_v42, %v4274_v10  ;;  %v1956_v24 = vrot.slane %v1942_v19, %v4274_v10 }
 0x3cf   : > { %v2028_v46 = vrot.slane %v2006_v43, %v4274_v10  ;;  %v4450_v48 = vpop.f32.mrb[11].mxu1  ;;  %v2173_v50 = vrot.slane %v2014_v44, %v4343_v18  ;;  %v2036_v57 = vcombine.high %v2014_v44, %v2014_v44  ;;  %v2007_v16 = vcombine.high %v2005_v11, %v2005_v11 }
 0x3d0   : > { %v4460_v53 = vrot.slane %v1957_v47, %v4274_v10  ;;  %v1725_v54 = vpop.permute.xlu1 %1724  ;;  %v2141_v58 = vrot.slane %v4453_v49, %v4343_v18  ;;  %v2021_v17 = vrot.slane %v2005_v11, %v4274_v10  ;;  %v1987_v25 = vcombine.high %v4453_v49, %v4453_v49 }
 0x3d1   : > { %v2177_v52 = vrot.slane %v2028_v46, %v4343_v18  ;;  %1813 = vst.msk [vmem:[%s4271_s17 + $0x41] sm:$0x1] %vm1804_vm4, %v1725_v54  ;;  %2282 = vrot.lane.b32.xlu1 %v2173_v50, %s4018_s13  ;;  %v2181_v0 = vrot.slane %v2036_v57, %v4343_v18  ;;  %v2038_v12 = vcombine.high %v2028_v46, %v2028_v46 }
 0x3d2   : > { %v4456_v51 = vpop.f32.mrb[12].mxu1  ;;  %v1727_v55 = vpop.permute.xlu0 %1726  ;;  %v2145_v62 = vrot.slane %v4460_v53, %v4343_v18  ;;  %v2189_v22 = vrot.slane %v2021_v17, %v4343_v18  ;;  %v2035_v23 = vrot.slane %v2007_v16, %v4274_v10  ;;  %v1958_v29 = vcombine.high %v1956_v24, %v1956_v24 }
 0x3d3   : > { %1814 = vst.msk [vmem:[%s4271_s17 + $0x49] sm:$0x1] %vm1804_vm4, %v1727_v55  ;;  %v4467_v56 = vpop.f32.mrb[13].mxu1  ;;  %2284 = vrot.lane.b32.xlu0 %v2177_v52, %s4018_s13  ;;  %v2185_v13 = vrot.slane %v2038_v12, %v4343_v18  ;;  %v1972_v30 = vrot.slane %v1956_v24, %v4274_v10  ;;  %v2149_v31 = vrot.slane %v1987_v25, %v4343_v18 }
 0x3d4   : > { %v1709_v60 = vpop.permute.xlu1 %1708  ;;  %v2193_v28 = vrot.slane %v2035_v23, %v4343_v18  ;;  %v1989_v34 = vcombine.high %v4460_v53, %v4460_v53  ;;  %v2096_v35 = vrot.slane %v4447_v45, %v4274_v10  ;;  %v1986_v38 = vrot.slane %v1958_v29, %v4274_v10 }
 0x3d5   : > { %1805 = vst.msk [vmem:[%s4271_s17 + $0x1] sm:$0x1] %vm1804_vm4, %v1709_v60  ;;  %2266 = vrot.lane.b32.xlu1 %v2141_v58, %s4018_s13  ;;  %v2157_v37 = vrot.slane %v1972_v30, %v4343_v18  ;;  %v2037_v41 = vcombine.high %v2021_v17, %v2021_v17  ;;  %v2039_v47 = vcombine.high %v2035_v23, %v2035_v23 }
 0x3d6   : > { %v4472_v59 = vpop.f32.mrb[14].mxu1  ;;  %v1711_v61 = vpop.permute.xlu0 %1710  ;;  %v2153_v36 = vrot.slane %v1989_v34, %v4343_v18  ;;  %v2104_v42 = vcombine.high %v2096_v35, %v2096_v35  ;;  %v2112_v43 = vrot.slane %v2096_v35, %v4274_v10  ;;  %v2161_v44 = vrot.slane %v1986_v38, %v4343_v18 }
 0x3d7   : > { %1806 = vst.msk [vmem:[%s4271_s17 + $0x9] sm:$0x1] %vm1804_vm4, %v1711_v61  ;;  %v4481_v63 = vpop.f32.mrb[15].mxu1  ;;  %2268 = vrot.lane.b32.xlu0 %v2145_v62, %s4018_s13  ;;  %v2197_v46 = vrot.slane %v2037_v41, %v4343_v18  ;;  %v2047_v52 = vrot.slane %v4450_v48, %v4274_v10  ;;  %v2201_v54 = vrot.slane %v2039_v47, %v4343_v18 }
 0x3d8   : > { %v1729_v2 = vpop.permute.xlu1 %1728  ;;  %v2126_v53 = vrot.slane %v2104_v42, %v4274_v10  ;;  %v2237_v55 = vrot.slane %v2112_v43, %v4343_v18  ;;  %v1988_v57 = vcombine.high %v1972_v30, %v1972_v30  ;;  %v2089_v61 = vcombine.high %v4447_v45, %v4447_v45 }
 0x3d9   : > { %1815 = vst.msk [vmem:[%s4271_s17 + $0x51] sm:$0x1] %vm1804_vm4, %v1729_v2  ;;  %2286 = vrot.lane.b32.xlu1 %v2181_v0, %s4018_s13  ;;  %v2055_v62 = vcombine.high %v2047_v52, %v2047_v52  ;;  %v2063_v0 = vrot.slane %v2047_v52, %v4274_v10  ;;  %v1990_v5 = vcombine.high %v1986_v38, %v1986_v38 }
 0x3da   : > { %v4485_v1 = vpop.f32.mrb[16].mxu1  ;;  %v1731_v3 = vpop.permute.xlu0 %1730  ;;  %v2241_v2 = vrot.slane %v2126_v53, %v4343_v18  ;;  %v2103_v45 = vrot.slane %v2089_v61, %v4274_v10  ;;  %v2134_v11 = vcombine.high %v2112_v43, %v2112_v43  ;;  %v2040_v19 = vcombine.high %v4450_v48, %v4450_v48 }
 0x3db   : > { %1816 = vst.msk [vmem:[%s4271_s17 + $0x59] sm:$0x1] %vm1804_vm4, %v1731_v3  ;;  %v4492_v4 = vpop.f32.mrb[17].mxu1  ;;  %2288 = vrot.lane.b32.xlu0 %v2185_v13, %s4018_s13  ;;  %v2165_v3 = vrot.slane %v1988_v57, %v4343_v18  ;;  %v2077_v12 = vrot.slane %v2055_v62, %v4274_v10  ;;  %v2169_v13 = vrot.slane %v1990_v5, %v4343_v18 }
 0x3dc   : > { %v1733_v7 = vpop.permute.xlu1 %1732  ;;  %v2105_v17 = vcombine.high %v2103_v45, %v2103_v45  ;;  %v2136_v23 = vcombine.high %v2126_v53, %v2126_v53  ;;  %v2054_v48 = vrot.slane %v2040_v19, %v4274_v10  ;;  %v2506_v52 = vrot.slane %v4467_v56, %v4274_v10 }
 0x3dd   : > { %1817 = vst.msk [vmem:[%s4271_s17 + $0x61] sm:$0x1] %vm1804_vm4, %v1733_v7  ;;  %2290 = vrot.lane.b32.xlu1 %v2189_v22, %s4018_s13  ;;  %v2245_v22 = vrot.slane %v2134_v11, %v4343_v18  ;;  %v2499_v11 = vcombine.high %v4467_v56, %v4467_v56 }
 0x3de   : > { %v4494_v6 = vpop.f32.mrb[18].mxu1  ;;  %v1735_v8 = vpop.permute.xlu0 %1734  ;;  %v2133_v29 = vrot.slane %v2105_v17, %v4274_v10  ;;  %v2522_v61 = vrot.slane %v2506_v52, %v4274_v10 }
 0x3df   : > { %1818 = vst.msk [vmem:[%s4271_s17 + $0x69] sm:$0x1] %vm1804_vm4, %v1735_v8  ;;  %v4500_v9 = vpop.f32.mrb[19].mxu1  ;;  %2292 = vrot.lane.b32.xlu0 %v2193_v28, %s4018_s13 }
 0x3e0   : > { %v1713_v14 = vpop.permute.xlu1 %1712  ;;  %v2257_v34 = vrot.slane %v2133_v29, %v4343_v18  ;;  %v2544_v19 = vcombine.high %v2522_v61, %v2522_v61 }
 0x3e1   : > { %1807 = vst.msk [vmem:[%s4271_s17 + $0x11] sm:$0x1] %vm1804_vm4, %v1713_v14  ;;  %2270 = vrot.lane.b32.xlu1 %v2149_v31, %s4018_s13  ;;  %v2205_v14 = vrot.slane %v2063_v0, %v4343_v18 }
 0x3e2   : > { %v1715_v15 = vpop.permute.xlu0 %1714 }
 0x3e3   : > { %1808 = vst.msk [vmem:[%s4271_s17 + $0x19] sm:$0x1] %vm1804_vm4, %v1715_v15  ;;  %2272 = vrot.lane.b32.xlu0 %v2153_v36, %s4018_s13  ;;  %v2087_v36 = vcombine.high %v2077_v12, %v2077_v12 }
 0x3e4   : > { %v1717_v20 = vpop.permute.xlu1 %1716 }
 0x3e5   : > { %1809 = vst.msk [vmem:[%s4271_s17 + $0x21] sm:$0x1] %vm1804_vm4, %v1717_v20  ;;  %2274 = vrot.lane.b32.xlu1 %v2157_v37, %s4018_s13  ;;  %v2119_v20 = vrot.slane %v2103_v45, %v4274_v10 }
 0x3e6   : > { %v1719_v21 = vpop.permute.xlu0 %1718 }
 0x3e7   : > { %1810 = vst.msk [vmem:[%s4271_s17 + $0x29] sm:$0x1] %vm1804_vm4, %v1719_v21  ;;  %2276 = vrot.lane.b32.xlu0 %v2161_v44, %s4018_s13  ;;  %v2209_v21 = vrot.slane %v2077_v12, %v4343_v18  ;;  %v2253_v28 = vrot.slane %v2119_v20, %v4343_v18  ;;  %v2135_v43 = vcombine.high %v2119_v20, %v2119_v20 }
 0x3e8   : > { %v1737_v26 = vpop.permute.xlu1 %1736 }
 0x3e9   : > { %1819 = vst.msk [vmem:[%s4271_s17 + $0x71] sm:$0x1] %vm1804_vm4, %v1737_v26  ;;  %2294 = vrot.lane.b32.xlu1 %v2197_v46, %s4018_s13  ;;  %v2085_v26 = vcombine.high %v2063_v0, %v2063_v0 }
 0x3ea   : > { %v1739_v27 = vpop.permute.xlu0 %1738 }
 0x3eb   : > { %1820 = vst.msk [vmem:[%s4271_s17 + $0x79] sm:$0x1] %vm1804_vm4, %v1739_v27  ;;  %2296 = vrot.lane.b32.xlu0 %v2201_v54, %s4018_s13  ;;  %v2249_v27 = vrot.slane %v2136_v23, %v4343_v18  ;;  %v2213_v35 = vrot.slane %v2085_v26, %v4343_v18 }
 0x3ec   : > { %v1757_v32 = vpop.permute.xlu1 %1756 }
 0x3ed   : > { %1829 = vst.msk [vmem:[%s4271_s17 + $0xc1] sm:$0x1] %vm1804_vm4, %v1757_v32  ;;  %2314 = vrot.lane.b32.xlu1 %v2237_v55, %s4018_s13  ;;  %v2056_v32 = vcombine.high %v2054_v48, %v2054_v48 }
 0x3ee   : > { %v1759_v33 = vpop.permute.xlu0 %1758 }
 0x3ef   : > { %1830 = vst.msk [vmem:[%s4271_s17 + $0xc9] sm:$0x1] %vm1804_vm4, %v1759_v33  ;;  %2316 = vrot.lane.b32.xlu0 %v2241_v2, %s4018_s13  ;;  %v2070_v33 = vrot.slane %v2054_v48, %v4274_v10  ;;  %v2084_v42 = vrot.slane %v2056_v32, %v4274_v10  ;;  %v2653_v48 = vrot.slane %v4472_v59, %v4274_v10 }
 0x3f0   : > { %v1721_v39 = vpop.permute.xlu1 %1720 }
 0x3f1   : > { %1811 = vst.msk [vmem:[%s4271_s17 + $0x31] sm:$0x1] %vm1804_vm4, %v1721_v39  ;;  %2278 = vrot.lane.b32.xlu1 %v2165_v3, %s4018_s13  ;;  %v2555_v39 = vrot.slane %v4456_v51, %v4274_v10  ;;  %v2221_v41 = vrot.slane %v2070_v33, %v4343_v18  ;;  %v2225_v47 = vrot.slane %v2084_v42, %v4343_v18 }
 0x3f2   : > { %v1723_v40 = vpop.permute.xlu0 %1722  ;;  %v2086_v57 = vcombine.high %v2070_v33, %v2070_v33  ;;  %v2088_v2 = vcombine.high %v2084_v42, %v2084_v42 }
 0x3f3   : > { %1812 = vst.msk [vmem:[%s4271_s17 + $0x39] sm:$0x1] %vm1804_vm4, %v1723_v40  ;;  %2280 = vrot.lane.b32.xlu0 %v2169_v13, %s4018_s13  ;;  %v2217_v40 = vrot.slane %v2087_v36, %v4343_v18  ;;  %v2563_v44 = vcombine.high %v2555_v39, %v2555_v39  ;;  %v2571_v46 = vrot.slane %v2555_v39, %v4274_v10 }
 0x3f4   : > { %v1741_v49 = vpop.permute.xlu1 %1740  ;;  %v2229_v0 = vrot.slane %v2086_v57, %v4343_v18 }
 0x3f5   : > { %1821 = vst.msk [vmem:[%s4271_s17 + $0x81] sm:$0x1] %vm1804_vm4, %v1741_v49  ;;  %2298 = vrot.lane.b32.xlu1 %v2205_v14, %s4018_s13  ;;  %v2261_v49 = vrot.slane %v2135_v43, %v4343_v18  ;;  %v2585_v53 = vrot.slane %v2563_v44, %v4274_v10  ;;  %v2730_v55 = vrot.slane %v2571_v46, %v4343_v18 }
 0x3f6   : > { %v1743_v50 = vpop.permute.xlu0 %1742  ;;  %v2593_v5 = vcombine.high %v2571_v46, %v2571_v46 }
 0x3f7   : > { %1822 = vst.msk [vmem:[%s4271_s17 + $0x89] sm:$0x1] %vm1804_vm4, %v1743_v50  ;;  %2300 = vrot.lane.b32.xlu0 %v2209_v21, %s4018_s13  ;;  %v2137_v50 = vcombine.high %v2133_v29, %v2133_v29  ;;  %v2734_v62 = vrot.slane %v2585_v53, %v4343_v18  ;;  %v2595_v13 = vcombine.high %v2585_v53, %v2585_v53 }
 0x3f8   : > { %v1761_v58 = vpop.permute.xlu1 %1760 }
 0x3f9   : > { %1831 = vst.msk [vmem:[%s4271_s17 + $0xd1] sm:$0x1] %vm1804_vm4, %v1761_v58  ;;  %2318 = vrot.lane.b32.xlu1 %v2245_v22, %s4018_s13  ;;  %v2265_v54 = vrot.slane %v2137_v50, %v4343_v18  ;;  %v2548_v58 = vcombine.high %v4456_v51, %v4456_v51  ;;  %v2233_v51 = vrot.slane %v2088_v2, %v4343_v18 }
 0x3fa   : > { %v1763_v60 = vpop.permute.xlu0 %1762  ;;  %v2742_v20 = vrot.slane %v2595_v13, %v4343_v18 }
 0x3fb   : > { %1832 = vst.msk [vmem:[%s4271_s17 + $0xd9] sm:$0x1] %vm1804_vm4, %v1763_v60  ;;  %2320 = vrot.lane.b32.xlu0 %v2249_v27, %s4018_s13  ;;  %v2514_v60 = vcombine.high %v2506_v52, %v2506_v52  ;;  %v2562_v3 = vrot.slane %v2548_v58, %v4274_v10 }
 0x3fc   : > { %v1765_v7 = vpop.permute.xlu1 %1764 }
 0x3fd   : > { %1833 = vst.msk [vmem:[%s4271_s17 + $0xe1] sm:$0x1] %vm1804_vm4, %v1765_v7  ;;  %2322 = vrot.lane.b32.xlu1 %v2253_v28, %s4018_s13  ;;  %v2536_v7 = vrot.slane %v2514_v60, %v4274_v10  ;;  %v2564_v45 = vcombine.high %v2562_v3, %v2562_v3  ;;  %v2578_v12 = vrot.slane %v2562_v3, %v4274_v10 }
 0x3fe   : > { %v1767_v8 = vpop.permute.xlu0 %1766 }
 0x3ff   : > { %1834 = vst.msk [vmem:[%s4271_s17 + $0xe9] sm:$0x1] %vm1804_vm4, %v1767_v8  ;;  %2324 = vrot.lane.b32.xlu0 %v2257_v34, %s4018_s13  ;;  %v2698_v8 = vrot.slane %v2522_v61, %v4343_v18  ;;  %v2702_v14 = vrot.slane %v2536_v7, %v4343_v18  ;;  %v2592_v17 = vrot.slane %v2564_v45, %v4274_v10 }
 0x400   : > { %v1745_v15 = vpop.permute.xlu1 %1744  ;;  %v2746_v56 = vrot.slane %v2578_v12, %v4343_v18  ;;  %v2546_v23 = vcombine.high %v2536_v7, %v2536_v7  ;;  %v2594_v26 = vcombine.high %v2578_v12, %v2578_v12 }
 0x401   : > { %1823 = vst.msk [vmem:[%s4271_s17 + $0x91] sm:$0x1] %vm1804_vm4, %v1745_v15  ;;  %2302 = vrot.lane.b32.xlu1 %v2213_v35, %s4018_s13  ;;  %v2738_v15 = vrot.slane %v2593_v5, %v4343_v18  ;;  %v2596_v34 = vcombine.high %v2592_v17, %v2592_v17  ;;  %v2604_v35 = vrot.slane %v4481_v63, %v4274_v10 }
 0x402   : > { %v1747_v16 = vpop.permute.xlu0 %1746  ;;  %v2710_v28 = vrot.slane %v2546_v23, %v4343_v18  ;;  %v2754_v33 = vrot.slane %v2594_v26, %v4343_v18 }
 0x403   : > { %1824 = vst.msk [vmem:[%s4271_s17 + $0x99] sm:$0x1] %vm1804_vm4, %v1747_v16  ;;  %2304 = vrot.lane.b32.xlu0 %v2217_v40, %s4018_s13  ;;  %v2513_v16 = vrot.slane %v2499_v11, %v4274_v10  ;;  %v2758_v39 = vrot.slane %v2596_v34, %v4343_v18  ;;  %v2646_v40 = vcombine.high %v4472_v59, %v4472_v59 }
 0x404   : > { %v1749_v24 = vpop.permute.xlu1 %1748  ;;  %v2620_v42 = vrot.slane %v2604_v35, %v4274_v10 }
 0x405   : > { %1825 = vst.msk [vmem:[%s4271_s17 + $0xa1] sm:$0x1] %vm1804_vm4, %v1749_v24  ;;  %2306 = vrot.lane.b32.xlu1 %v2221_v41, %s4018_s13  ;;  %v2515_v21 = vcombine.high %v2513_v16, %v2513_v16  ;;  %v2529_v22 = vrot.slane %v2513_v16, %v4274_v10  ;;  %v2750_v24 = vrot.slane %v2592_v17, %v4343_v18 }
 0x406   : > { %v1751_v25 = vpop.permute.xlu0 %1750  ;;  %v2612_v41 = vcombine.high %v2604_v35, %v2604_v35  ;;  %v2762_v59 = vrot.slane %v2620_v42, %v4343_v18  ;;  %v2642_v3 = vcombine.high %v2620_v42, %v2620_v42 }
 0x407   : > { %1826 = vst.msk [vmem:[%s4271_s17 + $0xa9] sm:$0x1] %vm1804_vm4, %v1751_v25  ;;  %2308 = vrot.lane.b32.xlu0 %v2225_v47, %s4018_s13  ;;  %v2706_v25 = vrot.slane %v2544_v19, %v4343_v18  ;;  %v2543_v27 = vrot.slane %v2515_v21, %v4274_v10  ;;  %v2714_v29 = vrot.slane %v2529_v22, %v4343_v18 }
 0x408   : > { %v1769_v30 = vpop.permute.xlu1 %1768  ;;  %v2545_v36 = vcombine.high %v2529_v22, %v2529_v22  ;;  %v2660_v47 = vrot.slane %v2646_v40, %v4274_v10  ;;  %v2634_v50 = vrot.slane %v2612_v41, %v4274_v10 }
 0x409   : > { %1835 = vst.msk [vmem:[%s4271_s17 + $0xf1] sm:$0x1] %vm1804_vm4, %v1769_v30  ;;  %2326 = vrot.lane.b32.xlu1 %v2261_v49, %s4018_s13  ;;  %v2661_v30 = vcombine.high %v2653_v48, %v2653_v48  ;;  %v2718_v32 = vrot.slane %v2543_v27, %v4343_v18  ;;  %v2547_v46 = vcombine.high %v2543_v27, %v2543_v27 }
 0x40a   : > { %v1771_v31 = vpop.permute.xlu0 %1770  ;;  %v2722_v44 = vrot.slane %v2545_v36, %v4343_v18  ;;  %v2662_v53 = vcombine.high %v2660_v47, %v2660_v47  ;;  %v2676_v57 = vrot.slane %v2660_v47, %v4274_v10  ;;  %v2766_v60 = vrot.slane %v2634_v50, %v4343_v18 }
 0x40b   : > { %1836 = vst.msk [vmem:[%s4271_s17 + $0xf9] sm:$0x1] %vm1804_vm4, %v1771_v31  ;;  %2328 = vrot.lane.b32.xlu0 %v2265_v54, %s4018_s13  ;;  %v2669_v31 = vrot.slane %v2653_v48, %v4274_v10  ;;  %v2726_v52 = vrot.slane %v2547_v46, %v4343_v18  ;;  %v2597_v54 = vcombine.high %v4481_v63, %v4481_v63 }
 0x40c   : > { %v1753_v37 = vpop.permute.xlu1 %1752  ;;  %v2690_v2 = vrot.slane %v2662_v53, %v4274_v10  ;;  %v2810_v7 = vrot.slane %v2676_v57, %v4343_v18  ;;  %v2644_v12 = vcombine.high %v2634_v50, %v2634_v50  ;;  %v2692_v16 = vcombine.high %v2676_v57, %v2676_v57 }
 0x40d   : > { %1827 = vst.msk [vmem:[%s4271_s17 + $0xb1] sm:$0x1] %vm1804_vm4, %v1753_v37  ;;  %2839 = vrot.lane.b32.xlu1 %v2730_v55, %s4018_s13  ;;  %v2683_v37 = vrot.slane %v2661_v30, %v4274_v10  ;;  %v2691_v49 = vcombine.high %v2669_v31, %v2669_v31  ;;  %v2611_v63 = vrot.slane %v2597_v54, %v4274_v10 }
 0x40e   : > { %v1755_v38 = vpop.permute.xlu0 %1754  ;;  %v2814_v13 = vrot.slane %v2690_v2, %v4343_v18  ;;  %v2774_v19 = vrot.slane %v2644_v12, %v4343_v18  ;;  %v2818_v23 = vrot.slane %v2692_v16, %v4343_v18  ;;  %v3063_v48 = vrot.slane %v4492_v4, %v4274_v10 }
 0x40f   : > { %1828 = vst.msk [vmem:[%s4271_s17 + $0xb9] sm:$0x1] %vm1804_vm4, %v1755_v38  ;;  %2841 = vrot.lane.b32.xlu0 %v2734_v62, %s4018_s13  ;;  %v2794_v38 = vrot.slane %v2669_v31, %v4343_v18  ;;  %v2798_v43 = vrot.slane %v2683_v37, %v4343_v18  ;;  %v2693_v58 = vcombine.high %v2683_v37, %v2683_v37 }
 0x410   : > { %v2802_v61 = vrot.slane %v2691_v49, %v4343_v18  ;;  %v2627_v11 = vrot.slane %v2611_v63, %v4274_v10  ;;  %v3105_v31 = vcombine.high %v4485_v1, %v4485_v1 }
 0x411   : > { %2310 = vrot.lane.b32.xlu1 %v2229_v0, %s4018_s13  ;;  %v2806_v5 = vrot.slane %v2693_v58, %v4343_v18 }
 0x412   : > { %v2643_v26 = vcombine.high %v2627_v11, %v2627_v11 }
 0x413   : > { %2312 = vrot.lane.b32.xlu0 %v2233_v51, %s4018_s13  ;;  %v2613_v51 = vcombine.high %v2611_v63, %v2611_v63 }
 0x414   : > { %v2786_v35 = vrot.slane %v2643_v26, %v4343_v18 }
 0x415   : > { %2823 = vrot.lane.b32.xlu1 %v2698_v8, %s4018_s13  ;;  %v2641_v17 = vrot.slane %v2613_v51, %v4274_v10 }
 0x417   : > { %2825 = vrot.lane.b32.xlu0 %v2702_v14, %s4018_s13  ;;  %v2770_v14 = vrot.slane %v2642_v3, %v4343_v18  ;;  %v2782_v22 = vrot.slane %v2641_v17, %v4343_v18  ;;  %v2645_v36 = vcombine.high %v2641_v17, %v2641_v17 }
 0x419   : > { %2843 = vrot.lane.b32.xlu1 %v2738_v15, %s4018_s13  ;;  %v3112_v15 = vrot.slane %v4485_v1, %v4274_v10  ;;  %v3119_v1 = vrot.slane %v3105_v31, %v4274_v10  ;;  %v2790_v41 = vrot.slane %v2645_v36, %v4343_v18 }
 0x41b   : > { %2845 = vrot.lane.b32.xlu0 %v2742_v20, %s4018_s13  ;;  %v2778_v20 = vrot.slane %v2627_v11, %v4343_v18  ;;  %v3128_v21 = vrot.slane %v3112_v15, %v4274_v10  ;;  %v3135_v46 = vrot.slane %v3119_v1, %v4274_v10 }
 0x41d   : > { %2847 = vrot.lane.b32.xlu1 %v2746_v56, %s4018_s13  ;;  %v3120_v56 = vcombine.high %v3112_v15, %v3112_v15 }
 0x41f   : > { %2849 = vrot.lane.b32.xlu0 %v2750_v24, %s4018_s13  ;;  %v2694_v24 = vcombine.high %v2690_v2, %v2690_v2  ;;  %v3142_v27 = vrot.slane %v3120_v56, %v4274_v10 }
 0x421   : > { %2827 = vrot.lane.b32.xlu1 %v2706_v25, %s4018_s13  ;;  %v3291_v34 = vrot.slane %v3142_v27, %v4343_v18  ;;  %v3152_v47 = vcombine.high %v3142_v27, %v3142_v27  ;;  %v3203_v27 = vcombine.high %v4494_v6, %v4494_v6 }
 0x423   : > { %2829 = vrot.lane.b32.xlu0 %v2710_v28, %s4018_s13  ;;  %v3287_v28 = vrot.slane %v3128_v21, %v4343_v18  ;;  %v3299_v57 = vrot.slane %v3152_v47, %v4343_v18 }
 0x425   : > { %2831 = vrot.lane.b32.xlu1 %v2714_v29, %s4018_s13  ;;  %v2822_v29 = vrot.slane %v2694_v24, %v4343_v18 }
 0x427   : > { %2833 = vrot.lane.b32.xlu0 %v2718_v32, %s4018_s13  ;;  %v3071_v32 = vcombine.high %v3063_v48, %v3063_v48 }
 0x429   : > { %2851 = vrot.lane.b32.xlu1 %v2754_v33, %s4018_s13  ;;  %v3079_v33 = vrot.slane %v3063_v48, %v4274_v10 }
 0x42b   : > { %2853 = vrot.lane.b32.xlu0 %v2758_v39, %s4018_s13  ;;  %v3093_v39 = vrot.slane %v3071_v32, %v4274_v10  ;;  %v3255_v40 = vrot.slane %v3079_v33, %v4343_v18  ;;  %v3101_v54 = vcombine.high %v3079_v33, %v3079_v33 }
 0x42d   : > { %2871 = vrot.lane.b32.xlu1 %v2794_v38, %s4018_s13  ;;  %v3150_v38 = vcombine.high %v3128_v21, %v3128_v21  ;;  %v3259_v50 = vrot.slane %v3093_v39, %v4343_v18  ;;  %v3103_v63 = vcombine.high %v3093_v39, %v3093_v39  ;;  %v3161_v21 = vrot.slane %v4500_v9, %v4274_v10 }
 0x42f   : > { %2873 = vrot.lane.b32.xlu0 %v2798_v43, %s4018_s13  ;;  %v3121_v43 = vcombine.high %v3119_v1, %v3119_v1  ;;  %v3267_v11 = vrot.slane %v3103_v63, %v4343_v18 }
 0x431   : > { %2835 = vrot.lane.b32.xlu1 %v2722_v44, %s4018_s13  ;;  %v3056_v44 = vcombine.high %v4492_v4, %v4492_v4  ;;  %v3149_v53 = vrot.slane %v3121_v43, %v4274_v10 }
 0x433   : > { %2837 = vrot.lane.b32.xlu0 %v2726_v52, %s4018_s13  ;;  %v3295_v52 = vrot.slane %v3150_v38, %v4343_v18  ;;  %v3070_v4 = vrot.slane %v3056_v44, %v4274_v10  ;;  %v3307_v2 = vrot.slane %v3149_v53, %v4343_v18  ;;  %v3153_v56 = vcombine.high %v3149_v53, %v3149_v53 }
 0x435   : > { %2855 = vrot.lane.b32.xlu1 %v2762_v59, %s4018_s13  ;;  %v3315_v48 = vrot.slane %v3153_v56, %v4343_v18 }
 0x437   : > { %2857 = vrot.lane.b32.xlu0 %v2766_v60, %s4018_s13  ;;  %v3303_v60 = vrot.slane %v3135_v46, %v4343_v18 }
 0x439   : > { %2875 = vrot.lane.b32.xlu1 %v2802_v61, %s4018_s13  ;;  %v3072_v61 = vcombine.high %v3070_v4, %v3070_v4 }
 0x43b   : > { %2877 = vrot.lane.b32.xlu0 %v2806_v5, %s4018_s13  ;;  %v3263_v5 = vrot.slane %v3101_v54, %v4343_v18  ;;  %v3100_v51 = vrot.slane %v3072_v61, %v4274_v10 }
 0x43d   : > { %2879 = vrot.lane.b32.xlu1 %v2810_v7, %s4018_s13  ;;  %v3210_v7 = vrot.slane %v4494_v6, %v4274_v10  ;;  %v3275_v17 = vrot.slane %v3100_v51, %v4343_v18  ;;  %v3217_v6 = vrot.slane %v3203_v27, %v4274_v10 }
 0x43f   : > { %2881 = vrot.lane.b32.xlu0 %v2814_v13, %s4018_s13  ;;  %v3226_v15 = vrot.slane %v3210_v7, %v4274_v10 }
 0x441   : > { %2859 = vrot.lane.b32.xlu1 %v2770_v14, %s4018_s13  ;;  %v3218_v14 = vcombine.high %v3210_v7, %v3210_v7  ;;  %v3351_v24 = vrot.slane %v3226_v15, %v4343_v18 }
 0x443   : > { %v2283_v55 = vpop.permute.xlu1 %2282  ;;  %2861 = vrot.lane.b32.xlu0 %v2774_v19, %s4018_s13 }
 0x444   : > { %2370 = vst.msk [vmem:[%s4271_s17 + $0x42] sm:$0x1] %vm1804_vm4, %v2283_v55 }
 0x445   : > { %v2285_v62 = vpop.permute.xlu0 %2284  ;;  %2863 = vrot.lane.b32.xlu1 %v2778_v20, %s4018_s13 }
 0x446   : > { %2371 = vst.msk [vmem:[%s4271_s17 + $0x4a] sm:$0x1] %vm1804_vm4, %v2285_v62  ;;  %v3086_v62 = vrot.slane %v3070_v4, %v4274_v10 }
 0x447   : > { %v2267_v0 = vpop.permute.xlu1 %2266  ;;  %2865 = vrot.lane.b32.xlu0 %v2782_v22, %s4018_s13 }
 0x448   : > { %2362 = vst.msk [vmem:[%s4271_s17 + $0x2] sm:$0x1] %vm1804_vm4, %v2267_v0  ;;  %v3271_v13 = vrot.slane %v3086_v62, %v4343_v18  ;;  %v3102_v22 = vcombine.high %v3086_v62, %v3086_v62 }
 0x449   : > { %v2269_v8 = vpop.permute.xlu0 %2268  ;;  %2883 = vrot.lane.b32.xlu1 %v2818_v23, %s4018_s13  ;;  %v3240_v23 = vrot.slane %v3218_v14, %v4274_v10 }
 0x44a   : > { %2363 = vst.msk [vmem:[%s4271_s17 + $0xa] sm:$0x1] %vm1804_vm4, %v2269_v8  ;;  %v3151_v8 = vcombine.high %v3135_v46, %v3135_v46  ;;  %v3279_v33 = vrot.slane %v3102_v22, %v4343_v18 }
 0x44b   : > { %v2287_v45 = vpop.permute.xlu1 %2286  ;;  %2885 = vrot.lane.b32.xlu0 %v2822_v29, %s4018_s13  ;;  %v3177_v29 = vrot.slane %v3161_v21, %v4274_v10  ;;  %v3355_v31 = vrot.slane %v3240_v23, %v4343_v18  ;;  %v3250_v43 = vcombine.high %v3240_v23, %v3240_v23 }
 0x44c   : > { %2372 = vst.msk [vmem:[%s4271_s17 + $0x52] sm:$0x1] %vm1804_vm4, %v2287_v45  ;;  %v3311_v20 = vrot.slane %v3151_v8, %v4343_v18 }
 0x44d   : > { %v2289_v25 = vpop.permute.xlu0 %2288  ;;  %3396 = vrot.lane.b32.xlu1 %v3287_v28, %s4018_s13  ;;  %v3169_v28 = vcombine.high %v3161_v21, %v3161_v21  ;;  %v3363_v4 = vrot.slane %v3250_v43, %v4343_v18 }
 0x44e   : > { %2373 = vst.msk [vmem:[%s4271_s17 + $0x5a] sm:$0x1] %vm1804_vm4, %v2289_v25 }
 0x44f   : > { %v2291_v30 = vpop.permute.xlu1 %2290  ;;  %3398 = vrot.lane.b32.xlu0 %v3291_v34, %s4018_s13  ;;  %v3104_v34 = vcombine.high %v3100_v51, %v3100_v51  ;;  %v3191_v36 = vrot.slane %v3169_v28, %v4274_v10 }
 0x450   : > { %2374 = vst.msk [vmem:[%s4271_s17 + $0x62] sm:$0x1] %vm1804_vm4, %v2291_v30 }
 0x451   : > { %v2293_v37 = vpop.permute.xlu0 %2292  ;;  %2867 = vrot.lane.b32.xlu1 %v2786_v35, %s4018_s13  ;;  %v3248_v35 = vcombine.high %v3226_v15, %v3226_v15  ;;  %v3283_v38 = vrot.slane %v3104_v34, %v4343_v18  ;;  %v3323_v44 = vrot.slane %v3191_v36, %v4343_v18 }
 0x452   : > { %2375 = vst.msk [vmem:[%s4271_s17 + $0x6a] sm:$0x1] %vm1804_vm4, %v2293_v37  ;;  %v3319_v37 = vrot.slane %v3177_v29, %v4343_v18 }
 0x453   : > { %v2271_v42 = vpop.permute.xlu1 %2270  ;;  %2869 = vrot.lane.b32.xlu0 %v2790_v41, %s4018_s13  ;;  %v3154_v41 = vcombine.high %v4500_v9, %v4500_v9 }
 0x454   : > { %2364 = vst.msk [vmem:[%s4271_s17 + $0x12] sm:$0x1] %vm1804_vm4, %v2271_v42  ;;  %v3233_v42 = vrot.slane %v3217_v6, %v4274_v10 }
 0x455   : > { %3380 = vrot.lane.b32.xlu1 %v3255_v40, %s4018_s13  ;;  %v2273_v49 = vpop.permute.xlu0 %2272  ;;  %v3219_v40 = vcombine.high %v3217_v6, %v3217_v6  ;;  %v3168_v9 = vrot.slane %v3154_v41, %v4274_v10 }
 0x456   : > { %2365 = vst.msk [vmem:[%s4271_s17 + $0x1a] sm:$0x1] %vm1804_vm4, %v2273_v49  ;;  %v3359_v49 = vrot.slane %v3248_v35, %v4343_v18  ;;  %v3367_v54 = vrot.slane %v3233_v42, %v4343_v18  ;;  %v3249_v51 = vcombine.high %v3233_v42, %v3233_v42 }
 0x457   : > { %v2275_v59 = vpop.permute.xlu1 %2274  ;;  %3382 = vrot.lane.b32.xlu0 %v3259_v50, %s4018_s13  ;;  %v3247_v50 = vrot.slane %v3219_v40, %v4274_v10 }
 0x458   : > { %2366 = vst.msk [vmem:[%s4271_s17 + $0x22] sm:$0x1] %vm1804_vm4, %v2275_v59  ;;  %v3199_v59 = vcombine.high %v3177_v29, %v3177_v29 }
 0x459   : > { %3400 = vrot.lane.b32.xlu1 %v3295_v52, %s4018_s13  ;;  %v2277_v55 = vpop.permute.xlu0 %2276  ;;  %v3371_v62 = vrot.slane %v3247_v50, %v4343_v18 }
 0x45a   : > { %2367 = vst.msk [vmem:[%s4271_s17 + $0x2a] sm:$0x1] %vm1804_vm4, %v2277_v55  ;;  %v3170_v55 = vcombine.high %v3168_v9, %v3168_v9 }
 0x45b   : > { %v2295_v58 = vpop.permute.xlu1 %2294  ;;  %3402 = vrot.lane.b32.xlu0 %v3299_v57, %s4018_s13  ;;  %v3184_v57 = vrot.slane %v3168_v9, %v4274_v10 }
 0x45c   : > { %2376 = vst.msk [vmem:[%s4271_s17 + $0x72] sm:$0x1] %vm1804_vm4, %v2295_v58  ;;  %v3201_v58 = vcombine.high %v3191_v36, %v3191_v36 }
 0x45d   : > { %3404 = vrot.lane.b32.xlu1 %v3303_v60, %s4018_s13  ;;  %v2297_v0 = vpop.permute.xlu0 %2296  ;;  %v3327_v60 = vrot.slane %v3199_v59, %v4343_v18 }
 0x45e   : > { %2377 = vst.msk [vmem:[%s4271_s17 + $0x7a] sm:$0x1] %vm1804_vm4, %v2297_v0  ;;  %v3198_v0 = vrot.slane %v3170_v55, %v4274_v10  ;;  %v3331_v7 = vrot.slane %v3201_v58, %v4343_v18 }
 0x45f   : > { %v2315_v3 = vpop.permute.xlu1 %2314  ;;  %3406 = vrot.lane.b32.xlu0 %v3307_v2, %s4018_s13  ;;  %v3200_v2 = vcombine.high %v3184_v57, %v3184_v57 }
 0x460   : > { %2386 = vst.msk [vmem:[%s4271_s17 + $0xc2] sm:$0x1] %vm1804_vm4, %v2315_v3  ;;  %v3335_v3 = vrot.slane %v3184_v57, %v4343_v18  ;;  %v3202_v10 = vcombine.high %v3198_v0, %v3198_v0 }
 0x461   : > { %3384 = vrot.lane.b32.xlu1 %v3263_v5, %s4018_s13  ;;  %v2317_v45 = vpop.permute.xlu0 %2316 }
 0x462   : > { %2387 = vst.msk [vmem:[%s4271_s17 + $0xca] sm:$0x1] %vm1804_vm4, %v2317_v45  ;;  %v3347_v15 = vrot.slane %v3202_v10, %v4343_v18 }
 0x463   : > { %v2279_v12 = vpop.permute.xlu1 %2278  ;;  %3386 = vrot.lane.b32.xlu0 %v3267_v11, %s4018_s13  ;;  %v3339_v11 = vrot.slane %v3198_v0, %v4343_v18 }
 0x464   : > { %2368 = vst.msk [vmem:[%s4271_s17 + $0x32] sm:$0x1] %vm1804_vm4, %v2279_v12 }
 0x465   : > { %3388 = vrot.lane.b32.xlu1 %v3271_v13, %s4018_s13  ;;  %v2281_v16 = vpop.permute.xlu0 %2280  ;;  %v3343_v13 = vrot.slane %v3200_v2, %v4343_v18 }
 0x466   : > { %2369 = vst.msk [vmem:[%s4271_s17 + $0x3a] sm:$0x1] %vm1804_vm4, %v2281_v16 }
 0x467   : > { %v2299_v19 = vpop.permute.xlu1 %2298  ;;  %3390 = vrot.lane.b32.xlu0 %v3275_v17, %s4018_s13  ;;  %v3375_v17 = vrot.slane %v3249_v51, %v4343_v18 }
 0x468   : > { %2378 = vst.msk [vmem:[%s4271_s17 + $0x82] sm:$0x1] %vm1804_vm4, %v2299_v19  ;;  %v3251_v19 = vcombine.high %v3247_v50, %v3247_v50 }
 0x469   : > { %3408 = vrot.lane.b32.xlu1 %v3311_v20, %s4018_s13  ;;  %v2301_v25 = vpop.permute.xlu0 %2300 }
 0x46a   : > { %2379 = vst.msk [vmem:[%s4271_s17 + $0x8a] sm:$0x1] %vm1804_vm4, %v2301_v25  ;;  %v3379_v56 = vrot.slane %v3251_v19, %v4343_v18 }
 0x46b   : > { %v2319_v26 = vpop.permute.xlu1 %2318  ;;  %3410 = vrot.lane.b32.xlu0 %v3315_v48, %s4018_s13 }
 0x46c   : > { %2388 = vst.msk [vmem:[%s4271_s17 + $0xd2] sm:$0x1] %vm1804_vm4, %v2319_v26 }
 0x46d   : > { %3428 = vrot.lane.b32.xlu1 %v3351_v24, %s4018_s13  ;;  %v2321_v30 = vpop.permute.xlu0 %2320 }
 0x46e   : > { %2389 = vst.msk [vmem:[%s4271_s17 + $0xda] sm:$0x1] %vm1804_vm4, %v2321_v30 }
 0x46f   : > { %v2323_v32 = vpop.permute.xlu1 %2322  ;;  %3430 = vrot.lane.b32.xlu0 %v3355_v31, %s4018_s13 }
 0x470   : > { %2390 = vst.msk [vmem:[%s4271_s17 + $0xe2] sm:$0x1] %vm1804_vm4, %v2323_v32 }
 0x471   : > { %3392 = vrot.lane.b32.xlu1 %v3279_v33, %s4018_s13  ;;  %v2325_v1 = vpop.permute.xlu0 %2324 }
 0x472   : > { %2391 = vst.msk [vmem:[%s4271_s17 + $0xea] sm:$0x1] %vm1804_vm4, %v2325_v1 }
 0x473   : > { %v2303_v39 = vpop.permute.xlu1 %2302  ;;  %3394 = vrot.lane.b32.xlu0 %v3283_v38, %s4018_s13 }
 0x474   : > { %2380 = vst.msk [vmem:[%s4271_s17 + $0x92] sm:$0x1] %vm1804_vm4, %v2303_v39 }
 0x475   : > { %3412 = vrot.lane.b32.xlu1 %v3319_v37, %s4018_s13  ;;  %v2305_v46 = vpop.permute.xlu0 %2304 }
 0x476   : > { %2381 = vst.msk [vmem:[%s4271_s17 + $0x9a] sm:$0x1] %vm1804_vm4, %v2305_v46 }
 0x477   : > { %v2307_v47 = vpop.permute.xlu1 %2306  ;;  %3414 = vrot.lane.b32.xlu0 %v3323_v44, %s4018_s13 }
 0x478   : > { %2382 = vst.msk [vmem:[%s4271_s17 + $0xa2] sm:$0x1] %vm1804_vm4, %v2307_v47 }
 0x479   : > { %3432 = vrot.lane.b32.xlu1 %v3359_v49, %s4018_s13  ;;  %v2309_v52 = vpop.permute.xlu0 %2308 }
 0x47a   : > { %2383 = vst.msk [vmem:[%s4271_s17 + $0xaa] sm:$0x1] %vm1804_vm4, %v2309_v52 }
 0x47b   : > { %v2327_v53 = vpop.permute.xlu1 %2326  ;;  %3434 = vrot.lane.b32.xlu0 %v3363_v4, %s4018_s13 }
 0x47c   : > { %2392 = vst.msk [vmem:[%s4271_s17 + $0xf2] sm:$0x1] %vm1804_vm4, %v2327_v53 }
 0x47d   : > { %3436 = vrot.lane.b32.xlu1 %v3367_v54, %s4018_s13  ;;  %v2329_v61 = vpop.permute.xlu0 %2328 }
 0x47e   : > { %2393 = vst.msk [vmem:[%s4271_s17 + $0xfa] sm:$0x1] %vm1804_vm4, %v2329_v61 }
 0x47f   : > { %v2840_v63 = vpop.permute.xlu1 %2839  ;;  %3438 = vrot.lane.b32.xlu0 %v3371_v62, %s4018_s13 }
 0x480   : > { %2927 = vst.msk [vmem:[%s4271_s17 + $0x43] sm:$0x1] %vm1804_vm4, %v2840_v63 }
 0x481   : > { %3416 = vrot.lane.b32.xlu1 %v3327_v60, %s4018_s13  ;;  %v2842_v5 = vpop.permute.xlu0 %2841 }
 0x482   : > { %2928 = vst.msk [vmem:[%s4271_s17 + $0x4b] sm:$0x1] %vm1804_vm4, %v2842_v5 }
 0x483   : > { %v2311_v8 = vpop.permute.xlu1 %2310  ;;  %3418 = vrot.lane.b32.xlu0 %v3331_v7, %s4018_s13 }
 0x484   : > { %2384 = vst.msk [vmem:[%s4271_s17 + $0xb2] sm:$0x1] %vm1804_vm4, %v2311_v8 }
 0x485   : > { %3420 = vrot.lane.b32.xlu1 %v3335_v3, %s4018_s13  ;;  %v2313_v45 = vpop.permute.xlu0 %2312 }
 0x486   : > { %2385 = vst.msk [vmem:[%s4271_s17 + $0xba] sm:$0x1] %vm1804_vm4, %v2313_v45 }
 0x487   : > { %v2824_v12 = vpop.permute.xlu1 %2823  ;;  %3422 = vrot.lane.b32.xlu0 %v3339_v11, %s4018_s13 }
 0x488   : > { %2919 = vst.msk [vmem:[%s4271_s17 + $0x3] sm:$0x1] %vm1804_vm4, %v2824_v12 }
 0x489   : > { %3424 = vrot.lane.b32.xlu1 %v3343_v13, %s4018_s13  ;;  %v2826_v14 = vpop.permute.xlu0 %2825 }
 0x48a   : > { %2920 = vst.msk [vmem:[%s4271_s17 + $0xb] sm:$0x1] %vm1804_vm4, %v2826_v14 }
 0x48b   : > { %v2844_v16 = vpop.permute.xlu1 %2843  ;;  %3426 = vrot.lane.b32.xlu0 %v3347_v15, %s4018_s13 }
 0x48c   : > { %2929 = vst.msk [vmem:[%s4271_s17 + $0x53] sm:$0x1] %vm1804_vm4, %v2844_v16 }
 0x48d   : > { %3440 = vrot.lane.b32.xlu1 %v3375_v17, %s4018_s13  ;;  %v2846_v20 = vpop.permute.xlu0 %2845 }
 0x48e   : > { %2930 = vst.msk [vmem:[%s4271_s17 + $0x5b] sm:$0x1] %vm1804_vm4, %v2846_v20 }
 0x48f   : > { %v2848_v21 = vpop.permute.xlu1 %2847  ;;  %3442 = vrot.lane.b32.xlu0 %v3379_v56, %s4018_s13 }
 0x490   : > { %2931 = vst.msk [vmem:[%s4271_s17 + $0x63] sm:$0x1] %vm1804_vm4, %v2848_v21 }
 0x491   : > { %v2850_v22 = vpop.permute.xlu0 %2849 }
 0x492   : > { %2932 = vst.msk [vmem:[%s4271_s17 + $0x6b] sm:$0x1] %vm1804_vm4, %v2850_v22 }
 0x493   : > { %v2828_v23 = vpop.permute.xlu1 %2827 }
 0x494   : > { %2921 = vst.msk [vmem:[%s4271_s17 + $0x13] sm:$0x1] %vm1804_vm4, %v2828_v23 }
 0x495   : > { %v2830_v24 = vpop.permute.xlu0 %2829 }
 0x496   : > { %2922 = vst.msk [vmem:[%s4271_s17 + $0x1b] sm:$0x1] %vm1804_vm4, %v2830_v24 }
 0x497   : > { %v2832_v18 = vpop.permute.xlu1 %2831 }
 0x498   : > { %2923 = vst.msk [vmem:[%s4271_s17 + $0x23] sm:$0x1] %vm1804_vm4, %v2832_v18 }
 0x499   : > { %v2834_v25 = vpop.permute.xlu0 %2833 }
 0x49a   : > { %2924 = vst.msk [vmem:[%s4271_s17 + $0x2b] sm:$0x1] %vm1804_vm4, %v2834_v25 }
 0x49b   : > { %v2852_v48 = vpop.permute.xlu1 %2851 }
 0x49c   : > { %2933 = vst.msk [vmem:[%s4271_s17 + $0x73] sm:$0x1] %vm1804_vm4, %v2852_v48 }
 0x49d   : > { %v2854_v26 = vpop.permute.xlu0 %2853 }
 0x49e   : > { %2934 = vst.msk [vmem:[%s4271_s17 + $0x7b] sm:$0x1] %vm1804_vm4, %v2854_v26 }
 0x49f   : > { %v2872_v27 = vpop.permute.xlu1 %2871 }
 0x4a0   : > { %2943 = vst.msk [vmem:[%s4271_s17 + $0xc3] sm:$0x1] %vm1804_vm4, %v2872_v27 }
 0x4a1   : > { %v2874_v28 = vpop.permute.xlu0 %2873 }
 0x4a2   : > { %2944 = vst.msk [vmem:[%s4271_s17 + $0xcb] sm:$0x1] %vm1804_vm4, %v2874_v28 }
 0x4a3   : > { %v2836_v29 = vpop.permute.xlu1 %2835 }
 0x4a4   : > { %2925 = vst.msk [vmem:[%s4271_s17 + $0x33] sm:$0x1] %vm1804_vm4, %v2836_v29 }
 0x4a5   : > { %v2838_v30 = vpop.permute.xlu0 %2837 }
 0x4a6   : > { %2926 = vst.msk [vmem:[%s4271_s17 + $0x3b] sm:$0x1] %vm1804_vm4, %v2838_v30 }
 0x4a7   : > { %v2856_v31 = vpop.permute.xlu1 %2855 }
 0x4a8   : > { %2935 = vst.msk [vmem:[%s4271_s17 + $0x83] sm:$0x1] %vm1804_vm4, %v2856_v31 }
 0x4a9   : > { %v2858_v32 = vpop.permute.xlu0 %2857 }
 0x4aa   : > { %2936 = vst.msk [vmem:[%s4271_s17 + $0x8b] sm:$0x1] %vm1804_vm4, %v2858_v32 }
 0x4ab   : > { %v2876_v33 = vpop.permute.xlu1 %2875 }
 0x4ac   : > { %2945 = vst.msk [vmem:[%s4271_s17 + $0xd3] sm:$0x1] %vm1804_vm4, %v2876_v33 }
 0x4ad   : > { %v2878_v34 = vpop.permute.xlu0 %2877 }
 0x4ae   : > { %2946 = vst.msk [vmem:[%s4271_s17 + $0xdb] sm:$0x1] %vm1804_vm4, %v2878_v34 }
 0x4af   : > { %v2880_v6 = vpop.permute.xlu1 %2879 }
 0x4b0   : > { %2947 = vst.msk [vmem:[%s4271_s17 + $0xe3] sm:$0x1] %vm1804_vm4, %v2880_v6 }
 0x4b1   : > { %v2882_v35 = vpop.permute.xlu0 %2881 }
 0x4b2   : > { %2948 = vst.msk [vmem:[%s4271_s17 + $0xeb] sm:$0x1] %vm1804_vm4, %v2882_v35 }
 0x4b3   : > { %v2860_v36 = vpop.permute.xlu1 %2859 }
 0x4b4   : > { %2937 = vst.msk [vmem:[%s4271_s17 + $0x93] sm:$0x1] %vm1804_vm4, %v2860_v36 }
 0x4b5   : > { %v2862_v37 = vpop.permute.xlu0 %2861 }
 0x4b6   : > { %2938 = vst.msk [vmem:[%s4271_s17 + $0x9b] sm:$0x1] %vm1804_vm4, %v2862_v37 }
 0x4b7   : > { %v2864_v1 = vpop.permute.xlu1 %2863 }
 0x4b8   : > { %2939 = vst.msk [vmem:[%s4271_s17 + $0xa3] sm:$0x1] %vm1804_vm4, %v2864_v1 }
 0x4b9   : > { %v2866_v38 = vpop.permute.xlu0 %2865 }
 0x4ba   : > { %2940 = vst.msk [vmem:[%s4271_s17 + $0xab] sm:$0x1] %vm1804_vm4, %v2866_v38 }
 0x4bb   : > { %v2884_v39 = vpop.permute.xlu1 %2883 }
 0x4bc   : > { %2949 = vst.msk [vmem:[%s4271_s17 + $0xf3] sm:$0x1] %vm1804_vm4, %v2884_v39 }
 0x4bd   : > { %v2886_v40 = vpop.permute.xlu0 %2885 }
 0x4be   : > { %2950 = vst.msk [vmem:[%s4271_s17 + $0xfb] sm:$0x1] %vm1804_vm4, %v2886_v40 }
 0x4bf   : > { %v3397_v41 = vpop.permute.xlu1 %3396 }
 0x4c0   : > { %3484 = vst.msk [vmem:[%s4271_s17 + $0x44] sm:$0x1] %vm1804_vm4, %v3397_v41 }
 0x4c1   : > { %v3399_v42 = vpop.permute.xlu0 %3398 }
 0x4c2   : > { %3485 = vst.msk [vmem:[%s4271_s17 + $0x4c] sm:$0x1] %vm1804_vm4, %v3399_v42 }
 0x4c3   : > { %v2868_v43 = vpop.permute.xlu1 %2867 }
 0x4c4   : > { %2941 = vst.msk [vmem:[%s4271_s17 + $0xb3] sm:$0x1] %vm1804_vm4, %v2868_v43 }
 0x4c5   : > { %v2870_v44 = vpop.permute.xlu0 %2869 }
 0x4c6   : > { %2942 = vst.msk [vmem:[%s4271_s17 + $0xbb] sm:$0x1] %vm1804_vm4, %v2870_v44 }
 0x4c7   : > { %v3381_v46 = vpop.permute.xlu1 %3380 }
 0x4c8   : > { %3476 = vst.msk [vmem:[%s4271_s17 + $0x4] sm:$0x1] %vm1804_vm4, %v3381_v46 }
 0x4c9   : > { %v3383_v47 = vpop.permute.xlu0 %3382 }
 0x4ca   : > { %3477 = vst.msk [vmem:[%s4271_s17 + $0xc] sm:$0x1] %vm1804_vm4, %v3383_v47 }
 0x4cb   : > { %v3401_v49 = vpop.permute.xlu1 %3400 }
 0x4cc   : > { %3486 = vst.msk [vmem:[%s4271_s17 + $0x54] sm:$0x1] %vm1804_vm4, %v3401_v49 }
 0x4cd   : > { %v3403_v9 = vpop.permute.xlu0 %3402 }
 0x4ce   : > { %3487 = vst.msk [vmem:[%s4271_s17 + $0x5c] sm:$0x1] %vm1804_vm4, %v3403_v9 }
 0x4cf   : > { %v3405_v50 = vpop.permute.xlu1 %3404 }
 0x4d0   : > { %3488 = vst.msk [vmem:[%s4271_s17 + $0x64] sm:$0x1] %vm1804_vm4, %v3405_v50 }
 0x4d1   : > { %v3407_v59 = vpop.permute.xlu0 %3406 }
 0x4d2   : > { %3489 = vst.msk [vmem:[%s4271_s17 + $0x6c] sm:$0x1] %vm1804_vm4, %v3407_v59 }
 0x4d3   : > { %v3385_v52 = vpop.permute.xlu1 %3384 }
 0x4d4   : > { %3478 = vst.msk [vmem:[%s4271_s17 + $0x14] sm:$0x1] %vm1804_vm4, %v3385_v52 }
 0x4d5   : > { %v3387_v4 = vpop.permute.xlu0 %3386 }
 0x4d6   : > { %3479 = vst.msk [vmem:[%s4271_s17 + $0x1c] sm:$0x1] %vm1804_vm4, %v3387_v4 }
 0x4d7   : > { %v3389_v53 = vpop.permute.xlu1 %3388 }
 0x4d8   : > { %3480 = vst.msk [vmem:[%s4271_s17 + $0x24] sm:$0x1] %vm1804_vm4, %v3389_v53 }
 0x4d9   : > { %v3391_v54 = vpop.permute.xlu0 %3390 }
 0x4da   : > { %3481 = vst.msk [vmem:[%s4271_s17 + $0x2c] sm:$0x1] %vm1804_vm4, %v3391_v54 }
 0x4db   : > { %v3409_v55 = vpop.permute.xlu1 %3408 }
 0x4dc   : > { %3490 = vst.msk [vmem:[%s4271_s17 + $0x74] sm:$0x1] %vm1804_vm4, %v3409_v55 }
 0x4dd   : > { %v3411_v57 = vpop.permute.xlu0 %3410 }
 0x4de   : > { %3491 = vst.msk [vmem:[%s4271_s17 + $0x7c] sm:$0x1] %vm1804_vm4, %v3411_v57 }
 0x4df   : > { %v3429_v58 = vpop.permute.xlu1 %3428 }
 0x4e0   : > { %3500 = vst.msk [vmem:[%s4271_s17 + $0xc4] sm:$0x1] %vm1804_vm4, %v3429_v58 }
 0x4e1   : > { %v3431_v60 = vpop.permute.xlu0 %3430 }
 0x4e2   : > { %3501 = vst.msk [vmem:[%s4271_s17 + $0xcc] sm:$0x1] %vm1804_vm4, %v3431_v60 }
 0x4e3   : > { %v3393_v61 = vpop.permute.xlu1 %3392 }
 0x4e4   : > { %3482 = vst.msk [vmem:[%s4271_s17 + $0x34] sm:$0x1] %vm1804_vm4, %v3393_v61 }
 0x4e5   : > { %v3395_v62 = vpop.permute.xlu0 %3394 }
 0x4e6   : > { %3483 = vst.msk [vmem:[%s4271_s17 + $0x3c] sm:$0x1] %vm1804_vm4, %v3395_v62 }
 0x4e7   : > { %v3413_v63 = vpop.permute.xlu1 %3412 }
 0x4e8   : > { %3492 = vst.msk [vmem:[%s4271_s17 + $0x84] sm:$0x1] %vm1804_vm4, %v3413_v63 }
 0x4e9   : > { %v3415_v0 = vpop.permute.xlu0 %3414 }
 0x4ea   : > { %3493 = vst.msk [vmem:[%s4271_s17 + $0x8c] sm:$0x1] %vm1804_vm4, %v3415_v0 }
 0x4eb   : > { %v3433_v2 = vpop.permute.xlu1 %3432 }
 0x4ec   : > { %3502 = vst.msk [vmem:[%s4271_s17 + $0xd4] sm:$0x1] %vm1804_vm4, %v3433_v2 }
 0x4ed   : > { %v3435_v3 = vpop.permute.xlu0 %3434 }
 0x4ee   : > { %3503 = vst.msk [vmem:[%s4271_s17 + $0xdc] sm:$0x1] %vm1804_vm4, %v3435_v3 }
 0x4ef   : > { %v3437_v5 = vpop.permute.xlu1 %3436 }
 0x4f0   : > { %3504 = vst.msk [vmem:[%s4271_s17 + $0xe4] sm:$0x1] %vm1804_vm4, %v3437_v5 }
 0x4f1   : > { %v3439_v7 = vpop.permute.xlu0 %3438 }
 0x4f2   : > { %3505 = vst.msk [vmem:[%s4271_s17 + $0xec] sm:$0x1] %vm1804_vm4, %v3439_v7 }
 0x4f3   : > { %v3417_v8 = vpop.permute.xlu1 %3416 }
 0x4f4   : > { %3494 = vst.msk [vmem:[%s4271_s17 + $0x94] sm:$0x1] %vm1804_vm4, %v3417_v8 }
 0x4f5   : > { %v3419_v51 = vpop.permute.xlu0 %3418 }
 0x4f6   : > { %3495 = vst.msk [vmem:[%s4271_s17 + $0x9c] sm:$0x1] %vm1804_vm4, %v3419_v51 }
 0x4f7   : > { %v3421_v10 = vpop.permute.xlu1 %3420 }
 0x4f8   : > { %3496 = vst.msk [vmem:[%s4271_s17 + $0xa4] sm:$0x1] %vm1804_vm4, %v3421_v10 }
 0x4f9   : > { %v3423_v45 = vpop.permute.xlu0 %3422 }
 0x4fa   : > { %3497 = vst.msk [vmem:[%s4271_s17 + $0xac] sm:$0x1] %vm1804_vm4, %v3423_v45 }
 0x4fb   : > { %v3425_v11 = vpop.permute.xlu1 %3424 }
 0x4fc   : > { %3498 = vst.msk [vmem:[%s4271_s17 + $0xb4] sm:$0x1] %vm1804_vm4, %v3425_v11 }
 0x4fd   : > { %v3427_v12 = vpop.permute.xlu0 %3426 }
 0x4fe   : > { %3499 = vst.msk [vmem:[%s4271_s17 + $0xbc] sm:$0x1] %vm1804_vm4, %v3427_v12 }
 0x4ff   : > { %v3441_v13 = vpop.permute.xlu1 %3440 }
 0x500   : > { %3506 = vst.msk [vmem:[%s4271_s17 + $0xf4] sm:$0x1] %vm1804_vm4, %v3441_v13 }
 0x501   : > { %v3443_v14 = vpop.permute.xlu0 %3442 }
 0x502   : > { %3507 = vst.msk [vmem:[%s4271_s17 + $0xfc] sm:$0x1] %vm1804_vm4, %v3443_v14 }
 0x503 PF: > { %s13_s12 = sadd.s32 1, %s4002_s12  }
 0x504   : > { %p10_p4 = scmp.ge.s32.totalorder %s13_s12, 4  }
 0x506   :  { %12 = sbr.rel (!%p10_p4) target bundleno = 1 (0x1), region = 70 }

// kernel: critic_forward.8
= control target key start
LH: loop header
LB: loop body
LE: loop exit
PB: predicated region body
PF: predicated region fallthrough
CT: control target
= control target key end

     0   :  { %v182_v0 = vmov 0.0   ;;  %vm183_vm0 = vmmov 0   ;;  %s237_s1 = inlined_call_operand.vmem [shape: bf16[128,128], index: 1, kind: input, shape index: {}]   ;;  %s238_s0 = inlined_call_operand.vmem [shape: f32[2,128], index: 0, kind: input, shape index: {}]   ;;  %s239_s2 = inlined_call_operand.vmem [shape: f32[1,128], index: 2, kind: input, shape index: {}]   ;;  %s240_s3 = inlined_call_operand.vmem [shape: f32[2,128], index: 3, kind: output, shape index: {}]  }
   0x1   :  { %152 = vmatprep.subr.bf16.mxu0 %v182_v0  ;;  %v174_v1 = vld [vmem:[%s237_s1] sm:$0xff]   ;;  %168 = vmatprep.mubr.msk.bf16.mxu0 %vm183_vm0, %v182_v0  ;;  %v175_v2 = vld [vmem:[%s237_s1 + $0x8] sm:$0xff]   ;;  %v176_v3 = vld [vmem:[%s237_s1 + $0x10] sm:$0xff]  }
   0x2   :  { %153 = vmatpush3.bf16.msra.mxu0 %v174_v1  ;;  %v177_v4 = vld [vmem:[%s237_s1 + $0x18] sm:$0xff]   ;;  %v178_v5 = vld [vmem:[%s237_s1 + $0x20] sm:$0xff]   ;;  %v179_v6 = vld [vmem:[%s237_s1 + $0x28] sm:$0xff]  }
   0x3   :  { %154 = vmatprep.subr.bf16.mxu0 %v182_v0  ;;  %v180_v7 = vld [vmem:[%s237_s1 + $0x30] sm:$0xff]   ;;  %v181_v8 = vld [vmem:[%s237_s1 + $0x38] sm:$0xff]   ;;  %v15_v9 = vld [vmem:[%s238_s0] sm:$0x3] }
   0x4   :  { %v16_v10 = vpack.c.bf16 %v15_v9, %v15_v9  ;;  %v134_v11 = vld [vmem:[%s239_s2] ss:$0 sm:$0xff] }
   0x6   :  { %155 = vmatpush3.bf16.msra.mxu0 %v175_v2 }
   0x7   :  { %156 = vmatprep.subr.bf16.mxu0 %v182_v0 }
   0xa   :  { %157 = vmatpush3.bf16.msra.mxu0 %v176_v3 }
   0xb   :  { %158 = vmatprep.subr.bf16.mxu0 %v182_v0 }
   0xe   :  { %159 = vmatpush3.bf16.msra.mxu0 %v177_v4 }
   0xf   :  { %160 = vmatprep.subr.bf16.mxu0 %v182_v0 }
  0x12   :  { %161 = vmatpush3.bf16.msra.mxu0 %v178_v5 }
  0x13   :  { %162 = vmatprep.subr.bf16.mxu0 %v182_v0 }
  0x16   :  { %163 = vmatpush3.bf16.msra.mxu0 %v179_v6 }
  0x17   :  { %164 = vmatprep.subr.bf16.mxu0 %v182_v0 }
  0x1a   :  { %165 = vmatpush3.bf16.msra.mxu0 %v180_v7 }
  0x1b   :  { %166 = vmatprep.subr.bf16.mxu0 %v182_v0 }
  0x1e   :  { %167 = vmatpush3.bf16.msra.mxu0 %v181_v8 }
  0x21   :  { %169 = vmatmul.mubr.bf16.vlgmr.msra.gmra.mrb[0].mxu0 %v16_v10 }
  0xf4   :  { %v122_v12 = vpop.f32.mrb[0].mxu0 }
  0xf5   :  { %v123_v13 = vadd.f32 %v134_v11, %v122_v12  ;;  %v170_v14 = vpop.f32.mrb[1].mxu0 }
  0xf6   :  { %v125_v15 = vpop.f32.mrb[2].mxu0 }
  0xf7   :  { %v128_v16 = vmax.f32 %v123_v13, 0.0  ;;  %v171_v17 = vpop.f32.mrb[3].mxu0 }
  0xf9   :  { %129 = vst [vmem:[%s240_s3] sm:$0x3] %v128_v16 }

// kernel: critic_forward.7
= control target key start
LH: loop header
LB: loop body
LE: loop exit
PB: predicated region body
PF: predicated region fallthrough
CT: control target
= control target key end

     0   :  { %s2652_s12 = smov 0   ;;  %s3047_s0 = inlined_call_operand.vmem [shape: f32[2,32,42], index: 0, kind: input, shape index: {}]   ;;  %s3048_s1 = inlined_call_operand.vmem [shape: f32[9,32,32], index: 1, kind: input, shape index: {}]   ;;  %s3049_s2 = inlined_call_operand.vmem [shape: f32[32,1], index: 2, kind: input, shape index: {}]   ;;  %s3050_s3 = inlined_call_operand.vmem [shape: f32[2,32,2,2], index: 3, kind: output, shape index: {}]  }
   0x1 LB: > { %s2088_s13 = sadd.s32 4294967295, %s2619_s12   ;;  %p2092_p0 = scmp.ge.s32.totalorder %s2619_s12, 1  ;;  %s2619_s12 = sphi %s2652_s12, %s13_s12  }
   0x2   : > { %p137_p1 = scmp.lt.s32.totalorder %s2619_s12, 3 }
   0x4   : > { %p138_p2 = pnand %p2092_p0, %p137_p1 }
   0x5   : > { %p161_p3 = scmp.lt.s32.totalorder (!%p138_p2), %s2088_s13, 1  ;;  %vm200_vm0 = vcmask (!%p138_p2), 261120   ;;  %v2117_v0 = vld [vmem:[%s3048_s1 + $0x60] sm:$0xff] (!%p138_p2)  ;;  %s2621_s20 = smov (!%p138_p2), 121   ;;  %v1222_v11 = vld [vmem:[%s3049_s2 + $0x8] sm:$0xff] (!%p138_p2)  ;;  %v2629_v12 = vmov (!%p138_p2), 0  }
   0x6   : > { %141 = sbr.rel (%p138_p2) target bundleno = 989 (0x3dd), region = 32  ;;  %2312 = vmatprep.mubr.msk.f32.mxu0 (!%p138_p2), %vm200_vm0, %v2117_v0  ;;  %s2622_s21 = smov (!%p138_p2), 122   ;;  %v2097_v7 = vld [vmem:[%s3048_s1 + $0x20] sm:$0xff] (!%p138_p2)  ;;  %2611 = vset.pattern.permute.xlu0 (!%p138_p2), %v2629_v12  ;;  %v1224_v13 = vld [vmem:[%s3049_s2 + $0x18] sm:$0xff] (!%p138_p2)  ;;  %v1223_v14 = vld [vmem:[%s3049_s2 + $0x10] sm:$0xff] (!%p138_p2)  ;;  %vm1314_vm2 = vcmask (!%p138_p2), 1043456  }
   0x7   : > { %2270 = vmatprep.mubr.msk.f32.mxu1 (!%p138_p2), %vm200_vm0, %v2097_v7  ;;  %s2623_s24 = smov (!%p138_p2), 127   ;;  %s2624_s25 = smov (!%p138_p2), 120   ;;  %v1221_v10 = vld [vmem:[%s3049_s2] sm:$0xff] (!%p138_p2)  ;;  %2612 = vset.pattern.permute.xlu1 (!%p138_p2), %v2629_v12  ;;  %v2118_v34 = vld [vmem:[%s3048_s1 + $0x68] sm:$0xff] (!%p138_p2)  ;;  %v2119_v40 = vld [vmem:[%s3048_s1 + $0x70] sm:$0xff] (!%p138_p2)  ;;  %vm1301_vm3 = vcmask (!%p138_p2), 31744  }
   0x8   : > { %s2625_s26 = smov (!%p138_p2), 116   ;;  %s2626_s27 = smov (!%p138_p2), 126   ;;  %v2120_v44 = vld [vmem:[%s3048_s1 + $0x78] sm:$0xff] (!%p138_p2)  ;;  %v2125_v50 = vld [vmem:[%s3048_s1 + $0x80] sm:$0xff] (!%p138_p2)  ;;  %v2098_v52 = vld [vmem:[%s3048_s1 + $0x28] sm:$0xff] (!%p138_p2)  ;;  %vm1635_vm4 = vcmask (!%p138_p2), 8192  }
   0x9   : > { %s2627_s28 = smov (!%p138_p2), 115   ;;  %s2628_s29 = smov (!%p138_p2), 114   ;;  %v2126_v53 = vld [vmem:[%s3048_s1 + $0x88] sm:$0xff] (!%p138_p2)  ;;  %v2099_v56 = vld [vmem:[%s3048_s1 + $0x30] sm:$0xff] (!%p138_p2)  ;;  %v2100_v63 = vld [vmem:[%s3048_s1 + $0x38] sm:$0xff] (!%p138_p2) }
   0xa   : > { %v2127_v59 = vld [vmem:[%s3048_s1 + $0x90] sm:$0xff] (!%p138_p2)  ;;  %v2128_v0 = vld [vmem:[%s3048_s1 + $0x98] sm:$0xff] (!%p138_p2)  ;;  %v2133_v7 = vld [vmem:[%s3048_s1 + $0xa0] sm:$0xff] (!%p138_p2) }
   0xb   : > { %v176_v12 = vld [vmem:[%s3048_s1 + $0x8] sm:$0xff] (!%p138_p2) }
   0xd   : > { %s3052_s13 = smov (!%p161_p3, %s2088_s13), 1 }
   0xe   : > { %s2178_s14 = sshll.u32 %s3052_s13, 5 }
   0xf   : > { %s165_s17 = scalar_lea.vmem %s3047_s0, %s2178_s14 }
  0x10   : > { %v171_v1 = vld [vmem:[%s165_s17] sm:$0xff]  ;;  %v172_v2 = vld [vmem:[%s165_s17 + $0x8] sm:$0xff]  ;;  %v173_v3 = vld [vmem:[%s165_s17 + $0x10] sm:$0xff] }
  0x11   : > { %v2541_v4 = vpack.i.bf16 %v172_v2, %v171_v1  ;;  %v174_v5 = vld [vmem:[%s165_s17 + $0x18] sm:$0xff]  ;;  %v2676_v8 = vpack.c.bf16 %v172_v2, %v171_v1 }
  0x12   : > { %v2546_v6 = vpack.i.bf16 %v174_v5, %v173_v3  ;;  %v2679_v9 = vpack.c.bf16 %v174_v5, %v173_v3 }
  0x13   : > { %2542 = vrot.lane.b32.xlu1 %v2541_v4, %s2621_s20  ;;  %2532 = vrot.lane.b32.xlu0 %v2541_v4, %s2622_s21 }
  0x17   : > { %2547 = vrot.lane.b32.xlu1 %v2546_v6, %s2621_s20  ;;  %2537 = vrot.lane.b32.xlu0 %v2546_v6, %s2622_s21 }
  0x1b   : > { %2557 = vrot.lane.b32.xlu1 %v2541_v4, %s2623_s24  ;;  %2552 = vrot.lane.b32.xlu0 %v2541_v4, %s2624_s25 }
  0x1f   : > { %2567 = vrot.lane.b32.xlu1 %v2546_v6, %s2623_s24  ;;  %2562 = vrot.lane.b32.xlu0 %v2546_v6, %s2624_s25 }
  0x23   : > { %2577 = vrot.lane.b32.xlu1 %v2546_v6, %s2625_s26  ;;  %2572 = vrot.lane.b32.xlu0 %v2541_v4, %s2625_s26 }
  0x27   : > { %2587 = vrot.lane.b32.xlu1 %v2541_v4, %s2626_s27  ;;  %2582 = vrot.lane.b32.xlu0 %v2541_v4, %s2627_s28 }
  0x2b   : > { %2597 = vrot.lane.b32.xlu1 %v2546_v6, %s2626_s27  ;;  %2592 = vrot.lane.b32.xlu0 %v2546_v6, %s2627_s28 }
  0x2f   : > { %2602 = vrot.lane.b32.xlu0 %v2541_v4, %s2628_s29  ;;  %2607 = vrot.lane.b32.xlu1 %v2546_v6, %s2628_s29  ;;  %v175_v6 = vld [vmem:[%s3048_s1] sm:$0xff] }
  0x33   : > { %1227 = vperm.xlu0 %2611, %v1221_v10   ;;  %1232 = vperm.xlu1 %2612, %v1222_v11  }
  0x37   : > { %1242 = vperm.xlu0 %2611, %v1224_v13   ;;  %1237 = vperm.xlu1 %2612, %v1223_v14   ;;  %v2134_v13 = vld [vmem:[%s3048_s1 + $0xa8] sm:$0xff] }
  0x85   : > { %v2543_v15 = vpop.permute.xlu1 %2542  ;;  %v2533_v16 = vpop.permute.xlu0 %2532 }
  0x86   : > { %v2535_v17 = vunpack.i.h.bf16 %v2533_v16  ;;  %v2534_v18 = vunpack.i.l.bf16 %v2533_v16  ;;  %v2545_v19 = vunpack.i.h.bf16 %v2543_v15  ;;  %v2544_v20 = vunpack.i.l.bf16 %v2543_v15 }
  0x88   : > { %v2428_v21 = vpack.c.bf16 %v2535_v17, %v2534_v18  ;;  %v2436_v26 = vpack.c.bf16 %v2545_v19, %v2544_v20  ;;  %v2135_v18 = vld [vmem:[%s3048_s1 + $0xb0] sm:$0xff] }
  0x89   : > { %v2548_v22 = vpop.permute.xlu1 %2547  ;;  %v2538_v23 = vpop.permute.xlu0 %2537 }
  0x8a   : > { %v2540_v24 = vunpack.i.h.bf16 %v2538_v23  ;;  %v2539_v25 = vunpack.i.l.bf16 %v2538_v23  ;;  %2429 = vmatprep.subr.bf16.mxu0 %v2428_v21  ;;  %v2550_v27 = vunpack.i.h.bf16 %v2548_v22  ;;  %v2549_v28 = vunpack.i.l.bf16 %v2548_v22  ;;  %v178_v22 = vld [vmem:[%s3048_s1 + $0x18] sm:$0xff] }
  0x8b   : > { %2431 = vmatpush3.bf16.msra.mxu0 %v2428_v21  ;;  %v2136_v23 = vld [vmem:[%s3048_s1 + $0xb8] sm:$0xff] }
  0x8c   : > { %v2432_v29 = vpack.c.bf16 %v2540_v24, %v2539_v25  ;;  %v2440_v35 = vpack.c.bf16 %v2550_v27, %v2549_v28  ;;  %v2109_v27 = vld [vmem:[%s3048_s1 + $0x40] sm:$0xff] }
  0x8d   : > { %v2558_v30 = vpop.permute.xlu1 %2557  ;;  %v2553_v31 = vpop.permute.xlu0 %2552  ;;  %v2141_v28 = vld [vmem:[%s3048_s1 + $0xc0] sm:$0xff] }
  0x8e   : > { %v2560_v32 = vunpack.i.h.bf16 %v2558_v30  ;;  %v2559_v33 = vunpack.i.l.bf16 %v2558_v30  ;;  %2433 = vmatprep.subr.bf16.mxu0 %v2432_v29  ;;  %v2555_v38 = vunpack.i.h.bf16 %v2553_v31  ;;  %v2554_v39 = vunpack.i.l.bf16 %v2553_v31  ;;  %v2110_v31 = vld [vmem:[%s3048_s1 + $0x48] sm:$0xff] }
  0x8f   : > { %2435 = vmatpush3.bf16.msra.mxu0 %v2432_v29 }
  0x90   : > { %v2404_v36 = vpack.c.bf16 %v2560_v32, %v2559_v33  ;;  %2437 = vmatprep.subr.bf16.mxu0 %v2436_v26  ;;  %v2444_v46 = vpack.c.bf16 %v2555_v38, %v2554_v39  ;;  %v2142_v32 = vld [vmem:[%s3048_s1 + $0xc8] sm:$0xff]  ;;  %v2112_v38 = vld [vmem:[%s3048_s1 + $0x58] sm:$0xff] }
  0x91   : > { %v2568_v37 = vpop.permute.xlu1 %2567  ;;  %v2563_v41 = vpop.permute.xlu0 %2562  ;;  %v2144_v39 = vld [vmem:[%s3048_s1 + $0xd8] sm:$0xff] }
  0x92   : > { %v2570_v42 = vunpack.i.h.bf16 %v2568_v37  ;;  %v2569_v43 = vunpack.i.l.bf16 %v2568_v37  ;;  %2405 = vmatprep.subr.bf16.mxu1 %v2404_v36  ;;  %2313 = vmatmul.mubr.msk.f32.vlgmr.msra.gmra.mrb[0].mxu0 %vm200_vm0, %v2118_v34  ;;  %v2565_v48 = vunpack.i.h.bf16 %v2563_v41  ;;  %v2564_v49 = vunpack.i.l.bf16 %v2563_v41  ;;  %v2111_v34 = vld [vmem:[%s3048_s1 + $0x50] sm:$0xff]  ;;  %v2149_v41 = vld [vmem:[%s3048_s1 + $0xe0] sm:$0xff] }
  0x93   : > { %2407 = vmatpush3.bf16.msra.mxu1 %v2404_v36  ;;  %2439 = vmatpush3.bf16.msra.mxu0 %v2436_v26  ;;  %v2143_v37 = vld [vmem:[%s3048_s1 + $0xd0] sm:$0xff] }
  0x94   : > { %v2408_v45 = vpack.c.bf16 %v2570_v42, %v2569_v43  ;;  %2315 = vmatprep.mubr.msk.f32.mxu0 %vm200_vm0, %v2119_v40  ;;  %2441 = vmatprep.subr.bf16.mxu0 %v2440_v35  ;;  %v2448_v54 = vpack.c.bf16 %v2565_v48, %v2564_v49  ;;  %v2159_v42 = vld [vmem:[%s3048_s1 + $0x110] sm:$0xff]  ;;  %v2150_v43 = vld [vmem:[%s3048_s1 + $0xe8] sm:$0xff] }
  0x95   : > { %v2578_v47 = vpop.permute.xlu1 %2577  ;;  %v2573_v51 = vpop.permute.xlu0 %2572  ;;  %v2158_v48 = vld [vmem:[%s3048_s1 + $0x108] sm:$0xff] }
  0x96   : > { %2409 = vmatprep.subr.bf16.mxu1 %v2408_v45  ;;  %2316 = vmatmul.mubr.msk.f32.gmra.mrb[2].mxu0 %vm200_vm0, %v2120_v44  ;;  %v2575_v57 = vunpack.i.h.bf16 %v2573_v51  ;;  %v2574_v58 = vunpack.i.l.bf16 %v2573_v51  ;;  %v2580_v1 = vunpack.i.h.bf16 %v2578_v47  ;;  %v2579_v2 = vunpack.i.l.bf16 %v2578_v47  ;;  %v2151_v44 = vld [vmem:[%s3048_s1 + $0xf0] sm:$0xff]  ;;  %v2157_v47 = vld [vmem:[%s3048_s1 + $0x100] sm:$0xff] }
  0x97   : > { %2411 = vmatpush3.bf16.msra.mxu1 %v2408_v45  ;;  %2443 = vmatpush3.bf16.msra.mxu0 %v2440_v35  ;;  %v2160_v45 = vld [vmem:[%s3048_s1 + $0x118] sm:$0xff] }
  0x98   : > { %2326 = vmatprep.mubr.msk.f32.mxu0 %vm200_vm0, %v2125_v50  ;;  %2413 = vmatprep.subr.bf16.mxu1 %v2676_v8  ;;  %v2452_v4 = vpack.c.bf16 %v2575_v57, %v2574_v58  ;;  %v2456_v14 = vpack.c.bf16 %v2580_v1, %v2579_v2 }
  0x99   : > { %2445 = vmatprep.subr.bf16.mxu0 %v2444_v46  ;;  %v2588_v55 = vpop.permute.xlu1 %2587  ;;  %v2583_v60 = vpop.permute.xlu0 %2582 }
  0x9a   : > { %2271 = vmatmul.mubr.msk.f32.vlgmr.msra.gmra.mrb[0].mxu1 %vm200_vm0, %v2098_v52  ;;  %2327 = vmatmul.mubr.msk.f32.vlgmr.msra.gmra.mrb[0].mxu0 %vm200_vm0, %v2126_v53  ;;  %v2590_v61 = vunpack.i.h.bf16 %v2588_v55  ;;  %v2589_v62 = vunpack.i.l.bf16 %v2588_v55  ;;  %v2585_v16 = vunpack.i.h.bf16 %v2583_v60  ;;  %v2584_v17 = vunpack.i.l.bf16 %v2583_v60 }
  0x9b   : > { %2415 = vmatpush3.bf16.msra.mxu1 %v2676_v8  ;;  %2447 = vmatpush3.bf16.msra.mxu0 %v2444_v46  ;;  %v2152_v46 = vld [vmem:[%s3048_s1 + $0xf8] sm:$0xff] }
  0x9c   : > { %2273 = vmatprep.mubr.msk.f32.mxu1 %vm200_vm0, %v2099_v56  ;;  %2329 = vmatprep.mubr.msk.f32.mxu0 %vm200_vm0, %v2127_v59  ;;  %v2420_v3 = vpack.c.bf16 %v2590_v61, %v2589_v62  ;;  %v2460_v26 = vpack.c.bf16 %v2585_v16, %v2584_v17 }
  0x9d   : > { %2417 = vmatprep.subr.bf16.mxu1 %v2679_v9  ;;  %2449 = vmatprep.subr.bf16.mxu0 %v2448_v54  ;;  %v2598_v5 = vpop.permute.xlu1 %2597  ;;  %v2593_v8 = vpop.permute.xlu0 %2592 }
  0x9e   : > { %2274 = vmatmul.mubr.msk.f32.gmra.mrb[2].mxu1 %vm200_vm0, %v2100_v63  ;;  %2330 = vmatmul.mubr.msk.f32.gmra.mrb[2].mxu0 %vm200_vm0, %v2128_v0  ;;  %v2600_v10 = vunpack.i.h.bf16 %v2598_v5  ;;  %v2599_v11 = vunpack.i.l.bf16 %v2598_v5  ;;  %v2595_v24 = vunpack.i.h.bf16 %v2593_v8  ;;  %v2594_v25 = vunpack.i.l.bf16 %v2593_v8 }
  0x9f   : > { %2419 = vmatpush3.bf16.msra.mxu1 %v2679_v9  ;;  %2451 = vmatpush3.bf16.msra.mxu0 %v2448_v54  ;;  %v177_v9 = vld [vmem:[%s3048_s1 + $0x10] sm:$0xff] }
  0xa0   : > { %2284 = vmatprep.mubr.msk.f32.mxu1 %vm200_vm0, %v175_v6  ;;  %2340 = vmatprep.mubr.msk.f32.mxu0 %vm200_vm0, %v2133_v7  ;;  %v2424_v15 = vpack.c.bf16 %v2600_v10, %v2599_v11  ;;  %v2464_v33 = vpack.c.bf16 %v2595_v24, %v2594_v25 }
  0xa1   : > { %2421 = vmatprep.subr.bf16.mxu1 %v2420_v3  ;;  %2453 = vmatprep.subr.bf16.mxu0 %v2452_v4  ;;  %v2603_v19 = vpop.permute.xlu0 %2602  ;;  %v2608_v30 = vpop.permute.xlu1 %2607 }
  0xa2   : > { %2285 = vmatmul.mubr.msk.f32.vlgmr.msra.gmra.mrb[0].mxu1 %vm200_vm0, %v176_v12  ;;  %2341 = vmatmul.mubr.msk.f32.vlgmr.msra.gmra.mrb[0].mxu0 %vm200_vm0, %v2134_v13  ;;  %v2605_v20 = vunpack.i.h.bf16 %v2603_v19  ;;  %v2604_v21 = vunpack.i.l.bf16 %v2603_v19  ;;  %v2610_v35 = vunpack.i.h.bf16 %v2608_v30  ;;  %v2609_v36 = vunpack.i.l.bf16 %v2608_v30 }
  0xa3   : > { %2423 = vmatpush3.bf16.msra.mxu1 %v2420_v3  ;;  %2455 = vmatpush3.bf16.msra.mxu0 %v2452_v4 }
  0xa4   : > { %2287 = vmatprep.mubr.msk.f32.mxu1 %vm200_vm0, %v177_v9  ;;  %2343 = vmatprep.mubr.msk.f32.mxu0 %vm200_vm0, %v2135_v18  ;;  %v2468_v29 = vpack.c.bf16 %v2605_v20, %v2604_v21  ;;  %v2472_v40 = vpack.c.bf16 %v2610_v35, %v2609_v36  ;;  %v2630_v9 = vmov 0.0  }
  0xa5   : > { %2425 = vmatprep.subr.bf16.mxu1 %v2424_v15  ;;  %2457 = vmatprep.subr.bf16.mxu0 %v2456_v14 }
  0xa6   : > { %2288 = vmatmul.mubr.msk.f32.gmra.mrb[2].mxu1 %vm200_vm0, %v178_v22  ;;  %2344 = vmatmul.mubr.msk.f32.gmra.mrb[2].mxu0 %vm200_vm0, %v2136_v23 }
  0xa7   : > { %2427 = vmatpush3.bf16.msra.mxu1 %v2424_v15  ;;  %2459 = vmatpush3.bf16.msra.mxu0 %v2456_v14  ;;  %v1293_v14 = vlaneseq }
  0xa8   : > { %2298 = vmatprep.mubr.msk.f32.mxu1 %vm200_vm0, %v2109_v27  ;;  %2354 = vmatprep.mubr.msk.f32.mxu0 %vm200_vm0, %v2141_v28 }
  0xa9   : > { %2461 = vmatprep.subr.bf16.mxu0 %v2460_v26  ;;  %2476 = vmatprep.subr.bf16.mxu1 %v2468_v29  ;;  %v1296_v15 = vand.u32 127, %v1293_v14  ;;  %v1294_v16 = vshrl.u32 %v1293_v14, 7 }
  0xaa   : > { %2299 = vmatmul.mubr.msk.f32.vlgmr.msra.gmra.mrb[0].mxu1 %vm200_vm0, %v2110_v31  ;;  %2355 = vmatmul.mubr.msk.f32.vlgmr.msra.gmra.mrb[0].mxu0 %vm200_vm0, %v2142_v32 }
  0xab   : > { %2463 = vmatpush3.bf16.msra.mxu0 %v2460_v26  ;;  %2301 = vmatprep.mubr.msk.f32.mxu1 %vm200_vm0, %v2111_v34  ;;  %v1297_v17 = vmul.u32 2, %v1296_v15 }
  0xac   : > { %2357 = vmatprep.mubr.msk.f32.mxu0 %vm200_vm0, %v2143_v37  ;;  %2465 = vmatprep.subr.bf16.mxu0 %v2464_v33 }
  0xad   : > { %2478 = vmatpush3.bf16.msra.mxu1 %v2468_v29  ;;  %vm1298_vm1 = vcmp.eq.s32.totalorder %v1294_v16, %v1297_v17 }
  0xae   : > { %2302 = vmatmul.mubr.msk.f32.gmra.mrb[2].mxu1 %vm200_vm0, %v2112_v38  ;;  %2358 = vmatmul.mubr.msk.f32.gmra.mrb[2].mxu0 %vm200_vm0, %v2144_v39  ;;  %v2165_v18 = vsel %vm1298_vm1, 1.0, %v2630_v9  ;;  %v2631_v39 = vmov 1966171168  }
  0xaf   : > { %2467 = vmatpush3.bf16.msra.mxu0 %v2464_v33  ;;  %2368 = vmatprep.mubr.msk.f32.mxu0 %vm200_vm0, %v2149_v41 }
  0xb0   : > { %2469 = vmatprep.subr.bf16.mxu0 %v2468_v29  ;;  %2477 = vmatprep.subr.bf16.mxu1 %v2472_v40 }
  0xb1   : > { %2479 = vmatpush3.bf16.msra.mxu1 %v2472_v40  ;;  %2385 = vmatprep.mubr.msk.f32.mxu1 %vm200_vm0, %v2159_v42 }
  0xb2   : > { %2369 = vmatmul.mubr.msk.f32.vlgmr.msra.gmra.mrb[0].mxu0 %vm200_vm0, %v2150_v43  ;;  %v1228_v55 = vpop.permute.xlu0 %1227  ;;  %v1233_v58 = vpop.permute.xlu1 %1232  ;;  %2388 = vmatprep.subr.msk.mxu1 %vm1314_vm2, %v2165_v18 }
  0xb3   : > { %2471 = vmatpush3.bf16.msra.mxu0 %v2468_v29  ;;  %2371 = vmatprep.mubr.msk.f32.mxu0 %vm200_vm0, %v2151_v44 }
  0xb4   : > { %2473 = vmatprep.subr.bf16.mxu0 %v2472_v40  ;;  %2386 = vmatmul.mubr.msk.f32.vlgmr.msra.gmra.mrb[4].mxu1 %vm200_vm0, %v2160_v45 }
  0xb5   : > { %2389 = vmatpush3.msk.msra.mxu1 %vm1314_vm2, %v2165_v18 }
  0xb6   : > { %2372 = vmatmul.mubr.msk.f32.gmra.mrb[2].mxu0 %vm200_vm0, %v2152_v46  ;;  %v1243_v2 = vpop.permute.xlu0 %1242  ;;  %v1238_v5 = vpop.permute.xlu1 %1237  ;;  %2396 = vmatprep.subr.msk.mxu1 %vm1314_vm2, %v2165_v18 }
  0xb7   : > { %2475 = vmatpush3.bf16.msra.mxu0 %v2472_v40  ;;  %2382 = vmatprep.mubr.msk.f32.mxu0 %vm200_vm0, %v2157_v47  ;;  %v1409_v40 = vunpack.c.l.s4 %v2631_v39 }
  0xb9   : > { %v1410_v41 = vunpack.c.0.s8 %v1409_v40 }
  0xba   : > { %2383 = vmatmul.mubr.msk.f32.vlgmr.msra.gmra.mrb[0].mxu0 %vm200_vm0, %v2158_v48 }
  0xbb   : > { %v2860_v42 = vsub.s32 %v1410_v41, %v1294_v16 }
 0x17d   : > { %v2300_v49 = vpop.f32.mrb[0].mxu1 }
 0x17e   : > { %v490_v50 = vpop.f32.mrb[1].mxu1 }
 0x181   : > { %v2303_v51 = vpop.f32.mrb[2].mxu1 }
 0x182   : > { %v500_v52 = vpop.f32.mrb[3].mxu1 }
 0x187   : > { %v2387_v53 = vpop.f32.mrb[4].mxu1 }
 0x188   : > { %v1208_v54 = vpop.f32.mrb[5].mxu1 }
 0x189   : > { %v2373_v56 = vpop.f32.mrb[2].mxu0 }
 0x18a   : > { %v2482_v57 = vadd.f32 %v2373_v56, %v2303_v51  ;;  %v1090_v59 = vpop.f32.mrb[3].mxu0 }
 0x18b   : > { %v2484_v60 = vadd.f32 %v1090_v59, %v500_v52 }
 0x18c   : > { %v2483_v61 = vadd.f32 %v2482_v57, %v2387_v53 }
 0x18d   : > { %v2485_v62 = vadd.f32 %v2484_v60, %v1208_v54  ;;  %v2384_v63 = vpop.f32.mrb[0].mxu0 }
 0x18e   : > { %v2480_v0 = vadd.f32 %v2384_v63, %v2300_v49  ;;  %v1198_v1 = vpop.f32.mrb[1].mxu0  ;;  %v1248_v7 = vadd.f32 %v2483_v61, %v1243_v2 }
 0x18f   : > { %v2481_v3 = vadd.f32 %v1198_v1, %v490_v50  ;;  %v1247_v10 = vadd.f32 %v2485_v62, %v1238_v5 }
 0x190   : > { %v1246_v4 = vadd.f32 %v2480_v0, %v1233_v58  ;;  %v1252_v12 = vmax.f32 %v1248_v7, 0.0 }
 0x191   : > { %v1245_v6 = vadd.f32 %v2481_v3, %v1228_v55  ;;  %v1251_v13 = vmax.f32 %v1247_v10, 0.0 }
 0x192   : > { %v1250_v8 = vmax.f32 %v1246_v4, 0.0 }
 0x193   : > { %v1249_v11 = vmax.f32 %v1245_v6, 0.0 }
 0x194   : > { %1259 = vrot.lane.b32.xlu0 %v1250_v8, %s2622_s21 }
 0x195   : > { %1257 = vrot.lane.b32.xlu1 %v1249_v11, %s2622_s21 }
 0x198   : > { %1263 = vrot.lane.b32.xlu0 %v1252_v12, %s2622_s21 }
 0x199   : > { %1261 = vrot.lane.b32.xlu1 %v1251_v13, %s2622_s21  ;;  %s2179_s21 = sshll.u32 %s3052_s13, 6 }
 0x19a   : > { %s2867_s15 = scalar_lea.vmem %s3050_s3, %s2179_s21 }
 0x206   : > { %v1260_v19 = vpop.permute.xlu0 %1259 }
 0x207   : > { %v1270_v20 = vmax.f32 %v1250_v8, %v1260_v19  ;;  %v1258_v21 = vpop.permute.xlu1 %1257 }
 0x208   : > { %v1269_v22 = vmax.f32 %v1249_v11, %v1258_v21 }
 0x209   : > { %1279 = vrot.lane.b32.xlu0 %v1270_v20, %s2623_s24 }
 0x20a   : > { %v1264_v23 = vpop.permute.xlu0 %1263  ;;  %1277 = vrot.lane.b32.xlu1 %v1269_v22, %s2623_s24 }
 0x20b   : > { %v1272_v24 = vmax.f32 %v1252_v12, %v1264_v23  ;;  %v1262_v25 = vpop.permute.xlu1 %1261 }
 0x20c   : > { %v1271_v26 = vmax.f32 %v1251_v13, %v1262_v25 }
 0x20d   : > { %1283 = vrot.lane.b32.xlu0 %v1272_v24, %s2623_s24 }
 0x20e   : > { %1281 = vrot.lane.b32.xlu1 %v1271_v26, %s2623_s24 }
 0x27b   : > { %v1280_v27 = vpop.permute.xlu0 %1279 }
 0x27c   : > { %v1290_v28 = vmax.f32 %v1270_v20, %v1280_v27  ;;  %v1278_v29 = vpop.permute.xlu1 %1277 }
 0x27d   : > { %v1289_v30 = vmax.f32 %v1269_v22, %v1278_v29 }
 0x27e   : > { %1670 = vrot.lane.b32.xlu0 %v1290_v28, %s2625_s26 }
 0x27f   : > { %v1284_v31 = vpop.permute.xlu0 %1283  ;;  %1668 = vrot.lane.b32.xlu1 %v1289_v30, %s2625_s26  ;;  %2390 = vmatprep.mubr.msk.f32.mxu1 %vm1301_vm3, %v1289_v30 }
 0x280   : > { %v1292_v32 = vmax.f32 %v1272_v24, %v1284_v31  ;;  %2391 = vmatmul.mubr.msk.f32.vlgmr.msra.gmra.mrb[6].mxu1 %vm1301_vm3, %v1290_v28  ;;  %v1282_v33 = vpop.permute.xlu1 %1281 }
 0x281   : > { %v1291_v34 = vmax.f32 %v1271_v26, %v1282_v33  ;;  %2397 = vmatpush3.msk.msra.mxu1 %vm1314_vm2, %v2165_v18 }
 0x282   : > { %1674 = vrot.lane.b32.xlu0 %v1292_v32, %s2625_s26 }
 0x283   : > { %1672 = vrot.lane.b32.xlu1 %v1291_v34, %s2625_s26  ;;  %2393 = vmatprep.mubr.msk.f32.mxu1 %vm1301_vm3, %v1291_v34 }
 0x284   : > { %2394 = vmatmul.mubr.msk.f32.gmra.mrb[8].mxu1 %vm1301_vm3, %v1292_v32 }
 0x2f0   : > { %v1671_v35 = vpop.permute.xlu0 %1670 }
 0x2f1   : > { %v1669_v36 = vpop.permute.xlu1 %1668 }
 0x2f2   : > { %2398 = vmatprep.mubr.msk.f32.mxu1 %vm1301_vm3, %v1669_v36 }
 0x2f3   : > { %2399 = vmatmul.mubr.msk.f32.vlgmr.msra.gmra.mrb[10].mxu1 %vm1301_vm3, %v1671_v35 }
 0x2f4   : > { %v1675_v38 = vpop.permute.xlu0 %1674 }
 0x2f5   : > { %v1673_v37 = vpop.permute.xlu1 %1672 }
 0x2f6   : > { %2401 = vmatprep.mubr.msk.f32.mxu1 %vm1301_vm3, %v1673_v37 }
 0x2f7   : > { %2402 = vmatmul.mubr.msk.f32.gmra.mrb[12].mxu1 %vm1301_vm3, %v1675_v38 }
 0x353   : > { %v2392_v43 = vpop.f32.mrb[6].mxu1 }
 0x354   : > { %v1456_v44 = vcombine.high %v2392_v43, %v2392_v43  ;;  %v1463_v45 = vrot.slane %v2392_v43, %v2860_v42  ;;  %v1384_v46 = vpop.f32.mrb[7].mxu1 }
 0x355   : > { %v1407_v47 = vcombine.high %v1384_v46, %v1384_v46  ;;  %v1414_v48 = vrot.slane %v1384_v46, %v2860_v42 }
 0x356   : > { %v1470_v49 = vrot.slane %v1456_v44, %v2860_v42  ;;  %v1471_v50 = vcombine.high %v1463_v45, %v1463_v45  ;;  %v1479_v51 = vrot.slane %v1463_v45, %v2860_v42 }
 0x357   : > { %v1421_v52 = vrot.slane %v1407_v47, %v2860_v42  ;;  %v1422_v53 = vcombine.high %v1414_v48, %v1414_v48  ;;  %v1430_v54 = vrot.slane %v1414_v48, %v2860_v42  ;;  %v2395_v55 = vpop.f32.mrb[8].mxu1 }
 0x358   : > { %v1472_v56 = vcombine.high %v1470_v49, %v1470_v49  ;;  %v1486_v57 = vrot.slane %v1470_v49, %v2860_v42  ;;  %v1493_v58 = vrot.slane %v1471_v50, %v2860_v42  ;;  %v1501_v59 = vcombine.high %v1479_v51, %v1479_v51  ;;  %1644 = vst.msk [vmem:[%s2867_s15 + $0x10] sm:$0x1] %vm1635_vm4, %v1479_v51  ;;  %v1394_v60 = vpop.f32.mrb[9].mxu1 }
 0x359   : > { %v1423_v61 = vcombine.high %v1421_v52, %v1421_v52  ;;  %v1437_v62 = vrot.slane %v1421_v52, %v2860_v42  ;;  %v1444_v63 = vrot.slane %v1422_v53, %v2860_v42  ;;  %v1452_v0 = vcombine.high %v1430_v54, %v1430_v54  ;;  %1636 = vst.msk [vmem:[%s2867_s15] sm:$0x1] %vm1635_vm4, %v1430_v54 }
 0x35a   : > { %v1500_v1 = vrot.slane %v1472_v56, %v2860_v42  ;;  %v1502_v2 = vcombine.high %v1486_v57, %v1486_v57  ;;  %v1503_v3 = vcombine.high %v1493_v58, %v1493_v58  ;;  %1645 = vst.msk [vmem:[%s2867_s15 + $0x12] sm:$0x1] %vm1635_vm4, %v1493_v58  ;;  %1646 = vst.msk [vmem:[%s2867_s15 + $0x14] sm:$0x1] %vm1635_vm4, %v1501_v59 }
 0x35b   : > { %1648 = vst.msk [vmem:[%s2867_s15 + $0x18] sm:$0x1] %vm1635_vm4, %v1486_v57  ;;  %v1554_v4 = vcombine.high %v2395_v55, %v2395_v55  ;;  %v1451_v5 = vrot.slane %v1423_v61, %v2860_v42  ;;  %v1453_v6 = vcombine.high %v1437_v62, %v1437_v62  ;;  %v1454_v7 = vcombine.high %v1444_v63, %v1444_v63 }
 0x35c   : > { %1637 = vst.msk [vmem:[%s2867_s15 + $0x2] sm:$0x1] %vm1635_vm4, %v1444_v63  ;;  %1638 = vst.msk [vmem:[%s2867_s15 + $0x4] sm:$0x1] %vm1635_vm4, %v1452_v0  ;;  %v1561_v8 = vrot.slane %v2395_v55, %v2860_v42  ;;  %v1504_v10 = vcombine.high %v1500_v1, %v1500_v1  ;;  %v1505_v12 = vcombine.high %v1394_v60, %v1394_v60 }
 0x35d   : > { %1640 = vst.msk [vmem:[%s2867_s15 + $0x8] sm:$0x1] %vm1635_vm4, %v1437_v62  ;;  %1647 = vst.msk [vmem:[%s2867_s15 + $0x16] sm:$0x1] %vm1635_vm4, %v1503_v3  ;;  %v1568_v11 = vrot.slane %v1554_v4, %v2860_v42  ;;  %v1512_v13 = vrot.slane %v1394_v60, %v2860_v42  ;;  %v1455_v14 = vcombine.high %v1451_v5, %v1451_v5 }
 0x35e   : > { %1649 = vst.msk [vmem:[%s2867_s15 + $0x1a] sm:$0x1] %vm1635_vm4, %v1500_v1  ;;  %1650 = vst.msk [vmem:[%s2867_s15 + $0x1c] sm:$0x1] %vm1635_vm4, %v1502_v2  ;;  %v1569_v15 = vcombine.high %v1561_v8, %v1561_v8  ;;  %v1577_v16 = vrot.slane %v1561_v8, %v2860_v42  ;;  %v1519_v18 = vrot.slane %v1505_v12, %v2860_v42 }
 0x35f   : > { %1639 = vst.msk [vmem:[%s2867_s15 + $0x6] sm:$0x1] %vm1635_vm4, %v1454_v7  ;;  %1641 = vst.msk [vmem:[%s2867_s15 + $0xa] sm:$0x1] %vm1635_vm4, %v1451_v5  ;;  %v1570_v17 = vcombine.high %v1568_v11, %v1568_v11  ;;  %v1584_v9 = vrot.slane %v1568_v11, %v2860_v42  ;;  %v1520_v19 = vcombine.high %v1512_v13, %v1512_v13 }
 0x360   : > { %1642 = vst.msk [vmem:[%s2867_s15 + $0xc] sm:$0x1] %vm1635_vm4, %v1453_v6  ;;  %1651 = vst.msk [vmem:[%s2867_s15 + $0x1e] sm:$0x1] %vm1635_vm4, %v1504_v10  ;;  %v1591_v20 = vrot.slane %v1569_v15, %v2860_v42  ;;  %v1599_v21 = vcombine.high %v1577_v16, %v1577_v16  ;;  %v1528_v22 = vrot.slane %v1512_v13, %v2860_v42 }
 0x361   : > { %1643 = vst.msk [vmem:[%s2867_s15 + $0xe] sm:$0x1] %vm1635_vm4, %v1455_v14  ;;  %1660 = vst.msk [vmem:[%s2867_s15 + $0x30] sm:$0x1] %vm1635_vm4, %v1577_v16  ;;  %v1598_v23 = vrot.slane %v1570_v17, %v2860_v42  ;;  %v1600_v24 = vcombine.high %v1584_v9, %v1584_v9  ;;  %v1521_v25 = vcombine.high %v1519_v18, %v1519_v18 }
 0x362   : > { %1664 = vst.msk [vmem:[%s2867_s15 + $0x38] sm:$0x1] %vm1635_vm4, %v1584_v9  ;;  %v1535_v26 = vrot.slane %v1519_v18, %v2860_v42  ;;  %v1601_v27 = vcombine.high %v1591_v20, %v1591_v20  ;;  %1661 = vst.msk [vmem:[%s2867_s15 + $0x32] sm:$0x1] %vm1635_vm4, %v1591_v20  ;;  %v1542_v28 = vrot.slane %v1520_v19, %v2860_v42 }
 0x363   : > { %1662 = vst.msk [vmem:[%s2867_s15 + $0x34] sm:$0x1] %vm1635_vm4, %v1599_v21  ;;  %v1550_v29 = vcombine.high %v1528_v22, %v1528_v22  ;;  %1652 = vst.msk [vmem:[%s2867_s15 + $0x20] sm:$0x1] %vm1635_vm4, %v1528_v22  ;;  %v1602_v30 = vcombine.high %v1598_v23, %v1598_v23  ;;  %v1549_v31 = vrot.slane %v1521_v25, %v2860_v42 }
 0x364   : > { %1665 = vst.msk [vmem:[%s2867_s15 + $0x3a] sm:$0x1] %vm1635_vm4, %v1598_v23  ;;  %1666 = vst.msk [vmem:[%s2867_s15 + $0x3c] sm:$0x1] %vm1635_vm4, %v1600_v24  ;;  %v1551_v32 = vcombine.high %v1535_v26, %v1535_v26  ;;  %v1552_v33 = vcombine.high %v1542_v28, %v1542_v28 }
 0x365   : > { %1656 = vst.msk [vmem:[%s2867_s15 + $0x28] sm:$0x1] %vm1635_vm4, %v1535_v26  ;;  %1663 = vst.msk [vmem:[%s2867_s15 + $0x36] sm:$0x1] %vm1635_vm4, %v1601_v27  ;;  %v1553_v34 = vcombine.high %v1549_v31, %v1549_v31 }
 0x366   : > { %1653 = vst.msk [vmem:[%s2867_s15 + $0x22] sm:$0x1] %vm1635_vm4, %v1542_v28  ;;  %1654 = vst.msk [vmem:[%s2867_s15 + $0x24] sm:$0x1] %vm1635_vm4, %v1550_v29 }
 0x367   : > { %1667 = vst.msk [vmem:[%s2867_s15 + $0x3e] sm:$0x1] %vm1635_vm4, %v1602_v30  ;;  %1657 = vst.msk [vmem:[%s2867_s15 + $0x2a] sm:$0x1] %vm1635_vm4, %v1549_v31 }
 0x368   : > { %1658 = vst.msk [vmem:[%s2867_s15 + $0x2c] sm:$0x1] %vm1635_vm4, %v1551_v32  ;;  %1655 = vst.msk [vmem:[%s2867_s15 + $0x26] sm:$0x1] %vm1635_vm4, %v1552_v33 }
 0x369   : > { %1659 = vst.msk [vmem:[%s2867_s15 + $0x2e] sm:$0x1] %vm1635_vm4, %v1553_v34 }
 0x3c6   : > { %v2400_v35 = vpop.f32.mrb[10].mxu1 }
 0x3c7   : > { %v1822_v36 = vcombine.high %v2400_v35, %v2400_v35  ;;  %v1829_v37 = vrot.slane %v2400_v35, %v2860_v42  ;;  %v1750_v38 = vpop.f32.mrb[11].mxu1 }
 0x3c8   : > { %v1773_v39 = vcombine.high %v1750_v38, %v1750_v38  ;;  %v1780_v40 = vrot.slane %v1750_v38, %v2860_v42 }
 0x3c9   : > { %v1836_v41 = vrot.slane %v1822_v36, %v2860_v42  ;;  %v1837_v43 = vcombine.high %v1829_v37, %v1829_v37  ;;  %v1845_v44 = vrot.slane %v1829_v37, %v2860_v42 }
 0x3ca   : > { %v1787_v45 = vrot.slane %v1773_v39, %v2860_v42  ;;  %v1788_v46 = vcombine.high %v1780_v40, %v1780_v40  ;;  %v1796_v47 = vrot.slane %v1780_v40, %v2860_v42  ;;  %v2403_v48 = vpop.f32.mrb[12].mxu1 }
 0x3cb   : > { %v1838_v49 = vcombine.high %v1836_v41, %v1836_v41  ;;  %v1852_v50 = vrot.slane %v1836_v41, %v2860_v42  ;;  %v1859_v51 = vrot.slane %v1837_v43, %v2860_v42  ;;  %v1867_v52 = vcombine.high %v1845_v44, %v1845_v44  ;;  %2009 = vst.msk [vmem:[%s2867_s15 + $0x11] sm:$0x1] %vm1635_vm4, %v1845_v44  ;;  %v1760_v53 = vpop.f32.mrb[13].mxu1 }
 0x3cc   : > { %v1789_v54 = vcombine.high %v1787_v45, %v1787_v45  ;;  %v1803_v55 = vrot.slane %v1787_v45, %v2860_v42  ;;  %v1810_v56 = vrot.slane %v1788_v46, %v2860_v42  ;;  %v1818_v57 = vcombine.high %v1796_v47, %v1796_v47  ;;  %2001 = vst.msk [vmem:[%s2867_s15 + $0x1] sm:$0x1] %vm1635_vm4, %v1796_v47 }
 0x3cd   : > { %v1866_v58 = vrot.slane %v1838_v49, %v2860_v42  ;;  %v1868_v59 = vcombine.high %v1852_v50, %v1852_v50  ;;  %v1869_v60 = vcombine.high %v1859_v51, %v1859_v51  ;;  %2010 = vst.msk [vmem:[%s2867_s15 + $0x13] sm:$0x1] %vm1635_vm4, %v1859_v51  ;;  %2011 = vst.msk [vmem:[%s2867_s15 + $0x15] sm:$0x1] %vm1635_vm4, %v1867_v52 }
 0x3ce   : > { %2013 = vst.msk [vmem:[%s2867_s15 + $0x19] sm:$0x1] %vm1635_vm4, %v1852_v50  ;;  %v1920_v61 = vcombine.high %v2403_v48, %v2403_v48  ;;  %v1817_v62 = vrot.slane %v1789_v54, %v2860_v42  ;;  %v1819_v63 = vcombine.high %v1803_v55, %v1803_v55  ;;  %v1820_v0 = vcombine.high %v1810_v56, %v1810_v56 }
 0x3cf   : > { %2002 = vst.msk [vmem:[%s2867_s15 + $0x3] sm:$0x1] %vm1635_vm4, %v1810_v56  ;;  %2003 = vst.msk [vmem:[%s2867_s15 + $0x5] sm:$0x1] %vm1635_vm4, %v1818_v57  ;;  %v1927_v1 = vrot.slane %v2403_v48, %v2860_v42  ;;  %v1870_v2 = vcombine.high %v1866_v58, %v1866_v58  ;;  %v1871_v4 = vcombine.high %v1760_v53, %v1760_v53 }
 0x3d0   : > { %2005 = vst.msk [vmem:[%s2867_s15 + $0x9] sm:$0x1] %vm1635_vm4, %v1803_v55  ;;  %2012 = vst.msk [vmem:[%s2867_s15 + $0x17] sm:$0x1] %vm1635_vm4, %v1869_v60  ;;  %v1934_v3 = vrot.slane %v1920_v61, %v2860_v42  ;;  %v1878_v5 = vrot.slane %v1760_v53, %v2860_v42  ;;  %v1821_v6 = vcombine.high %v1817_v62, %v1817_v62 }
 0x3d1   : > { %2014 = vst.msk [vmem:[%s2867_s15 + $0x1b] sm:$0x1] %vm1635_vm4, %v1866_v58  ;;  %2015 = vst.msk [vmem:[%s2867_s15 + $0x1d] sm:$0x1] %vm1635_vm4, %v1868_v59  ;;  %v1935_v7 = vcombine.high %v1927_v1, %v1927_v1  ;;  %v1943_v8 = vrot.slane %v1927_v1, %v2860_v42  ;;  %v1885_v12 = vrot.slane %v1871_v4, %v2860_v42 }
 0x3d2   : > { %2004 = vst.msk [vmem:[%s2867_s15 + $0x7] sm:$0x1] %vm1635_vm4, %v1820_v0  ;;  %2006 = vst.msk [vmem:[%s2867_s15 + $0xb] sm:$0x1] %vm1635_vm4, %v1817_v62  ;;  %v1936_v10 = vcombine.high %v1934_v3, %v1934_v3  ;;  %v1950_v11 = vrot.slane %v1934_v3, %v2860_v42  ;;  %v1886_v13 = vcombine.high %v1878_v5, %v1878_v5 }
 0x3d3   : > { %2007 = vst.msk [vmem:[%s2867_s15 + $0xd] sm:$0x1] %vm1635_vm4, %v1819_v63  ;;  %2016 = vst.msk [vmem:[%s2867_s15 + $0x1f] sm:$0x1] %vm1635_vm4, %v1870_v2  ;;  %v1957_v14 = vrot.slane %v1935_v7, %v2860_v42  ;;  %v1965_v15 = vcombine.high %v1943_v8, %v1943_v8  ;;  %v1894_v16 = vrot.slane %v1878_v5, %v2860_v42 }
 0x3d4   : > { %2008 = vst.msk [vmem:[%s2867_s15 + $0xf] sm:$0x1] %vm1635_vm4, %v1821_v6  ;;  %2025 = vst.msk [vmem:[%s2867_s15 + $0x31] sm:$0x1] %vm1635_vm4, %v1943_v8  ;;  %v1964_v17 = vrot.slane %v1936_v10, %v2860_v42  ;;  %v1966_v9 = vcombine.high %v1950_v11, %v1950_v11  ;;  %v1887_v18 = vcombine.high %v1885_v12, %v1885_v12 }
 0x3d5   : > { %2029 = vst.msk [vmem:[%s2867_s15 + $0x39] sm:$0x1] %vm1635_vm4, %v1950_v11  ;;  %v1901_v19 = vrot.slane %v1885_v12, %v2860_v42  ;;  %v1967_v20 = vcombine.high %v1957_v14, %v1957_v14  ;;  %2026 = vst.msk [vmem:[%s2867_s15 + $0x33] sm:$0x1] %vm1635_vm4, %v1957_v14  ;;  %v1908_v21 = vrot.slane %v1886_v13, %v2860_v42 }
 0x3d6   : > { %2027 = vst.msk [vmem:[%s2867_s15 + $0x35] sm:$0x1] %vm1635_vm4, %v1965_v15  ;;  %v1916_v22 = vcombine.high %v1894_v16, %v1894_v16  ;;  %2017 = vst.msk [vmem:[%s2867_s15 + $0x21] sm:$0x1] %vm1635_vm4, %v1894_v16  ;;  %v1968_v23 = vcombine.high %v1964_v17, %v1964_v17  ;;  %v1915_v24 = vrot.slane %v1887_v18, %v2860_v42 }
 0x3d7   : > { %2030 = vst.msk [vmem:[%s2867_s15 + $0x3b] sm:$0x1] %vm1635_vm4, %v1964_v17  ;;  %2031 = vst.msk [vmem:[%s2867_s15 + $0x3d] sm:$0x1] %vm1635_vm4, %v1966_v9  ;;  %v1917_v25 = vcombine.high %v1901_v19, %v1901_v19  ;;  %v1918_v26 = vcombine.high %v1908_v21, %v1908_v21 }
 0x3d8   : > { %2021 = vst.msk [vmem:[%s2867_s15 + $0x29] sm:$0x1] %vm1635_vm4, %v1901_v19  ;;  %2028 = vst.msk [vmem:[%s2867_s15 + $0x37] sm:$0x1] %vm1635_vm4, %v1967_v20  ;;  %v1919_v27 = vcombine.high %v1915_v24, %v1915_v24 }
 0x3d9   : > { %2018 = vst.msk [vmem:[%s2867_s15 + $0x23] sm:$0x1] %vm1635_vm4, %v1908_v21  ;;  %2019 = vst.msk [vmem:[%s2867_s15 + $0x25] sm:$0x1] %vm1635_vm4, %v1916_v22 }
 0x3da   : > { %2032 = vst.msk [vmem:[%s2867_s15 + $0x3f] sm:$0x1] %vm1635_vm4, %v1968_v23  ;;  %2022 = vst.msk [vmem:[%s2867_s15 + $0x2b] sm:$0x1] %vm1635_vm4, %v1915_v24 }
 0x3db   : > { %2023 = vst.msk [vmem:[%s2867_s15 + $0x2d] sm:$0x1] %vm1635_vm4, %v1917_v25  ;;  %2020 = vst.msk [vmem:[%s2867_s15 + $0x27] sm:$0x1] %vm1635_vm4, %v1918_v26 }
 0x3dc   : > { %2024 = vst.msk [vmem:[%s2867_s15 + $0x2f] sm:$0x1] %vm1635_vm4, %v1919_v27 }
 0x3dd PF: > { %s13_s12 = sadd.s32 1, %s2619_s12  }
 0x3de   : > { %p10_p4 = scmp.ge.s32.totalorder %s13_s12, 4  }
 0x3e0   :  { %12 = sbr.rel (!%p10_p4) target bundleno = 1 (0x1), region = 70 }

// kernel: critic_forward.5
= control target key start
LH: loop header
LB: loop body
LE: loop exit
PB: predicated region body
PF: predicated region fallthrough
CT: control target
= control target key end

     0   :  { %s3625_s12 = smov 0   ;;  %s4969_s0 = inlined_call_operand.vmem [shape: f32[2,1,361], index: 0, kind: input, shape index: {}]   ;;  %s4970_s1 = inlined_call_operand.vmem [shape: f32[9,16,1], index: 1, kind: input, shape index: {}]   ;;  %s4971_s2 = inlined_call_operand.vmem [shape: f32[16,1], index: 2, kind: input, shape index: {}]   ;;  %s4972_s3 = inlined_call_operand.vmem [shape: f32[2,16,11,10], index: 3, kind: output, shape index: {}]  }
   0x1 LB: > { %s3335_s13 = sadd.s32 4294967295, %s3584_s12   ;;  %p3339_p0 = scmp.ge.s32.totalorder %s3584_s12, 1  ;;  %s3584_s12 = sphi %s3625_s12, %s13_s12  }
   0x2   : > { %p136_p1 = scmp.lt.s32.totalorder %s3584_s12, 3 }
   0x4   : > { %p137_p2 = pnand %p3339_p0, %p136_p1 }
   0x5   : > { %v3344_v0 = vld [vmem:[%s4970_s1 + $0x20] sm:$0xff] (!%p137_p2)  ;;  %v3342_v1 = vld [vmem:[%s4970_s1 + $0x10] sm:$0xff] (!%p137_p2)  ;;  %v3586_v2 = vmov (!%p137_p2), 0   ;;  %v3345_v3 = vld [vmem:[%s4970_s1 + $0x28] sm:$0xff] (!%p137_p2)  ;;  %p159_p3 = scmp.lt.s32.totalorder (!%p137_p2), %s3335_s13, 1  ;;  %v182_v21 = vlaneseq (!%p137_p2)  ;;  %s3587_s6 = smov (!%p137_p2), 127  }
   0x6   : > { %140 = sbr.rel (%p137_p2) target bundleno = 1274 (0x4fa), region = 32  ;;  %3577 = vset.pattern.permute.xlu1 (!%p137_p2), %v3586_v2  ;;  %3576 = vset.pattern.permute.xlu0 (!%p137_p2), %v3586_v2  ;;  %v3343_v4 = vld [vmem:[%s4970_s1 + $0x18] sm:$0xff] (!%p137_p2)  ;;  %v3346_v6 = vld [vmem:[%s4970_s1 + $0x30] sm:$0xff] (!%p137_p2)  ;;  %v3349_v7 = vld [vmem:[%s4970_s1 + $0x48] sm:$0xff] (!%p137_p2)  ;;  %s3588_s7 = smov (!%p137_p2), 126   ;;  %vm240_vm0 = vcmask (!%p137_p2), 1039360  }
   0x7   : > { %262 = vperm.xlu1 (!%p137_p2), %3577, %v3344_v0   ;;  %208 = vperm.xlu0 (!%p137_p2), %3576, %v3342_v1   ;;  %v3347_v5 = vld [vmem:[%s4970_s1 + $0x38] sm:$0xff] (!%p137_p2)  ;;  %v3348_v8 = vld [vmem:[%s4970_s1 + $0x40] sm:$0xff] (!%p137_p2)  ;;  %v3350_v10 = vld [vmem:[%s4970_s1 + $0x50] sm:$0xff] (!%p137_p2)  ;;  %v3701_v22 = vshrl.u32 (!%p137_p2), %v182_v21, 7  ;;  %s3589_s8 = smov (!%p137_p2), 109   ;;  %s3590_s9 = smov (!%p137_p2), 108  }
   0x8   : > { %v3351_v9 = vld [vmem:[%s4970_s1 + $0x58] sm:$0xff] (!%p137_p2)  ;;  %v3353_v11 = vld [vmem:[%s4970_s1 + $0x68] sm:$0xff] (!%p137_p2)  ;;  %v3352_v12 = vld [vmem:[%s4970_s1 + $0x60] sm:$0xff] (!%p137_p2)  ;;  %s3591_s10 = smov (!%p137_p2), 107   ;;  %s3592_s11 = smov (!%p137_p2), 90   ;;  %vm294_vm1 = vcmask (!%p137_p2), 1031168  }
   0x9   : > { %v3355_v13 = vld [vmem:[%s4970_s1 + $0x78] sm:$0xff] (!%p137_p2)  ;;  %v3354_v14 = vld [vmem:[%s4970_s1 + $0x70] sm:$0xff] (!%p137_p2)  ;;  %v3357_v15 = vld [vmem:[%s4970_s1 + $0x88] sm:$0xff] (!%p137_p2)  ;;  %v3707_v23 = vsub.s32 (!%p137_p2), 0, %v3701_v22  ;;  %v188_v24 = vsub.s32 (!%p137_p2), 1, %v3701_v22  ;;  %v192_v28 = vsub.s32 (!%p137_p2), 2, %v3701_v22 }
   0xa   : > { %v3356_v16 = vld [vmem:[%s4970_s1 + $0x80] sm:$0xff] (!%p137_p2)  ;;  %v170_v17 = vld [vmem:[%s4970_s1 + $0x8] sm:$0xff] (!%p137_p2)  ;;  %s3593_s14 = smov (!%p137_p2), 89   ;;  %s3594_s15 = smov (!%p137_p2), 88   ;;  %vm348_vm2 = vcmask (!%p137_p2), 891904   ;;  %vm402_vm3 = vcmask (!%p137_p2), 883712  }
   0xb   : > { %267 = vperm.xlu1 (!%p137_p2), %3577, %v3345_v3   ;;  %213 = vperm.xlu0 (!%p137_p2), %3576, %v3343_v4   ;;  %v169_v18 = vld [vmem:[%s4970_s1] sm:$0xff] (!%p137_p2)  ;;  %v636_v20 = vld [vmem:[%s4971_s2 + $0x8] sm:$0xff] (!%p137_p2)  ;;  %vm456_vm4 = vcmask (!%p137_p2), 875520   ;;  %vm510_vm5 = vcmask (!%p137_p2), 736256   ;;  %vm564_vm6 = vcmask (!%p137_p2), 728064   ;;  %vm618_vm7 = vcmask (!%p137_p2), 719872  }
   0xc   : > { %v635_v19 = vld [vmem:[%s4971_s2] sm:$0xff] (!%p137_p2)  ;;  %vm784_vm12 = vcmask (!%p137_p2), 1040384   ;;  %vm777_vm13 = vcmask (!%p137_p2), 138240   ;;  %s3597_s16 = smov (!%p137_p2), 14   ;;  %s3598_s17 = smov (!%p137_p2), 52   ;;  %vm1724_vm14 = vcmask (!%p137_p2), 113664  }
   0xd   : > { %s4976_s13 = smov (!%p159_p3, %s3335_s13), 1  ;;  %s3599_s18 = smov 104   ;;  %vm743_vm15 = vcmask 80896  }
   0xe   : > { %s3548_s29 = smul.u32 3, %s4976_s13  ;;  %s3600_s19 = smov 66  }
   0xf   : > { %321 = vperm.xlu1 %3577, %v3347_v5   ;;  %316 = vperm.xlu0 %3576, %v3346_v6   ;;  %s3601_s20 = smov 28   ;;  %s3602_s21 = smov 118  }
  0x10   : > { %s162_s5 = scalar_lea.vmem %s4969_s0, %s3548_s29  ;;  %s3403_s22 = sshll.u32 %s4976_s13, 8 }
  0x11   : > { %v168_v25 = vld [vmem:[%s162_s5] sm:$0x7]  ;;  %s4062_s25 = scalar_lea.vmem %s4972_s3, %s3403_s22  ;;  %s3604_s13 = smov 1  }
  0x12   : > { %v3710_v26 = vrot.slane %v168_v25, %v188_v24  ;;  %v3713_v27 = vrot.slane %v168_v25, %v3707_v23  ;;  %v3718_v32 = vrot.slane %v168_v25, %v192_v28 }
  0x13   : > { %375 = vperm.xlu1 %3577, %v3349_v7   ;;  %370 = vperm.xlu0 %3576, %v3348_v8  }
  0x17   : > { %429 = vperm.xlu1 %3577, %v3351_v9   ;;  %424 = vperm.xlu0 %3576, %v3350_v10  }
  0x1b   : > { %483 = vperm.xlu1 %3577, %v3353_v11   ;;  %478 = vperm.xlu0 %3576, %v3352_v12  }
  0x1f   : > { %537 = vperm.xlu1 %3577, %v3355_v13   ;;  %532 = vperm.xlu0 %3576, %v3354_v14  }
  0x23   : > { %591 = vperm.xlu1 %3577, %v3357_v15   ;;  %586 = vperm.xlu0 %3576, %v3356_v16  }
  0x27   : > { %178 = vperm.xlu1 %3577, %v170_v17   ;;  %173 = vperm.xlu0 %3576, %v169_v18  }
  0x2b   : > { %639 = vperm.xlu1 %3577, %v635_v19  }
  0x2f   : > { %644 = vperm.xlu1 %3577, %v636_v20  }
  0x86   : > { %v209_v29 = vpop.permute.xlu0 %208  ;;  %v263_v38 = vpop.permute.xlu1 %262 }
  0x87   : > { %v217_v30 = vmul.f32 %v209_v29, %v3710_v26  ;;  %v216_v31 = vmul.f32 %v209_v29, %v3713_v27  ;;  %v218_v35 = vmul.f32 %v209_v29, %v3718_v32  ;;  %v271_v39 = vmul.f32 %v263_v38, %v3710_v26 }
  0x88   : > { %v270_v40 = vmul.f32 %v263_v38, %v3713_v27  ;;  %v272_v43 = vmul.f32 %v263_v38, %v3718_v32 }
  0x89   : > { %230 = vrot.lane.b32.xlu1 %v217_v30, %s3587_s6  ;;  %228 = vrot.lane.b32.xlu0 %v216_v31, %s3587_s6 }
  0x8a   : > { %v214_v33 = vpop.permute.xlu0 %213  ;;  %v268_v41 = vpop.permute.xlu1 %267 }
  0x8b   : > { %v219_v34 = vmul.f32 %v214_v33, %v3713_v27  ;;  %v221_v36 = vmul.f32 %v214_v33, %v3718_v32  ;;  %v220_v37 = vmul.f32 %v214_v33, %v3710_v26  ;;  %v273_v42 = vmul.f32 %v268_v41, %v3713_v27 }
  0x8c   : > { %v275_v44 = vmul.f32 %v268_v41, %v3718_v32  ;;  %v274_v45 = vmul.f32 %v268_v41, %v3710_v26 }
  0x8d   : > { %234 = vrot.lane.b32.xlu1 %v219_v34, %s3587_s6  ;;  %232 = vrot.lane.b32.xlu0 %v218_v35, %s3587_s6 }
  0x8e   : > { %v317_v46 = vpop.permute.xlu0 %316  ;;  %v322_v49 = vpop.permute.xlu1 %321 }
  0x8f   : > { %v325_v47 = vmul.f32 %v317_v46, %v3710_v26  ;;  %v324_v48 = vmul.f32 %v317_v46, %v3713_v27  ;;  %v327_v50 = vmul.f32 %v322_v49, %v3713_v27  ;;  %v326_v51 = vmul.f32 %v317_v46, %v3718_v32 }
  0x90   : > { %v329_v52 = vmul.f32 %v322_v49, %v3718_v32  ;;  %v328_v53 = vmul.f32 %v322_v49, %v3710_v26 }
  0x91   : > { %238 = vrot.lane.b32.xlu1 %v221_v36, %s3587_s6  ;;  %236 = vrot.lane.b32.xlu0 %v220_v37, %s3587_s6 }
  0x92   : > { %v371_v54 = vpop.permute.xlu0 %370  ;;  %v376_v57 = vpop.permute.xlu1 %375 }
  0x93   : > { %v379_v55 = vmul.f32 %v371_v54, %v3710_v26  ;;  %v378_v56 = vmul.f32 %v371_v54, %v3713_v27  ;;  %v381_v58 = vmul.f32 %v376_v57, %v3713_v27  ;;  %v380_v59 = vmul.f32 %v371_v54, %v3718_v32 }
  0x94   : > { %v383_v60 = vmul.f32 %v376_v57, %v3718_v32  ;;  %v382_v61 = vmul.f32 %v376_v57, %v3710_v26 }
  0x95   : > { %284 = vrot.lane.b32.xlu1 %v271_v39, %s3588_s7  ;;  %282 = vrot.lane.b32.xlu0 %v270_v40, %s3588_s7 }
  0x96   : > { %v425_v62 = vpop.permute.xlu0 %424  ;;  %v430_v1 = vpop.permute.xlu1 %429 }
  0x97   : > { %v433_v63 = vmul.f32 %v425_v62, %v3710_v26  ;;  %v432_v0 = vmul.f32 %v425_v62, %v3713_v27  ;;  %v435_v2 = vmul.f32 %v430_v1, %v3713_v27  ;;  %v434_v3 = vmul.f32 %v425_v62, %v3718_v32 }
  0x98   : > { %v437_v4 = vmul.f32 %v430_v1, %v3718_v32  ;;  %v436_v5 = vmul.f32 %v430_v1, %v3710_v26 }
  0x99   : > { %288 = vrot.lane.b32.xlu1 %v273_v42, %s3588_s7  ;;  %286 = vrot.lane.b32.xlu0 %v272_v43, %s3588_s7 }
  0x9a   : > { %v479_v6 = vpop.permute.xlu0 %478  ;;  %v484_v9 = vpop.permute.xlu1 %483 }
  0x9b   : > { %v487_v7 = vmul.f32 %v479_v6, %v3710_v26  ;;  %v486_v8 = vmul.f32 %v479_v6, %v3713_v27  ;;  %v490_v10 = vmul.f32 %v484_v9, %v3710_v26  ;;  %v488_v11 = vmul.f32 %v479_v6, %v3718_v32 }
  0x9c   : > { %v489_v14 = vmul.f32 %v484_v9, %v3713_v27  ;;  %v491_v17 = vmul.f32 %v484_v9, %v3718_v32 }
  0x9d   : > { %292 = vrot.lane.b32.xlu1 %v275_v44, %s3588_s7  ;;  %290 = vrot.lane.b32.xlu0 %v274_v45, %s3588_s7 }
  0x9e   : > { %v533_v12 = vpop.permute.xlu0 %532  ;;  %v538_v15 = vpop.permute.xlu1 %537 }
  0x9f   : > { %v541_v13 = vmul.f32 %v533_v12, %v3710_v26  ;;  %v543_v16 = vmul.f32 %v538_v15, %v3713_v27  ;;  %v545_v18 = vmul.f32 %v538_v15, %v3718_v32  ;;  %v540_v19 = vmul.f32 %v533_v12, %v3713_v27 }
  0xa0   : > { %v542_v25 = vmul.f32 %v533_v12, %v3718_v32  ;;  %v544_v30 = vmul.f32 %v538_v15, %v3710_v26 }
  0xa1   : > { %338 = vrot.lane.b32.xlu1 %v325_v47, %s3589_s8  ;;  %336 = vrot.lane.b32.xlu0 %v324_v48, %s3589_s8 }
  0xa2   : > { %v587_v20 = vpop.permute.xlu0 %586  ;;  %v592_v28 = vpop.permute.xlu1 %591 }
  0xa3   : > { %v595_v24 = vmul.f32 %v587_v20, %v3710_v26  ;;  %v597_v29 = vmul.f32 %v592_v28, %v3713_v27  ;;  %v599_v31 = vmul.f32 %v592_v28, %v3718_v32  ;;  %v594_v33 = vmul.f32 %v587_v20, %v3713_v27 }
  0xa4   : > { %v596_v34 = vmul.f32 %v587_v20, %v3718_v32  ;;  %v598_v35 = vmul.f32 %v592_v28, %v3710_v26 }
  0xa5   : > { %342 = vrot.lane.b32.xlu1 %v327_v50, %s3589_s8  ;;  %340 = vrot.lane.b32.xlu0 %v326_v51, %s3589_s8 }
  0xa6   : > { %v179_v36 = vpop.permute.xlu1 %178  ;;  %v174_v38 = vpop.permute.xlu0 %173 }
  0xa7   : > { %v201_v15 = vmul.f32 %v3710_v26, %v179_v36 }
  0xa9   : > { %346 = vrot.lane.b32.xlu1 %v329_v52, %s3589_s8  ;;  %344 = vrot.lane.b32.xlu0 %v328_v53, %s3589_s8 }
  0xaa   : > { %v3784_v37 = vpop.permute.xlu1 %639 }
  0xad   : > { %392 = vrot.lane.b32.xlu1 %v379_v55, %s3590_s9  ;;  %390 = vrot.lane.b32.xlu0 %v378_v56, %s3590_s9 }
  0xae   : > { %v3786_v39 = vpop.permute.xlu1 %644 }
  0xb1   : > { %396 = vrot.lane.b32.xlu1 %v381_v58, %s3590_s9  ;;  %394 = vrot.lane.b32.xlu0 %v380_v59, %s3590_s9 }
  0xb5   : > { %400 = vrot.lane.b32.xlu1 %v383_v60, %s3590_s9  ;;  %398 = vrot.lane.b32.xlu0 %v382_v61, %s3590_s9 }
  0xb9   : > { %446 = vrot.lane.b32.xlu1 %v433_v63, %s3591_s10  ;;  %444 = vrot.lane.b32.xlu0 %v432_v0, %s3591_s10 }
  0xbd   : > { %450 = vrot.lane.b32.xlu1 %v435_v2, %s3591_s10  ;;  %448 = vrot.lane.b32.xlu0 %v434_v3, %s3591_s10 }
  0xc1   : > { %454 = vrot.lane.b32.xlu1 %v437_v4, %s3591_s10  ;;  %452 = vrot.lane.b32.xlu0 %v436_v5, %s3591_s10 }
  0xc5   : > { %500 = vrot.lane.b32.xlu1 %v487_v7, %s3592_s11  ;;  %498 = vrot.lane.b32.xlu0 %v486_v8, %s3592_s11 }
  0xc9   : > { %506 = vrot.lane.b32.xlu1 %v490_v10, %s3592_s11  ;;  %502 = vrot.lane.b32.xlu0 %v488_v11, %s3592_s11 }
  0xcd   : > { %554 = vrot.lane.b32.xlu1 %v541_v13, %s3593_s14  ;;  %504 = vrot.lane.b32.xlu0 %v489_v14, %s3592_s11  ;;  %v200_v14 = vmul.f32 %v3713_v27, %v179_v36 }
  0xd1   : > { %558 = vrot.lane.b32.xlu1 %v543_v16, %s3593_s14  ;;  %508 = vrot.lane.b32.xlu0 %v491_v17, %s3592_s11  ;;  %v198_v16 = vmul.f32 %v3710_v26, %v174_v38  ;;  %v197_v17 = vmul.f32 %v3713_v27, %v174_v38 }
  0xd5   : > { %562 = vrot.lane.b32.xlu1 %v545_v18, %s3593_s14  ;;  %552 = vrot.lane.b32.xlu0 %v540_v19, %s3593_s14  ;;  %v199_v19 = vmul.f32 %v3718_v32, %v174_v38 }
  0xd9   : > { %608 = vrot.lane.b32.xlu1 %v595_v24, %s3594_s15  ;;  %556 = vrot.lane.b32.xlu0 %v542_v25, %s3593_s14  ;;  %v202_v24 = vmul.f32 %v3718_v32, %v179_v36 }
  0xdd   : > { %612 = vrot.lane.b32.xlu1 %v597_v29, %s3594_s15  ;;  %560 = vrot.lane.b32.xlu0 %v544_v30, %s3593_s14 }
  0xe1   : > { %616 = vrot.lane.b32.xlu1 %v599_v31, %s3594_s15  ;;  %606 = vrot.lane.b32.xlu0 %v594_v33, %s3594_s15 }
  0xe5   : > { %610 = vrot.lane.b32.xlu0 %v596_v34, %s3594_s15 }
  0xe9   : > { %614 = vrot.lane.b32.xlu0 %v598_v35, %s3594_s15 }
  0xfb   : > { %v231_v40 = vpop.permute.xlu1 %230  ;;  %v229_v41 = vpop.permute.xlu0 %228 }
  0xfc   : > { %v241_v18 = vsel %vm240_vm0, %v229_v41, %v231_v40 }
  0xfd   : > { %v251_v27 = vadd.f32 %v241_v18, %v197_v17 }
  0xff   : > { %v235_v42 = vpop.permute.xlu1 %234  ;;  %v233_v43 = vpop.permute.xlu0 %232 }
 0x100   : > { %v242_v20 = vsel %vm240_vm0, %v231_v40, %v233_v43  ;;  %v253_v31 = vadd.f32 %v233_v43, %v199_v19 }
 0x101   : > { %v252_v34 = vadd.f32 %v242_v20, %v198_v16 }
 0x103   : > { %v239_v44 = vpop.permute.xlu1 %238  ;;  %v237_v45 = vpop.permute.xlu0 %236 }
 0x104   : > { %v243_v28 = vsel %vm240_vm0, %v235_v42, %v237_v45  ;;  %v244_v29 = vsel %vm240_vm0, %v237_v45, %v239_v44  ;;  %v256_v35 = vadd.f32 %v239_v44, %v202_v24 }
 0x105   : > { %v254_v38 = vadd.f32 %v243_v28, %v200_v14  ;;  %v255_v40 = vadd.f32 %v244_v29, %v201_v15 }
 0x107   : > { %v285_v46 = vpop.permute.xlu1 %284  ;;  %v283_v47 = vpop.permute.xlu0 %282 }
 0x108   : > { %v295_v30 = vsel %vm294_vm1, %v283_v47, %v285_v46 }
 0x109   : > { %v305_v41 = vadd.f32 %v295_v30, %v251_v27 }
 0x10b   : > { %v289_v48 = vpop.permute.xlu1 %288  ;;  %v3788_v49 = vpop.permute.xlu0 %286 }
 0x10c   : > { %v296_v33 = vsel %vm294_vm1, %v285_v46, %v3788_v49  ;;  %v307_v43 = vadd.f32 %v3788_v49, %v253_v31 }
 0x10d   : > { %v306_v47 = vadd.f32 %v296_v33, %v252_v34 }
 0x10f   : > { %v3790_v50 = vpop.permute.xlu1 %292  ;;  %v291_v51 = vpop.permute.xlu0 %290 }
 0x110   : > { %v297_v32 = vsel %vm294_vm1, %v289_v48, %v291_v51  ;;  %v298_v36 = vsel %vm294_vm1, %v291_v51, %v3790_v50  ;;  %v310_v48 = vadd.f32 %v3790_v50, %v256_v35  ;;  %vm745_vm1 = vcmask 75776  }
 0x111   : > { %v308_v16 = vadd.f32 %v297_v32, %v254_v38  ;;  %v309_v51 = vadd.f32 %v298_v36, %v255_v40 }
 0x113   : > { %v339_v52 = vpop.permute.xlu1 %338  ;;  %v337_v53 = vpop.permute.xlu0 %336 }
 0x114   : > { %v349_v42 = vsel %vm348_vm2, %v337_v53, %v339_v52 }
 0x115   : > { %v359_v15 = vadd.f32 %v349_v42, %v305_v41 }
 0x117   : > { %v343_v54 = vpop.permute.xlu1 %342  ;;  %v3792_v55 = vpop.permute.xlu0 %340 }
 0x118   : > { %v350_v46 = vsel %vm348_vm2, %v339_v52, %v3792_v55  ;;  %v361_v53 = vadd.f32 %v3792_v55, %v307_v43 }
 0x11b   : > { %v3794_v56 = vpop.permute.xlu1 %346  ;;  %v3796_v57 = vpop.permute.xlu0 %344 }
 0x11c   : > { %v351_v44 = vsel %vm348_vm2, %v343_v54, %v3796_v57  ;;  %v352_v49 = vsel %vm348_vm2, %v3796_v57, %v3794_v56  ;;  %v360_v54 = vadd.f32 %v350_v46, %v306_v47  ;;  %v364_v50 = vadd.f32 %v3794_v56, %v310_v48 }
 0x11d   : > { %v362_v18 = vadd.f32 %v351_v44, %v308_v16  ;;  %v363_v24 = vadd.f32 %v352_v49, %v309_v51 }
 0x11f   : > { %v3798_v58 = vpop.permute.xlu1 %392  ;;  %v391_v59 = vpop.permute.xlu0 %390 }
 0x120   : > { %v403_v14 = vsel %vm402_vm3, %v391_v59, %v3798_v58 }
 0x121   : > { %v413_v20 = vadd.f32 %v403_v14, %v359_v15 }
 0x123   : > { %v3800_v60 = vpop.permute.xlu1 %396  ;;  %v3802_v61 = vpop.permute.xlu0 %394 }
 0x124   : > { %v404_v52 = vsel %vm402_vm3, %v3798_v58, %v3802_v61  ;;  %v415_v55 = vadd.f32 %v3802_v61, %v361_v53 }
 0x125   : > { %v414_v28 = vadd.f32 %v404_v52, %v360_v54 }
 0x127   : > { %v3804_v62 = vpop.permute.xlu1 %400  ;;  %v3806_v63 = vpop.permute.xlu0 %398 }
 0x128   : > { %v405_v57 = vsel %vm402_vm3, %v3800_v60, %v3806_v63  ;;  %v418_v56 = vadd.f32 %v3804_v62, %v364_v50  ;;  %v406_v61 = vsel %vm402_vm3, %v3806_v63, %v3804_v62 }
 0x129   : > { %v417_v35 = vadd.f32 %v406_v61, %v363_v24  ;;  %v3595_v61 = vmov 1.0|1.0  }
 0x12b   : > { %v3808_v0 = vpop.permute.xlu1 %446  ;;  %v3810_v1 = vpop.permute.xlu0 %444 }
 0x12c   : > { %v457_v59 = vsel %vm456_vm4, %v3810_v1, %v3808_v0 }
 0x12d   : > { %v467_v29 = vadd.f32 %v457_v59, %v413_v20 }
 0x12f   : > { %v3812_v2 = vpop.permute.xlu1 %450  ;;  %v3814_v3 = vpop.permute.xlu0 %448 }
 0x130   : > { %v458_v58 = vsel %vm456_vm4, %v3808_v0, %v3814_v3  ;;  %v469_v30 = vadd.f32 %v3814_v3, %v415_v55  ;;  %v416_v0 = vadd.f32 %v405_v57, %v362_v18 }
 0x131   : > { %v468_v27 = vadd.f32 %v458_v58, %v414_v28  ;;  %v732_v28 = vand.u32 127, %v182_v21 }
 0x133   : > { %v3816_v4 = vpop.permute.xlu1 %454  ;;  %v3818_v5 = vpop.permute.xlu0 %452 }
 0x134   : > { %v459_v31 = vsel %vm456_vm4, %v3812_v2, %v3818_v5  ;;  %v460_v62 = vsel %vm456_vm4, %v3818_v5, %v3816_v4  ;;  %v472_v32 = vadd.f32 %v3816_v4, %v418_v56  ;;  %v729_v56 = vadd.s32 8, %v3701_v22 }
 0x135   : > { %v470_v40 = vadd.f32 %v459_v31, %v416_v0  ;;  %v471_v41 = vadd.f32 %v460_v62, %v417_v35 }
 0x137   : > { %v3820_v6 = vpop.permute.xlu1 %500  ;;  %v3822_v7 = vpop.permute.xlu0 %498 }
 0x138   : > { %v511_v1 = vsel %vm510_vm5, %v3822_v7, %v3820_v6 }
 0x139   : > { %v521_v63 = vadd.f32 %v511_v1, %v467_v29  ;;  %v733_v1 = vmul.u32 2, %v732_v28  ;;  %v730_v29 = vadd.s32 16, %v3701_v22 }
 0x13b   : > { %v3824_v8 = vpop.permute.xlu1 %506  ;;  %v3826_v9 = vpop.permute.xlu0 %502  ;;  %vm734_vm8 = vcmp.eq.s32.totalorder %v3701_v22, %v733_v1  ;;  %vm735_vm9 = vcmp.eq.s32.totalorder %v729_v56, %v733_v1  ;;  %vm736_vm11 = vcmp.eq.s32.totalorder %v730_v29, %v733_v1 }
 0x13c   : > { %v512_v60 = vsel %vm510_vm5, %v3820_v6, %v3826_v9  ;;  %v523_v3 = vadd.f32 %v3826_v9, %v469_v30  ;;  %vm3938_vm10 = vmpackc.low %vm735_vm9, %vm734_vm8 }
 0x13d   : > { %v522_v36 = vadd.f32 %v512_v60, %v468_v27  ;;  %3517 = vmatprep.subr.msk.bf16.mxu0 %vm3938_vm10, %v3595_v61  ;;  %3521 = vmatprep.subr.msk.bf16.mxu1 %vm3938_vm10, %v3595_v61  ;;  %v3596_v60 = vmov 0.0  }
 0x13e   : > { %3519 = vmatpush3.bf16.msk.msra.mxu0 %vm3938_vm10, %v3595_v61  ;;  %3523 = vmatpush3.bf16.msk.msra.mxu1 %vm3938_vm10, %v3595_v61  ;;  %v3956_v0 = vsel %vm736_vm11, 1.0, %v3596_v60  ;;  %761 = vst.msk [vmem:[%s4062_s25 + $0x80] sm:$0xff] %vm743_vm15, %v3596_v60  ;;  %744 = vst.msk [vmem:[%s4062_s25] sm:$0xff] %vm743_vm15, %v3596_v60 }
 0x13f   : > { %v3828_v10 = vpop.permute.xlu1 %554  ;;  %v3830_v11 = vpop.permute.xlu0 %504  ;;  %3448 = vmatprep.subr.msk.mxu0 %vm784_vm12, %v3956_v0  ;;  %3457 = vmatprep.subr.msk.mxu1 %vm784_vm12, %v3956_v0  ;;  %747 = vst.msk [vmem:[%s4062_s25 + $0x10] sm:$0xff] %vm743_vm15, %v3596_v60  ;;  %749 = vst.msk [vmem:[%s4062_s25 + $0x20] sm:$0xff] %vm743_vm15, %v3596_v60 }
 0x140   : > { %751 = vst.msk [vmem:[%s4062_s25 + $0x30] sm:$0xff] %vm743_vm15, %v3596_v60  ;;  %753 = vst.msk [vmem:[%s4062_s25 + $0x40] sm:$0xff] %vm743_vm15, %v3596_v60 }
 0x141   : > { %755 = vst.msk [vmem:[%s4062_s25 + $0x50] sm:$0xff] %vm743_vm15, %v3596_v60  ;;  %757 = vst.msk [vmem:[%s4062_s25 + $0x60] sm:$0xff] %vm743_vm15, %v3596_v60 }
 0x142   : > { %3449 = vmatpush3.msk.msra.mxu0 %vm784_vm12, %v3956_v0  ;;  %3458 = vmatpush3.msk.msra.mxu1 %vm784_vm12, %v3956_v0  ;;  %759 = vst.msk [vmem:[%s4062_s25 + $0x70] sm:$0xff] %vm743_vm15, %v3596_v60  ;;  %763 = vst.msk [vmem:[%s4062_s25 + $0x90] sm:$0xff] %vm743_vm15, %v3596_v60 }
 0x143   : > { %v3832_v12 = vpop.permute.xlu1 %558  ;;  %v3834_v13 = vpop.permute.xlu0 %508  ;;  %3529 = vmatprep.subr.msk.bf16.mxu1 %vm3938_vm10, %v3595_v61  ;;  %3525 = vmatprep.subr.msk.bf16.mxu0 %vm3938_vm10, %v3595_v61  ;;  %765 = vst.msk [vmem:[%s4062_s25 + $0xa0] sm:$0xff] %vm743_vm15, %v3596_v60  ;;  %767 = vst.msk [vmem:[%s4062_s25 + $0xb0] sm:$0xff] %vm743_vm15, %v3596_v60 }
 0x144   : > { %v514_v5 = vsel %vm510_vm5, %v3824_v8, %v3834_v13  ;;  %769 = vst.msk [vmem:[%s4062_s25 + $0xc0] sm:$0xff] %vm743_vm15, %v3596_v60  ;;  %771 = vst.msk [vmem:[%s4062_s25 + $0xd0] sm:$0xff] %vm743_vm15, %v3596_v60 }
 0x145   : > { %v525_v48 = vadd.f32 %v514_v5, %v471_v41  ;;  %773 = vst.msk [vmem:[%s4062_s25 + $0xe0] sm:$0xff] %vm743_vm15, %v3596_v60  ;;  %775 = vst.msk [vmem:[%s4062_s25 + $0xf0] sm:$0xff] %vm743_vm15, %v3596_v60 }
 0x146   : > { %762 = vst.msk [vmem:[%s4062_s25 + $0x88] sm:$0x7] %vm745_vm1, %v3596_v60  ;;  %746 = vst.msk [vmem:[%s4062_s25 + $0x8] sm:$0x7] %vm745_vm1, %v3596_v60 }
 0x147   : > { %v553_v25 = vpop.permute.xlu0 %552  ;;  %v3847_v26 = vpop.permute.xlu1 %562  ;;  %748 = vst.msk [vmem:[%s4062_s25 + $0x18] sm:$0x7] %vm745_vm1, %v3596_v60  ;;  %750 = vst.msk [vmem:[%s4062_s25 + $0x28] sm:$0x7] %vm745_vm1, %v3596_v60 }
 0x148   : > { %v565_v7 = vsel %vm564_vm6, %v553_v25, %v3828_v10  ;;  %v513_v25 = vsel %vm510_vm5, %v3830_v11, %v3824_v8  ;;  %v526_v8 = vadd.f32 %v3834_v13, %v472_v32  ;;  %752 = vst.msk [vmem:[%s4062_s25 + $0x38] sm:$0x7] %vm745_vm1, %v3596_v60  ;;  %754 = vst.msk [vmem:[%s4062_s25 + $0x48] sm:$0x7] %vm745_vm1, %v3596_v60 }
 0x149   : > { %v575_v38 = vadd.f32 %v565_v7, %v521_v63  ;;  %v524_v44 = vadd.f32 %v513_v25, %v470_v40  ;;  %756 = vst.msk [vmem:[%s4062_s25 + $0x58] sm:$0x7] %vm745_vm1, %v3596_v60  ;;  %758 = vst.msk [vmem:[%s4062_s25 + $0x68] sm:$0x7] %vm745_vm1, %v3596_v60 }
 0x14a   : > { %v580_v14 = vadd.f32 %v3847_v26, %v526_v8  ;;  %760 = vst.msk [vmem:[%s4062_s25 + $0x78] sm:$0x7] %vm745_vm1, %v3596_v60  ;;  %764 = vst.msk [vmem:[%s4062_s25 + $0x98] sm:$0x7] %vm745_vm1, %v3596_v60 }
 0x14b   : > { %v557_v45 = vpop.permute.xlu0 %556  ;;  %v609_v17 = vpop.permute.xlu1 %608  ;;  %766 = vst.msk [vmem:[%s4062_s25 + $0xa8] sm:$0x7] %vm745_vm1, %v3596_v60  ;;  %768 = vst.msk [vmem:[%s4062_s25 + $0xb8] sm:$0x7] %vm745_vm1, %v3596_v60 }
 0x14c   : > { %v566_v6 = vsel %vm564_vm6, %v3828_v10, %v557_v45  ;;  %v577_v9 = vadd.f32 %v557_v45, %v523_v3  ;;  %770 = vst.msk [vmem:[%s4062_s25 + $0xc8] sm:$0x7] %vm745_vm1, %v3596_v60  ;;  %772 = vst.msk [vmem:[%s4062_s25 + $0xd8] sm:$0x7] %vm745_vm1, %v3596_v60 }
 0x14d   : > { %v576_v10 = vadd.f32 %v566_v6, %v522_v36  ;;  %774 = vst.msk [vmem:[%s4062_s25 + $0xe8] sm:$0x7] %vm745_vm1, %v3596_v60  ;;  %776 = vst.msk [vmem:[%s4062_s25 + $0xf8] sm:$0x7] %vm745_vm1, %v3596_v60 }
 0x14f   : > { %v561_v19 = vpop.permute.xlu0 %560  ;;  %v613_v34 = vpop.permute.xlu1 %612 }
 0x150   : > { %v567_v42 = vsel %vm564_vm6, %v3832_v12, %v561_v19  ;;  %v568_v47 = vsel %vm564_vm6, %v561_v19, %v3847_v26 }
 0x151   : > { %v578_v12 = vadd.f32 %v567_v42, %v524_v44  ;;  %v579_v15 = vadd.f32 %v568_v47, %v525_v48 }
 0x153   : > { %v607_v33 = vpop.permute.xlu0 %606  ;;  %v617_v45 = vpop.permute.xlu1 %616 }
 0x154   : > { %v619_v2 = vsel %vm618_vm7, %v607_v33, %v609_v17  ;;  %v634_v50 = vadd.f32 %v617_v45, %v580_v14 }
 0x155   : > { %v629_v43 = vadd.f32 %v619_v2, %v575_v38 }
 0x156   : > { %v652_v58 = vadd.f32 %v3786_v39, %v634_v50 }
 0x157   : > { %v611_v4 = vpop.permute.xlu0 %610  ;;  %v647_v13 = vadd.f32 %v3784_v37, %v629_v43 }
 0x158   : > { %v620_v46 = vsel %vm618_vm7, %v609_v17, %v611_v4  ;;  %v631_v11 = vadd.f32 %v611_v4, %v577_v9  ;;  %v658_v24 = vmax.f32 %v652_v58, 0.0 }
 0x159   : > { %v630_v16 = vadd.f32 %v620_v46, %v576_v10  ;;  %v653_v20 = vmax.f32 %v647_v13, 0.0 }
 0x15a   : > { %v3918_v51 = vadd.f32 %v3784_v37, %v631_v11 }
 0x15b   : > { %v615_v53 = vpop.permute.xlu0 %614  ;;  %v648_v49 = vadd.f32 %v3784_v37, %v630_v16 }
 0x15c   : > { %v621_v52 = vsel %vm618_vm7, %v613_v34, %v615_v53  ;;  %v622_v17 = vsel %vm618_vm7, %v615_v53, %v617_v45  ;;  %v655_v54 = vmax.f32 %v3918_v51, 0.0 }
 0x15d   : > { %v632_v18 = vadd.f32 %v621_v52, %v578_v12  ;;  %v633_v59 = vadd.f32 %v622_v17, %v579_v15  ;;  %v654_v19 = vmax.f32 %v648_v49, 0.0 }
 0x15e   : > { %669 = vrot.lane.b32.xlu0 %v655_v54, %s3589_s8 }
 0x15f   : > { %667 = vrot.lane.b32.xlu1 %v654_v19, %s3589_s8  ;;  %v650_v26 = vadd.f32 %v3786_v39, %v632_v18  ;;  %v651_v55 = vadd.f32 %v3786_v39, %v633_v59 }
 0x161   : > { %v656_v57 = vmax.f32 %v650_v26, 0.0  ;;  %v657_v37 = vmax.f32 %v651_v55, 0.0 }
 0x162   : > { %665 = vrot.lane.b32.xlu0 %v653_v20, %s3589_s8 }
 0x163   : > { %671 = vrot.lane.b32.xlu1 %v656_v57, %s3589_s8 }
 0x166   : > { %673 = vrot.lane.b32.xlu0 %v657_v37, %s3589_s8 }
 0x167   : > { %675 = vrot.lane.b32.xlu1 %v658_v24, %s3589_s8 }
 0x1d0   : > { %v670_v21 = vpop.permute.xlu0 %669 }
 0x1d1   : > { %v668_v30 = vpop.permute.xlu1 %667  ;;  %v689_v2 = vmax.f32 %v655_v54, %v670_v21 }
 0x1d2   : > { %v678_v27 = vsel %vm348_vm2, %v668_v30, %v670_v21 }
 0x1d3   : > { %v688_v31 = vmax.f32 %v654_v19, %v678_v27 }
 0x1d4   : > { %v666_v7 = vpop.permute.xlu0 %665 }
 0x1d5   : > { %v677_v33 = vsel %vm348_vm2, %v666_v7, %v668_v30  ;;  %701 = vrot.lane.b32.xlu1 %v688_v31, %s3587_s6  ;;  %v672_v62 = vpop.permute.xlu1 %671 }
 0x1d6   : > { %v687_v63 = vmax.f32 %v653_v20, %v677_v33 }
 0x1d8   : > { %699 = vrot.lane.b32.xlu0 %v687_v63, %s3587_s6  ;;  %v674_v3 = vpop.permute.xlu0 %673 }
 0x1d9   : > { %v679_v6 = vsel %vm348_vm2, %v672_v62, %v674_v3  ;;  %v676_v34 = vpop.permute.xlu1 %675 }
 0x1da   : > { %v680_v35 = vsel %vm348_vm2, %v674_v3, %v676_v34  ;;  %v690_v32 = vmax.f32 %v656_v57, %v679_v6  ;;  %v692_v25 = vmax.f32 %v658_v24, %v676_v34  ;;  %v3603_v57 = vmov 1966171168  }
 0x1db   : > { %v691_v36 = vmax.f32 %v657_v37, %v680_v35  ;;  %v867_v58 = vunpack.c.l.s4 %v3603_v57 }
 0x1dc   : > { %705 = vrot.lane.b32.xlu0 %v690_v32, %s3587_s6 }
 0x1dd   : > { %707 = vrot.lane.b32.xlu1 %v691_v36, %s3587_s6  ;;  %v868_v37 = vunpack.c.0.s8 %v867_v58 }
 0x1df   : > { %v4113_v24 = vsub.s32 %v868_v37, %v3701_v22 }
 0x1e0   : > { %703 = vrot.lane.b32.xlu0 %v689_v2, %s3587_s6 }
 0x1e1   : > { %709 = vrot.lane.b32.xlu1 %v692_v25, %s3587_s6 }
 0x247   : > { %v702_v5 = vpop.permute.xlu1 %701 }
 0x24a   : > { %v700_v38 = vpop.permute.xlu0 %699 }
 0x24b   : > { %v711_v9 = vsel %vm240_vm0, %v700_v38, %v702_v5 }
 0x24c   : > { %v721_v40 = vmax.f32 %v687_v63, %v711_v9 }
 0x24e   : > { %1092 = vrot.lane.b32.xlu0 %v721_v40, %s3592_s11  ;;  %3450 = vmatprep.mubr.msk.f32.mxu0 %vm777_vm13, %v721_v40  ;;  %v706_v41 = vpop.permute.xlu0 %705 }
 0x24f   : > { %v708_v10 = vpop.permute.xlu1 %707 }
 0x250   : > { %v713_v42 = vsel %vm240_vm0, %v706_v41, %v708_v10 }
 0x251   : > { %v724_v4 = vmax.f32 %v690_v32, %v713_v42 }
 0x252   : > { %1716 = vrot.lane.b32.xlu0 %v721_v40, %s3597_s16  ;;  %v704_v47 = vpop.permute.xlu0 %703 }
 0x253   : > { %v712_v43 = vsel %vm240_vm0, %v702_v5, %v704_v47  ;;  %v710_v46 = vpop.permute.xlu1 %709  ;;  %1094 = vrot.lane.b32.xlu1 %v724_v4, %s3592_s11  ;;  %3451 = vmatmul.mubr.msk.f32.vlgmr.msra.gmra.mrb[0].mxu0 %vm777_vm13, %v724_v4  ;;  %v723_v8 = vmax.f32 %v689_v2, %v704_v47 }
 0x254   : > { %v722_v11 = vmax.f32 %v688_v31, %v712_v43  ;;  %3527 = vmatpush3.bf16.msk.msra.mxu0 %vm3938_vm10, %v3595_v61  ;;  %v714_v44 = vsel %vm240_vm0, %v708_v10, %v710_v46  ;;  %v726_v16 = vmax.f32 %v692_v25, %v710_v46  ;;  %vm1075_vm0 = vcmask 65544  }
 0x255   : > { %3466 = vmatprep.subr.msk.mxu0 %vm784_vm12, %v3956_v0  ;;  %v725_v48 = vmax.f32 %v691_v36, %v714_v44 }
 0x256   : > { %1403 = vrot.lane.b32.xlu0 %v721_v40, %s3598_s17 }
 0x257   : > { %1718 = vrot.lane.b32.xlu1 %v722_v11, %s3597_s16 }
 0x258   : > { %3467 = vmatpush3.msk.msra.mxu0 %vm784_vm12, %v3956_v0 }
 0x259   : > { %3533 = vmatprep.subr.msk.bf16.mxu0 %vm3938_vm10, %v3595_v61 }
 0x25a   : > { %1722 = vrot.lane.b32.xlu0 %v725_v48, %s3597_s16 }
 0x25b   : > { %1720 = vrot.lane.b32.xlu1 %v724_v4, %s3597_s16 }
 0x25e   : > { %2034 = vrot.lane.b32.xlu0 %v722_v11, %s3599_s18 }
 0x25f   : > { %1405 = vrot.lane.b32.xlu1 %v724_v4, %s3598_s17 }
 0x262   : > { %2036 = vrot.lane.b32.xlu0 %v725_v48, %s3599_s18 }
 0x263   : > { %2345 = vrot.lane.b32.xlu1 %v722_v11, %s3600_s19 }
 0x266   : > { %2656 = vrot.lane.b32.xlu0 %v722_v11, %s3601_s20 }
 0x267   : > { %2347 = vrot.lane.b32.xlu1 %v725_v48, %s3600_s19 }
 0x26a   : > { %2658 = vrot.lane.b32.xlu0 %v725_v48, %s3601_s20 }
 0x26b   : > { %2969 = vrot.lane.b32.xlu1 %v723_v8, %s3602_s21 }
 0x26f   : > { %2971 = vrot.lane.b32.xlu1 %v726_v16, %s3602_s21 }
 0x2c0   : > { %v1093_v45 = vpop.permute.xlu0 %1092 }
 0x2c1   : > { %3459 = vmatprep.mubr.msk.f32.mxu1 %vm777_vm13, %v1093_v45 }
 0x2c4   : > { %v1717_v51 = vpop.permute.xlu0 %1716 }
 0x2c5   : > { %v1095_v14 = vpop.permute.xlu1 %1094 }
 0x2c6   : > { %3460 = vmatmul.mubr.msk.f32.vlgmr.msra.gmra.mrb[0].mxu1 %vm777_vm13, %v1095_v14 }
 0x2c7   : > { %3531 = vmatpush3.bf16.msk.msra.mxu1 %vm3938_vm10, %v3595_v61 }
 0x2c8   : > { %v1404_v12 = vpop.permute.xlu0 %1403  ;;  %3475 = vmatprep.subr.msk.mxu1 %vm784_vm12, %v3956_v0 }
 0x2c9   : > { %v1719_v15 = vpop.permute.xlu1 %1718  ;;  %3468 = vmatprep.mubr.msk.f32.mxu0 %vm777_vm13, %v1404_v12 }
 0x2ca   : > { %v1725_v53 = vsel %vm1724_vm14, %v1717_v51, %v1719_v15 }
 0x2cb   : > { %3477 = vmatprep.mubr.msk.f32.mxu1 %vm777_vm13, %v1725_v53  ;;  %3476 = vmatpush3.msk.msra.mxu1 %vm784_vm12, %v3956_v0 }
 0x2cc   : > { %v1723_v49 = vpop.permute.xlu0 %1722  ;;  %3537 = vmatprep.subr.msk.bf16.mxu1 %vm3938_vm10, %v3595_v61 }
 0x2cd   : > { %v1721_v52 = vpop.permute.xlu1 %1720 }
 0x2ce   : > { %v1726_v17 = vsel %vm1724_vm14, %v1721_v52, %v1723_v49 }
 0x2cf   : > { %3478 = vmatmul.mubr.msk.f32.vlgmr.msra.gmra.mrb[2].mxu1 %vm777_vm13, %v1726_v17 }
 0x2d0   : > { %v2035_v54 = vpop.permute.xlu0 %2034  ;;  %3539 = vmatpush3.bf16.msk.msra.mxu1 %vm3938_vm10, %v3595_v61 }
 0x2d1   : > { %v1406_v13 = vpop.permute.xlu1 %1405  ;;  %3493 = vmatprep.subr.msk.mxu1 %vm784_vm12, %v3956_v0 }
 0x2d2   : > { %3469 = vmatmul.mubr.msk.f32.vlgmr.msra.gmra.mrb[2].mxu0 %vm777_vm13, %v1406_v13 }
 0x2d3   : > { %3535 = vmatpush3.bf16.msk.msra.mxu0 %vm3938_vm10, %v3595_v61  ;;  %3486 = vmatprep.mubr.msk.f32.mxu0 %vm777_vm13, %v2035_v54 }
 0x2d4   : > { %v2037_v50 = vpop.permute.xlu0 %2036  ;;  %3484 = vmatprep.subr.msk.mxu0 %vm784_vm12, %v3956_v0  ;;  %3494 = vmatpush3.msk.msra.mxu1 %vm784_vm12, %v3956_v0 }
 0x2d5   : > { %v2346_v18 = vpop.permute.xlu1 %2345  ;;  %3545 = vmatprep.subr.msk.bf16.mxu1 %vm3938_vm10, %v3595_v61 }
 0x2d6   : > { %3495 = vmatprep.mubr.msk.f32.mxu1 %vm777_vm13, %v2346_v18 }
 0x2d7   : > { %3485 = vmatpush3.msk.msra.mxu0 %vm784_vm12, %v3956_v0 }
 0x2d8   : > { %3487 = vmatmul.mubr.msk.f32.vlgmr.msra.gmra.mrb[4].mxu0 %vm777_vm13, %v2037_v50  ;;  %3541 = vmatprep.subr.msk.bf16.mxu0 %vm3938_vm10, %v3595_v61  ;;  %v2657_v59 = vpop.permute.xlu0 %2656 }
 0x2d9   : > { %3543 = vmatpush3.bf16.msk.msra.mxu0 %vm3938_vm10, %v3595_v61  ;;  %v2348_v19 = vpop.permute.xlu1 %2347  ;;  %3504 = vmatprep.mubr.msk.f32.mxu0 %vm777_vm13, %v2657_v59 }
 0x2da   : > { %3496 = vmatmul.mubr.msk.f32.vlgmr.msra.gmra.mrb[4].mxu1 %vm777_vm13, %v2348_v19  ;;  %3502 = vmatprep.subr.msk.mxu0 %vm784_vm12, %v3956_v0 }
 0x2db   : > { %3547 = vmatpush3.bf16.msk.msra.mxu1 %vm3938_vm10, %v3595_v61 }
 0x2dc   : > { %v2659_v26 = vpop.permute.xlu0 %2658  ;;  %3511 = vmatprep.subr.msk.mxu1 %vm784_vm12, %v3956_v0 }
 0x2dd   : > { %3503 = vmatpush3.msk.msra.mxu0 %vm784_vm12, %v3956_v0  ;;  %v2970_v20 = vpop.permute.xlu1 %2969 }
 0x2de   : > { %3505 = vmatmul.mubr.msk.f32.vlgmr.msra.gmra.mrb[6].mxu0 %vm777_vm13, %v2659_v26  ;;  %3513 = vmatprep.mubr.msk.f32.mxu1 %vm777_vm13, %v2970_v20 }
 0x2df   : > { %3512 = vmatpush3.msk.msra.mxu1 %vm784_vm12, %v3956_v0 }
 0x2e1   : > { %v2972_v55 = vpop.permute.xlu1 %2971 }
 0x2e2   : > { %3514 = vmatmul.mubr.msk.f32.vlgmr.msra.gmra.mrb[6].mxu1 %vm777_vm13, %v2972_v55 }
 0x326   : > { %v3452_v28 = vpop.f32.mrb[0].mxu0 }
 0x327   : > { %v921_v56 = vrot.slane %v3452_v28, %v4113_v24  ;;  %v854_v1 = vpop.f32.mrb[1].mxu0  ;;  %v914_v21 = vcombine.high %v3452_v28, %v3452_v28 }
 0x328   : > { %v872_v39 = vrot.slane %v854_v1, %v4113_v24  ;;  %v865_v34 = vcombine.high %v854_v1, %v854_v1 }
 0x329   : > { %v929_v61 = vcombine.high %v921_v56, %v921_v56  ;;  %v937_v29 = vrot.slane %v921_v56, %v4113_v24  ;;  %v928_v22 = vrot.slane %v914_v21, %v4113_v24 }
 0x32a   : > { %v880_v0 = vcombine.high %v872_v39, %v872_v39  ;;  %v888_v27 = vrot.slane %v872_v39, %v4113_v24  ;;  %v879_v25 = vrot.slane %v865_v34, %v4113_v24 }
 0x32b   : > { %v951_v30 = vrot.slane %v929_v61, %v4113_v24  ;;  %v998_v31 = vrot.slane %v937_v29, %v3707_v23  ;;  %v959_v62 = vcombine.high %v937_v29, %v937_v29  ;;  %v930_v3 = vcombine.high %v928_v22, %v928_v22 }
 0x32c   : > { %v902_v7 = vrot.slane %v880_v0, %v4113_v24  ;;  %v966_v63 = vrot.slane %v888_v27, %v3707_v23  ;;  %v944_v32 = vrot.slane %v928_v22, %v4113_v24  ;;  %v910_v38 = vcombine.high %v888_v27, %v888_v27 }
 0x32d   : > { %v1002_v33 = vrot.slane %v951_v30, %v3707_v23  ;;  %1043 = vrot.lane.b32.xlu0 %v998_v31, %s3604_s13  ;;  %v961_v6 = vcombine.high %v951_v30, %v951_v30  ;;  %v1006_v36 = vrot.slane %v959_v62, %v3707_v23  ;;  %v958_v2 = vrot.slane %v930_v3, %v4113_v24 }
 0x32e   : > { %v970_v35 = vrot.slane %v902_v7, %v3707_v23  ;;  %v1014_v9 = vrot.slane %v944_v32, %v3707_v23  ;;  %v881_v40 = vcombine.high %v879_v25, %v879_v25  ;;  %v912_v41 = vcombine.high %v902_v7, %v902_v7 }
 0x32f   : > { %1045 = vrot.lane.b32.xlu1 %v1002_v33, %s3604_s13  ;;  %v1010_v5 = vrot.slane %v961_v6, %v3707_v23  ;;  %v1018_v10 = vrot.slane %v958_v2, %v3707_v23  ;;  %v895_v42 = vrot.slane %v879_v25, %v4113_v24  ;;  %v974_v4 = vrot.slane %v910_v38, %v3707_v23 }
 0x330   : > { %v909_v47 = vrot.slane %v881_v40, %v4113_v24  ;;  %v978_v43 = vrot.slane %v912_v41, %v3707_v23  ;;  %v960_v46 = vcombine.high %v944_v32, %v944_v32  ;;  %v962_v48 = vcombine.high %v958_v2, %v958_v2 }
 0x331   : > { %1027 = vrot.lane.b32.xlu0 %v966_v63, %s3604_s13  ;;  %v982_v11 = vrot.slane %v895_v42, %v3707_v23  ;;  %v911_v8 = vcombine.high %v895_v42, %v895_v42 }
 0x332   : > { %v986_v44 = vrot.slane %v909_v47, %v3707_v23  ;;  %v1022_v16 = vrot.slane %v960_v46, %v3707_v23  ;;  %v1026_v45 = vrot.slane %v962_v48, %v3707_v23  ;;  %v913_v51 = vcombine.high %v909_v47, %v909_v47 }
 0x333   : > { %1029 = vrot.lane.b32.xlu1 %v970_v35, %s3604_s13  ;;  %v990_v14 = vrot.slane %v911_v8, %v3707_v23 }
 0x334   : > { %v994_v12 = vrot.slane %v913_v51, %v3707_v23 }
 0x335   : > { %1047 = vrot.lane.b32.xlu0 %v1006_v36, %s3604_s13 }
 0x337   : > { %1049 = vrot.lane.b32.xlu1 %v1010_v5, %s3604_s13 }
 0x339   : > { %1051 = vrot.lane.b32.xlu0 %v1014_v9, %s3604_s13 }
 0x33b   : > { %1053 = vrot.lane.b32.xlu1 %v1018_v10, %s3604_s13 }
 0x33d   : > { %1031 = vrot.lane.b32.xlu0 %v974_v4, %s3604_s13 }
 0x33f   : > { %1033 = vrot.lane.b32.xlu1 %v978_v43, %s3604_s13 }
 0x341   : > { %1035 = vrot.lane.b32.xlu0 %v982_v11, %s3604_s13 }
 0x343   : > { %1037 = vrot.lane.b32.xlu1 %v986_v44, %s3604_s13 }
 0x345   : > { %1055 = vrot.lane.b32.xlu0 %v1022_v16, %s3604_s13 }
 0x347   : > { %1057 = vrot.lane.b32.xlu1 %v1026_v45, %s3604_s13 }
 0x349   : > { %1039 = vrot.lane.b32.xlu0 %v990_v14, %s3604_s13 }
 0x34b   : > { %1041 = vrot.lane.b32.xlu1 %v994_v12, %s3604_s13 }
 0x399   : > { %v4159_v15 = vpop.f32.mrb[0].mxu1 }
 0x39a   : > { %v1233_v53 = vrot.slane %v4159_v15, %v4113_v24  ;;  %v4163_v49 = vpop.f32.mrb[1].mxu1  ;;  %v1226_v32 = vcombine.high %v4159_v15, %v4159_v15 }
 0x39b   : > { %v1184_v39 = vrot.slane %v4163_v49, %v4113_v24 }
 0x39c   : > { %v1241_v52 = vcombine.high %v1233_v53, %v1233_v53  ;;  %v4166_v17 = vrot.slane %v1233_v53, %v4113_v24  ;;  %v1240_v10 = vrot.slane %v1226_v32, %v4113_v24 }
 0x39d   : > { %v4215_v22 = vrot.slane %v1184_v39, %v4113_v24  ;;  %v1192_v6 = vcombine.high %v1184_v39, %v1184_v39 }
 0x39e   : > { %v4169_v54 = vrot.slane %v1241_v52, %v4113_v24  ;;  %v1310_v13 = vrot.slane %v4166_v17, %v3707_v23  ;;  %v1271_v42 = vcombine.high %v4166_v17, %v4166_v17  ;;  %v4265_v11 = vrot.slane %v1240_v10, %v4113_v24 }
 0x39f   : > { %v1044_v50 = vpop.permute.xlu0 %1043  ;;  %v1278_v36 = vrot.slane %v4215_v22, %v3707_v23  ;;  %v4246_v9 = vrot.slane %v1192_v6, %v4113_v24  ;;  %v1242_v12 = vcombine.high %v1240_v10, %v1240_v10 }
 0x3a0   : > { %1355 = vrot.lane.b32.xlu0 %v1310_v13, %s3604_s13  ;;  %v1314_v18 = vrot.slane %v4169_v54, %v3707_v23  ;;  %1084 = vst.msk [vmem:[%s4062_s25 + $0x81] sm:$0x1] %vm1075_vm0, %v1044_v50  ;;  %v1318_v44 = vrot.slane %v1271_v42, %v3707_v23  ;;  %v1326_v45 = vrot.slane %v4265_v11, %v3707_v23 }
 0x3a1   : > { %v1046_v19 = vpop.permute.xlu1 %1045  ;;  %v1282_v43 = vrot.slane %v4246_v9, %v3707_v23  ;;  %v1273_v15 = vcombine.high %v4169_v54, %v4169_v54  ;;  %v1270_v13 = vrot.slane %v1242_v12, %v4113_v24 }
 0x3a2   : > { %v4176_v59 = vpop.f32.mrb[2].mxu1  ;;  %1085 = vst.msk [vmem:[%s4062_s25 + $0x91] sm:$0x1] %vm1075_vm0, %v1046_v19  ;;  %1357 = vrot.lane.b32.xlu1 %v1314_v18, %s3604_s13  ;;  %v1177_v18 = vcombine.high %v4163_v49, %v4163_v49 }
 0x3a3   : > { %v4180_v26 = vpop.f32.mrb[3].mxu1  ;;  %v1028_v55 = vpop.permute.xlu0 %1027  ;;  %v1322_v50 = vrot.slane %v1273_v15, %v3707_v23 }
 0x3a4   : > { %1076 = vst.msk [vmem:[%s4062_s25 + $0x1] sm:$0x1] %vm1075_vm0, %v1028_v55 }
 0x3a5   : > { %v4185_v20 = vpop.f32.mrb[2].mxu0  ;;  %v1030_v58 = vpop.permute.xlu1 %1029 }
 0x3a6   : > { %v4187_v57 = vpop.f32.mrb[3].mxu0  ;;  %1077 = vst.msk [vmem:[%s4062_s25 + $0x11] sm:$0x1] %vm1075_vm0, %v1030_v58  ;;  %v1544_v28 = vrot.slane %v4185_v20, %v4113_v24  ;;  %v1537_v14 = vcombine.high %v4185_v20, %v4185_v20  ;;  %v1330_v58 = vrot.slane %v1270_v13, %v3707_v23 }
 0x3a7   : > { %v1048_v37 = vpop.permute.xlu0 %1047  ;;  %v1495_v33 = vrot.slane %v4187_v57, %v4113_v24 }
 0x3a8   : > { %1086 = vst.msk [vmem:[%s4062_s25 + $0xa1] sm:$0x1] %vm1075_vm0, %v1048_v37  ;;  %v4206_v29 = vrot.slane %v1544_v28, %v4113_v24  ;;  %v1552_v27 = vcombine.high %v1544_v28, %v1544_v28  ;;  %v1551_v52 = vrot.slane %v1537_v14, %v4113_v24  ;;  %v1191_v37 = vrot.slane %v1177_v18, %v4113_v24 }
 0x3a9   : > { %v1050_v56 = vpop.permute.xlu1 %1049  ;;  %v4236_v2 = vrot.slane %v1495_v33, %v4113_v24  ;;  %v1503_v48 = vcombine.high %v1495_v33, %v1495_v33  ;;  %v1222_v28 = vcombine.high %v4215_v22, %v4215_v22  ;;  %v1224_v22 = vcombine.high %v4246_v9, %v4246_v9 }
 0x3aa   : > { %1087 = vst.msk [vmem:[%s4062_s25 + $0xb1] sm:$0x1] %vm1075_vm0, %v1050_v56  ;;  %v1621_v7 = vrot.slane %v4206_v29, %v3707_v23  ;;  %v1574_v34 = vrot.slane %v1552_v27, %v4113_v24  ;;  %v1582_v17 = vcombine.high %v4206_v29, %v4206_v29  ;;  %v1567_v19 = vrot.slane %v1551_v52, %v4113_v24 }
 0x3ab   : > { %v4197_v1 = vpop.f32.mrb[4].mxu0  ;;  %v1052_v30 = vpop.permute.xlu0 %1051  ;;  %v1589_v4 = vrot.slane %v4236_v2, %v3707_v23  ;;  %v1525_v51 = vrot.slane %v1503_v48, %v4113_v24  ;;  %v1553_v20 = vcombine.high %v1551_v52, %v1551_v52  ;;  %v1207_v29 = vrot.slane %v1191_v37, %v4113_v24 }
 0x3ac   : > { %v4203_v61 = vpop.f32.mrb[5].mxu0  ;;  %1088 = vst.msk [vmem:[%s4062_s25 + $0xc1] sm:$0x1] %vm1075_vm0, %v1052_v30  ;;  %1666 = vrot.lane.b32.xlu0 %v1621_v7, %s3604_s13  ;;  %v1625_v40 = vrot.slane %v1574_v34, %v3707_v23  ;;  %v1629_v54 = vrot.slane %v1582_v17, %v3707_v23  ;;  %v1584_v55 = vcombine.high %v1574_v34, %v1574_v34 }
 0x3ad   : > { %v4208_v21 = vpop.f32.mrb[4].mxu1  ;;  %v1054_v31 = vpop.permute.xlu1 %1053  ;;  %v1593_v53 = vrot.slane %v1525_v51, %v3707_v23  ;;  %v1637_v56 = vrot.slane %v1567_v19, %v3707_v23  ;;  %v1581_v49 = vrot.slane %v1553_v20, %v4113_v24  ;;  %v1488_v30 = vcombine.high %v4187_v57, %v4187_v57 }
 0x3ae   : > { %v4210_v0 = vpop.f32.mrb[5].mxu1  ;;  %1089 = vst.msk [vmem:[%s4062_s25 + $0xd1] sm:$0x1] %vm1075_vm0, %v1054_v31  ;;  %1668 = vrot.lane.b32.xlu1 %v1625_v40, %s3604_s13  ;;  %v1633_v39 = vrot.slane %v1584_v55, %v3707_v23  ;;  %v1286_v27 = vrot.slane %v1222_v28, %v3707_v23  ;;  %v1193_v31 = vcombine.high %v1191_v37, %v1191_v37 }
 0x3af   : > { %v1032_v63 = vpop.permute.xlu0 %1031  ;;  %v1641_v7 = vrot.slane %v1581_v49, %v3707_v23  ;;  %v1502_v33 = vrot.slane %v1488_v30, %v4113_v24  ;;  %v1294_v6 = vrot.slane %v1207_v29, %v3707_v23  ;;  %v1290_v34 = vrot.slane %v1224_v22, %v3707_v23 }
 0x3b0   : > { %1078 = vst.msk [vmem:[%s4062_s25 + $0x21] sm:$0x1] %vm1075_vm0, %v1032_v63  ;;  %1339 = vrot.lane.b32.xlu0 %v1278_v36, %s3604_s13  ;;  %v1533_v63 = vcombine.high %v4236_v2, %v4236_v2  ;;  %v1221_v57 = vrot.slane %v1193_v31, %v4113_v24  ;;  %v1535_v2 = vcombine.high %v1525_v51, %v1525_v51 }
 0x3b1   : > { %v4223_v62 = vpop.f32.mrb[6].mxu0  ;;  %v1034_v35 = vpop.permute.xlu1 %1033  ;;  %v1504_v36 = vcombine.high %v1502_v33, %v1502_v33  ;;  %v1272_v9 = vcombine.high %v4265_v11, %v4265_v11  ;;  %v1583_v42 = vcombine.high %v1567_v19, %v1567_v19  ;;  %v1585_v48 = vcombine.high %v1581_v49, %v1581_v49 }
 0x3b2   : > { %v4226_v3 = vpop.f32.mrb[7].mxu0  ;;  %1079 = vst.msk [vmem:[%s4062_s25 + $0x31] sm:$0x1] %vm1075_vm0, %v1034_v35  ;;  %1341 = vrot.lane.b32.xlu1 %v1282_v43, %s3604_s13  ;;  %v1518_v35 = vrot.slane %v1502_v33, %v4113_v24  ;;  %v1597_v32 = vrot.slane %v1533_v63, %v3707_v23  ;;  %v1601_v10 = vrot.slane %v1535_v2, %v3707_v23 }
 0x3b3   : > { %v1036_v5 = vpop.permute.xlu0 %1035  ;;  %v1274_v43 = vcombine.high %v1270_v13, %v1270_v13  ;;  %v1645_v11 = vrot.slane %v1583_v42, %v3707_v23  ;;  %v1649_v51 = vrot.slane %v1585_v48, %v3707_v23  ;;  %v1225_v14 = vcombine.high %v1221_v57, %v1221_v57 }
 0x3b4   : > { %1080 = vst.msk [vmem:[%s4062_s25 + $0x41] sm:$0x1] %vm1075_vm0, %v1036_v5  ;;  %1650 = vrot.lane.b32.xlu0 %v1589_v4, %s3604_s13  ;;  %v1298_v5 = vrot.slane %v1221_v57, %v3707_v23  ;;  %v1605_v40 = vrot.slane %v1518_v35, %v3707_v23  ;;  %v1334_v4 = vrot.slane %v1272_v9, %v3707_v23 }
 0x3b5   : > { %v4240_v25 = vpop.f32.mrb[6].mxu1  ;;  %v1038_v41 = vpop.permute.xlu1 %1037  ;;  %v2175_v15 = vrot.slane %v4197_v1, %v4113_v24  ;;  %v1306_v17 = vrot.slane %v1225_v14, %v3707_v23  ;;  %v1815_v18 = vrot.slane %v4180_v26, %v4113_v24  ;;  %v2126_v28 = vrot.slane %v4203_v61, %v4113_v24 }
 0x3b6   : > { %v4243_v38 = vpop.f32.mrb[7].mxu1  ;;  %1081 = vst.msk [vmem:[%s4062_s25 + $0x51] sm:$0x1] %vm1075_vm0, %v1038_v41  ;;  %1652 = vrot.lane.b32.xlu1 %v1593_v53, %s3604_s13  ;;  %v1532_v41 = vrot.slane %v1504_v36, %v4113_v24  ;;  %v1808_v42 = vcombine.high %v4180_v26, %v4180_v26 }
 0x3b7   : > { %v1056_v47 = vpop.permute.xlu0 %1055  ;;  %v2191_v19 = vrot.slane %v2175_v15, %v4113_v24  ;;  %v2183_v20 = vcombine.high %v2175_v15, %v2175_v15  ;;  %v2134_v22 = vcombine.high %v2126_v28, %v2126_v28 }
 0x3b8   : > { %1090 = vst.msk [vmem:[%s4062_s25 + $0xe1] sm:$0x1] %vm1075_vm0, %v1056_v47  ;;  %1359 = vrot.lane.b32.xlu0 %v1318_v44, %s3604_s13  ;;  %v1609_v47 = vrot.slane %v1532_v41, %v3707_v23  ;;  %v1338_v44 = vrot.slane %v1274_v43, %v3707_v23  ;;  %v1536_v13 = vcombine.high %v1532_v41, %v1532_v41 }
 0x3b9   : > { %v1058_v46 = vpop.permute.xlu1 %1057  ;;  %v2252_v37 = vrot.slane %v2191_v19, %v3707_v23  ;;  %v2205_v49 = vrot.slane %v2183_v20, %v4113_v24 }
 0x3ba   : > { %1091 = vst.msk [vmem:[%s4062_s25 + $0xf1] sm:$0x1] %vm1075_vm0, %v1058_v46  ;;  %1361 = vrot.lane.b32.xlu1 %v1322_v50, %s3604_s13  ;;  %v1223_v46 = vcombine.high %v1207_v29, %v1207_v29  ;;  %v1617_v55 = vrot.slane %v1536_v13, %v3707_v23  ;;  %v1857_v29 = vcombine.high %v4176_v59, %v4176_v59 }
 0x3bb   : > { %v1040_v8 = vpop.permute.xlu0 %1039 }
 0x3bc   : > { %1082 = vst.msk [vmem:[%s4062_s25 + $0x61] sm:$0x1] %vm1075_vm0, %v1040_v8  ;;  %1363 = vrot.lane.b32.xlu0 %v1326_v45, %s3604_s13  ;;  %v1864_v8 = vrot.slane %v4176_v59, %v4113_v24  ;;  %v1302_v45 = vrot.slane %v1223_v46, %v3707_v23  ;;  %v1871_v33 = vrot.slane %v1857_v29, %v4113_v24 }
 0x3bd   : > { %v1042_v16 = vpop.permute.xlu1 %1041  ;;  %v2215_v46 = vcombine.high %v2205_v49, %v2205_v49 }
 0x3be   : > { %1083 = vst.msk [vmem:[%s4062_s25 + $0x71] sm:$0x1] %vm1075_vm0, %v1042_v16  ;;  %1365 = vrot.lane.b32.xlu1 %v1330_v58, %s3604_s13  ;;  %v1534_v16 = vcombine.high %v1518_v35, %v1518_v35  ;;  %v1880_v12 = vrot.slane %v1864_v8, %v4113_v24  ;;  %v1872_v52 = vcombine.high %v1864_v8, %v1864_v8 }
 0x3bf   : > { %v1831_v58 = vrot.slane %v1815_v18, %v4113_v24  ;;  %v2168_v35 = vcombine.high %v4197_v1, %v4197_v1  ;;  %v1873_v36 = vcombine.high %v1871_v33, %v1871_v33 }
 0x3c0   : > { %1670 = vrot.lane.b32.xlu0 %v1629_v54, %s3604_s13  ;;  %v1613_v53 = vrot.slane %v1534_v16, %v3707_v23  ;;  %v1941_v50 = vrot.slane %v1880_v12, %v3707_v23  ;;  %v1894_v54 = vrot.slane %v1872_v52, %v4113_v24  ;;  %v1902_v63 = vcombine.high %v1880_v12, %v1880_v12 }
 0x3c1   : > { %v1909_v30 = vrot.slane %v1831_v58, %v3707_v23  ;;  %v2182_v9 = vrot.slane %v2168_v35, %v4113_v24  ;;  %v4407_v1 = vrot.slane %v1873_v36, %v4113_v24  ;;  %v1853_v48 = vcombine.high %v1831_v58, %v1831_v58 }
 0x3c2   : > { %1672 = vrot.lane.b32.xlu1 %v1633_v39, %s3604_s13  ;;  %v1945_v39 = vrot.slane %v1894_v54, %v3707_v23  ;;  %v1904_v2 = vcombine.high %v1894_v54, %v1894_v54  ;;  %v2264_v16 = vrot.slane %v2215_v46, %v3707_v23  ;;  %v2437_v46 = vrot.slane %v4210_v0, %v4113_v24 }
 0x3c3   : > { %v2184_v43 = vcombine.high %v2182_v9, %v2182_v9  ;;  %v1917_v14 = vrot.slane %v1853_v48, %v3707_v23 }
 0x3c4   : > { %1674 = vrot.lane.b32.xlu0 %v1637_v56, %s3604_s13  ;;  %v1823_v56 = vcombine.high %v1815_v18, %v1815_v18 }
 0x3c5   : > { %v2212_v26 = vrot.slane %v2184_v43, %v4113_v24 }
 0x3c6   : > { %1676 = vrot.lane.b32.xlu1 %v1641_v7, %s3604_s13  ;;  %v1845_v31 = vrot.slane %v1823_v56, %v4113_v24  ;;  %v2256_v7 = vrot.slane %v2205_v49, %v3707_v23 }
 0x3c7   : > { %v2272_v52 = vrot.slane %v2212_v26, %v3707_v23 }
 0x3c8   : > { %1343 = vrot.lane.b32.xlu0 %v1286_v27, %s3604_s13  ;;  %v4376_v27 = vrot.slane %v2126_v28, %v4113_v24  ;;  %v1913_v57 = vrot.slane %v1845_v31, %v3707_v23 }
 0x3ca   : > { %1345 = vrot.lane.b32.xlu1 %v1290_v34, %s3604_s13  ;;  %v2220_v59 = vrot.slane %v4376_v27, %v3707_v23  ;;  %v4392_v34 = vrot.slane %v1871_v33, %v4113_v24  ;;  %v2164_v13 = vcombine.high %v4376_v27, %v4376_v27 }
 0x3cc   : > { %1347 = vrot.lane.b32.xlu0 %v1294_v6, %s3604_s13  ;;  %v4388_v6 = vrot.slane %v2134_v22, %v4113_v24  ;;  %v1957_v41 = vrot.slane %v4392_v34, %v3707_v23  ;;  %v2228_v20 = vrot.slane %v2164_v13, %v3707_v23  ;;  %v1903_v28 = vcombine.high %v4392_v34, %v4392_v34 }
 0x3cd   : > { %v1905_v22 = vcombine.high %v4407_v1, %v4407_v1  ;;  %v2486_v34 = vrot.slane %v4208_v21, %v4113_v24 }
 0x3ce   : > { %1349 = vrot.lane.b32.xlu1 %v1298_v5, %s3604_s13  ;;  %v2224_v5 = vrot.slane %v4388_v6, %v3707_v23  ;;  %v2166_v58 = vcombine.high %v4388_v6, %v4388_v6  ;;  %v2216_v6 = vcombine.high %v2212_v26, %v2212_v26 }
 0x3d0   : > { %1654 = vrot.lane.b32.xlu0 %v1597_v32, %s3604_s13  ;;  %v1949_v32 = vrot.slane %v1902_v63, %v3707_v23 }
 0x3d2   : > { %1656 = vrot.lane.b32.xlu1 %v1601_v10, %s3604_s13  ;;  %v1953_v10 = vrot.slane %v1904_v2, %v3707_v23  ;;  %v2280_v2 = vrot.slane %v2216_v6, %v3707_v23 }
 0x3d4   : > { %1658 = vrot.lane.b32.xlu0 %v1605_v40, %s3604_s13  ;;  %v2213_v40 = vcombine.high %v2191_v19, %v2191_v19 }
 0x3d6   : > { %1660 = vrot.lane.b32.xlu1 %v1609_v47, %s3604_s13  ;;  %v2260_v47 = vrot.slane %v2213_v40, %v3707_v23  ;;  %v2797_v40 = vrot.slane %v4223_v62, %v4113_v24 }
 0x3d8   : > { %1367 = vrot.lane.b32.xlu0 %v1334_v4, %s3604_s13  ;;  %v2198_v4 = vrot.slane %v2182_v9, %v4113_v24  ;;  %v2502_v9 = vrot.slane %v2486_v34, %v4113_v24 }
 0x3da   : > { %1369 = vrot.lane.b32.xlu1 %v1338_v44, %s3604_s13  ;;  %v1822_v44 = vrot.slane %v1808_v42, %v4113_v24  ;;  %v2268_v8 = vrot.slane %v2198_v4, %v3707_v23  ;;  %v2214_v29 = vcombine.high %v2198_v4, %v2198_v4  ;;  %v2494_v42 = vcombine.high %v2486_v34, %v2486_v34 }
 0x3db   : > { %v2563_v43 = vrot.slane %v2502_v9, %v3707_v23  ;;  %v2430_v34 = vcombine.high %v4210_v0, %v4210_v0 }
 0x3dc   : > { %1678 = vrot.lane.b32.xlu0 %v1645_v11, %s3604_s13  ;;  %v1961_v11 = vrot.slane %v4407_v1, %v3707_v23  ;;  %v1824_v15 = vcombine.high %v1822_v44, %v1822_v44  ;;  %v2276_v33 = vrot.slane %v2214_v29, %v3707_v23  ;;  %v2516_v48 = vrot.slane %v2494_v42, %v4113_v24 }
 0x3de   : > { %1680 = vrot.lane.b32.xlu1 %v1649_v51, %s3604_s13  ;;  %v2119_v51 = vcombine.high %v4203_v61, %v4203_v61  ;;  %v1852_v18 = vrot.slane %v1824_v15, %v4113_v24 }
 0x3e0   : > { %1351 = vrot.lane.b32.xlu0 %v1302_v45, %s3604_s13  ;;  %v1838_v45 = vrot.slane %v1822_v44, %v4113_v24 }
 0x3e2   : > { %1353 = vrot.lane.b32.xlu1 %v1306_v17, %s3604_s13  ;;  %v2133_v17 = vrot.slane %v2119_v51, %v4113_v24  ;;  %v1925_v61 = vrot.slane %v1838_v45, %v3707_v23  ;;  %v2748_v51 = vrot.slane %v4226_v3, %v4113_v24 }
 0x3e4   : > { %1662 = vrot.lane.b32.xlu0 %v1613_v53, %s3604_s13  ;;  %v1855_v53 = vcombine.high %v1845_v31, %v1845_v31  ;;  %v2149_v54 = vrot.slane %v2133_v17, %v4113_v24  ;;  %v4522_v13 = vrot.slane %v2748_v51, %v4113_v24 }
 0x3e6   : > { %1664 = vrot.lane.b32.xlu1 %v1617_v55, %s3604_s13  ;;  %v1921_v19 = vrot.slane %v1855_v53, %v3707_v23  ;;  %v2135_v55 = vcombine.high %v2133_v17, %v2133_v17  ;;  %v2236_v56 = vrot.slane %v2149_v54, %v3707_v23  ;;  %v2567_v53 = vrot.slane %v2516_v48, %v3707_v23 }
 0x3e8   : > { %1986 = vrot.lane.b32.xlu0 %v1941_v50, %s3604_s13  ;;  %v2163_v49 = vrot.slane %v2135_v55, %v4113_v24 }
 0x3ea   : > { %1988 = vrot.lane.b32.xlu1 %v1945_v39, %s3604_s13  ;;  %v2232_v39 = vrot.slane %v2166_v58, %v3707_v23  ;;  %v2240_v31 = vrot.slane %v2163_v49, %v3707_v23 }
 0x3ec   : > { %2297 = vrot.lane.b32.xlu0 %v2252_v37, %s3604_s13  ;;  %v1929_v37 = vrot.slane %v1852_v18, %v3707_v23 }
 0x3ee   : > { %2299 = vrot.lane.b32.xlu1 %v2256_v7, %s3604_s13  ;;  %v1854_v7 = vcombine.high %v1838_v45, %v1838_v45 }
 0x3f0   : > { %1970 = vrot.lane.b32.xlu0 %v1909_v30, %s3604_s13  ;;  %v1965_v30 = vrot.slane %v1903_v28, %v3707_v23  ;;  %v1933_v35 = vrot.slane %v1854_v7, %v3707_v23 }
 0x3f2   : > { %1972 = vrot.lane.b32.xlu1 %v1913_v57, %s3604_s13  ;;  %v2165_v57 = vcombine.high %v2149_v54, %v2149_v54  ;;  %v2524_v54 = vcombine.high %v2502_v9, %v2502_v9 }
 0x3f4   : > { %2281 = vrot.lane.b32.xlu0 %v2220_v59, %s3604_s13  ;;  %v1969_v59 = vrot.slane %v1905_v22, %v3707_v23  ;;  %v2571_v29 = vrot.slane %v2524_v54, %v3707_v23 }
 0x3f6   : > { %2283 = vrot.lane.b32.xlu1 %v2224_v5, %s3604_s13  ;;  %v1856_v5 = vcombine.high %v1852_v18, %v1852_v18 }
 0x3f8   : > { %1990 = vrot.lane.b32.xlu0 %v1949_v32, %s3604_s13  ;;  %v1937_v4 = vrot.slane %v1856_v5, %v3707_v23 }
 0x3fa   : > { %1992 = vrot.lane.b32.xlu1 %v1953_v10, %s3604_s13 }
 0x3fc   : > { %1994 = vrot.lane.b32.xlu0 %v1957_v41, %s3604_s13  ;;  %v2244_v41 = vrot.slane %v2165_v57, %v3707_v23 }
 0x3fe   : > { %1996 = vrot.lane.b32.xlu1 %v1961_v11, %s3604_s13  ;;  %v4496_v11 = vrot.slane %v2797_v40, %v4113_v24 }
 0x400   : > { %2301 = vrot.lane.b32.xlu0 %v2260_v47, %s3604_s13  ;;  %v2167_v47 = vcombine.high %v2163_v49, %v2163_v49  ;;  %v2874_v45 = vrot.slane %v4496_v11, %v3707_v23  ;;  %v2790_v49 = vcombine.high %v4223_v62, %v4223_v62  ;;  %v2835_v7 = vcombine.high %v4496_v11, %v4496_v11 }
 0x402   : > { %2303 = vrot.lane.b32.xlu1 %v2264_v16, %s3604_s13  ;;  %v2248_v26 = vrot.slane %v2167_v47, %v3707_v23  ;;  %v4505_v16 = vrot.slane %v2437_v46, %v4113_v24  ;;  %v2804_v62 = vrot.slane %v2790_v49, %v4113_v24 }
 0x404   : > { %2305 = vrot.lane.b32.xlu0 %v2268_v8, %s3604_s13  ;;  %v2805_v8 = vcombine.high %v2797_v40, %v2797_v40  ;;  %v2531_v17 = vrot.slane %v4505_v16, %v3707_v23  ;;  %v2444_v40 = vrot.slane %v2430_v34, %v4113_v24 }
 0x406   : > { %2307 = vrot.lane.b32.xlu1 %v2272_v52, %s3604_s13  ;;  %v2479_v52 = vcombine.high %v4208_v21, %v4208_v21 }
 0x408   : > { %1974 = vrot.lane.b32.xlu0 %v1917_v14, %s3604_s13  ;;  %v2445_v14 = vcombine.high %v2437_v46, %v2437_v46  ;;  %v2741_v46 = vcombine.high %v4226_v3, %v4226_v3 }
 0x40a   : > { %1976 = vrot.lane.b32.xlu1 %v1921_v19, %s3604_s13  ;;  %v2493_v19 = vrot.slane %v2479_v52, %v4113_v24 }
 0x40c   : > { %1978 = vrot.lane.b32.xlu0 %v1925_v61, %s3604_s13  ;;  %v4529_v61 = vrot.slane %v2445_v14, %v4113_v24 }
 0x40e   : > { %1980 = vrot.lane.b32.xlu1 %v1929_v37, %s3604_s13  ;;  %v2535_v28 = vrot.slane %v4529_v61, %v3707_v23 }
 0x410   : > { %2285 = vrot.lane.b32.xlu0 %v2228_v20, %s3604_s13  ;;  %v2842_v20 = vrot.slane %v4522_v13, %v3707_v23 }
 0x412   : > { %v1356_v12 = vpop.permute.xlu0 %1355  ;;  %2287 = vrot.lane.b32.xlu1 %v2232_v39, %s3604_s13 }
 0x413   : > { %1395 = vst.msk [vmem:[%s4062_s25 + $0x82] sm:$0x1] %vm1075_vm0, %v1356_v12  ;;  %v4514_v12 = vrot.slane %v2805_v8, %v4113_v24  ;;  %v2477_v8 = vcombine.high %v4529_v61, %v4529_v61 }
 0x414   : > { %v1358_v50 = vpop.permute.xlu1 %1357  ;;  %2289 = vrot.lane.b32.xlu0 %v2236_v56, %s3604_s13  ;;  %v4548_v56 = vrot.slane %v2493_v19, %v4113_v24 }
 0x415   : > { %1396 = vst.msk [vmem:[%s4062_s25 + $0x92] sm:$0x1] %vm1075_vm0, %v1358_v50  ;;  %v2756_v50 = vcombine.high %v2748_v51, %v2748_v51  ;;  %v2878_v21 = vrot.slane %v4514_v12, %v3707_v23  ;;  %v2837_v5 = vcombine.high %v4514_v12, %v4514_v12 }
 0x416   : > { %2291 = vrot.lane.b32.xlu1 %v2240_v31, %s3604_s13 }
 0x417   : > { %v4543_v58 = vrot.slane %v2756_v50, %v4113_v24  ;;  %v2886_v47 = vrot.slane %v2837_v5, %v3707_v23 }
 0x418   : > { %1998 = vrot.lane.b32.xlu0 %v1965_v30, %s3604_s13  ;;  %v2495_v30 = vcombine.high %v2493_v19, %v2493_v19  ;;  %v2525_v19 = vcombine.high %v4548_v56, %v4548_v56 }
 0x419   : > { %v2846_v31 = vrot.slane %v4543_v58, %v3707_v23  ;;  %v2788_v50 = vcombine.high %v4543_v58, %v4543_v58 }
 0x41a   : > { %2000 = vrot.lane.b32.xlu1 %v1969_v59, %s3604_s13  ;;  %v4573_v59 = vrot.slane %v2495_v30, %v4113_v24  ;;  %v2587_v49 = vrot.slane %v2525_v19, %v3707_v23 }
 0x41c   : > { %2309 = vrot.lane.b32.xlu0 %v2276_v33, %s3604_s13  ;;  %v2583_v9 = vrot.slane %v4573_v59, %v3707_v23  ;;  %v2527_v30 = vcombine.high %v4573_v59, %v4573_v59  ;;  %v3110_v59 = vrot.slane %v4240_v25, %v4113_v24 }
 0x41e   : > { %v1667_v27 = vpop.permute.xlu0 %1666  ;;  %2311 = vrot.lane.b32.xlu1 %v2280_v2, %s3604_s13  ;;  %v2806_v2 = vcombine.high %v2804_v62, %v2804_v62 }
 0x41f   : > { %1706 = vst.msk [vmem:[%s4062_s25 + $0x83] sm:$0x1] %vm1075_vm0, %v1667_v27  ;;  %v2526_v27 = vcombine.high %v2516_v48, %v2516_v48  ;;  %v2446_v48 = vcombine.high %v2444_v40, %v2444_v40 }
 0x420   : > { %v1669_v32 = vpop.permute.xlu1 %1668  ;;  %1982 = vrot.lane.b32.xlu0 %v1933_v35, %s3604_s13  ;;  %v4579_v35 = vrot.slane %v2804_v62, %v4113_v24  ;;  %v4604_v42 = vrot.slane %v2806_v2, %v4113_v24  ;;  %v3061_v2 = vrot.slane %v4243_v38, %v4113_v24 }
 0x421   : > { %1707 = vst.msk [vmem:[%s4062_s25 + $0x93] sm:$0x1] %vm1075_vm0, %v1669_v32  ;;  %v2575_v57 = vrot.slane %v2526_v27, %v3707_v23  ;;  %v4635_v12 = vrot.slane %v2446_v48, %v4113_v24 }
 0x422   : > { %v1340_v63 = vpop.permute.xlu0 %1339  ;;  %1984 = vrot.lane.b32.xlu1 %v1937_v4, %s3604_s13  ;;  %v2894_v3 = vrot.slane %v4604_v42, %v3707_v23 }
 0x423   : > { %1387 = vst.msk [vmem:[%s4062_s25 + $0x2] sm:$0x1] %vm1075_vm0, %v1340_v63  ;;  %v2579_v63 = vrot.slane %v4548_v56, %v3707_v23 }
 0x424   : > { %v1342_v1 = vpop.permute.xlu1 %1341  ;;  %2293 = vrot.lane.b32.xlu0 %v2244_v41, %s3604_s13  ;;  %v2475_v41 = vcombine.high %v4505_v16, %v4505_v16  ;;  %v2755_v16 = vrot.slane %v2741_v46, %v4113_v24 }
 0x425   : > { %1388 = vst.msk [vmem:[%s4062_s25 + $0x12] sm:$0x1] %vm1075_vm0, %v1342_v1 }
 0x426   : > { %v1651_v36 = vpop.permute.xlu0 %1650  ;;  %2295 = vrot.lane.b32.xlu1 %v2248_v26, %s3604_s13  ;;  %v4639_v52 = vrot.slane %v2755_v16, %v4113_v24  ;;  %v2757_v61 = vcombine.high %v2755_v16, %v2755_v16 }
 0x427   : > { %1698 = vst.msk [vmem:[%s4062_s25 + $0x3] sm:$0x1] %vm1075_vm0, %v1651_v36  ;;  %v2882_v36 = vrot.slane %v2835_v7, %v3707_v23  ;;  %v2591_v7 = vrot.slane %v2527_v30, %v3707_v23 }
 0x428   : > { %2608 = vrot.lane.b32.xlu0 %v2563_v43, %s3604_s13  ;;  %v1653_v15 = vpop.permute.xlu1 %1652  ;;  %v4608_v43 = vrot.slane %v2444_v40, %v4113_v24  ;;  %v2858_v54 = vrot.slane %v4639_v52, %v3707_v23 }
 0x429   : > { %1699 = vst.msk [vmem:[%s4062_s25 + $0x13] sm:$0x1] %vm1075_vm0, %v1653_v15 }
 0x42a   : > { %v1360_v10 = vpop.permute.xlu0 %1359  ;;  %2610 = vrot.lane.b32.xlu1 %v2567_v53, %s3604_s13  ;;  %v2547_v14 = vrot.slane %v4608_v43, %v3707_v23  ;;  %v2543_v53 = vrot.slane %v2477_v8, %v3707_v23  ;;  %v2476_v27 = vcombine.high %v4608_v43, %v4608_v43  ;;  %v3069_v43 = vcombine.high %v3061_v2, %v3061_v2 }
 0x42b   : > { %1397 = vst.msk [vmem:[%s4062_s25 + $0xa2] sm:$0x1] %vm1075_vm0, %v1360_v10  ;;  %v2890_v10 = vrot.slane %v4579_v35, %v3707_v23 }
 0x42c   : > { %2919 = vrot.lane.b32.xlu0 %v2874_v45, %s3604_s13  ;;  %v1362_v18 = vpop.permute.xlu1 %1361  ;;  %v2786_v45 = vcombine.high %v4522_v13, %v4522_v13 }
 0x42d   : > { %1398 = vst.msk [vmem:[%s4062_s25 + $0xb2] sm:$0x1] %vm1075_vm0, %v1362_v18 }
 0x42e   : > { %v1364_v44 = vpop.permute.xlu0 %1363  ;;  %2921 = vrot.lane.b32.xlu1 %v2878_v21, %s3604_s13  ;;  %v2551_v21 = vrot.slane %v4635_v12, %v3707_v23 }
 0x42f   : > { %1399 = vst.msk [vmem:[%s4062_s25 + $0xc2] sm:$0x1] %vm1075_vm0, %v1364_v44  ;;  %v2539_v44 = vrot.slane %v2475_v41, %v3707_v23 }
 0x430   : > { %2592 = vrot.lane.b32.xlu0 %v2531_v17, %s3604_s13  ;;  %v1366_v37 = vpop.permute.xlu1 %1365  ;;  %v2850_v17 = vrot.slane %v2786_v45, %v3707_v23 }
 0x431   : > { %1400 = vst.msk [vmem:[%s4062_s25 + $0xd2] sm:$0x1] %vm1075_vm0, %v1366_v37  ;;  %v2854_v37 = vrot.slane %v2788_v50, %v3707_v23 }
 0x432   : > { %v1671_v55 = vpop.permute.xlu0 %1670  ;;  %2594 = vrot.lane.b32.xlu1 %v2535_v28, %s3604_s13  ;;  %v2836_v28 = vcombine.high %v4579_v35, %v4579_v35 }
 0x433   : > { %1708 = vst.msk [vmem:[%s4062_s25 + $0xa3] sm:$0x1] %vm1075_vm0, %v1671_v55  ;;  %v4663_v55 = vrot.slane %v2757_v61, %v4113_v24 }
 0x434   : > { %2903 = vrot.lane.b32.xlu0 %v2842_v20, %s3604_s13  ;;  %v1673_v22 = vpop.permute.xlu1 %1672 }
 0x435   : > { %1709 = vst.msk [vmem:[%s4062_s25 + $0xb3] sm:$0x1] %vm1075_vm0, %v1673_v22  ;;  %v2898_v22 = vrot.slane %v2836_v28, %v3707_v23 }
 0x436   : > { %v1675_v39 = vpop.permute.xlu0 %1674  ;;  %2905 = vrot.lane.b32.xlu1 %v2846_v31, %s3604_s13 }
 0x437   : > { %1710 = vst.msk [vmem:[%s4062_s25 + $0xc3] sm:$0x1] %vm1075_vm0, %v1675_v39 }
 0x438   : > { %2612 = vrot.lane.b32.xlu0 %v2571_v29, %s3604_s13  ;;  %v1677_v6 = vpop.permute.xlu1 %1676  ;;  %v2862_v29 = vrot.slane %v4663_v55, %v3707_v23 }
 0x439   : > { %1711 = vst.msk [vmem:[%s4062_s25 + $0xd3] sm:$0x1] %vm1075_vm0, %v1677_v6 }
 0x43a   : > { %v1344_v33 = vpop.permute.xlu0 %1343  ;;  %2614 = vrot.lane.b32.xlu1 %v2575_v57, %s3604_s13  ;;  %v2555_v57 = vrot.slane %v2476_v27, %v3707_v23 }
 0x43b   : > { %1389 = vst.msk [vmem:[%s4062_s25 + $0x22] sm:$0x1] %vm1075_vm0, %v1344_v33  ;;  %v2838_v33 = vcombine.high %v4604_v42, %v4604_v42  ;;  %v3077_v42 = vrot.slane %v3061_v2, %v4113_v24 }
 0x43c   : > { %2616 = vrot.lane.b32.xlu0 %v2579_v63, %s3604_s13  ;;  %v1346_v0 = vpop.permute.xlu1 %1345  ;;  %v2787_v63 = vcombine.high %v4639_v52, %v4639_v52 }
 0x43d   : > { %1390 = vst.msk [vmem:[%s4062_s25 + $0x32] sm:$0x1] %vm1075_vm0, %v1346_v0  ;;  %v2902_v35 = vrot.slane %v2838_v33, %v3707_v23  ;;  %v2789_v0 = vcombine.high %v4663_v55, %v4663_v55  ;;  %v3155_v48 = vrot.slane %v3077_v42, %v3707_v23 }
 0x43e   : > { %v1348_v32 = vpop.permute.xlu0 %1347  ;;  %2618 = vrot.lane.b32.xlu1 %v2583_v9, %s3604_s13  ;;  %v2866_v60 = vrot.slane %v2787_v63, %v3707_v23  ;;  %v3118_v9 = vcombine.high %v3110_v59, %v3110_v59 }
 0x43f   : > { %1391 = vst.msk [vmem:[%s4062_s25 + $0x42] sm:$0x1] %vm1075_vm0, %v1348_v32  ;;  %v2478_v32 = vcombine.high %v4635_v12, %v4635_v12 }
 0x440   : > { %2923 = vrot.lane.b32.xlu0 %v2882_v36, %s3604_s13  ;;  %v1350_v4 = vpop.permute.xlu1 %1349  ;;  %v3126_v36 = vrot.slane %v3110_v59, %v4113_v24 }
 0x441   : > { %1392 = vst.msk [vmem:[%s4062_s25 + $0x52] sm:$0x1] %vm1075_vm0, %v1350_v4  ;;  %v2559_v41 = vrot.slane %v2478_v32, %v3707_v23 }
 0x442   : > { %v1655_v1 = vpop.permute.xlu0 %1654  ;;  %2925 = vrot.lane.b32.xlu1 %v2886_v47, %s3604_s13  ;;  %v3140_v47 = vrot.slane %v3118_v9, %v4113_v24 }
 0x443   : > { %1700 = vst.msk [vmem:[%s4062_s25 + $0x23] sm:$0x1] %vm1075_vm0, %v1655_v1  ;;  %v3103_v1 = vcombine.high %v4240_v25, %v4240_v25  ;;  %v2870_v25 = vrot.slane %v2789_v0, %v3707_v23 }
 0x444   : > { %2927 = vrot.lane.b32.xlu0 %v2890_v10, %s3604_s13  ;;  %v1657_v26 = vpop.permute.xlu1 %1656  ;;  %v3187_v10 = vrot.slane %v3126_v36, %v3707_v23  ;;  %v3191_v16 = vrot.slane %v3140_v47, %v3707_v23 }
 0x445   : > { %1701 = vst.msk [vmem:[%s4062_s25 + $0x33] sm:$0x1] %vm1075_vm0, %v1657_v26  ;;  %v3091_v26 = vrot.slane %v3069_v43, %v4113_v24 }
 0x446   : > { %v1659_v11 = vpop.permute.xlu0 %1658  ;;  %2929 = vrot.lane.b32.xlu1 %v2894_v3, %s3604_s13 }
 0x447   : > { %1702 = vst.msk [vmem:[%s4062_s25 + $0x43] sm:$0x1] %vm1075_vm0, %v1659_v11  ;;  %v3117_v11 = vrot.slane %v3103_v1, %v4113_v24  ;;  %v3159_v52 = vrot.slane %v3091_v26, %v3707_v23 }
 0x448   : > { %2596 = vrot.lane.b32.xlu0 %v2539_v44, %s3604_s13  ;;  %v1661_v15 = vpop.permute.xlu1 %1660  ;;  %v3148_v44 = vcombine.high %v3126_v36, %v3126_v36 }
 0x449   : > { %1703 = vst.msk [vmem:[%s4062_s25 + $0x53] sm:$0x1] %vm1075_vm0, %v1661_v15  ;;  %v3133_v45 = vrot.slane %v3117_v11, %v4113_v24  ;;  %v3119_v15 = vcombine.high %v3117_v11, %v3117_v11 }
 0x44a   : > { %v1368_v51 = vpop.permute.xlu0 %1367  ;;  %2598 = vrot.lane.b32.xlu1 %v2543_v53, %s3604_s13  ;;  %v3195_v12 = vrot.slane %v3148_v44, %v3707_v23  ;;  %v3150_v53 = vcombine.high %v3140_v47, %v3140_v47 }
 0x44b   : > { %1401 = vst.msk [vmem:[%s4062_s25 + $0xe2] sm:$0x1] %vm1075_vm0, %v1368_v51  ;;  %v3054_v51 = vcombine.high %v4243_v38, %v4243_v38  ;;  %v3203_v50 = vrot.slane %v3133_v45, %v3707_v23 }
 0x44c   : > { %2600 = vrot.lane.b32.xlu0 %v2547_v14, %s3604_s13  ;;  %v1370_v18 = vpop.permute.xlu1 %1369  ;;  %v3199_v19 = vrot.slane %v3150_v53, %v3707_v23 }
 0x44d   : > { %1402 = vst.msk [vmem:[%s4062_s25 + $0xf2] sm:$0x1] %vm1075_vm0, %v1370_v18  ;;  %v3068_v38 = vrot.slane %v3054_v51, %v4113_v24  ;;  %v3147_v18 = vrot.slane %v3119_v15, %v4113_v24 }
 0x44e   : > { %v1679_v13 = vpop.permute.xlu0 %1678  ;;  %2602 = vrot.lane.b32.xlu1 %v2551_v21, %s3604_s13 }
 0x44f   : > { %1712 = vst.msk [vmem:[%s4062_s25 + $0xe3] sm:$0x1] %vm1075_vm0, %v1679_v13  ;;  %v3099_v13 = vcombine.high %v3077_v42, %v3077_v42 }
 0x450   : > { %2907 = vrot.lane.b32.xlu0 %v2850_v17, %s3604_s13  ;;  %v1681_v58 = vpop.permute.xlu1 %1680 }
 0x451   : > { %1713 = vst.msk [vmem:[%s4062_s25 + $0xf3] sm:$0x1] %vm1075_vm0, %v1681_v58  ;;  %v3070_v58 = vcombine.high %v3068_v38, %v3068_v38 }
 0x452   : > { %v1352_v20 = vpop.permute.xlu0 %1351  ;;  %2909 = vrot.lane.b32.xlu1 %v2854_v37, %s3604_s13  ;;  %v3101_v37 = vcombine.high %v3091_v26, %v3091_v26 }
 0x453   : > { %1393 = vst.msk [vmem:[%s4062_s25 + $0x62] sm:$0x1] %vm1075_vm0, %v1352_v20  ;;  %v3163_v20 = vrot.slane %v3099_v13, %v3707_v23  ;;  %v3098_v30 = vrot.slane %v3070_v58, %v4113_v24 }
 0x454   : > { %2911 = vrot.lane.b32.xlu0 %v2858_v54, %s3604_s13  ;;  %v1354_v39 = vpop.permute.xlu1 %1353  ;;  %v3084_v54 = vrot.slane %v3068_v38, %v4113_v24 }
 0x455   : > { %1394 = vst.msk [vmem:[%s4062_s25 + $0x72] sm:$0x1] %vm1075_vm0, %v1354_v39  ;;  %v3102_v33 = vcombine.high %v3098_v30, %v3098_v30  ;;  %v3175_v63 = vrot.slane %v3098_v30, %v3707_v23 }
 0x456   : > { %v1663_v56 = vpop.permute.xlu0 %1662  ;;  %2913 = vrot.lane.b32.xlu1 %v2862_v29, %s3604_s13  ;;  %v3171_v39 = vrot.slane %v3084_v54, %v3707_v23 }
 0x457   : > { %1704 = vst.msk [vmem:[%s4062_s25 + $0x63] sm:$0x1] %vm1075_vm0, %v1663_v56  ;;  %v3207_v56 = vrot.slane %v3147_v18, %v3707_v23 }
 0x458   : > { %2620 = vrot.lane.b32.xlu0 %v2587_v49, %s3604_s13  ;;  %v1665_v62 = vpop.permute.xlu1 %1664  ;;  %v3100_v49 = vcombine.high %v3084_v54, %v3084_v54 }
 0x459   : > { %1705 = vst.msk [vmem:[%s4062_s25 + $0x73] sm:$0x1] %vm1075_vm0, %v1665_v62 }
 0x45a   : > { %v1987_v31 = vpop.permute.xlu0 %1986  ;;  %2622 = vrot.lane.b32.xlu1 %v2591_v7, %s3604_s13  ;;  %v3179_v7 = vrot.slane %v3100_v49, %v3707_v23 }
 0x45b   : > { %2026 = vst.msk [vmem:[%s4062_s25 + $0x84] sm:$0x1] %vm1075_vm0, %v1987_v31  ;;  %v3167_v31 = vrot.slane %v3101_v37, %v3707_v23 }
 0x45c   : > { %2931 = vrot.lane.b32.xlu0 %v2898_v22, %s3604_s13  ;;  %v1989_v34 = vpop.permute.xlu1 %1988  ;;  %v3149_v22 = vcombine.high %v3133_v45, %v3133_v45 }
 0x45d   : > { %2027 = vst.msk [vmem:[%s4062_s25 + $0x94] sm:$0x1] %vm1075_vm0, %v1989_v34  ;;  %v3183_v34 = vrot.slane %v3102_v33, %v3707_v23 }
 0x45e   : > { %v2298_v6 = vpop.permute.xlu0 %2297  ;;  %2933 = vrot.lane.b32.xlu1 %v2902_v35, %s3604_s13  ;;  %v3151_v35 = vcombine.high %v3147_v18, %v3147_v18 }
 0x45f   : > { %2337 = vst.msk [vmem:[%s4062_s25 + $0x85] sm:$0x1] %vm1075_vm0, %v2298_v6  ;;  %v3211_v6 = vrot.slane %v3149_v22, %v3707_v23 }
 0x460   : > { %2604 = vrot.lane.b32.xlu0 %v2555_v57, %s3604_s13  ;;  %v2300_v40 = vpop.permute.xlu1 %2299  ;;  %v3215_v2 = vrot.slane %v3151_v35, %v3707_v23 }
 0x461   : > { %2338 = vst.msk [vmem:[%s4062_s25 + $0x95] sm:$0x1] %vm1075_vm0, %v2300_v40 }
 0x462   : > { %v1971_v5 = vpop.permute.xlu0 %1970  ;;  %2606 = vrot.lane.b32.xlu1 %v2559_v41, %s3604_s13 }
 0x463   : > { %2018 = vst.msk [vmem:[%s4062_s25 + $0x4] sm:$0x1] %vm1075_vm0, %v1971_v5 }
 0x464   : > { %2915 = vrot.lane.b32.xlu0 %v2866_v60, %s3604_s13  ;;  %v1973_v46 = vpop.permute.xlu1 %1972 }
 0x465   : > { %2019 = vst.msk [vmem:[%s4062_s25 + $0x14] sm:$0x1] %vm1075_vm0, %v1973_v46 }
 0x466   : > { %v2282_v4 = vpop.permute.xlu0 %2281  ;;  %2917 = vrot.lane.b32.xlu1 %v2870_v25, %s3604_s13 }
 0x467   : > { %2329 = vst.msk [vmem:[%s4062_s25 + $0x5] sm:$0x1] %vm1075_vm0, %v2282_v4 }
 0x468   : > { %3232 = vrot.lane.b32.xlu0 %v3187_v10, %s3604_s13  ;;  %v2284_v3 = vpop.permute.xlu1 %2283 }
 0x469   : > { %2330 = vst.msk [vmem:[%s4062_s25 + $0x15] sm:$0x1] %vm1075_vm0, %v2284_v3 }
 0x46a   : > { %v1991_v8 = vpop.permute.xlu0 %1990  ;;  %3234 = vrot.lane.b32.xlu1 %v3191_v16, %s3604_s13 }
 0x46b   : > { %2028 = vst.msk [vmem:[%s4062_s25 + $0xa4] sm:$0x1] %vm1075_vm0, %v1991_v8 }
 0x46c   : > { %3216 = vrot.lane.b32.xlu0 %v3155_v48, %s3604_s13  ;;  %v1993_v17 = vpop.permute.xlu1 %1992 }
 0x46d   : > { %2029 = vst.msk [vmem:[%s4062_s25 + $0xb4] sm:$0x1] %vm1075_vm0, %v1993_v17 }
 0x46e   : > { %v1995_v14 = vpop.permute.xlu0 %1994  ;;  %3218 = vrot.lane.b32.xlu1 %v3159_v52, %s3604_s13 }
 0x46f   : > { %2030 = vst.msk [vmem:[%s4062_s25 + $0xc4] sm:$0x1] %vm1075_vm0, %v1995_v14 }
 0x470   : > { %3236 = vrot.lane.b32.xlu0 %v3195_v12, %s3604_s13  ;;  %v1997_v21 = vpop.permute.xlu1 %1996 }
 0x471   : > { %2031 = vst.msk [vmem:[%s4062_s25 + $0xd4] sm:$0x1] %vm1075_vm0, %v1997_v21 }
 0x472   : > { %v2302_v61 = vpop.permute.xlu0 %2301  ;;  %3238 = vrot.lane.b32.xlu1 %v3199_v19, %s3604_s13 }
 0x473   : > { %2339 = vst.msk [vmem:[%s4062_s25 + $0xa5] sm:$0x1] %vm1075_vm0, %v2302_v61 }
 0x474   : > { %3240 = vrot.lane.b32.xlu0 %v3203_v50, %s3604_s13  ;;  %v2304_v28 = vpop.permute.xlu1 %2303 }
 0x475   : > { %2340 = vst.msk [vmem:[%s4062_s25 + $0xb5] sm:$0x1] %vm1075_vm0, %v2304_v28 }
 0x476   : > { %v2306_v55 = vpop.permute.xlu0 %2305  ;;  %3242 = vrot.lane.b32.xlu1 %v3207_v56, %s3604_s13 }
 0x477   : > { %2341 = vst.msk [vmem:[%s4062_s25 + $0xc5] sm:$0x1] %vm1075_vm0, %v2306_v55 }
 0x478   : > { %3220 = vrot.lane.b32.xlu0 %v3163_v20, %s3604_s13  ;;  %v2308_v27 = vpop.permute.xlu1 %2307 }
 0x479   : > { %2342 = vst.msk [vmem:[%s4062_s25 + $0xd5] sm:$0x1] %vm1075_vm0, %v2308_v27 }
 0x47a   : > { %v1975_v29 = vpop.permute.xlu0 %1974  ;;  %3222 = vrot.lane.b32.xlu1 %v3167_v31, %s3604_s13 }
 0x47b   : > { %2020 = vst.msk [vmem:[%s4062_s25 + $0x24] sm:$0x1] %vm1075_vm0, %v1975_v29 }
 0x47c   : > { %3224 = vrot.lane.b32.xlu0 %v3171_v39, %s3604_s13  ;;  %v1977_v24 = vpop.permute.xlu1 %1976 }
 0x47d   : > { %2021 = vst.msk [vmem:[%s4062_s25 + $0x34] sm:$0x1] %vm1075_vm0, %v1977_v24 }
 0x47e   : > { %v1979_v62 = vpop.permute.xlu0 %1978  ;;  %3226 = vrot.lane.b32.xlu1 %v3175_v63, %s3604_s13 }
 0x47f   : > { %2022 = vst.msk [vmem:[%s4062_s25 + $0x44] sm:$0x1] %vm1075_vm0, %v1979_v62 }
 0x480   : > { %3228 = vrot.lane.b32.xlu0 %v3179_v7, %s3604_s13  ;;  %v1981_v57 = vpop.permute.xlu1 %1980 }
 0x481   : > { %2023 = vst.msk [vmem:[%s4062_s25 + $0x54] sm:$0x1] %vm1075_vm0, %v1981_v57 }
 0x482   : > { %v2286_v59 = vpop.permute.xlu0 %2285  ;;  %3230 = vrot.lane.b32.xlu1 %v3183_v34, %s3604_s13 }
 0x483   : > { %2331 = vst.msk [vmem:[%s4062_s25 + $0x25] sm:$0x1] %vm1075_vm0, %v2286_v59 }
 0x484   : > { %3244 = vrot.lane.b32.xlu0 %v3211_v6, %s3604_s13  ;;  %v2288_v36 = vpop.permute.xlu1 %2287 }
 0x485   : > { %2332 = vst.msk [vmem:[%s4062_s25 + $0x35] sm:$0x1] %vm1075_vm0, %v2288_v36 }
 0x486   : > { %v2290_v32 = vpop.permute.xlu0 %2289  ;;  %3246 = vrot.lane.b32.xlu1 %v3215_v2, %s3604_s13 }
 0x487   : > { %2333 = vst.msk [vmem:[%s4062_s25 + $0x45] sm:$0x1] %vm1075_vm0, %v2290_v32 }
 0x488   : > { %v2292_v60 = vpop.permute.xlu1 %2291 }
 0x489   : > { %2334 = vst.msk [vmem:[%s4062_s25 + $0x55] sm:$0x1] %vm1075_vm0, %v2292_v60 }
 0x48a   : > { %v1999_v5 = vpop.permute.xlu0 %1998 }
 0x48b   : > { %2032 = vst.msk [vmem:[%s4062_s25 + $0xe4] sm:$0x1] %vm1075_vm0, %v1999_v5 }
 0x48c   : > { %v2001_v9 = vpop.permute.xlu1 %2000 }
 0x48d   : > { %2033 = vst.msk [vmem:[%s4062_s25 + $0xf4] sm:$0x1] %vm1075_vm0, %v2001_v9 }
 0x48e   : > { %v2310_v0 = vpop.permute.xlu0 %2309 }
 0x48f   : > { %2343 = vst.msk [vmem:[%s4062_s25 + $0xe5] sm:$0x1] %vm1075_vm0, %v2310_v0 }
 0x490   : > { %v2312_v40 = vpop.permute.xlu1 %2311 }
 0x491   : > { %2344 = vst.msk [vmem:[%s4062_s25 + $0xf5] sm:$0x1] %vm1075_vm0, %v2312_v40 }
 0x492   : > { %v1983_v23 = vpop.permute.xlu0 %1982 }
 0x493   : > { %2024 = vst.msk [vmem:[%s4062_s25 + $0x64] sm:$0x1] %vm1075_vm0, %v1983_v23 }
 0x494   : > { %v1985_v1 = vpop.permute.xlu1 %1984 }
 0x495   : > { %2025 = vst.msk [vmem:[%s4062_s25 + $0x74] sm:$0x1] %vm1075_vm0, %v1985_v1 }
 0x496   : > { %v2294_v41 = vpop.permute.xlu0 %2293 }
 0x497   : > { %2335 = vst.msk [vmem:[%s4062_s25 + $0x65] sm:$0x1] %vm1075_vm0, %v2294_v41 }
 0x498   : > { %v2296_v42 = vpop.permute.xlu1 %2295 }
 0x499   : > { %2336 = vst.msk [vmem:[%s4062_s25 + $0x75] sm:$0x1] %vm1075_vm0, %v2296_v42 }
 0x49a   : > { %v2609_v10 = vpop.permute.xlu0 %2608 }
 0x49b   : > { %2648 = vst.msk [vmem:[%s4062_s25 + $0x86] sm:$0x1] %vm1075_vm0, %v2609_v10 }
 0x49c   : > { %v2611_v47 = vpop.permute.xlu1 %2610 }
 0x49d   : > { %2649 = vst.msk [vmem:[%s4062_s25 + $0x96] sm:$0x1] %vm1075_vm0, %v2611_v47 }
 0x49e   : > { %v2920_v4 = vpop.permute.xlu0 %2919 }
 0x49f   : > { %2959 = vst.msk [vmem:[%s4062_s25 + $0x87] sm:$0x1] %vm1075_vm0, %v2920_v4 }
 0x4a0   : > { %v2922_v46 = vpop.permute.xlu1 %2921 }
 0x4a1   : > { %2960 = vst.msk [vmem:[%s4062_s25 + $0x97] sm:$0x1] %vm1075_vm0, %v2922_v46 }
 0x4a2   : > { %v2593_v43 = vpop.permute.xlu0 %2592 }
 0x4a3   : > { %2640 = vst.msk [vmem:[%s4062_s25 + $0x6] sm:$0x1] %vm1075_vm0, %v2593_v43 }
 0x4a4   : > { %v2595_v11 = vpop.permute.xlu1 %2594 }
 0x4a5   : > { %2641 = vst.msk [vmem:[%s4062_s25 + $0x16] sm:$0x1] %vm1075_vm0, %v2595_v11 }
 0x4a6   : > { %v2904_v25 = vpop.permute.xlu0 %2903 }
 0x4a7   : > { %2951 = vst.msk [vmem:[%s4062_s25 + $0x7] sm:$0x1] %vm1075_vm0, %v2904_v25 }
 0x4a8   : > { %v2906_v48 = vpop.permute.xlu1 %2905 }
 0x4a9   : > { %2952 = vst.msk [vmem:[%s4062_s25 + $0x17] sm:$0x1] %vm1075_vm0, %v2906_v48 }
 0x4aa   : > { %v2613_v44 = vpop.permute.xlu0 %2612 }
 0x4ab   : > { %2650 = vst.msk [vmem:[%s4062_s25 + $0xa6] sm:$0x1] %vm1075_vm0, %v2613_v44 }
 0x4ac   : > { %v2615_v26 = vpop.permute.xlu1 %2614 }
 0x4ad   : > { %2651 = vst.msk [vmem:[%s4062_s25 + $0xb6] sm:$0x1] %vm1075_vm0, %v2615_v26 }
 0x4ae   : > { %v2617_v8 = vpop.permute.xlu0 %2616 }
 0x4af   : > { %2652 = vst.msk [vmem:[%s4062_s25 + $0xc6] sm:$0x1] %vm1075_vm0, %v2617_v8 }
 0x4b0   : > { %v2619_v16 = vpop.permute.xlu1 %2618 }
 0x4b1   : > { %2653 = vst.msk [vmem:[%s4062_s25 + $0xd6] sm:$0x1] %vm1075_vm0, %v2619_v16 }
 0x4b2   : > { %v2924_v3 = vpop.permute.xlu0 %2923 }
 0x4b3   : > { %2961 = vst.msk [vmem:[%s4062_s25 + $0xa7] sm:$0x1] %vm1075_vm0, %v2924_v3 }
 0x4b4   : > { %v2926_v51 = vpop.permute.xlu1 %2925 }
 0x4b5   : > { %2962 = vst.msk [vmem:[%s4062_s25 + $0xb7] sm:$0x1] %vm1075_vm0, %v2926_v51 }
 0x4b6   : > { %v2928_v45 = vpop.permute.xlu0 %2927 }
 0x4b7   : > { %2963 = vst.msk [vmem:[%s4062_s25 + $0xc7] sm:$0x1] %vm1075_vm0, %v2928_v45 }
 0x4b8   : > { %v2930_v12 = vpop.permute.xlu1 %2929 }
 0x4b9   : > { %2964 = vst.msk [vmem:[%s4062_s25 + $0xd7] sm:$0x1] %vm1075_vm0, %v2930_v12 }
 0x4ba   : > { %v2597_v14 = vpop.permute.xlu0 %2596 }
 0x4bb   : > { %2642 = vst.msk [vmem:[%s4062_s25 + $0x26] sm:$0x1] %vm1075_vm0, %v2597_v14 }
 0x4bc   : > { %v2599_v53 = vpop.permute.xlu1 %2598 }
 0x4bd   : > { %2643 = vst.msk [vmem:[%s4062_s25 + $0x36] sm:$0x1] %vm1075_vm0, %v2599_v53 }
 0x4be   : > { %v2601_v15 = vpop.permute.xlu0 %2600 }
 0x4bf   : > { %2644 = vst.msk [vmem:[%s4062_s25 + $0x46] sm:$0x1] %vm1075_vm0, %v2601_v15 }
 0x4c0   : > { %v2603_v17 = vpop.permute.xlu1 %2602 }
 0x4c1   : > { %2645 = vst.msk [vmem:[%s4062_s25 + $0x56] sm:$0x1] %vm1075_vm0, %v2603_v17 }
 0x4c2   : > { %v2908_v52 = vpop.permute.xlu0 %2907 }
 0x4c3   : > { %2953 = vst.msk [vmem:[%s4062_s25 + $0x27] sm:$0x1] %vm1075_vm0, %v2908_v52 }
 0x4c4   : > { %v2910_v13 = vpop.permute.xlu1 %2909 }
 0x4c5   : > { %2954 = vst.msk [vmem:[%s4062_s25 + $0x37] sm:$0x1] %vm1075_vm0, %v2910_v13 }
 0x4c6   : > { %v2912_v38 = vpop.permute.xlu0 %2911 }
 0x4c7   : > { %2955 = vst.msk [vmem:[%s4062_s25 + $0x47] sm:$0x1] %vm1075_vm0, %v2912_v38 }
 0x4c8   : > { %v2914_v50 = vpop.permute.xlu1 %2913 }
 0x4c9   : > { %2956 = vst.msk [vmem:[%s4062_s25 + $0x57] sm:$0x1] %vm1075_vm0, %v2914_v50 }
 0x4ca   : > { %v2621_v61 = vpop.permute.xlu0 %2620 }
 0x4cb   : > { %2654 = vst.msk [vmem:[%s4062_s25 + $0xe6] sm:$0x1] %vm1075_vm0, %v2621_v61 }
 0x4cc   : > { %v2623_v21 = vpop.permute.xlu1 %2622 }
 0x4cd   : > { %2655 = vst.msk [vmem:[%s4062_s25 + $0xf6] sm:$0x1] %vm1075_vm0, %v2623_v21 }
 0x4ce   : > { %v2932_v18 = vpop.permute.xlu0 %2931 }
 0x4cf   : > { %2965 = vst.msk [vmem:[%s4062_s25 + $0xe7] sm:$0x1] %vm1075_vm0, %v2932_v18 }
 0x4d0   : > { %v2934_v54 = vpop.permute.xlu1 %2933 }
 0x4d1   : > { %2966 = vst.msk [vmem:[%s4062_s25 + $0xf7] sm:$0x1] %vm1075_vm0, %v2934_v54 }
 0x4d2   : > { %v2605_v19 = vpop.permute.xlu0 %2604 }
 0x4d3   : > { %2646 = vst.msk [vmem:[%s4062_s25 + $0x66] sm:$0x1] %vm1075_vm0, %v2605_v19 }
 0x4d4   : > { %v2607_v55 = vpop.permute.xlu1 %2606 }
 0x4d5   : > { %2647 = vst.msk [vmem:[%s4062_s25 + $0x76] sm:$0x1] %vm1075_vm0, %v2607_v55 }
 0x4d6   : > { %v2916_v20 = vpop.permute.xlu0 %2915 }
 0x4d7   : > { %2957 = vst.msk [vmem:[%s4062_s25 + $0x67] sm:$0x1] %vm1075_vm0, %v2916_v20 }
 0x4d8   : > { %v2918_v37 = vpop.permute.xlu1 %2917 }
 0x4d9   : > { %2958 = vst.msk [vmem:[%s4062_s25 + $0x77] sm:$0x1] %vm1075_vm0, %v2918_v37 }
 0x4da   : > { %v3233_v58 = vpop.permute.xlu0 %3232 }
 0x4db   : > { %3272 = vst.msk [vmem:[%s4062_s25 + $0x88] sm:$0x1] %vm1075_vm0, %v3233_v58 }
 0x4dc   : > { %v3235_v56 = vpop.permute.xlu1 %3234 }
 0x4dd   : > { %3273 = vst.msk [vmem:[%s4062_s25 + $0x98] sm:$0x1] %vm1075_vm0, %v3235_v56 }
 0x4de   : > { %v3217_v28 = vpop.permute.xlu0 %3216 }
 0x4df   : > { %3264 = vst.msk [vmem:[%s4062_s25 + $0x8] sm:$0x1] %vm1075_vm0, %v3217_v28 }
 0x4e0   : > { %v3219_v39 = vpop.permute.xlu1 %3218 }
 0x4e1   : > { %3265 = vst.msk [vmem:[%s4062_s25 + $0x18] sm:$0x1] %vm1075_vm0, %v3219_v39 }
 0x4e2   : > { %v3237_v49 = vpop.permute.xlu0 %3236 }
 0x4e3   : > { %3274 = vst.msk [vmem:[%s4062_s25 + $0xa8] sm:$0x1] %vm1075_vm0, %v3237_v49 }
 0x4e4   : > { %v3239_v30 = vpop.permute.xlu1 %3238 }
 0x4e5   : > { %3275 = vst.msk [vmem:[%s4062_s25 + $0xb8] sm:$0x1] %vm1075_vm0, %v3239_v30 }
 0x4e6   : > { %v3241_v29 = vpop.permute.xlu0 %3240 }
 0x4e7   : > { %3276 = vst.msk [vmem:[%s4062_s25 + $0xc8] sm:$0x1] %vm1075_vm0, %v3241_v29 }
 0x4e8   : > { %v3243_v31 = vpop.permute.xlu1 %3242 }
 0x4e9   : > { %3277 = vst.msk [vmem:[%s4062_s25 + $0xd8] sm:$0x1] %vm1075_vm0, %v3243_v31 }
 0x4ea   : > { %v3221_v27 = vpop.permute.xlu0 %3220 }
 0x4eb   : > { %3266 = vst.msk [vmem:[%s4062_s25 + $0x28] sm:$0x1] %vm1075_vm0, %v3221_v27 }
 0x4ec   : > { %v3223_v62 = vpop.permute.xlu1 %3222 }
 0x4ed   : > { %3267 = vst.msk [vmem:[%s4062_s25 + $0x38] sm:$0x1] %vm1075_vm0, %v3223_v62 }
 0x4ee   : > { %v3225_v22 = vpop.permute.xlu0 %3224 }
 0x4ef   : > { %3268 = vst.msk [vmem:[%s4062_s25 + $0x48] sm:$0x1] %vm1075_vm0, %v3225_v22 }
 0x4f0   : > { %v3227_v33 = vpop.permute.xlu1 %3226 }
 0x4f1   : > { %3269 = vst.msk [vmem:[%s4062_s25 + $0x58] sm:$0x1] %vm1075_vm0, %v3227_v33 }
 0x4f2   : > { %v3229_v7 = vpop.permute.xlu0 %3228 }
 0x4f3   : > { %3270 = vst.msk [vmem:[%s4062_s25 + $0x68] sm:$0x1] %vm1075_vm0, %v3229_v7 }
 0x4f4   : > { %v3231_v63 = vpop.permute.xlu1 %3230 }
 0x4f5   : > { %3271 = vst.msk [vmem:[%s4062_s25 + $0x78] sm:$0x1] %vm1075_vm0, %v3231_v63 }
 0x4f6   : > { %v3245_v24 = vpop.permute.xlu0 %3244 }
 0x4f7   : > { %3278 = vst.msk [vmem:[%s4062_s25 + $0xe8] sm:$0x1] %vm1075_vm0, %v3245_v24 }
 0x4f8   : > { %v3247_v59 = vpop.permute.xlu1 %3246 }
 0x4f9   : > { %3279 = vst.msk [vmem:[%s4062_s25 + $0xf8] sm:$0x1] %vm1075_vm0, %v3247_v59 }
 0x4fa PF: > { %s13_s12 = sadd.s32 1, %s3584_s12  }
 0x4fb   : > { %p10_p4 = scmp.ge.s32.totalorder %s13_s12, 4  }
 0x4fd   :  { %12 = sbr.rel (!%p10_p4) target bundleno = 1 (0x1), region = 70 }

// kernel: critic_forward.9
= control target key start
LH: loop header
LB: loop body
LE: loop exit
PB: predicated region body
PF: predicated region fallthrough
CT: control target
= control target key end

     0   :  { %s1510_s30 = smov 0   ;;  %s1815_s0 = inlined_call_operand.vmem [shape: f32[2,256], index: 0, kind: input, shape index: {}]   ;;  %s1816_s1 = inlined_call_operand.vmem [shape: f32[2,256,256], index: 1, kind: input, shape index: {}]   ;;  %s1817_s2 = inlined_call_operand.vmem [shape: f32[2,1,256], index: 2, kind: input, shape index: {}]   ;;  %s1818_s3 = inlined_call_operand.vmem [shape: f32[2,256,256], index: 3, kind: input, shape index: {}]   ;;  %s1819_s4 = inlined_call_operand.vmem [shape: f32[2,1,256], index: 4, kind: input, shape index: {}]   ;;  %s1820_s5 = inlined_call_operand.vmem [shape: f32[2,256,256], index: 5, kind: input, shape index: {}]   ;;  %s1821_s6 = inlined_call_operand.vmem [shape: f32[2,1,256], index: 6, kind: input, shape index: {}]   ;;  %s1822_s7 = inlined_call_operand.vmem [shape: f32[2,256,1], index: 7, kind: input, shape index: {}]   ;;  %s1823_s8 = inlined_call_operand.vmem [shape: f32[2,1,1], index: 8, kind: input, shape index: {}]   ;;  %s1824_s9 = inlined_call_operand.vmem [shape: f32[2,2,1], index: 9, kind: output, shape index: {}]  }
   0x1 LB: > { %s1160_s10 = sadd.s32 4294967295, %s1458_s30   ;;  %p1164_p0 = scmp.ge.s32.totalorder %s1458_s30, 1  ;;  %s1458_s30 = sphi %s1510_s30, %s19_s30  }
   0x2   : > { %p352_p1 = scmp.lt.s32.totalorder %s1458_s30, 3 }
   0x4   : > { %p353_p2 = pnand %p1164_p0, %p352_p1 }
   0x5   : > { %p417_p3 = scmp.lt.s32.totalorder (!%p353_p2), %s1160_s10, 1  ;;  %v1521_v0 = vld.sshfl [vmem:[%s1815_s0] sm:$0x33 pattern:$0x76325410] (!%p353_p2)  ;;  %vm1024_vm0 = vcmask (!%p353_p2), 1024  }
   0x6   : > { %356 = sbr.rel (%p353_p2) target bundleno = 955 (0x3bb), region = 56  ;;  %v541_v1 = vcombine.high (!%p353_p2), %v1521_v0, %v1521_v0 }
   0x8   : > { %608 = vmatprep.mubr.f32.mxu0 (!%p353_p2), %v541_v1 }
   0xd   : > { %s1826_s10 = smov (!%p417_p3, %s1160_s10), 1 }
   0xe   : > { %s1528_s13 = sshll.u32 %s1826_s10, 9  ;;  %s1736_s23 = sshll.u32 %s1826_s10, 1 }
   0xf   : > { %s1534_s16 = scalar_lea.vmem %s1816_s1, %s1528_s13  ;;  %s1566_s19 = scalar_lea.vmem %s1818_s3, %s1528_s13 }
  0x10   : > { %v458_v2 = vld [vmem:[%s1534_s16 + $0x8] sm:$0xff]  ;;  %v460_v3 = vld [vmem:[%s1534_s16 + $0x18] sm:$0xff]  ;;  %v457_v4 = vld [vmem:[%s1534_s16] sm:$0xff]  ;;  %s1675_s22 = scalar_lea.vmem %s1820_s5, %s1528_s13  ;;  %s425_s26 = scalar_lea.vmem %s1817_s2, %s1736_s23 }
  0x11   : > { %v1220_v5 = vpack.c.bf16 %v460_v3, %v458_v2  ;;  %v459_v6 = vld [vmem:[%s1534_s16 + $0x10] sm:$0xff]  ;;  %v462_v7 = vld [vmem:[%s1534_s16 + $0x28] sm:$0xff]  ;;  %v464_v8 = vld [vmem:[%s1534_s16 + $0x38] sm:$0xff]  ;;  %s1184_s27 = sshll.u32 %s1826_s10, 8  ;;  %s434_s14 = scalar_lea.vmem %s1819_s4, %s1736_s23 }
  0x12   : > { %v1222_v9 = vpack.c.bf16 %v459_v6, %v457_v4  ;;  %v1224_v10 = vpack.c.bf16 %v464_v8, %v462_v7  ;;  %v461_v11 = vld [vmem:[%s1534_s16 + $0x20] sm:$0xff]  ;;  %v463_v12 = vld [vmem:[%s1534_s16 + $0x30] sm:$0xff]  ;;  %v466_v13 = vld [vmem:[%s1534_s16 + $0x48] sm:$0xff]  ;;  %s1758_s11 = scalar_lea.vmem %s1822_s7, %s1184_s27  ;;  %s443_s17 = scalar_lea.vmem %s1821_s6, %s1736_s23 }
  0x13   : > { %1221 = vmatprep.subr.bf16.mxu0 %v1220_v5  ;;  %v468_v14 = vld [vmem:[%s1534_s16 + $0x58] sm:$0xff]  ;;  %v1226_v15 = vpack.c.bf16 %v463_v12, %v461_v11  ;;  %v465_v17 = vld [vmem:[%s1534_s16 + $0x40] sm:$0xff]  ;;  %v467_v18 = vld [vmem:[%s1534_s16 + $0x50] sm:$0xff]  ;;  %s451_s20 = scalar_lea.vmem %s1823_s8, %s1826_s10  ;;  %s455_s24 = scalar_lea.vmem %s1824_s9, %s1736_s23 }
  0x14   : > { %1223 = vmatpush1.bf16.msra.mxu0 %v1222_v9  ;;  %v1228_v16 = vpack.c.bf16 %v468_v14, %v466_v13  ;;  %v470_v19 = vld [vmem:[%s1534_s16 + $0x68] sm:$0xff]  ;;  %v472_v20 = vld [vmem:[%s1534_s16 + $0x78] sm:$0xff]  ;;  %v1230_v21 = vpack.c.bf16 %v467_v18, %v465_v17  ;;  %v469_v23 = vld [vmem:[%s1534_s16 + $0x60] sm:$0xff] }
  0x15   : > { %1225 = vmatprep.subr.bf16.mxu0 %v1224_v10  ;;  %v1232_v22 = vpack.c.bf16 %v472_v20, %v470_v19  ;;  %v471_v24 = vld [vmem:[%s1534_s16 + $0x70] sm:$0xff]  ;;  %v474_v25 = vld [vmem:[%s1534_s16 + $0x88] sm:$0xff]  ;;  %v476_v26 = vld [vmem:[%s1534_s16 + $0x98] sm:$0xff] }
  0x16   : > { %v1234_v27 = vpack.c.bf16 %v471_v24, %v469_v23  ;;  %v1236_v28 = vpack.c.bf16 %v476_v26, %v474_v25  ;;  %v473_v29 = vld [vmem:[%s1534_s16 + $0x80] sm:$0xff]  ;;  %v475_v30 = vld [vmem:[%s1534_s16 + $0x90] sm:$0xff]  ;;  %v478_v31 = vld [vmem:[%s1534_s16 + $0xa8] sm:$0xff] }
  0x17   : > { %v480_v32 = vld [vmem:[%s1534_s16 + $0xb8] sm:$0xff]  ;;  %v1238_v33 = vpack.c.bf16 %v475_v30, %v473_v29  ;;  %v477_v35 = vld [vmem:[%s1534_s16 + $0xa0] sm:$0xff]  ;;  %v479_v36 = vld [vmem:[%s1534_s16 + $0xb0] sm:$0xff] }
  0x18   : > { %1227 = vmatpush1.bf16.msra.mxu0 %v1226_v15  ;;  %v1240_v34 = vpack.c.bf16 %v480_v32, %v478_v31  ;;  %v482_v37 = vld [vmem:[%s1534_s16 + $0xc8] sm:$0xff]  ;;  %v484_v38 = vld [vmem:[%s1534_s16 + $0xd8] sm:$0xff]  ;;  %v1242_v39 = vpack.c.bf16 %v479_v36, %v477_v35  ;;  %v481_v40 = vld [vmem:[%s1534_s16 + $0xc0] sm:$0xff] }
  0x19   : > { %1229 = vmatprep.subr.bf16.mxu0 %v1228_v16  ;;  %v483_v41 = vld [vmem:[%s1534_s16 + $0xd0] sm:$0xff]  ;;  %v486_v42 = vld [vmem:[%s1534_s16 + $0xe8] sm:$0xff]  ;;  %v1244_v43 = vpack.c.bf16 %v484_v38, %v482_v37  ;;  %v488_v44 = vld [vmem:[%s1534_s16 + $0xf8] sm:$0xff] }
  0x1a   : > { %v618_v45 = vld [vmem:[%s1566_s19 + $0x8] sm:$0xff]  ;;  %v620_v46 = vld [vmem:[%s1566_s19 + $0x18] sm:$0xff]  ;;  %v617_v48 = vld [vmem:[%s1566_s19] sm:$0xff]  ;;  %v1246_v55 = vpack.c.bf16 %v483_v41, %v481_v40  ;;  %v1248_v59 = vpack.c.bf16 %v488_v44, %v486_v42 }
  0x1b   : > { %v1284_v47 = vpack.c.bf16 %v620_v46, %v618_v45  ;;  %v619_v49 = vld [vmem:[%s1566_s19 + $0x10] sm:$0xff]  ;;  %v622_v50 = vld [vmem:[%s1566_s19 + $0x28] sm:$0xff]  ;;  %v624_v52 = vld [vmem:[%s1566_s19 + $0x38] sm:$0xff] }
  0x1c   : > { %1231 = vmatpush1.bf16.msra.mxu0 %v1230_v21  ;;  %v1286_v51 = vpack.c.bf16 %v619_v49, %v617_v48  ;;  %v621_v53 = vld [vmem:[%s1566_s19 + $0x20] sm:$0xff]  ;;  %v623_v54 = vld [vmem:[%s1566_s19 + $0x30] sm:$0xff]  ;;  %v1288_v56 = vpack.c.bf16 %v624_v52, %v622_v50  ;;  %v626_v57 = vld [vmem:[%s1566_s19 + $0x48] sm:$0xff] }
  0x1d   : > { %1233 = vmatprep.subr.bf16.mxu0 %v1232_v22  ;;  %1285 = vmatprep.subr.bf16.mxu1 %v1284_v47  ;;  %v628_v58 = vld [vmem:[%s1566_s19 + $0x58] sm:$0xff]  ;;  %v485_v60 = vld [vmem:[%s1534_s16 + $0xe0] sm:$0xff]  ;;  %v487_v61 = vld [vmem:[%s1534_s16 + $0xf0] sm:$0xff]  ;;  %v1290_v63 = vpack.c.bf16 %v623_v54, %v621_v53 }
  0x1e   : > { %v490_v62 = vld [vmem:[%s1534_s16 + $0x108] sm:$0xff]  ;;  %1287 = vmatpush1.bf16.msra.mxu1 %v1286_v51  ;;  %v492_v1 = vld [vmem:[%s1534_s16 + $0x118] sm:$0xff]  ;;  %v1292_v2 = vpack.c.bf16 %v628_v58, %v626_v57  ;;  %v625_v3 = vld [vmem:[%s1566_s19 + $0x40] sm:$0xff]  ;;  %v1250_v7 = vpack.c.bf16 %v487_v61, %v485_v60 }
  0x1f   : > { %1289 = vmatprep.subr.bf16.mxu1 %v1288_v56  ;;  %v627_v4 = vld [vmem:[%s1566_s19 + $0x50] sm:$0xff]  ;;  %v630_v5 = vld [vmem:[%s1566_s19 + $0x68] sm:$0xff]  ;;  %v632_v6 = vld [vmem:[%s1566_s19 + $0x78] sm:$0xff]  ;;  %v1252_v8 = vpack.c.bf16 %v492_v1, %v490_v62 }
  0x20   : > { %1235 = vmatpush1.bf16.msra.mxu0 %v1234_v27  ;;  %v489_v9 = vld [vmem:[%s1534_s16 + $0x100] sm:$0xff]  ;;  %v491_v10 = vld [vmem:[%s1534_s16 + $0x110] sm:$0xff]  ;;  %v494_v11 = vld [vmem:[%s1534_s16 + $0x128] sm:$0xff]  ;;  %v1294_v12 = vpack.c.bf16 %v627_v4, %v625_v3  ;;  %v1296_v14 = vpack.c.bf16 %v632_v6, %v630_v5 }
  0x21   : > { %1237 = vmatprep.subr.bf16.mxu0 %v1236_v28  ;;  %v496_v13 = vld [vmem:[%s1534_s16 + $0x138] sm:$0xff]  ;;  %v629_v15 = vld [vmem:[%s1566_s19 + $0x60] sm:$0xff]  ;;  %v631_v16 = vld [vmem:[%s1566_s19 + $0x70] sm:$0xff]  ;;  %v1254_v19 = vpack.c.bf16 %v491_v10, %v489_v9 }
  0x22   : > { %1291 = vmatpush1.bf16.msra.mxu1 %v1290_v63  ;;  %v634_v17 = vld [vmem:[%s1566_s19 + $0x88] sm:$0xff]  ;;  %v636_v18 = vld [vmem:[%s1566_s19 + $0x98] sm:$0xff]  ;;  %v1256_v20 = vpack.c.bf16 %v496_v13, %v494_v11  ;;  %v493_v21 = vld [vmem:[%s1534_s16 + $0x120] sm:$0xff]  ;;  %v1298_v24 = vpack.c.bf16 %v631_v16, %v629_v15 }
  0x23   : > { %1293 = vmatprep.subr.bf16.mxu1 %v1292_v2  ;;  %v495_v22 = vld [vmem:[%s1534_s16 + $0x130] sm:$0xff]  ;;  %v498_v23 = vld [vmem:[%s1534_s16 + $0x148] sm:$0xff]  ;;  %v500_v25 = vld [vmem:[%s1534_s16 + $0x158] sm:$0xff]  ;;  %v1300_v26 = vpack.c.bf16 %v636_v18, %v634_v17 }
  0x24   : > { %1239 = vmatpush1.bf16.msra.mxu0 %v1238_v33  ;;  %v633_v27 = vld [vmem:[%s1566_s19 + $0x80] sm:$0xff]  ;;  %v635_v28 = vld [vmem:[%s1566_s19 + $0x90] sm:$0xff]  ;;  %v638_v29 = vld [vmem:[%s1566_s19 + $0xa8] sm:$0xff]  ;;  %v1258_v31 = vpack.c.bf16 %v495_v22, %v493_v21  ;;  %v1260_v32 = vpack.c.bf16 %v500_v25, %v498_v23 }
  0x25   : > { %1241 = vmatprep.subr.bf16.mxu0 %v1240_v34  ;;  %v640_v30 = vld [vmem:[%s1566_s19 + $0xb8] sm:$0xff]  ;;  %v497_v33 = vld [vmem:[%s1534_s16 + $0x140] sm:$0xff]  ;;  %v499_v34 = vld [vmem:[%s1534_s16 + $0x150] sm:$0xff]  ;;  %v1302_v36 = vpack.c.bf16 %v635_v28, %v633_v27 }
  0x26   : > { %1295 = vmatpush1.bf16.msra.mxu1 %v1294_v12  ;;  %v502_v35 = vld [vmem:[%s1534_s16 + $0x168] sm:$0xff]  ;;  %v504_v37 = vld [vmem:[%s1534_s16 + $0x178] sm:$0xff]  ;;  %v1304_v38 = vpack.c.bf16 %v640_v30, %v638_v29  ;;  %v639_v40 = vld [vmem:[%s1566_s19 + $0xb0] sm:$0xff] }
  0x27   : > { %1297 = vmatprep.subr.bf16.mxu1 %v1296_v14  ;;  %v642_v41 = vld [vmem:[%s1566_s19 + $0xc8] sm:$0xff]  ;;  %v644_v42 = vld [vmem:[%s1566_s19 + $0xd8] sm:$0xff]  ;;  %v1264_v44 = vpack.c.bf16 %v504_v37, %v502_v35  ;;  %v501_v45 = vld [vmem:[%s1534_s16 + $0x160] sm:$0xff] }
  0x28   : > { %1243 = vmatpush1.bf16.msra.mxu0 %v1242_v39  ;;  %v637_v39 = vld [vmem:[%s1566_s19 + $0xa0] sm:$0xff]  ;;  %v503_v46 = vld [vmem:[%s1534_s16 + $0x170] sm:$0xff]  ;;  %v506_v47 = vld [vmem:[%s1534_s16 + $0x188] sm:$0xff]  ;;  %v1308_v50 = vpack.c.bf16 %v644_v42, %v642_v41 }
  0x29   : > { %1245 = vmatprep.subr.bf16.mxu0 %v1244_v43  ;;  %v1262_v43 = vpack.c.bf16 %v499_v34, %v497_v33  ;;  %v1306_v48 = vpack.c.bf16 %v639_v40, %v637_v39  ;;  %v508_v49 = vld [vmem:[%s1534_s16 + $0x198] sm:$0xff]  ;;  %v641_v51 = vld [vmem:[%s1566_s19 + $0xc0] sm:$0xff]  ;;  %v643_v52 = vld [vmem:[%s1566_s19 + $0xd0] sm:$0xff] }
  0x2a   : > { %1299 = vmatpush1.bf16.msra.mxu1 %v1298_v24  ;;  %v646_v53 = vld [vmem:[%s1566_s19 + $0xe8] sm:$0xff]  ;;  %v648_v54 = vld [vmem:[%s1566_s19 + $0xf8] sm:$0xff]  ;;  %v1268_v56 = vpack.c.bf16 %v508_v49, %v506_v47  ;;  %v505_v57 = vld [vmem:[%s1534_s16 + $0x180] sm:$0xff]  ;;  %v1310_v60 = vpack.c.bf16 %v643_v52, %v641_v51 }
  0x2b   : > { %1301 = vmatprep.subr.bf16.mxu1 %v1300_v26  ;;  %v507_v58 = vld [vmem:[%s1534_s16 + $0x190] sm:$0xff]  ;;  %v512_v61 = vld [vmem:[%s1534_s16 + $0x1b8] sm:$0xff]  ;;  %v1312_v62 = vpack.c.bf16 %v648_v54, %v646_v53  ;;  %v645_v63 = vld [vmem:[%s1566_s19 + $0xe0] sm:$0xff] }
  0x2c   : > { %1247 = vmatpush1.bf16.msra.mxu0 %v1246_v55  ;;  %v1266_v55 = vpack.c.bf16 %v503_v46, %v501_v45  ;;  %v647_v1 = vld [vmem:[%s1566_s19 + $0xf0] sm:$0xff]  ;;  %v650_v2 = vld [vmem:[%s1566_s19 + $0x108] sm:$0xff]  ;;  %v652_v3 = vld [vmem:[%s1566_s19 + $0x118] sm:$0xff]  ;;  %v1270_v4 = vpack.c.bf16 %v507_v58, %v505_v57 }
  0x2d   : > { %1249 = vmatprep.subr.bf16.mxu0 %v1248_v59  ;;  %v510_v59 = vld [vmem:[%s1534_s16 + $0x1a8] sm:$0xff]  ;;  %v509_v6 = vld [vmem:[%s1534_s16 + $0x1a0] sm:$0xff]  ;;  %v1314_v9 = vpack.c.bf16 %v647_v1, %v645_v63  ;;  %v516_v10 = vld [vmem:[%s1534_s16 + $0x1d8] sm:$0xff]  ;;  %v1316_v11 = vpack.c.bf16 %v652_v3, %v650_v2 }
  0x2e   : > { %1303 = vmatpush1.bf16.msra.mxu1 %v1302_v36  ;;  %v1272_v5 = vpack.c.bf16 %v512_v61, %v510_v59  ;;  %v649_v12 = vld [vmem:[%s1566_s19 + $0x100] sm:$0xff]  ;;  %v651_v13 = vld [vmem:[%s1566_s19 + $0x110] sm:$0xff]  ;;  %v654_v14 = vld [vmem:[%s1566_s19 + $0x128] sm:$0xff] }
  0x2f   : > { %1305 = vmatprep.subr.bf16.mxu1 %v1304_v38  ;;  %v656_v15 = vld [vmem:[%s1566_s19 + $0x138] sm:$0xff]  ;;  %v513_v18 = vld [vmem:[%s1534_s16 + $0x1c0] sm:$0xff]  ;;  %v1318_v21 = vpack.c.bf16 %v651_v13, %v649_v12  ;;  %v655_v25 = vld [vmem:[%s1566_s19 + $0x130] sm:$0xff] }
  0x30   : > { %1251 = vmatpush1.bf16.msra.mxu0 %v1250_v7  ;;  %v511_v7 = vld [vmem:[%s1534_s16 + $0x1b0] sm:$0xff]  ;;  %v520_v22 = vld [vmem:[%s1534_s16 + $0x1f8] sm:$0xff]  ;;  %v1320_v23 = vpack.c.bf16 %v656_v15, %v654_v14  ;;  %v653_v24 = vld [vmem:[%s1566_s19 + $0x120] sm:$0xff] }
  0x31   : > { %1253 = vmatprep.subr.bf16.mxu0 %v1252_v8  ;;  %v514_v8 = vld [vmem:[%s1534_s16 + $0x1c8] sm:$0xff]  ;;  %v1274_v16 = vpack.c.bf16 %v511_v7, %v509_v6  ;;  %v660_v27 = vld [vmem:[%s1566_s19 + $0x158] sm:$0xff]  ;;  %v517_v30 = vld [vmem:[%s1534_s16 + $0x1e0] sm:$0xff] }
  0x32   : > { %1307 = vmatpush1.bf16.msra.mxu1 %v1306_v48  ;;  %v1276_v17 = vpack.c.bf16 %v516_v10, %v514_v8  ;;  %v658_v26 = vld [vmem:[%s1566_s19 + $0x148] sm:$0xff]  ;;  %v657_v34 = vld [vmem:[%s1566_s19 + $0x140] sm:$0xff]  ;;  %v659_v35 = vld [vmem:[%s1566_s19 + $0x150] sm:$0xff] }
  0x33   : > { %1309 = vmatprep.subr.bf16.mxu1 %v1308_v50  ;;  %v1324_v33 = vpack.c.bf16 %v660_v27, %v658_v26  ;;  %v662_v36 = vld [vmem:[%s1566_s19 + $0x168] sm:$0xff]  ;;  %v664_v37 = vld [vmem:[%s1566_s19 + $0x178] sm:$0xff]  ;;  %v1326_v39 = vpack.c.bf16 %v659_v35, %v657_v34  ;;  %v661_v41 = vld [vmem:[%s1566_s19 + $0x160] sm:$0xff] }
  0x34   : > { %1255 = vmatpush1.bf16.msra.mxu0 %v1254_v19  ;;  %v515_v19 = vld [vmem:[%s1534_s16 + $0x1d0] sm:$0xff]  ;;  %v1328_v40 = vpack.c.bf16 %v664_v37, %v662_v36  ;;  %v665_v47 = vld [vmem:[%s1566_s19 + $0x180] sm:$0xff]  ;;  %v670_v49 = vld [vmem:[%s1566_s19 + $0x1a8] sm:$0xff] }
  0x35   : > { %1257 = vmatprep.subr.bf16.mxu0 %v1256_v20  ;;  %v518_v20 = vld [vmem:[%s1534_s16 + $0x1e8] sm:$0xff]  ;;  %v1278_v28 = vpack.c.bf16 %v515_v19, %v513_v18  ;;  %v663_v42 = vld [vmem:[%s1566_s19 + $0x170] sm:$0xff]  ;;  %v672_v50 = vld [vmem:[%s1566_s19 + $0x1b8] sm:$0xff] }
  0x36   : > { %1311 = vmatpush1.bf16.msra.mxu1 %v1310_v60  ;;  %v1280_v29 = vpack.c.bf16 %v520_v22, %v518_v20  ;;  %v1330_v45 = vpack.c.bf16 %v663_v42, %v661_v41  ;;  %v667_v48 = vld [vmem:[%s1566_s19 + $0x190] sm:$0xff]  ;;  %v1336_v52 = vpack.c.bf16 %v672_v50, %v670_v49  ;;  %v669_v53 = vld [vmem:[%s1566_s19 + $0x1a0] sm:$0xff]  ;;  %v678_v61 = vld [vmem:[%s1566_s19 + $0x1e8] sm:$0xff] }
  0x37   : > { %1313 = vmatprep.subr.bf16.mxu1 %v1312_v62  ;;  %v1334_v51 = vpack.c.bf16 %v667_v48, %v665_v47  ;;  %v671_v54 = vld [vmem:[%s1566_s19 + $0x1b0] sm:$0xff]  ;;  %v673_v58 = vld [vmem:[%s1566_s19 + $0x1c0] sm:$0xff]  ;;  %v680_v62 = vld [vmem:[%s1566_s19 + $0x1f8] sm:$0xff] }
  0x38   : > { %1259 = vmatpush1.bf16.msra.mxu0 %v1258_v31  ;;  %v519_v31 = vld [vmem:[%s1534_s16 + $0x1f0] sm:$0xff]  ;;  %v1338_v57 = vpack.c.bf16 %v671_v54, %v669_v53  ;;  %v1344_v63 = vpack.c.bf16 %v680_v62, %v678_v61  ;;  %v677_v1 = vld [vmem:[%s1566_s19 + $0x1e0] sm:$0xff]  ;;  %v773_v10 = vld [vmem:[%s1675_s22 + $0x38] sm:$0xff] }
  0x39   : > { %1261 = vmatprep.subr.bf16.mxu0 %v1260_v32  ;;  %v1322_v32 = vpack.c.bf16 %v655_v25, %v653_v24  ;;  %v1282_v38 = vpack.c.bf16 %v519_v31, %v517_v30  ;;  %v675_v59 = vld [vmem:[%s1566_s19 + $0x1d0] sm:$0xff]  ;;  %v766_v6 = vld [vmem:[%s1675_s22] sm:$0xff]  ;;  %v775_v15 = vld [vmem:[%s1675_s22 + $0x48] sm:$0xff] }
  0x3a   : > { %1315 = vmatpush1.bf16.msra.mxu1 %v1314_v9  ;;  %v1342_v60 = vpack.c.bf16 %v675_v59, %v673_v58  ;;  %v679_v2 = vld [vmem:[%s1566_s19 + $0x1f0] sm:$0xff]  ;;  %v771_v9 = vld [vmem:[%s1675_s22 + $0x28] sm:$0xff]  ;;  %v770_v13 = vld [vmem:[%s1675_s22 + $0x20] sm:$0xff] }
  0x3b   : > { %1317 = vmatprep.subr.bf16.mxu1 %v1316_v11  ;;  %v1346_v3 = vpack.c.bf16 %v679_v2, %v677_v1  ;;  %v768_v8 = vld [vmem:[%s1675_s22 + $0x10] sm:$0xff]  ;;  %v1352_v12 = vpack.c.bf16 %v773_v10, %v771_v9  ;;  %v774_v19 = vld [vmem:[%s1675_s22 + $0x40] sm:$0xff]  ;;  %v781_v22 = vld [vmem:[%s1675_s22 + $0x78] sm:$0xff] }
  0x3c   : > { %1263 = vmatpush1.bf16.msra.mxu0 %v1262_v43  ;;  %v666_v43 = vld [vmem:[%s1566_s19 + $0x188] sm:$0xff]  ;;  %v1350_v11 = vpack.c.bf16 %v768_v8, %v766_v6  ;;  %v772_v14 = vld [vmem:[%s1675_s22 + $0x30] sm:$0xff]  ;;  %v778_v25 = vld [vmem:[%s1675_s22 + $0x60] sm:$0xff] }
  0x3d   : > { %1265 = vmatprep.subr.bf16.mxu0 %v1264_v44  ;;  %v668_v44 = vld [vmem:[%s1566_s19 + $0x198] sm:$0xff]  ;;  %v776_v20 = vld [vmem:[%s1675_s22 + $0x50] sm:$0xff]  ;;  %v783_v27 = vld [vmem:[%s1675_s22 + $0x88] sm:$0xff] }
  0x3e   : > { %1319 = vmatpush1.bf16.msra.mxu1 %v1318_v21  ;;  %v1332_v46 = vpack.c.bf16 %v668_v44, %v666_v43  ;;  %v779_v21 = vld [vmem:[%s1675_s22 + $0x68] sm:$0xff]  ;;  %v780_v26 = vld [vmem:[%s1675_s22 + $0x70] sm:$0xff]  ;;  %v782_v31 = vld [vmem:[%s1675_s22 + $0x80] sm:$0xff] }
  0x3f   : > { %1321 = vmatprep.subr.bf16.mxu1 %v1320_v23  ;;  %v1358_v23 = vpack.c.bf16 %v776_v20, %v774_v19  ;;  %v1360_v24 = vpack.c.bf16 %v781_v22, %v779_v21  ;;  %v789_v34 = vld [vmem:[%s1675_s22 + $0xb8] sm:$0xff]  ;;  %v786_v37 = vld [vmem:[%s1675_s22 + $0xa0] sm:$0xff]  ;;  %v792_v44 = vld [vmem:[%s1675_s22 + $0xd0] sm:$0xff] }
  0x40   : > { %1267 = vmatpush1.bf16.msra.mxu0 %v1266_v55  ;;  %v674_v55 = vld [vmem:[%s1566_s19 + $0x1c8] sm:$0xff]  ;;  %v790_v43 = vld [vmem:[%s1675_s22 + $0xc0] sm:$0xff]  ;;  %v796_v50 = vld [vmem:[%s1675_s22 + $0xf0] sm:$0xff] }
  0x41   : > { %1269 = vmatprep.subr.bf16.mxu0 %v1268_v56  ;;  %v676_v56 = vld [vmem:[%s1566_s19 + $0x1d8] sm:$0xff]  ;;  %v1374_v47 = vpack.c.bf16 %v792_v44, %v790_v43  ;;  %v794_v49 = vld [vmem:[%s1675_s22 + $0xe0] sm:$0xff]  ;;  %v804_v61 = vld [vmem:[%s1675_s22 + $0x130] sm:$0xff] }
  0x42   : > { %1323 = vmatpush1.bf16.msra.mxu1 %v1322_v32  ;;  %v784_v32 = vld [vmem:[%s1675_s22 + $0x90] sm:$0xff]  ;;  %v1378_v53 = vpack.c.bf16 %v796_v50, %v794_v49  ;;  %v807_v62 = vld [vmem:[%s1675_s22 + $0x148] sm:$0xff]  ;;  %v813_v6 = vld [vmem:[%s1675_s22 + $0x178] sm:$0xff] }
  0x43   : > { %1325 = vmatprep.subr.bf16.mxu1 %v1324_v33  ;;  %v787_v33 = vld [vmem:[%s1675_s22 + $0xa8] sm:$0xff]  ;;  %v1366_v35 = vpack.c.bf16 %v784_v32, %v782_v31  ;;  %v810_v9 = vld [vmem:[%s1675_s22 + $0x160] sm:$0xff]  ;;  %v812_v10 = vld [vmem:[%s1675_s22 + $0x170] sm:$0xff] }
  0x44   : > { %1271 = vmatpush1.bf16.msra.mxu0 %v1270_v4  ;;  %v767_v4 = vld [vmem:[%s1675_s22 + $0x8] sm:$0xff]  ;;  %v1368_v36 = vpack.c.bf16 %v789_v34, %v787_v33  ;;  %v818_v21 = vld [vmem:[%s1675_s22 + $0x1a0] sm:$0xff]  ;;  %v820_v22 = vld [vmem:[%s1675_s22 + $0x1b0] sm:$0xff] }
  0x45   : > { %1273 = vmatprep.subr.bf16.mxu0 %v1272_v5  ;;  %v769_v5 = vld [vmem:[%s1675_s22 + $0x18] sm:$0xff]  ;;  %v827_v43 = vld [vmem:[%s1675_s22 + $0x1e8] sm:$0xff]  ;;  %v931_v49 = vld [vmem:[%s1758_s11 + $0x80] sm:$0xff] }
  0x46   : > { %1327 = vmatpush1.bf16.msra.mxu1 %v1326_v39  ;;  %v1348_v7 = vpack.c.bf16 %v769_v5, %v767_v4  ;;  %v791_v39 = vld [vmem:[%s1675_s22 + $0xc8] sm:$0xff]  ;;  %v808_v4 = vld [vmem:[%s1675_s22 + $0x150] sm:$0xff]  ;;  %v829_v44 = vld [vmem:[%s1675_s22 + $0x1f8] sm:$0xff] }
  0x47   : > { %1329 = vmatprep.subr.bf16.mxu1 %v1328_v40  ;;  %v793_v40 = vld [vmem:[%s1675_s22 + $0xd8] sm:$0xff]  ;;  %v811_v5 = vld [vmem:[%s1675_s22 + $0x168] sm:$0xff] }
  0x48   : > { %1275 = vmatpush1.bf16.msra.mxu0 %v1274_v16  ;;  %v777_v16 = vld [vmem:[%s1675_s22 + $0x58] sm:$0xff]  ;;  %v1372_v42 = vpack.c.bf16 %v793_v40, %v791_v39  ;;  %v1392_v8 = vpack.c.bf16 %v813_v6, %v811_v5  ;;  %v822_v40 = vld [vmem:[%s1675_s22 + $0x1c0] sm:$0xff]  ;;  %v932_v50 = vld [vmem:[%s1758_s11 + $0x88] sm:$0xff] }
  0x49   : > { %1277 = vmatprep.subr.bf16.mxu0 %v1276_v17  ;;  %v1354_v17 = vpack.c.bf16 %v772_v14, %v770_v13  ;;  %v1356_v18 = vpack.c.bf16 %v777_v16, %v775_v15  ;;  %v1394_v13 = vpack.c.bf16 %v812_v10, %v810_v9  ;;  %v814_v15 = vld [vmem:[%s1675_s22 + $0x180] sm:$0xff]  ;;  %v816_v16 = vld [vmem:[%s1675_s22 + $0x190] sm:$0xff]  ;;  %v940_v9 = vld [vmem:[%s1758_s11 + $0xc8] sm:$0xff] }
  0x4a   : > { %1331 = vmatpush1.bf16.msra.mxu1 %v1330_v45  ;;  %v795_v45 = vld [vmem:[%s1675_s22 + $0xe8] sm:$0xff]  ;;  %v1398_v19 = vpack.c.bf16 %v816_v16, %v814_v15  ;;  %v921_v6 = vld [vmem:[%s1758_s11 + $0x30] sm:$0xff]  ;;  %v942_v15 = vld [vmem:[%s1758_s11 + $0xd8] sm:$0xff] }
  0x4b   : > { %1333 = vmatprep.subr.bf16.mxu1 %v1332_v46  ;;  %v797_v46 = vld [vmem:[%s1675_s22 + $0xf8] sm:$0xff] }
  0x4c   : > { %1279 = vmatpush1.bf16.msra.mxu0 %v1278_v28  ;;  %v785_v28 = vld [vmem:[%s1675_s22 + $0x98] sm:$0xff]  ;;  %v1376_v48 = vpack.c.bf16 %v797_v46, %v795_v45  ;;  %v1408_v45 = vpack.c.bf16 %v829_v44, %v827_v43  ;;  %v826_v46 = vld [vmem:[%s1675_s22 + $0x1e0] sm:$0xff] }
  0x4d   : > { %1281 = vmatprep.subr.bf16.mxu0 %v1280_v29  ;;  %v1362_v29 = vpack.c.bf16 %v780_v26, %v778_v25  ;;  %v1364_v30 = vpack.c.bf16 %v785_v28, %v783_v27  ;;  %v1402_v25 = vpack.c.bf16 %v820_v22, %v818_v21  ;;  %v523_v27 = vlaneseq  ;;  %v944_v21 = vld [vmem:[%s1758_s11 + $0xe8] sm:$0xff]  ;;  %v830_v44 = vld [vmem:[%s443_s17] sm:$0x3] }
  0x4e   : > { %1335 = vmatpush1.bf16.msra.mxu1 %v1334_v51  ;;  %v799_v51 = vld [vmem:[%s1675_s22 + $0x108] sm:$0xff] }
  0x4f   : > { %1337 = vmatprep.subr.bf16.mxu1 %v1336_v52  ;;  %v801_v52 = vld [vmem:[%s1675_s22 + $0x118] sm:$0xff]  ;;  %v524_v28 = vshrl.u32 %v523_v27, 7 }
  0x50   : > { %1283 = vmatpush1.bf16.msra.mxu0 %v1282_v38  ;;  %v788_v38 = vld [vmem:[%s1675_s22 + $0xb0] sm:$0xff]  ;;  %v1380_v54 = vpack.c.bf16 %v801_v52, %v799_v51  ;;  %v915_v51 = vld [vmem:[%s1758_s11] sm:$0xff]  ;;  %v1412_v52 = vpack.c.bf16 %v932_v50, %v931_v49 }
  0x51   : > { %1349 = vmatprep.subr.bf16.mxu0 %v1348_v7  ;;  %v1370_v41 = vpack.c.bf16 %v788_v38, %v786_v37  ;;  %v1744_v31 = vsub.s32 1, %v524_v28 }
  0x52   : > { %1339 = vmatpush1.bf16.msra.mxu1 %v1338_v57  ;;  %v803_v57 = vld [vmem:[%s1675_s22 + $0x128] sm:$0xff] }
  0x53   : > { %609 = vmatmul.mubr.f32.vlgmr.msra.gmra.mrb[0].mxu0 %v1521_v0  ;;  %v1340_v0 = vpack.c.bf16 %v676_v56, %v674_v55  ;;  %v798_v55 = vld [vmem:[%s1675_s22 + $0x100] sm:$0xff]  ;;  %v800_v56 = vld [vmem:[%s1675_s22 + $0x110] sm:$0xff] }
  0x54   : > { %1351 = vmatpush1.bf16.msra.mxu0 %v1350_v11  ;;  %v1382_v58 = vpack.c.bf16 %v800_v56, %v798_v55  ;;  %v815_v11 = vld [vmem:[%s1675_s22 + $0x188] sm:$0xff]  ;;  %v934_v55 = vld [vmem:[%s1758_s11 + $0x98] sm:$0xff] }
  0x55   : > { %1341 = vmatprep.subr.bf16.mxu1 %v1340_v0  ;;  %1353 = vmatprep.subr.bf16.mxu0 %v1352_v12  ;;  %v805_v0 = vld [vmem:[%s1675_s22 + $0x138] sm:$0xff] }
  0x56   : > { %1343 = vmatpush1.bf16.msra.mxu1 %v1342_v60  ;;  %v1384_v59 = vpack.c.bf16 %v805_v0, %v803_v57  ;;  %v802_v60 = vld [vmem:[%s1675_s22 + $0x120] sm:$0xff]  ;;  %v817_v12 = vld [vmem:[%s1675_s22 + $0x198] sm:$0xff]  ;;  %v917_v0 = vld [vmem:[%s1758_s11 + $0x10] sm:$0xff] }
  0x57   : > { %1345 = vmatprep.subr.bf16.mxu1 %v1344_v63  ;;  %v809_v63 = vld [vmem:[%s1675_s22 + $0x158] sm:$0xff]  ;;  %v1386_v1 = vpack.c.bf16 %v804_v61, %v802_v60  ;;  %v1396_v14 = vpack.c.bf16 %v817_v12, %v815_v11  ;;  %v936_v60 = vld [vmem:[%s1758_s11 + $0xa8] sm:$0xff]  ;;  %v923_v12 = vld [vmem:[%s1758_s11 + $0x40] sm:$0xff] }
  0x58   : > { %1355 = vmatpush1.bf16.msra.mxu0 %v1354_v17  ;;  %v1388_v2 = vpack.c.bf16 %v809_v63, %v807_v62  ;;  %v819_v17 = vld [vmem:[%s1675_s22 + $0x1a8] sm:$0xff]  ;;  %v919_v63 = vld [vmem:[%s1758_s11 + $0x20] sm:$0xff] }
  0x59   : > { %1357 = vmatprep.subr.bf16.mxu0 %v1356_v18  ;;  %v821_v18 = vld [vmem:[%s1675_s22 + $0x1b8] sm:$0xff] }
  0x5a   : > { %1347 = vmatpush1.bf16.msra.mxu1 %v1346_v3  ;;  %v806_v3 = vld [vmem:[%s1675_s22 + $0x140] sm:$0xff]  ;;  %v1400_v20 = vpack.c.bf16 %v821_v18, %v819_v17  ;;  %v925_v18 = vld [vmem:[%s1758_s11 + $0x50] sm:$0xff] }
  0x5b   : > { %v1390_v7 = vpack.c.bf16 %v808_v4, %v806_v3  ;;  %1413 = vmatprep.subr.bf16.mxu1 %v1412_v52  ;;  %v938_v3 = vld [vmem:[%s1758_s11 + $0xb8] sm:$0xff] }
  0x5c   : > { %1359 = vmatpush1.bf16.msra.mxu0 %v1358_v23  ;;  %v823_v23 = vld [vmem:[%s1675_s22 + $0x1c8] sm:$0xff] }
  0x5d   : > { %1361 = vmatprep.subr.bf16.mxu0 %v1360_v24  ;;  %v825_v24 = vld [vmem:[%s1675_s22 + $0x1d8] sm:$0xff] }
  0x5e   : > { %v1404_v26 = vpack.c.bf16 %v825_v24, %v823_v23  ;;  %v681_v24 = vld [vmem:[%s434_s14] sm:$0x3] }
  0x60   : > { %1363 = vmatpush1.bf16.msra.mxu0 %v1362_v29  ;;  %v1742_v29 = vsub.s32 0, %v524_v28 }
  0x61   : > { %1365 = vmatprep.subr.bf16.mxu0 %v1364_v30  ;;  %v521_v30 = vld [vmem:[%s425_s26] sm:$0x3] }
  0x62   : > { %v526_v32 = vrot.slane %v521_v30, %v1742_v29  ;;  %v530_v33 = vrot.slane %v521_v30, %v1744_v31 }
  0x64   : > { %1367 = vmatpush1.bf16.msra.mxu0 %v1366_v35 }
  0x65   : > { %1369 = vmatprep.subr.bf16.mxu0 %v1368_v36 }
  0x68   : > { %1371 = vmatpush1.bf16.msra.mxu0 %v1370_v41  ;;  %v824_v41 = vld [vmem:[%s1675_s22 + $0x1d0] sm:$0xff] }
  0x69   : > { %1373 = vmatprep.subr.bf16.mxu0 %v1372_v42  ;;  %v1406_v42 = vpack.c.bf16 %v824_v41, %v822_v40  ;;  %v929_v41 = vld [vmem:[%s1758_s11 + $0x70] sm:$0xff] }
  0x6c   : > { %1375 = vmatpush1.bf16.msra.mxu0 %v1374_v47  ;;  %v828_v47 = vld [vmem:[%s1675_s22 + $0x1f0] sm:$0xff] }
  0x6d   : > { %1377 = vmatprep.subr.bf16.mxu0 %v1376_v48  ;;  %v1410_v48 = vpack.c.bf16 %v828_v47, %v826_v46  ;;  %v839_v46 = vrot.slane %v830_v44, %v1744_v31 }
  0x70   : > { %1379 = vmatpush1.bf16.msra.mxu0 %v1378_v53  ;;  %v916_v53 = vld [vmem:[%s1758_s11 + $0x8] sm:$0xff] }
  0x71   : > { %1381 = vmatprep.subr.bf16.mxu0 %v1380_v54  ;;  %v933_v54 = vld [vmem:[%s1758_s11 + $0x90] sm:$0xff]  ;;  %v1414_v56 = vpack.c.bf16 %v916_v53, %v915_v51 }
  0x72   : > { %v1416_v57 = vpack.c.bf16 %v934_v55, %v933_v54  ;;  %v1178_v54 = vld [vmem:[%s451_s20] ss:$0 sm:$0xff] }
  0x74   : > { %1383 = vmatpush1.bf16.msra.mxu0 %v1382_v58  ;;  %v918_v58 = vld [vmem:[%s1758_s11 + $0x18] sm:$0xff] }
  0x75   : > { %1385 = vmatprep.subr.bf16.mxu0 %v1384_v59  ;;  %v935_v59 = vld [vmem:[%s1758_s11 + $0xa0] sm:$0xff]  ;;  %v1418_v61 = vpack.c.bf16 %v918_v58, %v917_v0 }
  0x76   : > { %v1420_v62 = vpack.c.bf16 %v936_v60, %v935_v59 }
  0x78   : > { %1387 = vmatpush1.bf16.msra.mxu0 %v1386_v1  ;;  %v920_v1 = vld [vmem:[%s1758_s11 + $0x28] sm:$0xff] }
  0x79   : > { %1389 = vmatprep.subr.bf16.mxu0 %v1388_v2  ;;  %v937_v2 = vld [vmem:[%s1758_s11 + $0xb0] sm:$0xff]  ;;  %v1422_v4 = vpack.c.bf16 %v920_v1, %v919_v63 }
  0x7a   : > { %v1424_v5 = vpack.c.bf16 %v938_v3, %v937_v2 }
  0x7c   : > { %1391 = vmatpush1.bf16.msra.mxu0 %v1390_v7  ;;  %v922_v7 = vld [vmem:[%s1758_s11 + $0x38] sm:$0xff] }
  0x7d   : > { %1393 = vmatprep.subr.bf16.mxu0 %v1392_v8  ;;  %v939_v8 = vld [vmem:[%s1758_s11 + $0xc0] sm:$0xff]  ;;  %v1426_v10 = vpack.c.bf16 %v922_v7, %v921_v6 }
  0x7e   : > { %v1428_v11 = vpack.c.bf16 %v940_v9, %v939_v8 }
  0x80   : > { %1395 = vmatpush1.bf16.msra.mxu0 %v1394_v13  ;;  %v924_v13 = vld [vmem:[%s1758_s11 + $0x48] sm:$0xff] }
  0x81   : > { %1397 = vmatprep.subr.bf16.mxu0 %v1396_v14  ;;  %v941_v14 = vld [vmem:[%s1758_s11 + $0xd0] sm:$0xff]  ;;  %v1430_v16 = vpack.c.bf16 %v924_v13, %v923_v12 }
  0x82   : > { %v1432_v17 = vpack.c.bf16 %v942_v15, %v941_v14 }
  0x84   : > { %1399 = vmatpush1.bf16.msra.mxu0 %v1398_v19  ;;  %v926_v19 = vld [vmem:[%s1758_s11 + $0x58] sm:$0xff] }
  0x85   : > { %1401 = vmatprep.subr.bf16.mxu0 %v1400_v20  ;;  %v943_v20 = vld [vmem:[%s1758_s11 + $0xe0] sm:$0xff]  ;;  %v1434_v22 = vpack.c.bf16 %v926_v19, %v925_v18 }
  0x86   : > { %v1436_v23 = vpack.c.bf16 %v944_v21, %v943_v20 }
  0x88   : > { %1403 = vmatpush1.bf16.msra.mxu0 %v1402_v25  ;;  %v686_v25 = vrot.slane %v681_v24, %v1742_v29 }
  0x89   : > { %1405 = vmatprep.subr.bf16.mxu0 %v1404_v26  ;;  %v690_v26 = vrot.slane %v681_v24, %v1744_v31 }
  0x8c   : > { %1407 = vmatpush1.bf16.msra.mxu0 %v1406_v42  ;;  %v930_v42 = vld [vmem:[%s1758_s11 + $0x78] sm:$0xff] }
  0x8d   : > { %1409 = vmatprep.subr.bf16.mxu0 %v1408_v45  ;;  %v1442_v43 = vpack.c.bf16 %v930_v42, %v929_v41  ;;  %v835_v45 = vrot.slane %v830_v44, %v1742_v29 }
  0x90   : > { %1411 = vmatpush1.bf16.msra.mxu0 %v1410_v48 }
 0x126   : > { %v610_v34 = vpop.f32.mrb[0].mxu0 }
 0x127   : > { %v611_v35 = vadd.f32 %v610_v34, %v526_v32  ;;  %v612_v36 = vpop.f32.mrb[1].mxu0 }
 0x128   : > { %v613_v37 = vadd.f32 %v612_v36, %v530_v33  ;;  %v928_v36 = vld [vmem:[%s1758_s11 + $0x68] sm:$0xff] }
 0x129   : > { %v615_v39 = vmax.f32 %v611_v35, 0.0  ;;  %v927_v35 = vld [vmem:[%s1758_s11 + $0x60] sm:$0xff] }
 0x12a   : > { %v616_v38 = vmax.f32 %v613_v37, 0.0  ;;  %v1438_v37 = vpack.c.bf16 %v928_v36, %v927_v35 }
 0x12c   : > { %757 = vmatprep.mubr.f32.mxu1 %v616_v38  ;;  %v945_v38 = vld [vmem:[%s1758_s11 + $0xf0] sm:$0xff] }
 0x12d   : > { %758 = vmatmul.mubr.f32.vlgmr.msra.gmra.mrb[0].mxu1 %v615_v39  ;;  %v946_v39 = vld [vmem:[%s1758_s11 + $0xf8] sm:$0xff] }
 0x12e   : > { %1415 = vmatpush3.bf16.msra.mxu1 %v1414_v56  ;;  %v1440_v40 = vpack.c.bf16 %v946_v39, %v945_v38 }
 0x12f   : > { %1417 = vmatprep.subr.bf16.mxu1 %v1416_v57 }
 0x132   : > { %1419 = vmatpush3.bf16.msra.mxu1 %v1418_v61 }
 0x133   : > { %1421 = vmatprep.subr.bf16.mxu1 %v1420_v62 }
 0x136   : > { %1423 = vmatpush3.bf16.msra.mxu1 %v1422_v4 }
 0x137   : > { %1425 = vmatprep.subr.bf16.mxu1 %v1424_v5 }
 0x13a   : > { %1427 = vmatpush3.bf16.msra.mxu1 %v1426_v10 }
 0x13b   : > { %1429 = vmatprep.subr.bf16.mxu1 %v1428_v11 }
 0x13e   : > { %1431 = vmatpush3.bf16.msra.mxu1 %v1430_v16 }
 0x13f   : > { %1433 = vmatprep.subr.bf16.mxu1 %v1432_v17 }
 0x142   : > { %1435 = vmatpush3.bf16.msra.mxu1 %v1434_v22 }
 0x143   : > { %1437 = vmatprep.subr.bf16.mxu1 %v1436_v23 }
 0x146   : > { %1439 = vmatpush3.bf16.msra.mxu1 %v1438_v37 }
 0x147   : > { %1441 = vmatprep.subr.bf16.mxu1 %v1440_v40 }
 0x14a   : > { %1443 = vmatpush3.bf16.msra.mxu1 %v1442_v43 }
 0x200   : > { %v759_v27 = vpop.f32.mrb[0].mxu1 }
 0x201   : > { %v760_v28 = vadd.f32 %v759_v27, %v686_v25  ;;  %v761_v30 = vpop.f32.mrb[1].mxu1 }
 0x202   : > { %v762_v32 = vadd.f32 %v761_v30, %v690_v26 }
 0x203   : > { %v764_v34 = vmax.f32 %v760_v28, 0.0 }
 0x204   : > { %v765_v33 = vmax.f32 %v762_v32, 0.0 }
 0x206   : > { %906 = vmatprep.mubr.f32.mxu0 %v765_v33 }
 0x207   : > { %907 = vmatmul.mubr.f32.vlgmr.msra.gmra.mrb[2].mxu0 %v764_v34 }
 0x2da   : > { %v908_v47 = vpop.f32.mrb[2].mxu0 }
 0x2db   : > { %v909_v48 = vadd.f32 %v908_v47, %v835_v45  ;;  %v910_v49 = vpop.f32.mrb[3].mxu0 }
 0x2dc   : > { %v911_v50 = vadd.f32 %v910_v49, %v839_v46 }
 0x2dd   : > { %v913_v52 = vmax.f32 %v909_v48, 0.0 }
 0x2de   : > { %v914_v51 = vmax.f32 %v911_v50, 0.0 }
 0x2e0   : > { %1018 = vmatprep.mubr.f32.mxu1 %v914_v51 }
 0x2e1   : > { %1019 = vmatmul.mubr.f32.vlgmr.msra.gmra.mrb[2].mxu1 %v913_v52 }
 0x3b4   : > { %v1217_v53 = vpop.f32.mrb[2].mxu1 }
 0x3b5   : > { %v1218_v55 = vpop.f32.mrb[3].mxu1 }
 0x3b6   : > { %v1219_v56 = vadd.f32 %v1218_v55, %v1217_v53 }
 0x3b8   : > { %v1021_v29 = vadd.f32 %v1219_v56, %v1178_v54 }
 0x3ba   : > { %1025 = vst.msk [vmem:[%s455_s24] sm:$0x3] %vm1024_vm0, %v1021_v29 }
 0x3bb PF: > { %s19_s30 = sadd.s32 1, %s1458_s30  }
 0x3bc   : > { %p16_p4 = scmp.ge.s32.totalorder %s19_s30, 4  }
 0x3be   :  { %18 = sbr.rel (!%p16_p4) target bundleno = 1 (0x1), region = 107 }

</bundles_post_ra>
